<compile_context>
chip_gen: v6e
topology: v6e:2x2x1
jax: 0.10.0
libtpu: 0.0.40
codegen_flags: <defaults>
</compile_context>

<pallas_src>
import jax
import jax.numpy as jnp
from jax.experimental import pallas as pl
from jax.experimental.pallas import tpu as pltpu

PI = 3.14159  # matches the literal hard-coded in the PyTorch module

H_DIM = 768
EMB_DIM = 32
HID_DIM = 512
OUT_DIM = 2
TB = 256  # batch tile: fills the 256-wide MXU M dim on v6e/v7x, multiple of 8


def pre_direction_kernel(cd_ref, h_ref,
                         v_sin_ref, v_cos_ref, b1f_ref,
                         w1_h_ref, w2_ref, b2_ref,
                         out_ref):
    # cd_ref: [TB, 1] current direction in degrees (f32)
    ang = cd_ref[...] * (PI / 180.0)                       # [TB, 1]
    s = jnp.sin(ang)                                       # [TB, 1]
    c = jnp.cos(ang)                                       # [TB, 1]

    # Linear(768+32, 512) with the concat + embedding Linear folded:
    #   z = h @ w1_h + s * (w_sin @ w1_emb) + c * (w_cos @ w1_emb) + b1'
    # bf16 MXU matmul, f32 accumulation.
    h_bf = h_ref[...].astype(jnp.bfloat16)                 # VPU cast (in-kernel)
    z = jnp.dot(h_bf, w1_h_ref[...],
                preferred_element_type=jnp.float32)        # [TB, 512] (MXU)
    z = z + s * v_sin_ref[...] + c * v_cos_ref[...] + b1f_ref[...]  # f32 VPU FMAs
    z = jnp.maximum(z, 0.0)                                # ReLU (Dropout = id)

    # direction_prediction Linear(512, 2)  (bf16 MXU, f32 accumulate + bias)
    y = jnp.dot(z.astype(jnp.bfloat16), w2_ref[...],
                preferred_element_type=jnp.float32) + b2_ref[...]
    out_ref[...] = y.astype(out_ref.dtype)                 # [TB, 2]


def fold_params(params):
    """One-time parameter preparation (hoisted out of the per-call path).

    Folds the 2->32 embedding Linear and the concat into the first big Linear:
        v_sin = w_emb[0] @ w1[:32]      # [1,512]
        v_cos = w_emb[1] @ w1[:32]      # [1,512]
        b1'   = b_emb   @ w1[:32] + b1  # [1,512]
    and pre-casts the MXU weights to bf16 so their HBM-resident copies are bf16.
    """
    w_emb, b_emb, w1, b1, w2, b2 = params
    w1_emb = w1[:EMB_DIM, :]                     # [32, 512]
    w1_h = w1[EMB_DIM:, :]                       # [768, 512]
    v_sin = (w_emb[0:1, :] @ w1_emb).astype(jnp.float32)   # [1, 512]
    v_cos = (w_emb[1:2, :] @ w1_emb).astype(jnp.float32)   # [1, 512]
    b1f = (b_emb @ w1_emb + b1).astype(jnp.float32)        # [1, 512]
    return (v_sin, v_cos, b1f,
            w1_h.astype(jnp.bfloat16),           # [768, 512] bf16
            w2.astype(jnp.bfloat16),             # [512, 2]   bf16
            b2.astype(jnp.float32))              # [1, 2]


@jax.jit
def pre_direction_forward(h, current_direct, folded_params):
    """h: [B, 768], current_direct: [B, 1], folded_params from fold_params()."""
    v_sin, v_cos, b1f, w1_h, w2, b2 = folded_params
    B = h.shape[0]

    # No wrapper-side padding: Pallas masks the partial last block.
    grid = (pl.cdiv(B, TB),)

    cd_spec = pl.BlockSpec((TB, 1), lambda i: (i, 0))
    h_spec = pl.BlockSpec((TB, H_DIM), lambda i: (i, 0))
    out_spec = pl.BlockSpec((TB, OUT_DIM), lambda i: (i, 0))
    # weights are small -> keep the whole array resident for every grid step
    full = lambda shp: pl.BlockSpec(shp, lambda i: (0, 0))

    out = pl.pallas_call(
        pre_direction_kernel,
        out_shape=jax.ShapeDtypeStruct((B, OUT_DIM), jnp.float32),
        grid_spec=pltpu.PrefetchScalarGridSpec(
            num_scalar_prefetch=0,
            grid=grid,
            in_specs=[
                cd_spec, h_spec,
                full((1, HID_DIM)), full((1, HID_DIM)), full((1, HID_DIM)),
                full((H_DIM, HID_DIM)),
                full((HID_DIM, OUT_DIM)), full((1, OUT_DIM)),
            ],
            out_specs=out_spec,
        ),
        compiler_params=pltpu.CompilerParams(
            dimension_semantics=("parallel",)),
    )(current_direct, h, v_sin, v_cos, b1f, w1_h, w2, b2)

    return out


def init_params(key):
    """Deterministic synthetic parameters (PyTorch-Linear-style uniform init)."""
    ks = jax.random.split(key, 6)

    def unif(k, shape, fan_in):
        bound = 1.0 / jnp.sqrt(float(fan_in))
        return jax.random.uniform(k, shape, jnp.float32, -bound, bound)

    # embedding: Linear(2, 32), stored as [in, out]
    w_emb = unif(ks[0], (2, EMB_DIM), 2)
    b_emb = unif(ks[1], (1, EMB_DIM), 2)

    # linears[0]: Linear(800, 512)
    w1 = unif(ks[2], (EMB_DIM + H_DIM, HID_DIM), EMB_DIM + H_DIM)
    b1 = unif(ks[3], (1, HID_DIM), EMB_DIM + H_DIM)

    # direction_prediction: Linear(512, 2)
    w2 = unif(ks[4], (HID_DIM, OUT_DIM), HID_DIM)
    b2 = unif(ks[5], (1, OUT_DIM), HID_DIM)

    return (w_emb, b_emb, w1, b1, w2, b2)


def reference_forward(h, current_direct, params):
    """Pure-JAX f32 reference of the PyTorch forward (Dropout in eval mode)."""
    w_emb, b_emb, w1, b1, w2, b2 = params
    ang = current_direct / 180.0 * PI
    direct_embeds = jnp.concatenate([jnp.sin(ang), jnp.cos(ang)], axis=1)  # [B,2]
    e = direct_embeds @ w_emb + b_emb
    x = jnp.concatenate([e, h], axis=1)
    z = jnp.maximum(x @ w1 + b1, 0.0)
    return z @ w2 + b2


if __name__ == "__main__":
    key = jax.random.PRNGKey(0)
    k_h, k_cd, k_p = jax.random.split(key, 3)

    B = 8  # small example batch; kernel masks the partial 256-row tile itself
    h = jax.random.normal(k_h, (B, H_DIM), jnp.float32)
    current_direct = jax.random.uniform(k_cd, (B, 1), jnp.float32, 0.0, 360.0)
    params = init_params(k_p)
    folded = fold_params(params)   # one-time fold + bf16 weight cast

    out = pre_direction_forward(h, current_direct, folded)
    out = jax.block_until_ready(out)

    ref = reference_forward(h, current_direct, params)
    assert out.shape == (B, OUT_DIM)
    assert out.dtype == jnp.float32
    # bf16 MXU operands (f32 accumulation) -> relaxed tolerance vs f32 reference
    max_err = float(jnp.max(jnp.abs(out - ref)))
    assert jnp.allclose(out, ref, atol=5e-2, rtol=5e-2), max_err
    print("KERNEL_OK")
</pallas_src>

<mosaic_0001>
module attributes {stable_mosaic.version = 11 : i64} {
  func.func @pre_direction_kernel(%arg0: i32, %arg1: memref<256x1xf32, #tpu.memory_space<vmem>>, %arg2: memref<256x768xf32, #tpu.memory_space<vmem>>, %arg3: memref<1x512xf32, #tpu.memory_space<vmem>>, %arg4: memref<1x512xf32, #tpu.memory_space<vmem>>, %arg5: memref<1x512xf32, #tpu.memory_space<vmem>>, %arg6: memref<768x512xbf16, #tpu.memory_space<vmem>>, %arg7: memref<512x2xbf16, #tpu.memory_space<vmem>>, %arg8: memref<1x2xf32, #tpu.memory_space<vmem>>, %arg9: memref<256x2xf32, #tpu.memory_space<vmem>>) attributes {dimension_semantics = [#tpu.dimension_semantics<parallel>], iteration_bounds = array<i64: 1>, scalar_prefetch = 0 : i64, scratch_operands = 0 : i64, tpu.core_type = #tpu.core_type<tc>, window_params = [{transform_indices = @transform_0, window_bounds = array<i64: 256, 1>}, {transform_indices = @transform_1, window_bounds = array<i64: 256, 768>}, {pipeline_mode = #tpu.pipeline_mode<synchronous>, transform_indices = @transform_2, window_bounds = array<i64: 1, 512>}, {pipeline_mode = #tpu.pipeline_mode<synchronous>, transform_indices = @transform_3, window_bounds = array<i64: 1, 512>}, {pipeline_mode = #tpu.pipeline_mode<synchronous>, transform_indices = @transform_4, window_bounds = array<i64: 1, 512>}, {pipeline_mode = #tpu.pipeline_mode<synchronous>, transform_indices = @transform_5, window_bounds = array<i64: 768, 512>}, {pipeline_mode = #tpu.pipeline_mode<synchronous>, transform_indices = @transform_6, window_bounds = array<i64: 512, 2>}, {pipeline_mode = #tpu.pipeline_mode<synchronous>, transform_indices = @transform_7, window_bounds = array<i64: 1, 2>}, {transform_indices = @transform_8, window_bounds = array<i64: 256, 2>}]} {
    %c0 = arith.constant 0 : index
    %c0_0 = arith.constant 0 : index
    %0 = vector.load %arg1[%c0, %c0_0] : memref<256x1xf32, #tpu.memory_space<vmem>>, vector<256x1xf32>
    %cst = arith.constant 0.0174532775 : f32
    %1 = vector.broadcast %cst : f32 to vector<256x1xf32>
    %2 = arith.mulf %0, %1 : vector<256x1xf32>
    %3 = math.sin %2 : vector<256x1xf32>
    %4 = math.cos %2 : vector<256x1xf32>
    %c0_1 = arith.constant 0 : index
    %c0_2 = arith.constant 0 : index
    %5 = vector.load %arg2[%c0_1, %c0_2] : memref<256x768xf32, #tpu.memory_space<vmem>>, vector<256x768xf32>
    %6 = arith.truncf %5 : vector<256x768xf32> to vector<256x768xbf16>
    %c0_3 = arith.constant 0 : index
    %c0_4 = arith.constant 0 : index
    %7 = vector.load %arg6[%c0_3, %c0_4] : memref<768x512xbf16, #tpu.memory_space<vmem>>, vector<768x512xbf16>
    %cst_5 = arith.constant dense<0.000000e+00> : vector<256x512xf32>
    %8 = tpu.matmul %6, %7, %cst_5 {dimension_numbers = #tpu.dot_dimension_numbers<[1], [0], [0], [1], [0, 0, 1, 1], [], []>} : vector<256x768xbf16>, vector<768x512xbf16>, vector<256x512xf32> -> vector<256x512xf32>
    %c0_6 = arith.constant 0 : index
    %c0_7 = arith.constant 0 : index
    %9 = vector.load %arg3[%c0_6, %c0_7] : memref<1x512xf32, #tpu.memory_space<vmem>>, vector<1x512xf32>
    %10 = vector.broadcast %3 : vector<256x1xf32> to vector<256x512xf32>
    %11 = vector.broadcast %9 : vector<1x512xf32> to vector<256x512xf32>
    %12 = arith.mulf %10, %11 : vector<256x512xf32>
    %13 = arith.addf %8, %12 : vector<256x512xf32>
    %c0_8 = arith.constant 0 : index
    %c0_9 = arith.constant 0 : index
    %14 = vector.load %arg4[%c0_8, %c0_9] : memref<1x512xf32, #tpu.memory_space<vmem>>, vector<1x512xf32>
    %15 = vector.broadcast %4 : vector<256x1xf32> to vector<256x512xf32>
    %16 = vector.broadcast %14 : vector<1x512xf32> to vector<256x512xf32>
    %17 = arith.mulf %15, %16 : vector<256x512xf32>
    %18 = arith.addf %13, %17 : vector<256x512xf32>
    %c0_10 = arith.constant 0 : index
    %c0_11 = arith.constant 0 : index
    %19 = vector.load %arg5[%c0_10, %c0_11] : memref<1x512xf32, #tpu.memory_space<vmem>>, vector<1x512xf32>
    %20 = vector.broadcast %19 : vector<1x512xf32> to vector<256x512xf32>
    %21 = arith.addf %18, %20 : vector<256x512xf32>
    %cst_12 = arith.constant 0.000000e+00 : f32
    %22 = vector.broadcast %cst_12 : f32 to vector<256x512xf32>
    %23 = arith.maximumf %21, %22 : vector<256x512xf32>
    %24 = arith.truncf %23 : vector<256x512xf32> to vector<256x512xbf16>
    %c0_13 = arith.constant 0 : index
    %c0_14 = arith.constant 0 : index
    %25 = vector.load %arg7[%c0_13, %c0_14] : memref<512x2xbf16, #tpu.memory_space<vmem>>, vector<512x2xbf16>
    %cst_15 = arith.constant dense<0.000000e+00> : vector<256x2xf32>
    %26 = tpu.matmul %24, %25, %cst_15 {dimension_numbers = #tpu.dot_dimension_numbers<[1], [0], [0], [1], [0, 0, 1, 1], [], []>} : vector<256x512xbf16>, vector<512x2xbf16>, vector<256x2xf32> -> vector<256x2xf32>
    %c0_16 = arith.constant 0 : index
    %c0_17 = arith.constant 0 : index
    %27 = vector.load %arg8[%c0_16, %c0_17] : memref<1x2xf32, #tpu.memory_space<vmem>>, vector<1x2xf32>
    %28 = vector.broadcast %27 : vector<1x2xf32> to vector<256x2xf32>
    %29 = arith.addf %26, %28 : vector<256x2xf32>
    %c0_18 = arith.constant 0 : index
    %c0_19 = arith.constant 0 : index
    %30 = vector.load %arg9[%c0_18, %c0_19] : memref<256x2xf32, #tpu.memory_space<vmem>>, vector<256x2xf32>
    tpu.vector_store %arg9[%c0_18, %c0_19], %29 {strides = array<i32>} : memref<256x2xf32, #tpu.memory_space<vmem>>, vector<256x2xf32>,
    return
  }
  func.func @transform_0(%arg0: i32) -> (i32, i32) {
    %c0_i32 = arith.constant 0 : i32
    %c0_i32_0 = arith.constant 0 : i32
    return %arg0, %c0_i32 : i32, i32
  }
  func.func @transform_1(%arg0: i32) -> (i32, i32) {
    %c0_i32 = arith.constant 0 : i32
    %c0_i32_0 = arith.constant 0 : i32
    return %arg0, %c0_i32 : i32, i32
  }
  func.func @transform_2(%arg0: i32) -> (i32, i32) {
    %c0_i32 = arith.constant 0 : i32
    %c0_i32_0 = arith.constant 0 : i32
    %c0_i32_1 = arith.constant 0 : i32
    return %c0_i32, %c0_i32_0 : i32, i32
  }
  func.func @transform_3(%arg0: i32) -> (i32, i32) {
    %c0_i32 = arith.constant 0 : i32
    %c0_i32_0 = arith.constant 0 : i32
    %c0_i32_1 = arith.constant 0 : i32
    return %c0_i32, %c0_i32_0 : i32, i32
  }
  func.func @transform_4(%arg0: i32) -> (i32, i32) {
    %c0_i32 = arith.constant 0 : i32
    %c0_i32_0 = arith.constant 0 : i32
    %c0_i32_1 = arith.constant 0 : i32
    return %c0_i32, %c0_i32_0 : i32, i32
  }
  func.func @transform_5(%arg0: i32) -> (i32, i32) {
    %c0_i32 = arith.constant 0 : i32
    %c0_i32_0 = arith.constant 0 : i32
    %c0_i32_1 = arith.constant 0 : i32
    return %c0_i32, %c0_i32_0 : i32, i32
  }
  func.func @transform_6(%arg0: i32) -> (i32, i32) {
    %c0_i32 = arith.constant 0 : i32
    %c0_i32_0 = arith.constant 0 : i32
    %c0_i32_1 = arith.constant 0 : i32
    return %c0_i32, %c0_i32_0 : i32, i32
  }
  func.func @transform_7(%arg0: i32) -> (i32, i32) {
    %c0_i32 = arith.constant 0 : i32
    %c0_i32_0 = arith.constant 0 : i32
    %c0_i32_1 = arith.constant 0 : i32
    return %c0_i32, %c0_i32_0 : i32, i32
  }
  func.func @transform_8(%arg0: i32) -> (i32, i32) {
    %c0_i32 = arith.constant 0 : i32
    %c0_i32_0 = arith.constant 0 : i32
    return %arg0, %c0_i32 : i32, i32
  }
}

</mosaic_0001>

<bundles_post_ra>
// kernel: pre_direction_forward.1
= control target key start
LH: loop header
LB: loop body
LE: loop exit
PB: predicated region body
PF: predicated region fallthrough
CT: control target
= control target key end

     0   :  { %13 = vsyncpa [#allocation3], 0  ;;  %s12397_s27 = smov [#allocation2]   ;;  %s19134_s0 = inlined_call_operand.vmem [shape: f32[8,1], index: 0, kind: input, shape index: {}]   ;;  %s19135_s1 = inlined_call_operand.vmem [shape: f32[8,768], index: 1, kind: input, shape index: {}]   ;;  %s19136_s2 = inlined_call_operand.vmem [shape: f32[1,512], index: 2, kind: input, shape index: {}]   ;;  %s19137_s3 = inlined_call_operand.vmem [shape: f32[1,512], index: 3, kind: input, shape index: {}]   ;;  %s19138_s4 = inlined_call_operand.vmem [shape: f32[1,512], index: 4, kind: input, shape index: {}]   ;;  %s19139_s5 = inlined_call_operand.hbm [shape: bf16[768,512], index: 5, kind: input, shape index: {}]   ;;  %s19140_s6 = inlined_call_operand.vmem [shape: bf16[512,2], index: 6, kind: input, shape index: {}]   ;;  %s19141_s7 = inlined_call_operand.vmem [shape: f32[1,2], index: 7, kind: input, shape index: {}]   ;;  %s19142_s8 = inlined_call_operand.vmem [shape: f32[8,2], index: 8, kind: output, shape index: {}]  }
   0x1   :  { %s29_s28 = sshll.u32 %s12397_s27, 4  ;;  %s30_s28 = int_to_ptr.vmem [resolvable:$true] %s29_s28 }
   0x2   :  { %s12383_s29 = scalar_lea.vmem %s30_s28, 24576  ;;  %p12388_p1 = scmp.lt.s32.totalorder %s30_s28, %s30_s28 }
   0x3   :  { %p12384_p0 = scmp.ne.s32.totalorder %s30_s28, %s12383_s29  ;;  %p12389_p2 = scmp.lt.s32.totalorder %s12383_s29, %s12383_s29 }
   0x5   :  { %p12390_p3 = por %p12389_p2, %p12388_p1 }
   0x7   :  { %p12391_p4 = pnand %p12390_p3, %p12384_p0 }
   0x9   :  { %12394 = shalt.err (!%p12391_p4)
}
   0xa   :  { %s12398_s30 = smov 256   ;;  %s12399_s9 = smov 16  }
   0xb   :  { %35 = dma.hbm_to_vmem [thread:$0]  %s19139_s5, 24576, %s30_s28, [#allocation3], %s12398_s30, %s12398_s30, %s12399_s9  }
   0xc   :  { %12395 = dma.done.wait [#allocation3], 24576  }
   0xd   :  { %12396 = vsyncadd [#allocation3], 4294942720  ;;  %v11925_v0 = vld [vmem:[#allocation2 + $0xe4] ss:$16 sps:$4 sm:$0xff]   ;;  %v11929_v2 = vld [vmem:[#allocation2 + $0xe0] ss:$16 sps:$4 sm:$0xff]  }
   0xe   :  { %v11927_v1 = vld [vmem:[#allocation2 + $0x2e4] ss:$16 sps:$4 sm:$0xff]   ;;  %8482 = vmatprep.subr.bf16.mxu0 %v11925_v0  ;;  %v11930_v3 = vld [vmem:[#allocation2 + $0x2e0] ss:$16 sps:$4 sm:$0xff]   ;;  %v12400_v8 = vmov 0   ;;  %v6733_v47 = vld [vmem:[%s19135_s1 + $0x8] sm:$0xff] }
   0xf   :  { %8675 = vmatprep.subr.bf16.mxu1 %v11927_v1  ;;  %v11931_v4 = vld [vmem:[#allocation2 + $0xc4] ss:$16 sps:$4 sm:$0xff]   ;;  %8483 = vmatpush1.bf16.msra.mxu0 %v11929_v2  ;;  %v11935_v6 = vld [vmem:[#allocation2 + $0xc0] ss:$16 sps:$4 sm:$0xff]   ;;  %v6739_v48 = vld [vmem:[%s19135_s1 + $0x38] sm:$0xff] }
  0x10   :  { %8676 = vmatpush1.bf16.msra.mxu1 %v11930_v3  ;;  %v11933_v5 = vld [vmem:[#allocation2 + $0x2c4] ss:$16 sps:$4 sm:$0xff]   ;;  %8484 = vmatprep.subr.bf16.mxu0 %v11931_v4  ;;  %v11936_v7 = vld [vmem:[#allocation2 + $0x2c0] ss:$16 sps:$4 sm:$0xff]   ;;  %v6735_v49 = vld [vmem:[%s19135_s1 + $0x18] sm:$0xff]  ;;  %v12467_v54 = vpack.c.bf16 %v6739_v48, %v6733_v47 }
  0x11   :  { %11923 = vset.pattern.permute.xlu0 %v12400_v8  ;;  %8677 = vmatprep.subr.bf16.mxu1 %v11933_v5  ;;  %v11937_v9 = vld [vmem:[#allocation2 + $0xa4] ss:$16 sps:$4 sm:$0xff]   ;;  %v11941_v11 = vld [vmem:[#allocation2 + $0xa0] ss:$16 sps:$4 sm:$0xff]   ;;  %v6741_v50 = vld [vmem:[%s19135_s1 + $0x48] sm:$0xff] }
  0x12   :  { %11924 = vset.pattern.permute.xlu1 %v12400_v8  ;;  %v11939_v10 = vld [vmem:[#allocation2 + $0x2a4] ss:$16 sps:$4 sm:$0xff]   ;;  %v11942_v12 = vld [vmem:[#allocation2 + $0x2a0] ss:$16 sps:$4 sm:$0xff]   ;;  %v12469_v55 = vpack.c.bf16 %v6741_v50, %v6735_v49  ;;  %8514 = vmatprep.mubr.bf16.mxu0 %v12467_v54  ;;  %v12044_v47 = vld [vmem:[#allocation2 + $0x8c] ss:$16 sps:$4 sm:$0xff]  }
  0x13   :  { %8485 = vmatpush1.bf16.msra.mxu0 %v11935_v6  ;;  %v11943_v13 = vld [vmem:[#allocation2 + $0x84] ss:$16 sps:$4 sm:$0xff]   ;;  %v11947_v15 = vld [vmem:[#allocation2 + $0x80] ss:$16 sps:$4 sm:$0xff]   ;;  %v6769_v49 = vld [vmem:[%s19135_s1 + $0x128] sm:$0xff] }
  0x14   :  { %8678 = vmatpush1.bf16.msra.mxu1 %v11936_v7  ;;  %8486 = vmatprep.subr.bf16.mxu0 %v11937_v9  ;;  %v11945_v14 = vld [vmem:[#allocation2 + $0x284] ss:$16 sps:$4 sm:$0xff]   ;;  %v11948_v16 = vld [vmem:[#allocation2 + $0x280] ss:$16 sps:$4 sm:$0xff]   ;;  %19358 = vst [vmem:[#allocation6_spill] sm:$0xff] %v12469_v55  ;;  %v6775_v50 = vld [vmem:[%s19135_s1 + $0x158] sm:$0xff] }
  0x15   :  { %8679 = vmatprep.subr.bf16.mxu1 %v11939_v10  ;;  %v11949_v17 = vld [vmem:[#allocation2 + $0x64] ss:$16 sps:$4 sm:$0xff]   ;;  %v11953_v19 = vld [vmem:[#allocation2 + $0x60] ss:$16 sps:$4 sm:$0xff]   ;;  %8707 = vmatprep.mubr.bf16.mxu1 %v12469_v55 }
  0x16   :  { %v11951_v18 = vld [vmem:[#allocation2 + $0x264] ss:$16 sps:$4 sm:$0xff]   ;;  %v11954_v20 = vld [vmem:[#allocation2 + $0x260] ss:$16 sps:$4 sm:$0xff]  }
  0x17   :  { %8487 = vmatpush1.bf16.msra.mxu0 %v11941_v11  ;;  %v11955_v21 = vld [vmem:[#allocation2 + $0x44] ss:$16 sps:$4 sm:$0xff]   ;;  %v11959_v23 = vld [vmem:[#allocation2 + $0x40] ss:$16 sps:$4 sm:$0xff]  }
  0x18   :  { %8680 = vmatpush1.bf16.msra.mxu1 %v11942_v12  ;;  %8488 = vmatprep.subr.bf16.mxu0 %v11943_v13  ;;  %v11957_v22 = vld [vmem:[#allocation2 + $0x244] ss:$16 sps:$4 sm:$0xff]   ;;  %v11960_v24 = vld [vmem:[#allocation2 + $0x240] ss:$16 sps:$4 sm:$0xff]   ;;  %v12026_v12 = vld [vmem:[#allocation2 + $0xec] ss:$16 sps:$4 sm:$0xff]  }
  0x19   :  { %8681 = vmatprep.subr.bf16.mxu1 %v11945_v14  ;;  %v11961_v25 = vld [vmem:[#allocation2 + $0x24] ss:$16 sps:$4 sm:$0xff]   ;;  %v11965_v27 = vld [vmem:[#allocation2 + $0x20] ss:$16 sps:$4 sm:$0xff]   ;;  %v6745_v13 = vld [vmem:[%s19135_s1 + $0x68] sm:$0xff] }
  0x1a   :  { %v11963_v26 = vld [vmem:[#allocation2 + $0x224] ss:$16 sps:$4 sm:$0xff]   ;;  %v11966_v28 = vld [vmem:[#allocation2 + $0x220] ss:$16 sps:$4 sm:$0xff]   ;;  %v6751_v14 = vld [vmem:[%s19135_s1 + $0x98] sm:$0xff] }
  0x1b   :  { %8489 = vmatpush1.bf16.msra.mxu0 %v11947_v15  ;;  %v11967_v29 = vld [vmem:[#allocation2 + $0x4] ss:$16 sps:$4 sm:$0xff]   ;;  %v11971_v31 = vld [vmem:[#allocation2] ss:$16 sps:$4 sm:$0xff]   ;;  %v6747_v15 = vld [vmem:[%s19135_s1 + $0x78] sm:$0xff] }
  0x1c   :  { %8682 = vmatpush1.bf16.msra.mxu1 %v11948_v16  ;;  %8490 = vmatprep.subr.bf16.mxu0 %v11949_v17  ;;  %v11969_v30 = vld [vmem:[#allocation2 + $0x204] ss:$16 sps:$4 sm:$0xff]   ;;  %v11972_v32 = vld [vmem:[#allocation2 + $0x200] ss:$16 sps:$4 sm:$0xff]   ;;  %v6753_v16 = vld [vmem:[%s19135_s1 + $0xa8] sm:$0xff] }
  0x1d   :  { %8683 = vmatprep.subr.bf16.mxu1 %v11951_v18  ;;  %v11973_v33 = vld [vmem:[#allocation2 + $0x1e4] ss:$16 sps:$4 sm:$0xff]   ;;  %v11977_v35 = vld [vmem:[#allocation2 + $0x1e0] ss:$16 sps:$4 sm:$0xff]  }
  0x1e   :  { %v11975_v34 = vld [vmem:[#allocation2 + $0x3e4] ss:$16 sps:$4 sm:$0xff]   ;;  %v11978_v36 = vld [vmem:[#allocation2 + $0x3e0] ss:$16 sps:$4 sm:$0xff]  }
  0x1f   :  { %8491 = vmatpush1.bf16.msra.mxu0 %v11953_v19  ;;  %v11979_v37 = vld [vmem:[#allocation2 + $0x1c4] ss:$16 sps:$4 sm:$0xff]   ;;  %v11983_v39 = vld [vmem:[#allocation2 + $0x1c0] ss:$16 sps:$4 sm:$0xff]  }
  0x20   :  { %8684 = vmatpush1.bf16.msra.mxu1 %v11954_v20  ;;  %8492 = vmatprep.subr.bf16.mxu0 %v11955_v21  ;;  %v11981_v38 = vld [vmem:[#allocation2 + $0x3c4] ss:$16 sps:$4 sm:$0xff]   ;;  %v11984_v40 = vld [vmem:[#allocation2 + $0x3c0] ss:$16 sps:$4 sm:$0xff]   ;;  %v12024_v20 = vld [vmem:[#allocation2 + $0xe8] ss:$16 sps:$4 sm:$0xff]   ;;  %v12501_v21 = vpack.c.bf16 %v6751_v14, %v6745_v13 }
  0x21   :  { %8685 = vmatprep.subr.bf16.mxu1 %v11957_v22  ;;  %v11985_v41 = vld [vmem:[#allocation2 + $0x1a4] ss:$16 sps:$4 sm:$0xff]   ;;  %v11989_v43 = vld [vmem:[#allocation2 + $0x1a0] ss:$16 sps:$4 sm:$0xff]   ;;  %v12503_v22 = vpack.c.bf16 %v6753_v16, %v6747_v15  ;;  %v12062_v14 = vld [vmem:[#allocation2 + $0x2c] ss:$16 sps:$4 sm:$0xff]  }
  0x22   :  { %v11987_v42 = vld [vmem:[#allocation2 + $0x3a4] ss:$16 sps:$4 sm:$0xff]   ;;  %v11990_v44 = vld [vmem:[#allocation2 + $0x3a0] ss:$16 sps:$4 sm:$0xff]  }
  0x23   :  { %8493 = vmatpush1.bf16.msra.mxu0 %v11959_v23  ;;  %v11991_v45 = vld [vmem:[#allocation2 + $0x184] ss:$16 sps:$4 sm:$0xff]   ;;  %v11995_v51 = vld [vmem:[#allocation2 + $0x180] ss:$16 sps:$4 sm:$0xff]   ;;  %19360 = vst [vmem:[#allocation8_spill] sm:$0xff] %v12503_v22 }
  0x24   :  { %8686 = vmatpush1.bf16.msra.mxu1 %v11960_v24  ;;  %8494 = vmatprep.subr.bf16.mxu0 %v11961_v25  ;;  %v11993_v46 = vld [vmem:[#allocation2 + $0x384] ss:$16 sps:$4 sm:$0xff]   ;;  %v11996_v52 = vld [vmem:[#allocation2 + $0x380] ss:$16 sps:$4 sm:$0xff]  }
  0x25   :  { %8687 = vmatprep.subr.bf16.mxu1 %v11963_v26  ;;  %v11997_v53 = vld [vmem:[#allocation2 + $0x164] ss:$16 sps:$4 sm:$0xff]   ;;  %v12001_v57 = vld [vmem:[#allocation2 + $0x160] ss:$16 sps:$4 sm:$0xff]  }
  0x26   :  { %v11999_v56 = vld [vmem:[#allocation2 + $0x364] ss:$16 sps:$4 sm:$0xff]   ;;  %v12002_v58 = vld [vmem:[#allocation2 + $0x360] ss:$16 sps:$4 sm:$0xff]  }
  0x27   :  { %8495 = vmatpush1.bf16.msra.mxu0 %v11965_v27  ;;  %v12003_v59 = vld [vmem:[#allocation2 + $0x144] ss:$16 sps:$4 sm:$0xff]   ;;  %v12007_v61 = vld [vmem:[#allocation2 + $0x140] ss:$16 sps:$4 sm:$0xff]  }
  0x28   :  { %8688 = vmatpush1.bf16.msra.mxu1 %v11966_v28  ;;  %8496 = vmatprep.subr.bf16.mxu0 %v11967_v29  ;;  %v12005_v60 = vld [vmem:[#allocation2 + $0x344] ss:$16 sps:$4 sm:$0xff]   ;;  %v12008_v62 = vld [vmem:[#allocation2 + $0x340] ss:$16 sps:$4 sm:$0xff]   ;;  %v12030_v29 = vld [vmem:[#allocation2 + $0xc8] ss:$16 sps:$4 sm:$0xff]  }
  0x29   :  { %8689 = vmatprep.subr.bf16.mxu1 %v11969_v30  ;;  %v12009_v63 = vld [vmem:[#allocation2 + $0x124] ss:$16 sps:$4 sm:$0xff]   ;;  %v12013_v1 = vld [vmem:[#allocation2 + $0x120] ss:$16 sps:$4 sm:$0xff]   ;;  %v12032_v30 = vld [vmem:[#allocation2 + $0xcc] ss:$16 sps:$4 sm:$0xff]  }
  0x2a   :  { %v12011_v0 = vld [vmem:[#allocation2 + $0x324] ss:$16 sps:$4 sm:$0xff]   ;;  %v12014_v2 = vld [vmem:[#allocation2 + $0x320] ss:$16 sps:$4 sm:$0xff]  }
  0x2b   :  { %8497 = vmatpush1.bf16.msra.mxu0 %v11971_v31  ;;  %v12015_v3 = vld [vmem:[#allocation2 + $0x104] ss:$16 sps:$4 sm:$0xff]   ;;  %v12019_v5 = vld [vmem:[#allocation2 + $0x100] ss:$16 sps:$4 sm:$0xff]   ;;  %v6757_v31 = vld [vmem:[%s19135_s1 + $0xc8] sm:$0xff] }
  0x2c   :  { %8690 = vmatpush1.bf16.msra.mxu1 %v11972_v32  ;;  %8498 = vmatprep.subr.bf16.mxu0 %v11973_v33  ;;  %v12017_v4 = vld [vmem:[#allocation2 + $0x304] ss:$16 sps:$4 sm:$0xff]   ;;  %v12020_v6 = vld [vmem:[#allocation2 + $0x300] ss:$16 sps:$4 sm:$0xff]   ;;  %v6763_v32 = vld [vmem:[%s19135_s1 + $0xf8] sm:$0xff] }
  0x2d   :  { %8691 = vmatprep.subr.bf16.mxu1 %v11975_v34  ;;  %v6732_v7 = vld [vmem:[%s19135_s1] sm:$0xff]  ;;  %v6738_v8 = vld [vmem:[%s19135_s1 + $0x30] sm:$0xff]  ;;  %v6759_v33 = vld [vmem:[%s19135_s1 + $0xd8] sm:$0xff] }
  0x2e   :  { %v6734_v9 = vld [vmem:[%s19135_s1 + $0x10] sm:$0xff]  ;;  %v6740_v10 = vld [vmem:[%s19135_s1 + $0x40] sm:$0xff]  ;;  %v12497_v17 = vpack.c.bf16 %v6738_v8, %v6732_v7  ;;  %v6765_v34 = vld [vmem:[%s19135_s1 + $0x108] sm:$0xff] }
  0x2f   :  { %8499 = vmatpush2.bf16.msra.mxu0 %v11977_v35  ;;  %v12023_v11 = vld [vmem:[#allocation2 + $0x4e4] ss:$16 sps:$4 sm:$0xff]   ;;  %v12499_v18 = vpack.c.bf16 %v6740_v10, %v6734_v9  ;;  %v12021_v19 = vld [vmem:[#allocation2 + $0x4e0] ss:$16 sps:$4 sm:$0xff]   ;;  %v6781_v7 = vld [vmem:[%s19135_s1 + $0x188] sm:$0xff] }
  0x30   :  { %8692 = vmatpush2.bf16.msra.mxu1 %v11978_v36  ;;  %8500 = vmatprep.subr.bf16.mxu0 %v11979_v37  ;;  %v12029_v23 = vld [vmem:[#allocation2 + $0x4c4] ss:$16 sps:$4 sm:$0xff]   ;;  %v12027_v28 = vld [vmem:[#allocation2 + $0x4c0] ss:$16 sps:$4 sm:$0xff]   ;;  %v12038_v36 = vld [vmem:[#allocation2 + $0xac] ss:$16 sps:$4 sm:$0xff]  }
  0x31   :  { %8693 = vmatprep.subr.bf16.mxu1 %v11981_v38  ;;  %19359 = vst [vmem:[#allocation7_spill] sm:$0xff] %v12499_v18  ;;  %v6744_v24 = vld [vmem:[%s19135_s1 + $0x60] sm:$0xff]  ;;  %v6750_v25 = vld [vmem:[%s19135_s1 + $0x90] sm:$0xff]  ;;  %v6787_v8 = vld [vmem:[%s19135_s1 + $0x1b8] sm:$0xff] }
  0x32   :  { %v6746_v26 = vld [vmem:[%s19135_s1 + $0x70] sm:$0xff]  ;;  %v6752_v27 = vld [vmem:[%s19135_s1 + $0xa0] sm:$0xff]  ;;  %v12533_v37 = vpack.c.bf16 %v6750_v25, %v6744_v24  ;;  %v6783_v9 = vld [vmem:[%s19135_s1 + $0x198] sm:$0xff] }
  0x33   :  { %8501 = vmatpush2.bf16.msra.mxu0 %v11983_v39  ;;  %v12035_v35 = vld [vmem:[#allocation2 + $0x4a4] ss:$16 sps:$4 sm:$0xff]   ;;  %v12535_v38 = vpack.c.bf16 %v6752_v27, %v6746_v26  ;;  %v12537_v39 = vpack.c.bf16 %v6763_v32, %v6757_v31  ;;  %v6789_v10 = vld [vmem:[%s19135_s1 + $0x1c8] sm:$0xff] }
  0x34   :  { %8694 = vmatpush2.bf16.msra.mxu1 %v11984_v40  ;;  %8502 = vmatprep.subr.bf16.mxu0 %v11985_v41  ;;  %v12539_v40 = vpack.c.bf16 %v6765_v34, %v6759_v33  ;;  %v12033_v41 = vld [vmem:[#allocation2 + $0x4a0] ss:$16 sps:$4 sm:$0xff]   ;;  %v12059_v13 = vld [vmem:[#allocation2 + $0x424] ss:$16 sps:$4 sm:$0xff]   ;;  %v12060_v24 = vld [vmem:[#allocation2 + $0x28] ss:$16 sps:$4 sm:$0xff]  }
  0x35   :  { %8695 = vmatprep.subr.bf16.mxu1 %v11987_v42  ;;  %19361 = vst [vmem:[#allocation9_spill] sm:$0xff] %v12535_v38  ;;  %v12036_v42 = vld [vmem:[#allocation2 + $0xa8] ss:$16 sps:$4 sm:$0xff]   ;;  %v6764_v48 = vld [vmem:[%s19135_s1 + $0x100] sm:$0xff]  ;;  %v6786_v26 = vld [vmem:[%s19135_s1 + $0x1b0] sm:$0xff] }
  0x36   :  { %19362 = vst [vmem:[#allocation10_spill] sm:$0xff] %v12539_v40  ;;  %v6780_v25 = vld [vmem:[%s19135_s1 + $0x180] sm:$0xff]  ;;  %v6782_v27 = vld [vmem:[%s19135_s1 + $0x190] sm:$0xff]  ;;  %v12068_v31 = vld [vmem:[#allocation2 + $0xc] ss:$16 sps:$4 sm:$0xff]  }
  0x37   :  { %8503 = vmatpush2.bf16.msra.mxu0 %v11989_v43  ;;  %v6756_v43 = vld [vmem:[%s19135_s1 + $0xc0] sm:$0xff]  ;;  %v6799_v33 = vld [vmem:[%s19135_s1 + $0x218] sm:$0xff] }
  0x38   :  { %8696 = vmatpush2.bf16.msra.mxu1 %v11990_v44  ;;  %8504 = vmatprep.subr.bf16.mxu0 %v11991_v45  ;;  %v6762_v44 = vld [vmem:[%s19135_s1 + $0xf0] sm:$0xff]  ;;  %v44_v32 = vld [vmem:[%s19134_s0] sm:$0xff]  ;;  %v6795_v34 = vld [vmem:[%s19135_s1 + $0x1f8] sm:$0xff] }
  0x39   :  { %8697 = vmatprep.subr.bf16.mxu1 %v11993_v46  ;;  %v6758_v45 = vld [vmem:[%s19135_s1 + $0xd0] sm:$0xff] }
  0x3a   :  { %v12041_v46 = vld [vmem:[#allocation2 + $0x484] ss:$16 sps:$4 sm:$0xff]  }
  0x3b   :  { %8505 = vmatpush2.bf16.msra.mxu0 %v11995_v51  ;;  %v6771_v51 = vld [vmem:[%s19135_s1 + $0x138] sm:$0xff] }
  0x3c   :  { %8698 = vmatpush2.bf16.msra.mxu1 %v11996_v52  ;;  %8506 = vmatprep.subr.bf16.mxu0 %v11997_v53  ;;  %v6777_v52 = vld [vmem:[%s19135_s1 + $0x168] sm:$0xff]  ;;  %v12039_v53 = vld [vmem:[#allocation2 + $0x480] ss:$16 sps:$4 sm:$0xff]  }
  0x3d   :  { %8699 = vmatprep.subr.bf16.mxu1 %v11999_v56  ;;  %v12042_v56 = vld [vmem:[#allocation2 + $0x88] ss:$16 sps:$4 sm:$0xff]  }
  0x3f   :  { %8507 = vmatpush2.bf16.msra.mxu0 %v12001_v57  ;;  %v12047_v57 = vld [vmem:[#allocation2 + $0x464] ss:$16 sps:$4 sm:$0xff]  }
  0x40   :  { %8700 = vmatpush2.bf16.msra.mxu1 %v12002_v58  ;;  %8508 = vmatprep.subr.bf16.mxu0 %v12003_v59  ;;  %v12050_v58 = vld [vmem:[#allocation2 + $0x6c] ss:$16 sps:$4 sm:$0xff]   ;;  %v12569_v59 = vpack.c.bf16 %v6762_v44, %v6756_v43  ;;  %v6792_v44 = vld [vmem:[%s19135_s1 + $0x1e0] sm:$0xff] }
  0x41   :  { %8701 = vmatprep.subr.bf16.mxu1 %v12005_v60  ;;  %v12571_v60 = vpack.c.bf16 %v6764_v48, %v6758_v45  ;;  %v45_v43 = vld [vmem:[%s19134_s0 + $0x8] sm:$0xff]  ;;  %v6798_v45 = vld [vmem:[%s19135_s1 + $0x210] sm:$0xff] }
  0x42   :  { %v12071_v48 = vld [vmem:[#allocation2 + $0x5e4] ss:$16 sps:$4 sm:$0xff]  }
  0x43   :  { %8509 = vmatpush2.bf16.msra.mxu0 %v12007_v61  ;;  %19363 = vst [vmem:[#allocation11_spill] sm:$0xff] %v12571_v60  ;;  %v12573_v61 = vpack.c.bf16 %v6775_v50, %v6769_v49 }
  0x44   :  { %8702 = vmatpush2.bf16.msra.mxu1 %v12008_v62  ;;  %8510 = vmatprep.subr.bf16.mxu0 %v12009_v63  ;;  %v12575_v62 = vpack.c.bf16 %v6777_v52, %v6771_v51  ;;  %v12045_v63 = vld [vmem:[#allocation2 + $0x460] ss:$16 sps:$4 sm:$0xff]   ;;  %v6805_v51 = vld [vmem:[%s19135_s1 + $0x248] sm:$0xff]  ;;  %v6811_v52 = vld [vmem:[%s19135_s1 + $0x278] sm:$0xff] }
  0x45   :  { %8703 = vmatprep.subr.bf16.mxu1 %v12011_v0  ;;  %v12048_v0 = vld [vmem:[#allocation2 + $0x68] ss:$16 sps:$4 sm:$0xff]  }
  0x46   :  { %19364 = vst [vmem:[#allocation12_spill] sm:$0xff] %v12575_v62 }
  0x47   :  { %8511 = vmatpush2.bf16.msra.mxu0 %v12013_v1  ;;  %v6768_v1 = vld [vmem:[%s19135_s1 + $0x120] sm:$0xff] }
  0x48   :  { %8704 = vmatpush2.bf16.msra.mxu1 %v12014_v2  ;;  %8512 = vmatprep.subr.bf16.mxu0 %v12015_v3  ;;  %v6774_v2 = vld [vmem:[%s19135_s1 + $0x150] sm:$0xff] }
  0x49   :  { %8705 = vmatprep.subr.bf16.mxu1 %v12017_v4  ;;  %v6770_v3 = vld [vmem:[%s19135_s1 + $0x130] sm:$0xff]  ;;  %v6776_v4 = vld [vmem:[%s19135_s1 + $0x160] sm:$0xff]  ;;  %v12605_v15 = vpack.c.bf16 %v6774_v2, %v6768_v1 }
  0x4a   :  { %v12607_v16 = vpack.c.bf16 %v6776_v4, %v6770_v3  ;;  %v6810_v3 = vld [vmem:[%s19135_s1 + $0x270] sm:$0xff] }
  0x4b   :  { %8513 = vmatpush2.bf16.msra.mxu0 %v12019_v5  ;;  %v12053_v5 = vld [vmem:[#allocation2 + $0x444] ss:$16 sps:$4 sm:$0xff]   ;;  %v12069_v4 = vld [vmem:[#allocation2 + $0x5e0] ss:$16 sps:$4 sm:$0xff]  }
  0x4c   :  { %8706 = vmatpush2.bf16.msra.mxu1 %v12020_v6  ;;  %8868 = vmatprep.subr.bf16.mxu0 %v12023_v11  ;;  %v12056_v6 = vld [vmem:[#allocation2 + $0x4c] ss:$16 sps:$4 sm:$0xff]   ;;  %v12051_v11 = vld [vmem:[#allocation2 + $0x440] ss:$16 sps:$4 sm:$0xff]   ;;  %19365 = vst [vmem:[#allocation13_spill] sm:$0xff] %v12607_v16 }
  0x4d   :  { %9061 = vmatprep.subr.bf16.mxu1 %v12026_v12  ;;  %v12054_v12 = vld [vmem:[#allocation2 + $0x48] ss:$16 sps:$4 sm:$0xff]  }
  0x4e   :  { %8515 = vmatmul.mubr.bf16.vlgmr.msra.gmra.mxu0 %v12497_v17 }
  0x4f   :  { %8708 = vmatmul.mubr.bf16.vlgmr.msra.gmra.mxu1 %v12499_v18  ;;  %8869 = vmatpush1.bf16.msra.mxu0 %v12021_v19  ;;  %v12609_v19 = vpack.c.bf16 %v6787_v8, %v6781_v7  ;;  %v6806_v7 = vld [vmem:[%s19135_s1 + $0x250] sm:$0xff]  ;;  %v6812_v8 = vld [vmem:[%s19135_s1 + $0x280] sm:$0xff] }
  0x50   :  { %9062 = vmatpush1.bf16.msra.mxu1 %v12024_v20  ;;  %8524 = vmatprep.mubr.bf16.mxu0 %v12501_v21  ;;  %v12611_v20 = vpack.c.bf16 %v6789_v10, %v6783_v9  ;;  %v6817_v9 = vld [vmem:[%s19135_s1 + $0x2a8] sm:$0xff]  ;;  %v6823_v10 = vld [vmem:[%s19135_s1 + $0x2d8] sm:$0xff] }
  0x51   :  { %8717 = vmatprep.mubr.bf16.mxu1 %v12503_v22  ;;  %8870 = vmatprep.subr.bf16.mxu0 %v12029_v23  ;;  %v12057_v23 = vld [vmem:[#allocation2 + $0x420] ss:$16 sps:$4 sm:$0xff]  }
  0x52   :  { %9063 = vmatprep.subr.bf16.mxu1 %v12032_v30  ;;  %19366 = vst [vmem:[#allocation14_spill] sm:$0xff] %v12611_v20  ;;  %v12065_v30 = vld [vmem:[#allocation2 + $0x404] ss:$16 sps:$4 sm:$0xff]  }
  0x53   :  { %8871 = vmatpush1.bf16.msra.mxu0 %v12027_v28  ;;  %v6788_v28 = vld [vmem:[%s19135_s1 + $0x1c0] sm:$0xff] }
  0x54   :  { %9064 = vmatpush1.bf16.msra.mxu1 %v12030_v29  ;;  %8872 = vmatprep.subr.bf16.mxu0 %v12035_v35  ;;  %v6793_v29 = vld [vmem:[%s19135_s1 + $0x1e8] sm:$0xff]  ;;  %v12682_v1 = vpack.c.bf16 %v6788_v28, %v6782_v27  ;;  %v6824_v27 = vld [vmem:[%s19135_s1 + $0x2e0] sm:$0xff] }
  0x55   :  { %9065 = vmatprep.subr.bf16.mxu1 %v12038_v36  ;;  %v6801_v35 = vld [vmem:[%s19135_s1 + $0x228] sm:$0xff]  ;;  %v12642_v36 = vmul.f32 0.017453277, %v44_v32  ;;  %v12684_v2 = vpack.c.bf16 %v6799_v33, %v6793_v29 }
  0x56   :  { %8525 = vmatmul.mubr.bf16.gmra.mxu0 %v12533_v37  ;;  %19367 = vst [vmem:[#allocation15_spill] sm:$0xff] %v12682_v1  ;;  %v12072_v28 = vld [vmem:[#allocation2 + $0x1e8] ss:$16 sps:$4 sm:$0xff]  }
  0x57   :  { %8718 = vmatmul.mubr.bf16.gmra.mxu1 %v12535_v38  ;;  %8534 = vmatprep.mubr.bf16.mxu0 %v12537_v39  ;;  %v19144_v49 = vand.u32 2147483647, %v12642_v36  ;;  %v111_v50 = vand.u32 2139095040, %v12642_v36  ;;  %v6829_v33 = vld [vmem:[%s19135_s1 + $0x308] sm:$0xff]  ;;  %vm110_vm13 = vcmp.lt.s32.totalorder %v12642_v36, 0 }
  0x58   :  { %8727 = vmatprep.mubr.bf16.mxu1 %v12539_v40  ;;  %8873 = vmatpush1.bf16.msra.mxu0 %v12033_v41  ;;  %v12063_v41 = vld [vmem:[#allocation2 + $0x400] ss:$16 sps:$4 sm:$0xff]  }
  0x59   :  { %9066 = vmatpush1.bf16.msra.mxu1 %v12036_v42  ;;  %8874 = vmatprep.subr.bf16.mxu0 %v12041_v46  ;;  %v12066_v42 = vld [vmem:[#allocation2 + $0x8] ss:$16 sps:$4 sm:$0xff]   ;;  %v6794_v46 = vld [vmem:[%s19135_s1 + $0x1f0] sm:$0xff] }
  0x5a   :  { %9067 = vmatprep.subr.bf16.mxu1 %v12044_v47  ;;  %v6800_v47 = vld [vmem:[%s19135_s1 + $0x220] sm:$0xff] }
  0x5b   :  { %v12730_v32 = vpack.c.bf16 %v6800_v47, %v6794_v46  ;;  %v6837_v47 = vld [vmem:[%s19135_s1 + $0x348] sm:$0xff] }
  0x5c   :  { %8875 = vmatpush1.bf16.msra.mxu0 %v12039_v53  ;;  %v6807_v53 = vld [vmem:[%s19135_s1 + $0x258] sm:$0xff] }
  0x5d   :  { %9068 = vmatpush1.bf16.msra.mxu1 %v12042_v56  ;;  %8876 = vmatprep.subr.bf16.mxu0 %v12047_v57  ;;  %v6813_v56 = vld [vmem:[%s19135_s1 + $0x288] sm:$0xff]  ;;  %v6804_v57 = vld [vmem:[%s19135_s1 + $0x240] sm:$0xff]  ;;  %19369 = vst [vmem:[#allocation17_spill] sm:$0xff] %v12730_v32 }
  0x5e   :  { %9069 = vmatprep.subr.bf16.mxu1 %v12050_v58  ;;  %8535 = vmatmul.mubr.bf16.gmra.mxu0 %v12569_v59  ;;  %v12074_v58 = vld [vmem:[#allocation2 + $0x1ec] ss:$16 sps:$4 sm:$0xff]   ;;  %v12749_v46 = vpack.c.bf16 %v6810_v3, %v6804_v57  ;;  %v12764_v3 = vpack.c.bf16 %v6812_v8, %v6806_v7 }
  0x5f   :  { %8728 = vmatmul.mubr.bf16.gmra.mxu1 %v12571_v60  ;;  %8544 = vmatprep.mubr.bf16.mxu0 %v12573_v61 }
  0x60   :  { %8737 = vmatprep.mubr.bf16.mxu1 %v12575_v62  ;;  %8877 = vmatpush1.bf16.msra.mxu0 %v12045_v63  ;;  %v12678_v63 = vmul.f32 0.017453277, %v45_v43  ;;  %v12077_v43 = vld [vmem:[#allocation2 + $0x5c4] ss:$16 sps:$4 sm:$0xff]   ;;  %19371 = vst [vmem:[#allocation19_spill] sm:$0xff] %v12764_v3 }
  0x61   :  { %9070 = vmatpush1.bf16.msra.mxu1 %v12048_v0  ;;  %8878 = vmatprep.subr.bf16.mxu0 %v12053_v5  ;;  %v12680_v0 = vpack.c.bf16 %v6786_v26, %v6780_v25  ;;  %v112_v5 = vshrl.u32 %v111_v50, 23  ;;  %v6822_v25 = vld [vmem:[%s19135_s1 + $0x2d0] sm:$0xff] }
  0x62   :  { %9071 = vmatprep.subr.bf16.mxu1 %v12056_v6  ;;  %v12689_v6 = vpack.c.bf16 %v6801_v35, %v6795_v34  ;;  %v6818_v26 = vld [vmem:[%s19135_s1 + $0x2b0] sm:$0xff]  ;;  %v6835_v34 = vld [vmem:[%s19135_s1 + $0x338] sm:$0xff] }
  0x63   :  { %v11080_v29 = vadd.s32 4294967169, %v112_v5  ;;  %v6831_v35 = vld [vmem:[%s19135_s1 + $0x318] sm:$0xff]  ;;  %v12766_v5 = vpack.c.bf16 %v6823_v10, %v6817_v9 }
  0x64   :  { %8879 = vmatpush1.bf16.msra.mxu0 %v12051_v11  ;;  %19368 = vst [vmem:[#allocation16_spill] sm:$0xff] %v12689_v6  ;;  %v6819_v11 = vld [vmem:[%s19135_s1 + $0x2b8] sm:$0xff]  ;;  %v12776_v7 = vpack.c.bf16 %v6837_v47, %v6831_v35  ;;  %v19154_v35 = vmov 2102212464  }
  0x65   :  { %9072 = vmatpush1.bf16.msra.mxu1 %v12054_v12  ;;  %8880 = vmatprep.subr.bf16.mxu0 %v12059_v13  ;;  %v6825_v12 = vld [vmem:[%s19135_s1 + $0x2e8] sm:$0xff]  ;;  %v115_v13 = vand.u32 8388607, %v19144_v49  ;;  %v118_v50 = vadd.s32 1, %v11080_v29  ;;  %v12075_v29 = vld [vmem:[#allocation2 + $0x5c0] ss:$16 sps:$4 sm:$0xff]  }
  0x66   :  { %9073 = vmatprep.subr.bf16.mxu1 %v12062_v14  ;;  %8545 = vmatmul.mubr.bf16.gmra.mxu0 %v12605_v15  ;;  %v19143_v14 = vand.u32 2147483647, %v12678_v63  ;;  %19375 = vst [vmem:[#allocation23_spill] sm:$0xff] %v12776_v7 }
  0x67   :  { %8738 = vmatmul.mubr.bf16.gmra.mxu1 %v12607_v16  ;;  %8554 = vmatprep.mubr.bf16.mxu0 %v12609_v19  ;;  %vm119_vm0 = vcmp.gt.s32.totalorder %v118_v50, 0 }
  0x68   :  { %8747 = vmatprep.mubr.bf16.mxu1 %v12611_v20  ;;  %8881 = vmatpush1.bf16.msra.mxu0 %v12057_v23  ;;  %v215_v23 = vand.u32 2139095040, %v12678_v63 }
  0x69   :  { %9074 = vmatpush1.bf16.msra.mxu1 %v12060_v24  ;;  %8882 = vmatprep.subr.bf16.mxu0 %v12065_v30  ;;  %v6816_v24 = vld [vmem:[%s19135_s1 + $0x2a0] sm:$0xff]  ;;  %v46_v30 = vld [vmem:[%s19134_s0 + $0x10] sm:$0xff] }
  0x6a   :  { %9075 = vmatprep.subr.bf16.mxu1 %v12068_v31  ;;  %v12728_v31 = vpack.c.bf16 %v6798_v45, %v6792_v44  ;;  %v12745_v44 = vpack.c.bf16 %v6811_v52, %v6805_v51  ;;  %v12747_v45 = vpack.c.bf16 %v6813_v56, %v6807_v53  ;;  %v6834_v51 = vld [vmem:[%s19135_s1 + $0x330] sm:$0xff]  ;;  %v116_v52 = vor.u32 8388608, %v115_v13 }
  0x6b   :  { %v12762_v57 = vmul.f32 0.017453277, %v46_v30  ;;  %v12770_v49 = vpack.c.bf16 %v6822_v25, %v6816_v24  ;;  %v120_v13 = vsel %vm119_vm0, %v118_v50, 0  ;;  %v12774_v30 = vpack.c.bf16 %v6835_v34, %v6829_v33 }
  0x6c   :  { %8883 = vmatpush1.bf16.msra.mxu0 %v12063_v41  ;;  %v216_v41 = vshrl.u32 %v215_v23, 23  ;;  %19370 = vst [vmem:[#allocation18_spill] sm:$0xff] %v12747_v45  ;;  %v12768_v23 = vpack.c.bf16 %v6825_v12, %v6819_v11  ;;  %v121_v8 = vshrl.u32 %v120_v13, 5  ;;  %v122_v9 = vand.u32 31, %v120_v13 }
  0x6d   :  { %9076 = vmatpush1.bf16.msra.mxu1 %v12066_v42  ;;  %8884 = vmatprep.subr.bf16.mxu0 %v12071_v48  ;;  %v219_v42 = vand.u32 8388607, %v19143_v14  ;;  %v6828_v48 = vld [vmem:[%s19135_s1 + $0x300] sm:$0xff]  ;;  %v12078_v14 = vld [vmem:[#allocation2 + $0x1c8] ss:$16 sps:$4 sm:$0xff]   ;;  %19374 = vst [vmem:[#allocation22_spill] sm:$0xff] %v12774_v30 }
  0x6e   :  { %9077 = vmatprep.subr.bf16.mxu1 %v12074_v58  ;;  %8555 = vmatmul.mubr.bf16.gmra.mxu0 %v12680_v0  ;;  %v12080_v58 = vld [vmem:[#allocation2 + $0x1cc] ss:$16 sps:$4 sm:$0xff]   ;;  %v11084_v53 = vadd.s32 4294967169, %v216_v41  ;;  %19372 = vst [vmem:[#allocation20_spill] sm:$0xff] %v12768_v23  ;;  %v12778_v10 = vpack.c.bf16 %v6834_v51, %v6828_v48  ;;  %v319_v12 = vand.u32 2139095040, %v12762_v57  ;;  %v123_v24 = vsub.s32 32, %v122_v9 }
  0x6f   :  { %8748 = vmatmul.mubr.bf16.gmra.mxu1 %v12682_v1  ;;  %8564 = vmatprep.mubr.bf16.mxu0 %v12684_v2  ;;  %v220_v56 = vor.u32 8388608, %v219_v42  ;;  %v19150_v25 = vmov 683565275   ;;  %v19146_v33 = vmov 2131351028   ;;  %v134_v42 = vshll.u32 %v19154_v35, %v122_v9 }
  0x70   :  { %8757 = vmatprep.mubr.bf16.mxu1 %v12689_v6  ;;  %8885 = vmatpush2.bf16.msra.mxu0 %v12069_v4  ;;  %v12772_v6 = vpack.c.bf16 %v6824_v27, %v6818_v26  ;;  %v222_v41 = vadd.s32 1, %v11084_v53  ;;  %19376 = vst [vmem:[#allocation24_spill] sm:$0xff] %v12778_v10  ;;  %v12780_v4 = vshll.u32 %v116_v52, 8  ;;  %v125_v26 = vshll.u32 %v19150_v25, %v122_v9 }
  0x71   :  { %9078 = vmatpush2.bf16.msra.mxu1 %v12072_v28  ;;  %8886 = vmatprep.subr.bf16.mxu0 %v12077_v43  ;;  %v12782_v11 = vshll.u32 %v220_v56, 8  ;;  %v19148_v27 = vmov 2475754826   ;;  %v131_v34 = vshll.u32 %v19146_v33, %v122_v9  ;;  %v19156_v43 = vmov 920167782  }
  0x72   :  { %19373 = vst [vmem:[#allocation21_spill] sm:$0xff] %v12772_v6  ;;  %9079 = vmatprep.subr.bf16.mxu1 %v12080_v58  ;;  %v128_v28 = vshll.u32 %v19148_v27, %v122_v9  ;;  %vm223_vm1 = vcmp.gt.s32.totalorder %v222_v41, 0  ;;  %v137_v47 = vshll.u32 %v19156_v43, %v122_v9  ;;  %vm140_vm2 = vcmp.lt.s32.totalorder %v121_v8, 1 }
  0x73   :  { %v124_v48 = vshrl.u32 %v19150_v25, %v123_v24  ;;  %v126_v50 = vshrl.u32 %v19148_v27, %v123_v24  ;;  %vm141_vm3 = vcmp.lt.s32.totalorder %v121_v8, 2  ;;  %v132_v58 = vshrl.u32 %v19154_v35, %v123_v24 }
  0x74   :  { %8887 = vmatpush2.bf16.msra.mxu0 %v12075_v29  ;;  %v135_v51 = vshrl.u32 %v19156_v43, %v123_v24  ;;  %v19163_v52 = vmov 1326507024   ;;  %vm142_vm4 = vcmp.lt.s32.totalorder %v121_v8, 3  ;;  %vm143_vm5 = vcmp.lt.s32.totalorder %v121_v8, 4 }
  0x75   :  { %9080 = vmatpush2.bf16.msra.mxu1 %v12078_v14  ;;  %v129_v14 = vshrl.u32 %v19146_v33, %v123_v24  ;;  %v138_v53 = vshrl.u32 %v19163_v52, %v123_v24  ;;  %v127_v56 = vor.u32 %v126_v50, %v125_v26  ;;  %v224_v13 = vsel %vm223_vm1, %v222_v41, 0 }
  0x76   :  { %8565 = vmatmul.mubr.bf16.gmra.mxu0 %v12728_v31  ;;  %v133_v9 = vor.u32 %v132_v58, %v131_v34  ;;  %v136_v33 = vor.u32 %v135_v51, %v134_v42  ;;  %v320_v25 = vshrl.u32 %v319_v12, 23  ;;  %v12803_v35 = vshrl.u32 %v224_v13, 5 }
  0x77   :  { %8758 = vmatmul.mubr.bf16.gmra.mxu1 %v12730_v32  ;;  %8574 = vmatprep.mubr.bf16.mxu0 %v12745_v44  ;;  %v130_v29 = vor.u32 %v129_v14, %v128_v28  ;;  %v139_v27 = vor.u32 %v138_v53, %v137_v47  ;;  %v144_v32 = vsel %vm140_vm2, %v124_v48, %v127_v56  ;;  %v226_v43 = vand.u32 31, %v224_v13 }
  0x78   :  { %8767 = vmatprep.mubr.bf16.mxu1 %v12747_v45  ;;  %v145_v1 = vsel %vm143_vm5, %v133_v9, 2102212464  ;;  %v149_v20 = vsel %vm143_vm5, %v136_v33, 920167782  ;;  %v19377_v50 = vmov 683565275  }
  0x79   :  { %v148_v45 = vsel %vm140_vm2, %v127_v56, %v130_v29  ;;  %v152_v24 = vsel %vm140_vm2, %v130_v29, %v133_v9  ;;  %v153_v26 = vsel %vm143_vm5, %v139_v27, 1326507024  ;;  %v146_v28 = vsel %vm142_vm4, %v130_v29, %v145_v1 }
  0x7a   :  { %v150_v41 = vsel %vm142_vm4, %v133_v9, %v149_v20  ;;  %v154_v34 = vsel %vm142_vm4, %v136_v33, %v153_v26  ;;  %v227_v42 = vsub.s32 32, %v226_v43  ;;  %v147_v12 = vsel %vm141_vm3, %v144_v32, %v146_v28 }
  0x7b   :  { %v151_v47 = vsel %vm141_vm3, %v148_v45, %v150_v41  ;;  %v155_v48 = vsel %vm141_vm3, %v152_v24, %v154_v34  ;;  %v229_v14 = vshll.u32 %v19377_v50, %v226_v43  ;;  %v163_v32 = vmul.u32 %v12780_v4, %v147_v12  ;;  %v6830_v12 = vld [vmem:[%s19135_s1 + $0x310] sm:$0xff] }
  0x7c   :  { %v12816_v27 = vmul.u32.u64.low %v12780_v4, %v155_v48  ;;  %v12817_v1 = vmul.u32.u64.high %v12780_v4, %v155_v48, %v12816_v27  ;;  %v12820_v20 = vmul.u32.u64.low %v12780_v4, %v151_v47  ;;  %v12821_v33 = vmul.u32.u64.high %v12780_v4, %v151_v47, %v12820_v20 }
  0x7d   :  { %v228_v45 = vshrl.u32 %v19377_v50, %v227_v42  ;;  %v19378_v8 = vmov 2475754826   ;;  %v11088_v51 = vadd.s32 4294967169, %v320_v25  ;;  %v19379_v56 = vmov 2131351028   ;;  %v6836_v25 = vld [vmem:[%s19135_s1 + $0x340] sm:$0xff] }
  0x7e   :  { %8575 = vmatmul.mubr.bf16.gmra.mxu0 %v12749_v46  ;;  %v230_v58 = vshrl.u32 %v19378_v8, %v227_v42  ;;  %v232_v53 = vshll.u32 %v19378_v8, %v226_v43  ;;  %v233_v29 = vshrl.u32 %v19379_v56, %v227_v42  ;;  %v235_v13 = vshll.u32 %v19379_v56, %v226_v43 }
  0x7f   :  { %8768 = vmatmul.mubr.bf16.gmra.mxu1 %v12764_v3  ;;  %8584 = vmatprep.mubr.bf16.mxu0 %v12766_v5  ;;  %v19380_v9 = vmov 2102212464   ;;  %v19381_v41 = vmov 920167782   ;;  %vm165_vm6 = vc.u32 %v12817_v1, %v12820_v20  ;;  %v166_v47 = vadd.s32 1, %v12821_v33 }
  0x80   :  { %8777 = vmatprep.mubr.bf16.mxu1 %v12768_v23  ;;  %v236_v24 = vshrl.u32 %v19380_v9, %v227_v42  ;;  %v231_v26 = vor.u32 %v230_v58, %v229_v14  ;;  %v238_v28 = vshll.u32 %v19380_v9, %v226_v43  ;;  %v239_v34 = vshrl.u32 %v19381_v41, %v227_v42 }
  0x81   :  { %v241_v4 = vshll.u32 %v19381_v41, %v226_v43  ;;  %v234_v48 = vor.u32 %v233_v29, %v232_v53  ;;  %vm244_vm7 = vcmp.lt.s32.totalorder %v12803_v35, 1  ;;  %v242_v43 = vshrl.u32 %v19163_v52, %v227_v42  ;;  %v6841_v42 = vld [vmem:[%s19135_s1 + $0x368] sm:$0xff]  ;;  %v12083_v52 = vld [vmem:[#allocation2 + $0x5a4] ss:$16 sps:$4 sm:$0xff]  }
  0x82   :  { %v237_v14 = vor.u32 %v236_v24, %v235_v13  ;;  %v240_v27 = vor.u32 %v239_v34, %v238_v28  ;;  %vm245_vm8 = vcmp.lt.s32.totalorder %v12803_v35, 2  ;;  %v167_v58 = vsel %vm165_vm6, %v166_v47, %v12821_v33  ;;  %v6847_v33 = vld [vmem:[%s19135_s1 + $0x398] sm:$0xff]  ;;  %8888 = vmatprep.subr.bf16.mxu0 %v12083_v52 }
  0x83   :  { %vm246_vm9 = vcmp.lt.s32.totalorder %v12803_v35, 3  ;;  %vm247_vm10 = vcmp.lt.s32.totalorder %v12803_v35, 4  ;;  %v248_v23 = vsel %vm244_vm7, %v228_v45, %v231_v26  ;;  %v168_v3 = vadd.s32 %v167_v58, %v163_v32  ;;  %v6843_v32 = vld [vmem:[%s19135_s1 + $0x378] sm:$0xff] }
  0x84   :  { %v243_v16 = vor.u32 %v242_v43, %v241_v4  ;;  %v249_v53 = vsel %vm247_vm10, %v237_v14, 2102212464  ;;  %v252_v29 = vsel %vm244_vm7, %v231_v26, %v234_v48  ;;  %v253_v13 = vsel %vm247_vm10, %v240_v27, 920167782  ;;  %v6849_v4 = vld [vmem:[%s19135_s1 + $0x3a8] sm:$0xff] }
  0x85   :  { %v250_v45 = vsel %vm246_vm9, %v234_v48, %v249_v53  ;;  %v256_v24 = vsel %vm244_vm7, %v234_v48, %v237_v14  ;;  %v12877_v28 = vpack.c.bf16 %v6836_v25, %v6830_v12  ;;  %v169_v34 = vadd.s32 536870912, %v168_v3  ;;  %v12081_v48 = vld [vmem:[#allocation2 + $0x5a0] ss:$16 sps:$4 sm:$0xff]   ;;  %v12084_v26 = vld [vmem:[#allocation2 + $0x1a8] ss:$16 sps:$4 sm:$0xff]  }
  0x86   :  { %8585 = vmatmul.mubr.bf16.gmra.mxu0 %v12770_v49  ;;  %v254_v47 = vsel %vm246_vm9, %v237_v14, %v253_v13  ;;  %v257_v43 = vsel %vm247_vm10, %v243_v16, 1326507024  ;;  %v251_v58 = vsel %vm245_vm8, %v248_v23, %v250_v45  ;;  %v326_v25 = vadd.s32 1, %v11088_v51 }
  0x87   :  { %8778 = vmatmul.mubr.bf16.gmra.mxu1 %v12772_v6  ;;  %8594 = vmatprep.mubr.bf16.mxu0 %v12774_v30  ;;  %19382 = vst [vmem:[#allocation25_spill] sm:$0xff] %v12877_v28  ;;  %v255_v53 = vsel %vm245_vm8, %v252_v29, %v254_v47  ;;  %v258_v12 = vsel %vm246_vm9, %v240_v27, %v257_v43  ;;  %v12086_v6 = vld [vmem:[#allocation2 + $0x1ac] ss:$16 sps:$4 sm:$0xff]   ;;  %v19383_v29 = vand.u32 2147483647, %v12762_v57  ;;  %v6840_v43 = vld [vmem:[%s19135_s1 + $0x360] sm:$0xff] }
  0x88   :  { %8787 = vmatprep.mubr.bf16.mxu1 %v12776_v7  ;;  %v170_v7 = vshrl.u32 %v169_v34, 30  ;;  %v259_v14 = vsel %vm245_vm8, %v256_v24, %v258_v12  ;;  %v12895_v13 = vmul.u32.u64.low %v12782_v11, %v255_v53  ;;  %v12896_v16 = vmul.u32.u64.high %v12782_v11, %v255_v53, %v12895_v13  ;;  %8889 = vmatpush2.bf16.msra.mxu0 %v12081_v48  ;;  %v6846_v53 = vld [vmem:[%s19135_s1 + $0x390] sm:$0xff] }
  0x89   :  { %v12900_v23 = vmul.u32.u64.low %v12782_v11, %v259_v14  ;;  %v12901_v45 = vmul.u32.u64.high %v12782_v11, %v259_v14, %v12900_v23  ;;  %v323_v27 = vand.u32 8388607, %v19383_v29  ;;  %vm327_vm11 = vcmp.gt.s32.totalorder %v326_v25, 0  ;;  %9081 = vmatprep.subr.bf16.mxu1 %v12086_v6  ;;  %v6848_v6 = vld [vmem:[%s19135_s1 + $0x3a0] sm:$0xff] }
  0x8a   :  { %v171_v51 = vshll.u32 %v170_v7, 30  ;;  %v12905_v34 = vpack.c.bf16 %v6847_v33, %v6841_v42  ;;  %v12907_v35 = vpack.c.bf16 %v6849_v4, %v6843_v32  ;;  %v328_v24 = vsel %vm327_vm11, %v326_v25, 0  ;;  %9082 = vmatpush2.bf16.msra.mxu1 %v12084_v26  ;;  %v6842_v33 = vld [vmem:[%s19135_s1 + $0x370] sm:$0xff]  ;;  %v6859_v32 = vld [vmem:[%s19135_s1 + $0x3f8] sm:$0xff]  ;;  %v6861_v4 = vld [vmem:[%s19135_s1 + $0x408] sm:$0xff] }
  0x8b   :  { %v267_v47 = vmul.u32 %v12782_v11, %v251_v58  ;;  %v270_v42 = vadd.s32 1, %v12896_v16  ;;  %v6853_v11 = vld [vmem:[%s19135_s1 + $0x3c8] sm:$0xff]  ;;  %vm269_vm12 = vc.u32 %v12901_v45, %v12895_v13  ;;  %v6855_v26 = vld [vmem:[%s19135_s1 + $0x3d8] sm:$0xff]  ;;  %v324_v12 = vor.u32 8388608, %v323_v27  ;;  %v6852_v14 = vld [vmem:[%s19135_s1 + $0x3c0] sm:$0xff] }
  0x8c   :  { %19384 = vst [vmem:[#allocation26_spill] sm:$0xff] %v12905_v34  ;;  %19385 = vst [vmem:[#allocation27_spill] sm:$0xff] %v12907_v35  ;;  %v12916_v52 = vsub.s32 %v168_v3, %v171_v51  ;;  %v330_v3 = vand.u32 31, %v328_v24  ;;  %v47_v25 = vld [vmem:[%s19134_s0 + $0x18] sm:$0xff]  ;;  %v6858_v23 = vld [vmem:[%s19135_s1 + $0x3f0] sm:$0xff]  ;;  %v12968_v62 = vpack.c.bf16 %v6846_v53, %v6840_v43  ;;  %v12972_v40 = vpack.c.bf16 %v6859_v32, %v6853_v11 }
  0x8d   :  { %v271_v58 = vsel %vm269_vm12, %v270_v42, %v12896_v16  ;;  %v6854_v16 = vld [vmem:[%s19135_s1 + $0x3d0] sm:$0xff]  ;;  %v6860_v27 = vld [vmem:[%s19135_s1 + $0x400] sm:$0xff]  ;;  %v19386_v51 = vand.u32 2147483647, %v12642_v36  ;;  %v12974_v22 = vshrl.u32 %v328_v24, 5  ;;  %v12976_v18 = vshll.u32 %v324_v12, 8 }
  0x8e   :  { %8595 = vmatmul.mubr.bf16.gmra.mxu0 %v12778_v10  ;;  %v174_v48 = vsub.s32 0, %v12916_v52  ;;  %v272_v29 = vadd.s32 %v271_v58, %v267_v47  ;;  %19389 = vst [vmem:[#allocation28_spill] sm:$0xff] %v12968_v62  ;;  %v12970_v58 = vpack.c.bf16 %v6848_v6, %v6842_v33  ;;  %v331_v60 = vsub.s32 32, %v330_v3  ;;  %19391 = vst [vmem:[#allocation30_spill] sm:$0xff] %v12972_v40 }
  0x8f   :  { %8788 = vmatmul.mubr.bf16.gmra.mxu1 %v12877_v28  ;;  %8604 = vmatprep.mubr.bf16.mxu0 %v12905_v34  ;;  %vm12963_vm14 = vcmp.le.f32.partialorder %v19386_v51, 0.7853982  ;;  %v194_v28 = vsub.s32 4, %v170_v7  ;;  %v12978_v51 = vpack.c.bf16 %v6861_v4, %v6855_v26  ;;  %v164_v55 = vadd.s32 %v12820_v20, %v12817_v1 }
  0x90   :  { %8797 = vmatprep.mubr.bf16.mxu1 %v12907_v35  ;;  %v11081_v35 = vmin.u32 %v174_v48, %v12916_v52  ;;  %v273_v47 = vadd.s32 536870912, %v272_v29  ;;  %19390 = vst [vmem:[#allocation29_spill] sm:$0xff] %v12970_v58  ;;  %v12984_v43 = vmul.f32 0.017453277, %v47_v25  ;;  %v12986_v53 = vpack.c.bf16 %v6858_v23, %v6852_v14 }
  0x91   :  { %19392 = vst [vmem:[#allocation31_spill] sm:$0xff] %v12978_v51  ;;  %v195_v6 = vsel %vm110_vm13, %v194_v28, %v170_v7  ;;  %v12991_v24 = vpack.c.bf16 %v6860_v27, %v6854_v16  ;;  %v334_v1 = vshrl.u32 %v19378_v8, %v331_v60  ;;  %v336_v20 = vshll.u32 %v19378_v8, %v330_v3 }
  0x92   :  { %v176_v38 = vclz %v11081_v35  ;;  %v12982_v48 = vshrl.u32 %v273_v47, 30  ;;  %19393 = vst [vmem:[#allocation32_spill] sm:$0xff] %v12986_v53  ;;  %v333_v35 = vshll.u32 %v19377_v50, %v330_v3  ;;  %v337_v32 = vshrl.u32 %v19379_v56, %v331_v60 }
  0x93   :  { %19394 = vst [vmem:[#allocation33_spill] sm:$0xff] %v12991_v24  ;;  %v340_v7 = vshrl.u32 %v19380_v9, %v331_v60  ;;  %v342_v28 = vshll.u32 %v19380_v9, %v330_v3  ;;  %v343_v12 = vshrl.u32 %v19381_v41, %v331_v60  ;;  %v345_v25 = vshll.u32 %v19381_v41, %v330_v3 }
  0x94   :  { %v11082_v33 = vadd.s32 4294967294, %v176_v38  ;;  %v275_v11 = vshll.u32 %v12982_v48, 30  ;;  %v339_v38 = vshll.u32 %v19379_v56, %v330_v3  ;;  %v19395_v27 = vmov 1326507024  }
  0x95   :  { %v346_v47 = vshrl.u32 %v19395_v27, %v331_v60  ;;  %vm214_vm0 = vcmp.lt.s32.totalorder %v12678_v63, 0  ;;  %v335_v3 = vor.u32 %v334_v1, %v333_v35  ;;  %v344_v34 = vor.u32 %v343_v12, %v342_v28 }
  0x96   :  { %8605 = vmatmul.mubr.bf16.gmra.mxu0 %v12968_v62  ;;  %vm11083_vm15 = vcmp.lt.s32.totalorder %v11082_v33, 0  ;;  %v13004_v4 = vsub.s32 %v272_v29, %v275_v11  ;;  %v341_v62 = vor.u32 %v340_v7, %v339_v38  ;;  %vm348_vm1 = vcmp.lt.s32.totalorder %v12974_v22, 1 }
  0x97   :  { %8798 = vmatmul.mubr.bf16.gmra.mxu1 %v12970_v58  ;;  %8614 = vmatprep.mubr.bf16.mxu0 %v12972_v40  ;;  %v179_v26 = vsel %vm11083_vm15, 0, %v11082_v33  ;;  %v13012_v58 = vsel %vm12963_vm14, 0, %v195_v6  ;;  %v332_v33 = vshrl.u32 %v19377_v50, %v331_v60  ;;  %v347_v30 = vor.u32 %v346_v47, %v345_v25 }
  0x98   :  { %8807 = vmatprep.mubr.bf16.mxu1 %v12978_v51  ;;  %v180_v14 = vsub.s32 32, %v179_v26  ;;  %v181_v23 = vshll.u32 %v12916_v52, %v179_v26  ;;  %v184_v16 = vsub.s32 4294967266, %v179_v26  ;;  %v268_v51 = vadd.s32 %v12895_v13, %v12901_v45 }
  0x99   :  { %v278_v29 = vsub.s32 0, %v13004_v4  ;;  %v338_v52 = vor.u32 %v337_v32, %v336_v20  ;;  %vm351_vm2 = vcmp.lt.s32.totalorder %v12974_v22, 4  ;;  %v201_v13 = vadd.s32 3, %v13012_v58 }
  0x9a   :  { %v182_v11 = vshrl.u32 %v164_v55, %v180_v14  ;;  %v185_v40 = vadd.s32 127, %v184_v16  ;;  %v19396_v55 = vand.u32 2147483647, %v12678_v63  ;;  %vm349_vm4 = vcmp.lt.s32.totalorder %v12974_v22, 2 }
  0x9b   :  { %v11085_v26 = vmin.u32 %v278_v29, %v13004_v4  ;;  %vm350_vm5 = vcmp.lt.s32.totalorder %v12974_v22, 3  ;;  %v353_v1 = vsel %vm351_vm2, %v341_v62, 2102212464  ;;  %v356_v20 = vsel %vm348_vm1, %v335_v3, %v338_v52 }
  0x9c   :  { %v183_v6 = vor.u32 %v182_v11, %v181_v23  ;;  %v186_v10 = vshll.u32 %v185_v40, 23  ;;  %vm13025_vm3 = vcmp.le.f32.partialorder %v19396_v55, 0.7853982  ;;  %v298_v38 = vsub.s32 4, %v12982_v48 }
  0x9d   :  { %v280_v45 = vclz %v11085_v26  ;;  %v357_v7 = vsel %vm351_vm2, %v344_v34, 920167782  ;;  %v360_v28 = vsel %vm348_vm1, %v338_v52, %v341_v62  ;;  %v361_v14 = vsel %vm351_vm2, %v347_v30, 1326507024 }
  0x9e   :  { %8615 = vmatmul.mubr.bf16.gmra.mxu0 %v12986_v53  ;;  %v187_v40 = vor.u32 4788187, %v186_v10  ;;  %v190_v35 = vcvt.s32.f32 %v183_v6  ;;  %v352_v10 = vsel %vm348_vm1, %v332_v33, %v335_v3  ;;  %v358_v25 = vsel %vm350_vm5, %v341_v62, %v357_v7 }
  0x9f   :  { %8808 = vmatmul.mubr.bf16.gmra.mxu1 %v12991_v24  ;;  %v11086_v32 = vadd.s32 4294967294, %v280_v45  ;;  %v354_v23 = vsel %vm350_vm5, %v338_v52, %v353_v1  ;;  %v359_v16 = vsel %vm349_vm4, %v356_v20, %v358_v25  ;;  %v362_v47 = vsel %vm350_vm5, %v344_v34, %v361_v14 }
  0xa0   :  { %v188_v12 = vand.u32 2147483647, %v187_v40  ;;  %v363_v33 = vsel %vm349_vm4, %v360_v28, %v362_v47  ;;  %v19184_v62 = vand.u32 2147483647, %v12984_v43  ;;  %v299_v52 = vsel %vm214_vm0, %v298_v38, %v12982_v48  ;;  %v48_v40 = vld [vmem:[%s19134_s0 + $0x20] sm:$0xff] }
  0xa1   :  { %vm11087_vm6 = vcmp.lt.s32.totalorder %v11086_v32, 0  ;;  %v355_v55 = vsel %vm349_vm4, %v352_v10, %v354_v23  ;;  %v13064_v34 = vmul.u32.u64.low %v12976_v18, %v363_v33  ;;  %v13065_v45 = vmul.u32.u64.high %v12976_v18, %v363_v33, %v13064_v34  ;;  %v6867_v33 = vld [vmem:[%s19135_s1 + $0x438] sm:$0xff] }
  0xa2   :  { %v191_v29 = vmul.f32 %v190_v35, %v188_v12  ;;  %v283_v11 = vsel %vm11087_vm6, 0, %v11086_v32  ;;  %v301_v22 = vsel %vm13025_vm3, 0, %v299_v52  ;;  %v423_v32 = vand.u32 2139095040, %v12984_v43 }
  0xa3   :  { %v284_v3 = vsub.s32 32, %v283_v11  ;;  %v285_v30 = vshll.u32 %v13004_v4, %v283_v11  ;;  %v288_v26 = vsub.s32 4294967266, %v283_v11  ;;  %v427_v38 = vand.u32 8388607, %v19184_v62  ;;  %v6865_v11 = vld [vmem:[%s19135_s1 + $0x428] sm:$0xff] }
  0xa4   :  { %v192_v6 = vxor.u32 2147483648, %v191_v29  ;;  %v13071_v4 = vmul.u32.u64.low %v12976_v18, %v359_v16  ;;  %v13072_v20 = vmul.u32.u64.high %v12976_v18, %v359_v16, %v13071_v4  ;;  %v13085_v12 = vmul.f32 0.017453277, %v48_v40 }
  0xa5   :  { %v286_v35 = vshrl.u32 %v268_v51, %v284_v3  ;;  %v289_v1 = vadd.s32 127, %v288_v26  ;;  %v371_v10 = vmul.u32 %v12976_v18, %v355_v55  ;;  %v424_v25 = vshrl.u32 %v423_v32, 23  ;;  %v6871_v18 = vld [vmem:[%s19135_s1 + $0x458] sm:$0xff] }
  0xa6   :  { %v193_v48 = vsel %vm110_vm13, %v192_v6, %v191_v29  ;;  %vm373_vm7 = vc.u32 %v13065_v45, %v13071_v4  ;;  %v374_v16 = vadd.s32 1, %v13072_v20  ;;  %v13091_v47 = vand.u32 3, %v201_v13 }
  0xa7   :  { %v196_v51 = vsel %vm12963_vm14, %v12642_v36, %v193_v48  ;;  %v287_v7 = vor.u32 %v286_v35, %v285_v30  ;;  %v290_v28 = vshll.u32 %v289_v1, 23  ;;  %v13094_v42 = vand.u32 3, %v13012_v58  ;;  %v6873_v58 = vld [vmem:[%s19135_s1 + $0x468] sm:$0xff] }
  0xa8   :  { %12245 = vcosq.f32 %v196_v51  ;;  %v11092_v29 = vadd.s32 4294967169, %v424_v25  ;;  %v375_v13 = vsel %vm373_vm7, %v374_v16, %v13072_v20  ;;  %v527_v30 = vand.u32 2139095040, %v13085_v12  ;;  %v49_v48 = vld [vmem:[%s19134_s0 + $0x28] sm:$0xff] }
  0xa9   :  { %12247 = vsinq.f32 %v196_v51  ;;  %v291_v14 = vor.u32 4788187, %v290_v28  ;;  %v294_v23 = vcvt.s32.f32 %v287_v7  ;;  %v305_v26 = vadd.s32 3, %v301_v22 }
  0xaa   :  { %v376_v52 = vadd.s32 %v375_v13, %v371_v10  ;;  %v430_v6 = vadd.s32 1, %v11092_v29  ;;  %vm318_vm8 = vcmp.lt.s32.totalorder %v12762_v57, 0  ;;  %v428_v34 = vor.u32 8388608, %v427_v38 }
  0xab   :  { %v292_v3 = vand.u32 2147483647, %v291_v14  ;;  %v19183_v40 = vand.u32 2147483647, %v13085_v12  ;;  %v13112_v35 = vpack.c.bf16 %v6871_v18, %v6865_v11  ;;  %vm3531_vm9 = vcmp.eq.s32.totalorder %v13094_v42, 0 }
  0xac   :  { %vm3534_vm10 = vcmp.eq.s32.totalorder %v13094_v42, 2  ;;  %v377_v1 = vadd.s32 536870912, %v376_v52  ;;  %vm431_vm11 = vcmp.gt.s32.totalorder %v430_v6, 0  ;;  %v13116_v20 = vpack.c.bf16 %v6873_v58, %v6867_v33 }
  0xad   :  { %v295_v55 = vmul.f32 %v294_v23, %v292_v3  ;;  %19399 = vst [vmem:[#allocation34_spill] sm:$0xff] %v13112_v35  ;;  %vm203_vm12 = vcmp.lt.s32.totalorder %v13091_v47, 2  ;;  %vm204_vm13 = vcmp.eq.s32.totalorder %v13091_v47, 0  ;;  %vm3530_vm14 = vcmp.lt.s32.totalorder %v13094_v42, 2  ;;  %8624 = vmatprep.mubr.bf16.mxu0 %v13112_v35 }
  0xae   :  { %19400 = vst [vmem:[#allocation35_spill] sm:$0xff] %v13116_v20  ;;  %v432_v38 = vsel %vm431_vm11, %v430_v6, 0  ;;  %v528_v51 = vshrl.u32 %v527_v30, 23  ;;  %vm207_vm15 = vcmp.eq.s32.totalorder %v13091_v47, 2  ;;  %v13126_v7 = vand.u32 3, %v301_v22  ;;  %8817 = vmatprep.mubr.bf16.mxu1 %v13116_v20 }
  0xaf   :  { %v296_v32 = vxor.u32 2147483648, %v295_v55  ;;  %v378_v28 = vshrl.u32 %v377_v1, 30  ;;  %v434_v10 = vand.u32 31, %v432_v38  ;;  %v13131_v14 = vand.u32 3, %v305_v26  ;;  %v12087_v26 = vld [vmem:[#allocation2 + $0x580] ss:$16 sps:$4 sm:$0xff]  }
  0xb0   :  { %v13133_v23 = vshll.u32 %v428_v34, 8  ;;  %v13137_v16 = vand.u32 8388607, %v19183_v40  ;;  %v13142_v18 = vmul.f32 0.017453277, %v49_v48  ;;  %v11096_v3 = vadd.s32 4294967169, %v528_v51 }
  0xb1   :  { %v297_v25 = vsel %vm214_vm0, %v296_v32, %v295_v55  ;;  %v379_v29 = vshll.u32 %v378_v28, 30  ;;  %v402_v11 = vsub.s32 4, %v378_v28  ;;  %v435_v33 = vsub.s32 32, %v434_v10  ;;  %v12089_v6 = vld [vmem:[#allocation2 + $0x584] ss:$16 sps:$4 sm:$0xff]  }
  0xb2   :  { %v300_v22 = vsel %vm13025_vm3, %v12678_v63, %v297_v25  ;;  %vm200_vm0 = vweird.f32 %v12642_v36  ;;  %v19401_v13 = vand.u32 2147483647, %v12762_v57  ;;  %v13153_v60 = vadd.s32 %v13071_v4, %v13065_v45  ;;  %v12090_v55 = vld [vmem:[#allocation2 + $0x188] ss:$16 sps:$4 sm:$0xff]   ;;  %v12092_v25 = vld [vmem:[#allocation2 + $0x18c] ss:$16 sps:$4 sm:$0xff]   ;;  %8890 = vmatprep.subr.bf16.mxu0 %v12089_v6 }
  0xb3   :  { %12249 = vcosq.f32 %v300_v22  ;;  %v13155_v58 = vsub.s32 %v376_v52, %v379_v29  ;;  %v13157_v1 = vshrl.u32 %v432_v38, 5  ;;  %v437_v48 = vshll.u32 %v19377_v50, %v434_v10  ;;  %8891 = vmatpush2.bf16.msra.mxu0 %v12087_v26  ;;  %9083 = vmatprep.subr.bf16.mxu1 %v12092_v25 }
  0xb4   :  { %12251 = vsinq.f32 %v300_v22  ;;  %vm13147_vm1 = vcmp.le.f32.partialorder %v19401_v13, 0.7853982  ;;  %v440_v32 = vshll.u32 %v19378_v8, %v434_v10  ;;  %v403_v4 = vsel %vm318_vm8, %v402_v11, %v378_v28  ;;  %9084 = vmatpush2.bf16.msra.mxu1 %v12090_v55 }
  0xb5   :  { %v12246_v34 = vpop.eup %12245  ;;  %v382_v45 = vsub.s32 0, %v13155_v58  ;;  %v443_v52 = vshll.u32 %v19379_v56, %v434_v10  ;;  %v438_v38 = vshrl.u32 %v19378_v8, %v435_v33  ;;  %v441_v40 = vshrl.u32 %v19379_v56, %v435_v33 }
  0xb6   :  { %v12248_v22 = vpop.eup %12247  ;;  %v208_v13 = vxor.u32 2147483648, %v12246_v34  ;;  %v444_v62 = vshrl.u32 %v19380_v9, %v435_v33  ;;  %vm311_vm2 = vcmp.eq.s32.totalorder %v13131_v14, 2  ;;  %vm3637_vm3 = vcmp.eq.s32.totalorder %v13126_v7, 2 }
  0xb7   :  { %v205_v29 = vxor.u32 2147483648, %v12248_v22  ;;  %v11089_v28 = vmin.u32 %v382_v45, %v13155_v58  ;;  %v446_v11 = vshll.u32 %v19380_v9, %v434_v10  ;;  %vm308_vm4 = vcmp.eq.s32.totalorder %v13131_v14, 0 }
  0xb8   :  { %v209_v51 = vsel %vm207_vm15, %v208_v13, %v12248_v22  ;;  %v3536_v20 = vsel %vm3534_vm10, %v208_v13, %v12248_v22  ;;  %vm3634_vm5 = vcmp.eq.s32.totalorder %v13126_v7, 0  ;;  %v436_v25 = vshrl.u32 %v19377_v50, %v435_v33 }
  0xb9   :  { %v206_v6 = vsel %vm204_vm13, %v12246_v34, %v205_v29  ;;  %v3533_v26 = vsel %vm3531_vm9, %v12246_v34, %v205_v29  ;;  %v447_v22 = vshrl.u32 %v19381_v41, %v435_v33  ;;  %vm307_vm6 = vcmp.lt.s32.totalorder %v13131_v14, 2 }
  0xba   :  { %v210_v13 = vsel %vm203_vm12, %v206_v6, %v209_v51  ;;  %v3537_v55 = vsel %vm3530_vm14, %v3533_v26, %v3536_v20  ;;  %vm3633_vm7 = vcmp.lt.s32.totalorder %v13126_v7, 2  ;;  %v384_v45 = vclz %v11089_v28 }
  0xbb   :  { %v449_v34 = vshll.u32 %v19381_v41, %v434_v10  ;;  %v211_v29 = vsel %vm200_vm0, nan, %v210_v13  ;;  %v3538_v24 = vsel %vm200_vm0, nan, %v3537_v55  ;;  %vm304_vm9 = vweird.f32 %v12678_v63 }
  0xbc   :  { %v439_v47 = vor.u32 %v438_v38, %v437_v48  ;;  %v442_v51 = vor.u32 %v441_v40, %v440_v32  ;;  %7215 = vperm.xlu0 %11923, %v211_v29   ;;  %9643 = vperm.xlu1 %11924, %v3538_v24   ;;  %v11090_v42 = vadd.s32 4294967294, %v384_v45  ;;  %v445_v20 = vor.u32 %v444_v62, %v443_v52 }
  0xbd   :  { %v448_v6 = vor.u32 %v447_v22, %v446_v11  ;;  %v450_v26 = vshrl.u32 %v19395_v27, %v435_v33  ;;  %v13200_v10 = vsel %vm13147_vm1, 0, %v403_v4  ;;  %vm452_vm10 = vcmp.lt.s32.totalorder %v13157_v1, 1 }
  0xbe   :  { %vm455_vm11 = vcmp.lt.s32.totalorder %v13157_v1, 4  ;;  %v534_v36 = vadd.s32 1, %v11096_v3  ;;  %vm11091_vm12 = vcmp.lt.s32.totalorder %v11090_v42, 0  ;;  %vm454_vm13 = vcmp.lt.s32.totalorder %v13157_v1, 3 }
  0xbf   :  { %v451_v28 = vor.u32 %v450_v26, %v449_v34  ;;  %v457_v24 = vsel %vm455_vm11, %v445_v20, 2102212464  ;;  %v387_v62 = vsel %vm11091_vm12, 0, %v11090_v42  ;;  %vm453_vm14 = vcmp.lt.s32.totalorder %v13157_v1, 2 }
  0xc0   :  { %v456_v40 = vsel %vm452_vm10, %v436_v25, %v439_v47  ;;  %v461_v33 = vsel %vm455_vm11, %v448_v6, 920167782  ;;  %v12250_v48 = vpop.eup %12249  ;;  %v388_v32 = vsub.s32 32, %v387_v62  ;;  %v389_v3 = vshll.u32 %v13155_v58, %v387_v62 }
  0xc1   :  { %v392_v4 = vsub.s32 4294967266, %v387_v62  ;;  %v460_v52 = vsel %vm452_vm10, %v439_v47, %v442_v51  ;;  %v12252_v38 = vpop.eup %12251  ;;  %v312_v11 = vxor.u32 2147483648, %v12250_v48  ;;  %v458_v22 = vsel %vm454_vm13, %v442_v51, %v457_v24 }
  0xc2   :  { %v462_v13 = vsel %vm454_vm13, %v445_v20, %v461_v33  ;;  %v465_v25 = vsel %vm455_vm11, %v451_v28, 1326507024  ;;  %v309_v55 = vxor.u32 2147483648, %v12252_v38  ;;  %v390_v45 = vshrl.u32 %v13153_v60, %v388_v32 }
  0xc3   :  { %v393_v34 = vadd.s32 127, %v392_v4  ;;  %v464_v58 = vsel %vm452_vm10, %v442_v51, %v445_v20  ;;  %v313_v29 = vsel %vm311_vm2, %v312_v11, %v12252_v38  ;;  %v3639_v47 = vsel %vm3637_vm3, %v312_v11, %v12252_v38 }
  0xc4   :  { %v463_v42 = vsel %vm453_vm14, %v460_v52, %v462_v13  ;;  %v466_v26 = vsel %vm454_vm13, %v448_v6, %v465_v25  ;;  %v310_v28 = vsel %vm308_vm4, %v12250_v48, %v309_v55  ;;  %v3636_v60 = vsel %vm3634_vm5, %v12250_v48, %v309_v55 }
  0xc5   :  { %v391_v24 = vor.u32 %v390_v45, %v389_v3  ;;  %v394_v51 = vshll.u32 %v393_v34, 23  ;;  %v314_v20 = vsel %vm307_vm6, %v310_v28, %v313_v29  ;;  %v3640_v62 = vsel %vm3633_vm7, %v3636_v60, %v3639_v47 }
  0xc6   :  { %v459_v33 = vsel %vm453_vm14, %v456_v40, %v458_v22  ;;  %v467_v6 = vsel %vm453_vm14, %v464_v58, %v466_v26  ;;  %v315_v32 = vsel %vm304_vm9, nan, %v314_v20  ;;  %v3641_v48 = vsel %vm304_vm9, nan, %v3640_v62 }
  0xc7   :  { %v395_v3 = vor.u32 4788187, %v394_v51  ;;  %v398_v4 = vcvt.s32.f32 %v391_v24  ;;  %7220 = vperm.xlu0 %11923, %v315_v32   ;;  %9648 = vperm.xlu1 %11924, %v3641_v48   ;;  %v13249_v14 = vmul.u32.u64.low %v13133_v23, %v467_v6  ;;  %v13250_v7 = vmul.u32.u64.high %v13133_v23, %v467_v6, %v13249_v14 }
  0xc8   :  { %v13253_v52 = vmul.u32.u64.low %v13133_v23, %v463_v42  ;;  %v13254_v40 = vmul.u32.u64.high %v13133_v23, %v463_v42, %v13253_v52  ;;  %vm535_vm15 = vcmp.gt.s32.totalorder %v534_v36, 0  ;;  %v19404_v11 = vor.u32 8388608, %v13137_v16 }
  0xc9   :  { %v396_v1 = vand.u32 2147483647, %v395_v3  ;;  %v536_v38 = vsel %vm535_vm15, %v534_v36, 0  ;;  %v409_v13 = vadd.s32 3, %v13200_v10  ;;  %v475_v25 = vmul.u32 %v13133_v23, %v459_v33 }
  0xca   :  { %v13259_v63 = vshll.u32 %v19404_v11, 8  ;;  %v538_v55 = vand.u32 31, %v536_v38  ;;  %vm477_vm0 = vc.u32 %v13250_v7, %v13253_v52  ;;  %v478_v45 = vadd.s32 1, %v13254_v40 }
  0xcb   :  { %v399_v22 = vmul.f32 %v398_v4, %v396_v1  ;;  %v537_v34 = vshrl.u32 %v536_v38, 5  ;;  %v631_v58 = vand.u32 2139095040, %v13142_v18  ;;  %vm408_vm6 = vweird.f32 %v12762_v57 }
  0xcc   :  { %v539_v36 = vsub.s32 32, %v538_v55  ;;  %v541_v16 = vshll.u32 %v19377_v50, %v538_v55  ;;  %v544_v47 = vshll.u32 %v19378_v8, %v538_v55  ;;  %v479_v42 = vsel %vm477_vm0, %v478_v45, %v13254_v40 }
  0xcd   :  { %v400_v29 = vxor.u32 2147483648, %v399_v22  ;;  %v547_v26 = vshll.u32 %v19379_v56, %v538_v55  ;;  %v550_v23 = vshll.u32 %v19380_v9, %v538_v55  ;;  %v553_v28 = vshll.u32 %v19381_v41, %v538_v55 }
  0xce   :  { %v480_v24 = vadd.s32 %v479_v42, %v475_v25  ;;  %v540_v51 = vshrl.u32 %v19377_v50, %v539_v36  ;;  %v542_v20 = vshrl.u32 %v19378_v8, %v539_v36  ;;  %v545_v33 = vshrl.u32 %v19379_v56, %v539_v36 }
  0xcf   :  { %v401_v60 = vsel %vm318_vm8, %v400_v29, %v399_v22  ;;  %v548_v6 = vshrl.u32 %v19380_v9, %v539_v36  ;;  %v551_v32 = vshrl.u32 %v19381_v41, %v539_v36  ;;  %v554_v4 = vshrl.u32 %v19395_v27, %v539_v36 }
  0xd0   :  { %v404_v62 = vsel %vm13147_vm1, %v12762_v57, %v401_v60  ;;  %v481_v48 = vadd.s32 536870912, %v480_v24  ;;  %v543_v3 = vor.u32 %v542_v20, %v541_v16  ;;  %v546_v14 = vor.u32 %v545_v33, %v544_v47 }
  0xd1   :  { %12253 = vcosq.f32 %v404_v62  ;;  %v549_v40 = vor.u32 %v548_v6, %v547_v26  ;;  %v552_v1 = vor.u32 %v551_v32, %v550_v23  ;;  %v555_v11 = vor.u32 %v554_v4, %v553_v28 }
  0xd2   :  { %12255 = vsinq.f32 %v404_v62  ;;  %v482_v38 = vshrl.u32 %v481_v48, 30  ;;  %vm556_vm8 = vcmp.lt.s32.totalorder %v537_v34, 1  ;;  %v632_v30 = vshrl.u32 %v631_v58, 23 }
  0xd3   :  { %vm422_vm1 = vcmp.lt.s32.totalorder %v12984_v43, 0  ;;  %vm557_vm2 = vcmp.lt.s32.totalorder %v537_v34, 2  ;;  %vm558_vm3 = vcmp.lt.s32.totalorder %v537_v34, 3  ;;  %vm559_vm4 = vcmp.lt.s32.totalorder %v537_v34, 4 }
  0xd4   :  { %v564_v22 = vsel %vm556_vm8, %v543_v3, %v546_v14  ;;  %v483_v25 = vshll.u32 %v482_v38, 30  ;;  %v560_v55 = vsel %vm556_vm8, %v540_v51, %v543_v3  ;;  %v561_v45 = vsel %vm559_vm4, %v549_v40, 2102212464 }
  0xd5   :  { %v565_v29 = vsel %vm559_vm4, %v552_v1, 920167782  ;;  %v562_v36 = vsel %vm558_vm3, %v546_v14, %v561_v45  ;;  %v568_v47 = vsel %vm556_vm8, %v546_v14, %v549_v40  ;;  %v569_v42 = vsel %vm559_vm4, %v555_v11, 1326507024 }
  0xd6   :  { %v566_v16 = vsel %vm558_vm3, %v549_v40, %v565_v29  ;;  %v410_v26 = vand.u32 3, %v409_v13  ;;  %v19405_v23 = vand.u32 2147483647, %v12984_v43  ;;  %v13293_v28 = vsub.s32 %v480_v24, %v483_v25 }
  0xd7   :  { %v567_v60 = vsel %vm557_vm2, %v564_v22, %v566_v16  ;;  %v3735_v51 = vand.u32 3, %v13200_v10  ;;  %v570_v20 = vsel %vm558_vm3, %v552_v1, %v569_v42  ;;  %v506_v6 = vsub.s32 4, %v482_v38 }
  0xd8   :  { %vm13289_vm5 = vcmp.le.f32.partialorder %v19405_v23, 0.7853982  ;;  %v13299_v62 = vmul.u32.u64.low %v13259_v63, %v567_v60  ;;  %v13300_v33 = vmul.u32.u64.high %v13259_v63, %v567_v60, %v13299_v62  ;;  %v486_v13 = vsub.s32 0, %v13293_v28 }
  0xd9   :  { %v563_v32 = vsel %vm557_vm2, %v560_v55, %v562_v36  ;;  %v571_v24 = vsel %vm557_vm2, %v568_v47, %v570_v20  ;;  %v19187_v10 = vand.u32 2147483647, %v13142_v18  ;;  %v11100_v4 = vadd.s32 4294967169, %v632_v30 }
  0xda   :  { %v13308_v48 = vmul.u32.u64.low %v13259_v63, %v571_v24  ;;  %v13309_v3 = vmul.u32.u64.high %v13259_v63, %v571_v24, %v13308_v48  ;;  %vm411_vm7 = vcmp.lt.s32.totalorder %v410_v26, 2  ;;  %vm412_vm9 = vcmp.eq.s32.totalorder %v410_v26, 0 }
  0xdb   :  { %vm415_vm10 = vcmp.eq.s32.totalorder %v410_v26, 2  ;;  %v11093_v14 = vmin.u32 %v486_v13, %v13293_v28  ;;  %vm3736_vm11 = vcmp.lt.s32.totalorder %v3735_v51, 2  ;;  %v579_v40 = vmul.u32 %v13259_v63, %v563_v32  ;;  %v6864_v63 = vld [vmem:[%s19135_s1 + $0x420] sm:$0xff] }
  0xdc   :  { %v582_v1 = vadd.s32 1, %v13300_v33  ;;  %v638_v11 = vadd.s32 1, %v11100_v4  ;;  %v507_v22 = vsel %vm422_vm1, %v506_v6, %v482_v38  ;;  %vm3737_vm12 = vcmp.eq.s32.totalorder %v3735_v51, 0  ;;  %v6870_v38 = vld [vmem:[%s19135_s1 + $0x450] sm:$0xff] }
  0xdd   :  { %v488_v34 = vclz %v11093_v14  ;;  %vm3740_vm13 = vcmp.eq.s32.totalorder %v3735_v51, 2  ;;  %v476_v30 = vadd.s32 %v13253_v52, %v13250_v7  ;;  %vm581_vm14 = vc.u32 %v13309_v3, %v13299_v62 }
  0xde   :  { %v12254_v25 = vpop.eup %12253  ;;  %v13323_v55 = vand.u32 8388607, %v19187_v10  ;;  %vm639_vm15 = vcmp.gt.s32.totalorder %v638_v11, 0  ;;  %v583_v7 = vsel %vm581_vm14, %v582_v1, %v13300_v33  ;;  %v509_v47 = vsel %vm13289_vm5, 0, %v507_v22 }
  0xdf   :  { %v12256_v45 = vpop.eup %12255  ;;  %v416_v29 = vxor.u32 2147483648, %v12254_v25  ;;  %v11094_v36 = vadd.s32 4294967294, %v488_v34  ;;  %v640_v52 = vsel %vm639_vm15, %v638_v11, 0  ;;  %v584_v42 = vadd.s32 %v583_v7, %v579_v40 }
  0xe0   :  { %v413_v16 = vxor.u32 2147483648, %v12256_v45  ;;  %v642_v23 = vand.u32 31, %v640_v52  ;;  %v13336_v13 = vpack.c.bf16 %v6870_v38, %v6864_v63  ;;  %v636_v7 = vor.u32 8388608, %v13323_v55 }
  0xe1   :  { %v417_v60 = vsel %vm415_vm10, %v416_v29, %v12256_v45  ;;  %vm11095_vm0 = vcmp.lt.s32.totalorder %v11094_v36, 0  ;;  %v3742_v20 = vsel %vm3740_vm13, %v416_v29, %v12256_v45  ;;  %v585_v33 = vadd.s32 536870912, %v584_v42 }
  0xe2   :  { %19408 = vst [vmem:[#allocation36_spill] sm:$0xff] %v13336_v13  ;;  %v414_v6 = vsel %vm412_vm9, %v12254_v25, %v413_v16  ;;  %v491_v32 = vsel %vm11095_vm0, 0, %v11094_v36  ;;  %v3739_v24 = vsel %vm3737_vm12, %v12254_v25, %v413_v16  ;;  %8625 = vmatmul.mubr.bf16.gmra.mxu0 %v13336_v13  ;;  %v643_v22 = vsub.s32 32, %v642_v23 }
  0xe3   :  { %v418_v48 = vsel %vm411_vm7, %v414_v6, %v417_v60  ;;  %v492_v4 = vsub.s32 32, %v491_v32  ;;  %v493_v14 = vshll.u32 %v13293_v28, %v491_v32  ;;  %v496_v40 = vsub.s32 4294967266, %v491_v32 }
  0xe4   :  { %v419_v1 = vsel %vm408_vm6, nan, %v418_v48  ;;  %v3743_v11 = vsel %vm3736_vm11, %v3739_v24, %v3742_v20  ;;  %v586_v34 = vshrl.u32 %v585_v33, 30  ;;  %v13346_v25 = vadd.s32 3, %v509_v47  ;;  %v12093_v48 = vld [vmem:[#allocation2 + $0x560] ss:$16 sps:$4 sm:$0xff]  }
  0xe5   :  { %7225 = vperm.xlu0 %11923, %v419_v1   ;;  %v494_v63 = vshrl.u32 %v476_v30, %v492_v4  ;;  %v497_v38 = vadd.s32 127, %v496_v40  ;;  %v3744_v26 = vsel %vm408_vm6, nan, %v3743_v11  ;;  %v13350_v45 = vand.u32 3, %v509_v47  ;;  %v12095_v4 = vld [vmem:[#allocation2 + $0x564] ss:$16 sps:$4 sm:$0xff]  }
  0xe6   :  { %v587_v28 = vshll.u32 %v586_v34, 30  ;;  %v645_v51 = vshll.u32 %v19377_v50, %v642_v23  ;;  %vm526_vm8 = vcmp.lt.s32.totalorder %v13085_v12, 0  ;;  %v646_v30 = vshrl.u32 %v19378_v8, %v643_v22  ;;  %8892 = vmatprep.subr.bf16.mxu0 %v12095_v4 }
  0xe7   :  { %v495_v29 = vor.u32 %v494_v63, %v493_v14  ;;  %v498_v36 = vshll.u32 %v497_v38, 23  ;;  %v648_v60 = vshll.u32 %v19378_v8, %v642_v23  ;;  %v649_v57 = vshrl.u32 %v19379_v56, %v643_v22  ;;  %v12098_v63 = vld [vmem:[#allocation2 + $0x16c] ss:$16 sps:$4 sm:$0xff]   ;;  %8893 = vmatpush2.bf16.msra.mxu0 %v12093_v48 }
  0xe8   :  { %v13355_v16 = vsub.s32 %v584_v42, %v587_v28  ;;  %v13360_v6 = vshrl.u32 %v640_v52, 5  ;;  %v651_v32 = vshll.u32 %v19379_v56, %v642_v23  ;;  %v610_v24 = vsub.s32 4, %v586_v34  ;;  %v12096_v52 = vld [vmem:[#allocation2 + $0x168] ss:$16 sps:$4 sm:$0xff]   ;;  %9085 = vmatprep.subr.bf16.mxu1 %v12098_v63 }
  0xe9   :  { %v499_v20 = vor.u32 4788187, %v498_v36  ;;  %v502_v47 = vcvt.s32.f32 %v495_v29  ;;  %9653 = vperm.xlu0 %11923, %v3744_v26   ;;  %v652_v33 = vshrl.u32 %v19380_v9, %v643_v22  ;;  %v654_v42 = vshll.u32 %v19380_v9, %v642_v23  ;;  %9086 = vmatpush2.bf16.msra.mxu1 %v12096_v52 }
  0xea   :  { %v590_v55 = vsub.s32 0, %v13355_v16  ;;  %v655_v40 = vshrl.u32 %v19381_v41, %v643_v22  ;;  %v657_v1 = vshll.u32 %v19381_v41, %v642_v23  ;;  %v658_v11 = vshrl.u32 %v19395_v27, %v643_v22 }
  0xeb   :  { %v500_v14 = vand.u32 2147483647, %v499_v20  ;;  %v644_v26 = vshrl.u32 %v19377_v50, %v643_v22  ;;  %v647_v28 = vor.u32 %v646_v30, %v645_v51  ;;  %v650_v29 = vor.u32 %v649_v57, %v648_v60 }
  0xec   :  { %v11097_v38 = vmin.u32 %v590_v55, %v13355_v16  ;;  %v653_v10 = vor.u32 %v652_v33, %v651_v32  ;;  %v656_v13 = vor.u32 %v655_v40, %v654_v42  ;;  %vm660_vm2 = vcmp.lt.s32.totalorder %v13360_v6, 1 }
  0xed   :  { %v503_v36 = vmul.f32 %v502_v47, %v500_v14  ;;  %v580_v23 = vadd.s32 %v13299_v62, %v13309_v3  ;;  %v659_v35 = vor.u32 %v658_v11, %v657_v1  ;;  %v13374_v53 = vshll.u32 %v636_v7, 8  ;;  %v50_v1 = vld [vmem:[%s19134_s0 + $0x30] sm:$0xff]  ;;  %v6877_v11 = vld [vmem:[%s19135_s1 + $0x488] sm:$0xff] }
  0xee   :  { %v592_v20 = vclz %v11097_v38  ;;  %vm661_vm3 = vcmp.lt.s32.totalorder %v13360_v6, 2  ;;  %vm662_vm4 = vcmp.lt.s32.totalorder %v13360_v6, 3  ;;  %vm663_vm6 = vcmp.lt.s32.totalorder %v13360_v6, 4 }
  0xef   :  { %v504_v55 = vxor.u32 2147483648, %v503_v36  ;;  %v665_v51 = vsel %vm663_vm6, %v653_v10, 2102212464  ;;  %v668_v30 = vsel %vm660_vm2, %v647_v28, %v650_v29  ;;  %v669_v62 = vsel %vm663_vm6, %v656_v13, 920167782 }
  0xf0   :  { %v11098_v22 = vadd.s32 4294967294, %v592_v20  ;;  %v611_v7 = vsel %vm526_vm8, %v610_v24, %v586_v34  ;;  %v664_v60 = vsel %vm660_vm2, %v644_v26, %v647_v28  ;;  %v670_v57 = vsel %vm662_vm4, %v653_v10, %v669_v62  ;;  %v6866_v34 = vld [vmem:[%s19135_s1 + $0x430] sm:$0xff]  ;;  %v6872_v24 = vld [vmem:[%s19135_s1 + $0x460] sm:$0xff] }
  0xf1   :  { %v505_v3 = vsel %vm422_vm1, %v504_v55, %v503_v36  ;;  %v666_v32 = vsel %vm662_vm4, %v650_v29, %v665_v51  ;;  %v671_v33 = vsel %vm661_vm3, %v668_v30, %v670_v57  ;;  %v672_v58 = vsel %vm660_vm2, %v650_v29, %v653_v10  ;;  %v6883_v10 = vld [vmem:[%s19135_s1 + $0x4b8] sm:$0xff] }
  0xf2   :  { %v508_v47 = vsel %vm13289_vm5, %v12984_v43, %v505_v3  ;;  %vm11099_vm7 = vcmp.lt.s32.totalorder %v11098_v22, 0  ;;  %v673_v48 = vsel %vm663_vm6, %v659_v35, 1326507024  ;;  %v667_v28 = vsel %vm661_vm3, %v664_v60, %v666_v32  ;;  %v6879_v3 = vld [vmem:[%s19135_s1 + $0x498] sm:$0xff]  ;;  %v6885_v60 = vld [vmem:[%s19135_s1 + $0x4c8] sm:$0xff] }
  0xf3   :  { %12257 = vcosq.f32 %v508_v47  ;;  %v595_v42 = vsel %vm11099_vm7, 0, %v11098_v22  ;;  %v674_v35 = vsel %vm662_vm4, %v656_v13, %v673_v48  ;;  %v13438_v13 = vmul.f32 0.017453277, %v50_v1 }
  0xf4   :  { %12259 = vsinq.f32 %v508_v47  ;;  %v596_v4 = vsub.s32 32, %v595_v42  ;;  %v597_v14 = vshll.u32 %v13355_v16, %v595_v42  ;;  %v600_v40 = vsub.s32 4294967266, %v595_v42  ;;  %v6878_v42 = vld [vmem:[%s19135_s1 + $0x490] sm:$0xff] }
  0xf5   :  { %v13423_v52 = vmul.u32.u64.low %v13374_v53, %v671_v33  ;;  %v13424_v63 = vmul.u32.u64.high %v13374_v53, %v671_v33, %v13423_v52  ;;  %v13427_v16 = vpack.c.bf16 %v6872_v24, %v6866_v34  ;;  %v675_v29 = vsel %vm661_vm3, %v672_v58, %v674_v35  ;;  %v6882_v34 = vld [vmem:[%s19135_s1 + $0x4b0] sm:$0xff]  ;;  %v6884_v58 = vld [vmem:[%s19135_s1 + $0x4c0] sm:$0xff] }
  0xf6   :  { %v598_v38 = vshrl.u32 %v580_v23, %v596_v4  ;;  %v601_v26 = vadd.s32 127, %v600_v40  ;;  %v13434_v36 = vmul.u32.u64.low %v13374_v53, %v675_v29  ;;  %v13435_v20 = vmul.u32.u64.high %v13374_v53, %v675_v29, %v13434_v36 }
  0xf7   :  { %19409 = vst [vmem:[#allocation37_spill] sm:$0xff] %v13427_v16  ;;  %8818 = vmatmul.mubr.bf16.gmra.mxu1 %v13427_v16  ;;  %v13440_v55 = vpack.c.bf16 %v6883_v10, %v6877_v11  ;;  %v19410_v23 = vand.u32 2147483647, %v13085_v12  ;;  %v683_v6 = vmul.u32 %v13374_v53, %v667_v28  ;;  %v686_v62 = vadd.s32 1, %v13424_v63  ;;  %v6876_v53 = vld [vmem:[%s19135_s1 + $0x480] sm:$0xff] }
  0xf8   :  { %v599_v22 = vor.u32 %v598_v38, %v597_v14  ;;  %v602_v51 = vshll.u32 %v601_v26, 23  ;;  %v735_v33 = vand.u32 2139095040, %v13438_v13  ;;  %vm512_vm5 = vweird.f32 %v12984_v43 }
  0xf9   :  { %vm13444_vm1 = vcmp.le.f32.partialorder %v19410_v23, 0.7853982  ;;  %8634 = vmatprep.mubr.bf16.mxu0 %v13440_v55  ;;  %v514_v24 = vand.u32 3, %v13346_v25  ;;  %vm3839_vm9 = vcmp.lt.s32.totalorder %v13350_v45, 2  ;;  %vm685_vm10 = vc.u32 %v13435_v20, %v13423_v52 }
  0xfa   :  { %v603_v57 = vor.u32 4788187, %v602_v51  ;;  %v606_v47 = vcvt.s32.f32 %v599_v22  ;;  %v613_v32 = vsel %vm13444_vm1, 0, %v611_v7  ;;  %v51_v7 = vld [vmem:[%s19134_s0 + $0x38] sm:$0xff]  ;;  %v687_v25 = vsel %vm685_vm10, %v686_v62, %v13424_v63 }
  0xfb   :  { %v736_v4 = vshrl.u32 %v735_v33, 23  ;;  %v13481_v14 = vpack.c.bf16 %v6885_v60, %v6879_v3  ;;  %v617_v40 = vadd.s32 3, %v613_v32  ;;  %v688_v1 = vadd.s32 %v687_v25, %v683_v6 }
  0xfc   :  { %v604_v48 = vand.u32 2147483647, %v603_v57  ;;  %v19192_v11 = vand.u32 2147483647, %v13438_v13  ;;  %v13484_v10 = vpack.c.bf16 %v6882_v34, %v6876_v53  ;;  %v13487_v26 = vmul.f32 0.017453277, %v51_v7 }
  0xfd   :  { %19413 = vst [vmem:[#allocation38_spill] sm:$0xff] %v13481_v14  ;;  %v11104_v38 = vadd.s32 4294967169, %v736_v4  ;;  %8827 = vmatprep.mubr.bf16.mxu1 %v13481_v14  ;;  %v13489_v28 = vpack.c.bf16 %v6884_v58, %v6878_v42  ;;  %vm515_vm11 = vcmp.lt.s32.totalorder %v514_v24, 2  ;;  %vm3840_vm12 = vcmp.eq.s32.totalorder %v13350_v45, 0 }
  0xfe   :  { %v607_v35 = vmul.f32 %v606_v47, %v604_v48  ;;  %vm3843_vm13 = vcmp.eq.s32.totalorder %v13350_v45, 2  ;;  %v689_v63 = vadd.s32 536870912, %v688_v1  ;;  %8635 = vmatmul.mubr.bf16.gmra.mxu0 %v13484_v10  ;;  %vm516_vm14 = vcmp.eq.s32.totalorder %v514_v24, 0 }
  0xff   :  { %19414 = vst [vmem:[#allocation39_spill] sm:$0xff] %v13489_v28  ;;  %vm519_vm15 = vcmp.eq.s32.totalorder %v514_v24, 2  ;;  %v742_v22 = vadd.s32 1, %v11104_v38  ;;  %8828 = vmatmul.mubr.bf16.gmra.mxu1 %v13489_v28  ;;  %v13495_v6 = vand.u32 3, %v617_v40  ;;  %v739_v3 = vand.u32 8388607, %v19192_v11 }
 0x100   :  { %v12258_v29 = vpop.eup %12257  ;;  %v608_v36 = vxor.u32 2147483648, %v607_v35  ;;  %v690_v62 = vshrl.u32 %v689_v63, 30  ;;  %v839_v47 = vand.u32 2139095040, %v13487_v26  ;;  %v19415_v45 = vand.u32 2147483647, %v13142_v18 }
 0x101   :  { %v12260_v51 = vpop.eup %12259  ;;  %v520_v23 = vxor.u32 2147483648, %v12258_v29  ;;  %vm743_vm0 = vcmp.gt.s32.totalorder %v742_v22, 0  ;;  %v740_v38 = vor.u32 8388608, %v739_v3  ;;  %vm630_vm2 = vcmp.lt.s32.totalorder %v13142_v18, 0 }
 0x102   :  { %v517_v60 = vxor.u32 2147483648, %v12260_v51  ;;  %v609_v57 = vsel %vm526_vm8, %v608_v36, %v607_v35  ;;  %v691_v7 = vshll.u32 %v690_v62, 30  ;;  %v714_v48 = vsub.s32 4, %v690_v62 }
 0x103   :  { %v521_v33 = vsel %vm519_vm15, %v520_v23, %v12260_v51  ;;  %v3845_v53 = vsel %vm3843_vm13, %v520_v23, %v12260_v51  ;;  %v612_v34 = vsel %vm13444_vm1, %v13085_v12, %v609_v57  ;;  %v13517_v35 = vand.u32 3, %v613_v32 }
 0x104   :  { %v518_v42 = vsel %vm516_vm14, %v12258_v29, %v517_v60  ;;  %v3842_v58 = vsel %vm3840_vm12, %v12258_v29, %v517_v60  ;;  %12261 = vcosq.f32 %v612_v34  ;;  %v13513_v40 = vsub.s32 %v688_v1, %v691_v7 }
 0x105   :  { %v522_v25 = vsel %vm515_vm11, %v518_v42, %v521_v33  ;;  %v3846_v4 = vsel %vm3839_vm9, %v3842_v58, %v3845_v53  ;;  %12263 = vsinq.f32 %v612_v34  ;;  %v744_v63 = vsel %vm743_vm0, %v742_v22, 0 }
 0x106   :  { %v523_v30 = vsel %vm512_vm5, nan, %v522_v25  ;;  %v694_v29 = vsub.s32 0, %v13513_v40  ;;  %v746_v36 = vand.u32 31, %v744_v63  ;;  %v3847_v24 = vsel %vm512_vm5, nan, %v3846_v4 }
 0x107   :  { %7230 = vperm.xlu1 %11924, %v523_v30   ;;  %vm13525_vm8 = vcmp.le.f32.partialorder %v19415_v45, 0.7853982  ;;  %v19191_v32 = vand.u32 2147483647, %v13487_v26  ;;  %vm623_vm3 = vcmp.eq.s32.totalorder %v13495_v6, 2  ;;  %v715_v51 = vsel %vm630_vm2, %v714_v48, %v690_v62 }
 0x108   :  { %v11101_v22 = vmin.u32 %v694_v29, %v13513_v40  ;;  %v747_v23 = vsub.s32 32, %v746_v36  ;;  %v840_v43 = vshrl.u32 %v839_v47, 23  ;;  %vm620_vm4 = vcmp.eq.s32.totalorder %v13495_v6, 0 }
 0x109   :  { %v684_v3 = vadd.s32 %v13423_v52, %v13435_v20  ;;  %vm3943_vm6 = vcmp.eq.s32.totalorder %v13517_v35, 0  ;;  %vm3946_vm7 = vcmp.eq.s32.totalorder %v13517_v35, 2  ;;  %v749_v60 = vshll.u32 %v19377_v50, %v746_v36 }
 0x10a   :  { %v13541_v57 = vshll.u32 %v740_v38, 8  ;;  %vm619_vm1 = vcmp.lt.s32.totalorder %v13495_v6, 2  ;;  %v696_v33 = vclz %v11101_v22  ;;  %vm3942_vm5 = vcmp.lt.s32.totalorder %v13517_v35, 2 }
 0x10b   :  { %9658 = vperm.xlu1 %11924, %v3847_v24   ;;  %v750_v62 = vshrl.u32 %v19378_v8, %v747_v23  ;;  %v752_v47 = vshll.u32 %v19378_v8, %v746_v36  ;;  %v753_v52 = vshrl.u32 %v19379_v56, %v747_v23  ;;  %vm616_vm9 = vweird.f32 %v13085_v12 }
 0x10c   :  { %v13551_v20 = vsel %vm13525_vm8, 0, %v715_v51  ;;  %v745_v53 = vshrl.u32 %v744_v63, 5  ;;  %v755_v34 = vshll.u32 %v19379_v56, %v746_v36  ;;  %v13556_v7 = vand.u32 8388607, %v19191_v32 }
 0x10d   :  { %v11102_v42 = vadd.s32 4294967294, %v696_v33  ;;  %v748_v58 = vshrl.u32 %v19377_v50, %v747_v23  ;;  %v756_v48 = vshrl.u32 %v19380_v9, %v747_v23  ;;  %v11108_v25 = vadd.s32 4294967169, %v840_v43 }
 0x10e   :  { %v758_v4 = vshll.u32 %v19380_v9, %v746_v36  ;;  %v759_v30 = vshrl.u32 %v19381_v41, %v747_v23  ;;  %v761_v38 = vshll.u32 %v19381_v41, %v746_v36  ;;  %v762_v63 = vshrl.u32 %v19395_v27, %v747_v23 }
 0x10f   :  { %vm11103_vm10 = vcmp.lt.s32.totalorder %v11102_v42, 0  ;;  %v751_v29 = vor.u32 %v750_v62, %v749_v60  ;;  %v754_v24 = vor.u32 %v753_v52, %v752_v47  ;;  %v757_v45 = vor.u32 %v756_v48, %v755_v34 }
 0x110   :  { %v699_v22 = vsel %vm11103_vm10, 0, %v11102_v42  ;;  %v760_v51 = vor.u32 %v759_v30, %v758_v4  ;;  %vm764_vm11 = vcmp.lt.s32.totalorder %v745_v53, 1  ;;  %vm765_vm12 = vcmp.lt.s32.totalorder %v745_v53, 2 }
 0x111   :  { %v12262_v33 = vpop.eup %12261  ;;  %v700_v32 = vsub.s32 32, %v699_v22  ;;  %v701_v43 = vshll.u32 %v13513_v40, %v699_v22  ;;  %v704_v11 = vsub.s32 4294967266, %v699_v22  ;;  %vm767_vm13 = vcmp.lt.s32.totalorder %v745_v53, 4 }
 0x112   :  { %v12264_v28 = vpop.eup %12263  ;;  %v624_v14 = vxor.u32 2147483648, %v12262_v33  ;;  %v763_v16 = vor.u32 %v762_v63, %v761_v38  ;;  %vm766_vm14 = vcmp.lt.s32.totalorder %v745_v53, 3  ;;  %v768_v36 = vsel %vm764_vm11, %v748_v58, %v751_v29 }
 0x113   :  { %v621_v23 = vxor.u32 2147483648, %v12264_v28  ;;  %v702_v60 = vshrl.u32 %v684_v3, %v700_v32  ;;  %v705_v62 = vadd.s32 127, %v704_v11  ;;  %v769_v47 = vsel %vm767_vm13, %v757_v45, 2102212464 }
 0x114   :  { %v625_v52 = vsel %vm623_vm3, %v624_v14, %v12264_v28  ;;  %v3948_v34 = vsel %vm3946_vm7, %v624_v14, %v12264_v28  ;;  %v772_v40 = vsel %vm764_vm11, %v751_v29, %v754_v24  ;;  %v773_v42 = vsel %vm767_vm13, %v760_v51, 920167782 }
 0x115   :  { %v622_v48 = vsel %vm620_vm4, %v12262_v33, %v621_v23  ;;  %v703_v4 = vor.u32 %v702_v60, %v701_v43  ;;  %v706_v58 = vshll.u32 %v705_v62, 23  ;;  %v3945_v11 = vsel %vm3943_vm6, %v12262_v33, %v621_v23 }
 0x116   :  { %v626_v32 = vsel %vm619_vm1, %v622_v48, %v625_v52  ;;  %v3949_v3 = vsel %vm3942_vm5, %v3945_v11, %v3948_v34  ;;  %v770_v14 = vsel %vm766_vm14, %v754_v24, %v769_v47  ;;  %v774_v28 = vsel %vm766_vm14, %v757_v45, %v773_v42 }
 0x117   :  { %v627_v30 = vsel %vm616_vm9, nan, %v626_v32  ;;  %v707_v38 = vor.u32 4788187, %v706_v58  ;;  %v710_v63 = vcvt.s32.f32 %v703_v4  ;;  %v776_v29 = vsel %vm764_vm11, %v754_v24, %v757_v45  ;;  %v52_v24 = vld [vmem:[%s19134_s0 + $0x40] sm:$0xff] }
 0x118   :  { %7235 = vperm.xlu0 %11923, %v627_v30   ;;  %v3950_v22 = vsel %vm616_vm9, nan, %v3949_v3  ;;  %v775_v6 = vsel %vm765_vm12, %v772_v40, %v774_v28  ;;  %v777_v35 = vsel %vm767_vm13, %v763_v16, 1326507024  ;;  %v846_v33 = vadd.s32 1, %v11108_v25 }
 0x119   :  { %v708_v43 = vand.u32 2147483647, %v707_v38  ;;  %v778_v23 = vsel %vm766_vm14, %v760_v51, %v777_v35  ;;  %v13592_v60 = vmul.u32.u64.low %v13541_v57, %v775_v6  ;;  %v13593_v62 = vmul.u32.u64.high %v13541_v57, %v775_v6, %v13592_v60 }
 0x11a   :  { %v771_v12 = vsel %vm765_vm12, %v768_v36, %v770_v14  ;;  %v779_v45 = vsel %vm765_vm12, %v776_v29, %v778_v23  ;;  %v844_v47 = vor.u32 8388608, %v13556_v7  ;;  %vm847_vm15 = vcmp.gt.s32.totalorder %v846_v33, 0 }
 0x11b   :  { %v711_v16 = vmul.f32 %v710_v63, %v708_v43  ;;  %v13603_v25 = vmul.u32.u64.low %v13541_v57, %v779_v45  ;;  %v13604_v51 = vmul.u32.u64.high %v13541_v57, %v779_v45, %v13603_v25  ;;  %v848_v52 = vsel %vm847_vm15, %v846_v33, 0 }
 0x11c   :  { %v721_v34 = vadd.s32 3, %v13551_v20  ;;  %9663 = vperm.xlu0 %11923, %v3950_v22   ;;  %v850_v40 = vand.u32 31, %v848_v52  ;;  %v13607_v42 = vmul.f32 0.017453277, %v52_v24  ;;  %v13610_v36 = vand.u32 3, %v13551_v20 }
 0x11d   :  { %v712_v48 = vxor.u32 2147483648, %v711_v16  ;;  %v787_v53 = vmul.u32 %v13541_v57, %v771_v12  ;;  %v790_v7 = vadd.s32 1, %v13593_v62  ;;  %v849_v4 = vshrl.u32 %v848_v52, 5 }
 0x11e   :  { %v851_v58 = vsub.s32 32, %v850_v40  ;;  %v853_v11 = vshll.u32 %v19377_v50, %v850_v40  ;;  %v13615_v32 = vshll.u32 %v844_v47, 8  ;;  %vm789_vm0 = vc.u32 %v13604_v51, %v13592_v60 }
 0x11f   :  { %v713_v3 = vsel %vm630_vm2, %v712_v48, %v711_v16  ;;  %v856_v14 = vshll.u32 %v19378_v8, %v850_v40  ;;  %v859_v20 = vshll.u32 %v19379_v56, %v850_v40  ;;  %v791_v28 = vsel %vm789_vm0, %v790_v7, %v13593_v62 }
 0x120   :  { %v716_v57 = vsel %vm13525_vm8, %v13142_v18, %v713_v3  ;;  %v854_v30 = vshrl.u32 %v19378_v8, %v851_v58  ;;  %v862_v38 = vshll.u32 %v19380_v9, %v850_v40  ;;  %v792_v63 = vadd.s32 %v791_v28, %v787_v53 }
 0x121   :  { %12265 = vcosq.f32 %v716_v57  ;;  %v857_v29 = vshrl.u32 %v19379_v56, %v851_v58  ;;  %v860_v22 = vshrl.u32 %v19380_v9, %v851_v58  ;;  %v863_v35 = vshrl.u32 %v19381_v41, %v851_v58 }
 0x122   :  { %12267 = vsinq.f32 %v716_v57  ;;  %v855_v6 = vor.u32 %v854_v30, %v853_v11  ;;  %v865_v33 = vshll.u32 %v19381_v41, %v850_v40  ;;  %v793_v1 = vadd.s32 536870912, %v792_v63  ;;  %v6889_v57 = vld [vmem:[%s19135_s1 + $0x4e8] sm:$0xff] }
 0x123   :  { %v858_v43 = vor.u32 %v857_v29, %v856_v14  ;;  %v861_v23 = vor.u32 %v860_v22, %v859_v20  ;;  %v866_v62 = vshrl.u32 %v19395_v27, %v851_v58  ;;  %v852_v24 = vshrl.u32 %v19377_v50, %v851_v58  ;;  %v12101_v29 = vld [vmem:[#allocation2 + $0x544] ss:$16 sps:$4 sm:$0xff]   ;;  %v12102_v22 = vld [vmem:[#allocation2 + $0x148] ss:$16 sps:$4 sm:$0xff]  }
 0x124   :  { %v864_v12 = vor.u32 %v863_v35, %v862_v38  ;;  %vm868_vm8 = vcmp.lt.s32.totalorder %v849_v4, 1  ;;  %vm870_vm2 = vcmp.lt.s32.totalorder %v849_v4, 3  ;;  %v13635_v45 = vshrl.u32 %v793_v1, 30  ;;  %v12099_v38 = vld [vmem:[#allocation2 + $0x540] ss:$16 sps:$4 sm:$0xff]   ;;  %8894 = vmatprep.subr.bf16.mxu0 %v12101_v29 }
 0x125   :  { %v867_v47 = vor.u32 %v866_v62, %v865_v33  ;;  %vm869_vm3 = vcmp.lt.s32.totalorder %v849_v4, 2  ;;  %vm871_vm4 = vcmp.lt.s32.totalorder %v849_v4, 4  ;;  %v876_v25 = vsel %vm868_vm8, %v855_v6, %v858_v43  ;;  %8895 = vmatpush2.bf16.msra.mxu0 %v12099_v38 }
 0x126   :  { %v873_v16 = vsel %vm871_vm4, %v861_v23, 2102212464  ;;  %v877_v52 = vsel %vm871_vm4, %v864_v12, 920167782  ;;  %v943_v40 = vand.u32 2139095040, %v13607_v42  ;;  %v13638_v48 = vand.u32 3, %v721_v34 }
 0x127   :  { %v795_v53 = vshll.u32 %v13635_v45, 30  ;;  %v878_v7 = vsel %vm870_vm2, %v861_v23, %v877_v52  ;;  %v880_v58 = vsel %vm868_vm8, %v858_v43, %v861_v23  ;;  %v872_v11 = vsel %vm868_vm8, %v852_v24, %v855_v6  ;;  %v6895_v34 = vld [vmem:[%s19135_s1 + $0x518] sm:$0xff] }
 0x128   :  { %v874_v3 = vsel %vm870_vm2, %v858_v43, %v873_v16  ;;  %v879_v14 = vsel %vm869_vm3, %v876_v25, %v878_v7  ;;  %v881_v20 = vsel %vm871_vm4, %v867_v47, 1326507024  ;;  %vm720_vm6 = vweird.f32 %v13142_v18  ;;  %v6891_v43 = vld [vmem:[%s19135_s1 + $0x4f8] sm:$0xff] }
 0x129   :  { %v13651_v28 = vsub.s32 %v792_v63, %v795_v53  ;;  %v882_v30 = vsel %vm870_vm2, %v864_v12, %v881_v20  ;;  %v13656_v35 = vmul.u32.u64.low %v13615_v32, %v879_v14  ;;  %v13657_v33 = vmul.u32.u64.high %v13615_v32, %v879_v14, %v13656_v35  ;;  %v6897_v63 = vld [vmem:[%s19135_s1 + $0x528] sm:$0xff] }
 0x12a   :  { %v883_v6 = vsel %vm869_vm3, %v880_v58, %v882_v30  ;;  %v944_v1 = vshrl.u32 %v943_v40, 23  ;;  %v12104_v23 = vld [vmem:[#allocation2 + $0x14c] ss:$16 sps:$4 sm:$0xff]   ;;  %v875_v24 = vsel %vm869_vm3, %v872_v11, %v874_v3  ;;  %vm4045_vm7 = vcmp.lt.s32.totalorder %v13610_v36, 2 }
 0x12b   :  { %v798_v62 = vsub.s32 0, %v13651_v28  ;;  %v13669_v12 = vmul.u32.u64.low %v13615_v32, %v883_v6  ;;  %v13670_v47 = vmul.u32.u64.high %v13615_v32, %v883_v6, %v13669_v12  ;;  %vm4046_vm1 = vcmp.eq.s32.totalorder %v13610_v36, 0  ;;  %9087 = vmatprep.subr.bf16.mxu1 %v12104_v23 }
 0x12c   :  { %vm734_vm5 = vcmp.lt.s32.totalorder %v13438_v13, 0  ;;  %v19197_v16 = vand.u32 2147483647, %v13607_v42  ;;  %vm4049_vm9 = vcmp.eq.s32.totalorder %v13610_v36, 2  ;;  %v13678_v25 = vpack.c.bf16 %v6895_v34, %v6889_v57  ;;  %9088 = vmatpush2.bf16.msra.mxu1 %v12102_v22 }
 0x12d   :  { %v11105_v4 = vmin.u32 %v798_v62, %v13651_v28  ;;  %v13680_v52 = vpack.c.bf16 %v6897_v63, %v6891_v43  ;;  %vm727_vm10 = vcmp.eq.s32.totalorder %v13638_v48, 2  ;;  %v891_v53 = vmul.u32 %v13615_v32, %v875_v24  ;;  %v6894_v24 = vld [vmem:[%s19135_s1 + $0x510] sm:$0xff] }
 0x12e   :  { %v12266_v40 = vpop.eup %12265  ;;  %v894_v7 = vadd.s32 1, %v13657_v33  ;;  %v11112_v58 = vadd.s32 4294967169, %v944_v1  ;;  %vm723_vm11 = vcmp.lt.s32.totalorder %v13638_v48, 2  ;;  %vm724_vm12 = vcmp.eq.s32.totalorder %v13638_v48, 0  ;;  %8644 = vmatprep.mubr.bf16.mxu0 %v13678_v25 }
 0x12f   :  { %19418 = vst [vmem:[#allocation40_spill] sm:$0xff] %v13680_v52  ;;  %v12268_v11 = vpop.eup %12267  ;;  %v728_v3 = vxor.u32 2147483648, %v12266_v40  ;;  %v800_v14 = vclz %v11105_v4  ;;  %8837 = vmatprep.mubr.bf16.mxu1 %v13680_v52  ;;  %v818_v57 = vsub.s32 4, %v13635_v45  ;;  %vm893_vm13 = vc.u32 %v13670_v47, %v13656_v35 }
 0x130   :  { %v725_v20 = vxor.u32 2147483648, %v12268_v11  ;;  %v947_v32 = vand.u32 8388607, %v19197_v16  ;;  %v895_v29 = vsel %vm893_vm13, %v894_v7, %v13657_v33  ;;  %v950_v43 = vadd.s32 1, %v11112_v58  ;;  %v6888_v33 = vld [vmem:[%s19135_s1 + $0x4e0] sm:$0xff] }
 0x131   :  { %v729_v34 = vsel %vm727_vm10, %v728_v3, %v12268_v11  ;;  %v4051_v30 = vsel %vm4049_vm9, %v728_v3, %v12268_v11  ;;  %v11106_v38 = vadd.s32 4294967294, %v800_v14  ;;  %v896_v1 = vadd.s32 %v895_v29, %v891_v53 }
 0x132   :  { %v726_v22 = vsel %vm724_vm12, %v12266_v40, %v725_v20  ;;  %v4048_v6 = vsel %vm4046_vm1, %v12266_v40, %v725_v20  ;;  %v788_v62 = vadd.s32 %v13592_v60, %v13604_v51  ;;  %v819_v36 = vsel %vm734_vm5, %v818_v57, %v13635_v45 }
 0x133   :  { %v730_v63 = vsel %vm723_vm11, %v726_v22, %v729_v34  ;;  %v4052_v23 = vsel %vm4045_vm7, %v4048_v6, %v4051_v30  ;;  %vm11107_vm14 = vcmp.lt.s32.totalorder %v11106_v38, 0  ;;  %v897_v4 = vadd.s32 536870912, %v896_v1 }
 0x134   :  { %v731_v12 = vsel %vm720_vm6, nan, %v730_v63  ;;  %v803_v48 = vsel %vm11107_vm14, 0, %v11106_v38  ;;  %vm951_vm15 = vcmp.gt.s32.totalorder %v950_v43, 0  ;;  %v4053_v53 = vsel %vm720_vm6, nan, %v4052_v23 }
 0x135   :  { %7240 = vperm.xlu1 %11924, %v731_v12   ;;  %v804_v60 = vsub.s32 32, %v803_v48  ;;  %v805_v51 = vshll.u32 %v13651_v28, %v803_v48  ;;  %v808_v40 = vsub.s32 4294967266, %v803_v48  ;;  %v13719_v7 = vshrl.u32 %v897_v4, 30  ;;  %v53_v12 = vld [vmem:[%s19134_s0 + $0x48] sm:$0xff] }
 0x136   :  { %v952_v58 = vsel %vm951_vm15, %v950_v43, 0  ;;  %v13721_v11 = vpack.c.bf16 %v6894_v24, %v6888_v33  ;;  %v19419_v3 = vand.u32 2147483647, %v13438_v13  ;;  %v948_v22 = vor.u32 8388608, %v947_v32 }
 0x137   :  { %v806_v45 = vshrl.u32 %v788_v62, %v804_v60  ;;  %v809_v20 = vadd.s32 127, %v808_v40  ;;  %v954_v57 = vand.u32 31, %v952_v58  ;;  %v899_v18 = vshll.u32 %v13719_v7, 30 }
 0x138   :  { %vm13725_vm0 = vcmp.le.f32.partialorder %v19419_v3, 0.7853982  ;;  %8645 = vmatmul.mubr.bf16.gmra.mxu0 %v13721_v11  ;;  %v892_v4 = vadd.s32 %v13656_v35, %v13670_v47  ;;  %v13753_v40 = vshll.u32 %v948_v22, 8  ;;  %v922_v3 = vsub.s32 4, %v13719_v7 }
 0x139   :  { %v13731_v28 = vsel %vm13725_vm0, 0, %v819_v36  ;;  %9668 = vperm.xlu1 %11924, %v4053_v53   ;;  %v807_v34 = vor.u32 %v806_v45, %v805_v51  ;;  %v810_v30 = vshll.u32 %v809_v20, 23  ;;  %v955_v38 = vsub.s32 32, %v954_v57 }
 0x13a   :  { %v13735_v29 = vsub.s32 %v896_v1, %v899_v18  ;;  %v13738_v63 = vadd.s32 3, %v13731_v28  ;;  %v957_v62 = vshll.u32 %v19377_v50, %v954_v57  ;;  %v960_v24 = vshll.u32 %v19378_v8, %v954_v57 }
 0x13b   :  { %v811_v6 = vor.u32 4788187, %v810_v30  ;;  %v814_v43 = vcvt.s32.f32 %v807_v34  ;;  %v958_v33 = vshrl.u32 %v19378_v8, %v955_v38  ;;  %v961_v32 = vshrl.u32 %v19379_v56, %v955_v38 }
 0x13c   :  { %v902_v23 = vsub.s32 0, %v13735_v29  ;;  %v963_v48 = vshll.u32 %v19379_v56, %v954_v57  ;;  %v964_v36 = vshrl.u32 %v19380_v9, %v955_v38  ;;  %v953_v51 = vshrl.u32 %v952_v58, 5 }
 0x13d   :  { %v812_v1 = vand.u32 2147483647, %v811_v6  ;;  %v966_v45 = vshll.u32 %v19380_v9, %v954_v57  ;;  %v13757_v20 = vmul.f32 0.017453277, %v53_v12  ;;  %vm838_vm8 = vcmp.lt.s32.totalorder %v13487_v26, 0 }
 0x13e   :  { %v11109_v60 = vmin.u32 %v902_v23, %v13735_v29  ;;  %v956_v34 = vshrl.u32 %v19377_v50, %v955_v38  ;;  %v959_v30 = vor.u32 %v958_v33, %v957_v62  ;;  %v962_v6 = vor.u32 %v961_v32, %v960_v24 }
 0x13f   :  { %v815_v53 = vmul.f32 %v814_v43, %v812_v1  ;;  %v965_v47 = vor.u32 %v964_v36, %v963_v48  ;;  %v967_v58 = vshrl.u32 %v19381_v41, %v955_v38  ;;  %v969_v22 = vshll.u32 %v19381_v41, %v954_v57 }
 0x140   :  { %v904_v18 = vclz %v11109_v60  ;;  %v970_v23 = vshrl.u32 %v19395_v27, %v955_v38  ;;  %vm972_vm2 = vcmp.lt.s32.totalorder %v953_v51, 1  ;;  %vm973_vm3 = vcmp.lt.s32.totalorder %v953_v51, 2 }
 0x141   :  { %v816_v35 = vxor.u32 2147483648, %v815_v53  ;;  %v19422_v1 = vand.u32 2147483647, %v13487_v26  ;;  %v968_v62 = vor.u32 %v967_v58, %v966_v45  ;;  %vm974_vm6 = vcmp.lt.s32.totalorder %v953_v51, 3 }
 0x142   :  { %v11110_v43 = vadd.s32 4294967294, %v904_v18  ;;  %vm975_vm7 = vcmp.lt.s32.totalorder %v953_v51, 4  ;;  %v971_v38 = vor.u32 %v970_v23, %v969_v22  ;;  %v976_v33 = vsel %vm972_vm2, %v956_v34, %v959_v30 }
 0x143   :  { %v817_v12 = vsel %vm734_vm5, %v816_v35, %v815_v53  ;;  %vm13768_vm4 = vcmp.le.f32.partialorder %v19422_v1, 0.7853982  ;;  %v977_v32 = vsel %vm975_vm7, %v965_v47, 2102212464  ;;  %v980_v48 = vsel %vm972_vm2, %v959_v30, %v962_v6 }
 0x144   :  { %v820_v57 = vsel %vm13725_vm0, %v13438_v13, %v817_v12  ;;  %vm11111_vm1 = vcmp.lt.s32.totalorder %v11110_v43, 0  ;;  %v978_v18 = vsel %vm974_vm6, %v962_v6, %v977_v32  ;;  %v981_v14 = vsel %vm975_vm7, %v968_v62, 920167782  ;;  %v6903_v32 = vld [vmem:[%s19135_s1 + $0x558] sm:$0xff] }
 0x145   :  { %12269 = vcosq.f32 %v820_v57  ;;  %v907_v24 = vsel %vm11111_vm1, 0, %v11110_v43  ;;  %v984_v35 = vsel %vm972_vm2, %v962_v6, %v965_v47  ;;  %v985_v58 = vsel %vm975_vm7, %v971_v38, 1326507024 }
 0x146   :  { %12271 = vsinq.f32 %v820_v57  ;;  %v908_v36 = vsub.s32 32, %v907_v24  ;;  %v909_v53 = vshll.u32 %v13735_v29, %v907_v24  ;;  %v912_v45 = vsub.s32 4294967266, %v907_v24 }
 0x147   :  { %v13784_v43 = vand.u32 3, %v13731_v28  ;;  %v982_v30 = vsel %vm974_vm6, %v965_v47, %v981_v14  ;;  %v923_v29 = vsel %vm838_vm8, %v922_v3, %v13719_v7  ;;  %v979_v23 = vsel %vm973_vm3, %v976_v33, %v978_v18  ;;  %v6896_v7 = vld [vmem:[%s19135_s1 + $0x520] sm:$0xff]  ;;  %v6901_v3 = vld [vmem:[%s19135_s1 + $0x548] sm:$0xff] }
 0x148   :  { %v910_v34 = vshrl.u32 %v892_v4, %v908_v36  ;;  %v913_v22 = vadd.s32 127, %v912_v45  ;;  %v983_v12 = vsel %vm973_vm3, %v980_v48, %v982_v30  ;;  %v986_v1 = vsel %vm974_vm6, %v968_v62, %v985_v58  ;;  %v6890_v4 = vld [vmem:[%s19135_s1 + $0x4f0] sm:$0xff]  ;;  %v6907_v62 = vld [vmem:[%s19135_s1 + $0x578] sm:$0xff]  ;;  %v6909_v48 = vld [vmem:[%s19135_s1 + $0x588] sm:$0xff] }
 0x149   :  { %v987_v28 = vsel %vm973_vm3, %v984_v35, %v986_v1  ;;  %v1047_v47 = vand.u32 2139095040, %v13757_v20  ;;  %v13812_v51 = vmul.u32.u64.low %v13753_v40, %v983_v12  ;;  %v13813_v24 = vmul.u32.u64.high %v13753_v40, %v983_v12, %v13812_v51 }
 0x14a   :  { %v911_v6 = vor.u32 %v910_v34, %v909_v53  ;;  %v914_v57 = vshll.u32 %v913_v22, 23  ;;  %v13808_v38 = vmul.u32.u64.low %v13753_v40, %v987_v28  ;;  %v13809_v33 = vmul.u32.u64.high %v13753_v40, %v987_v28, %v13808_v38 }
 0x14b   :  { %v925_v45 = vsel %vm13768_vm4, 0, %v923_v29  ;;  %v1048_v18 = vshrl.u32 %v1047_v47, 23  ;;  %vm824_vm5 = vweird.f32 %v13438_v13  ;;  %v826_v14 = vand.u32 3, %v13738_v63 }
 0x14c   :  { %v915_v36 = vor.u32 4788187, %v914_v57  ;;  %v918_v53 = vcvt.s32.f32 %v911_v6  ;;  %v13826_v35 = vpack.c.bf16 %v6896_v7, %v6890_v4  ;;  %v13828_v58 = vpack.c.bf16 %v6907_v62, %v6901_v3 }
 0x14d   :  { %v995_v22 = vmul.u32 %v13753_v40, %v979_v23  ;;  %v11116_v30 = vadd.s32 4294967169, %v1048_v18  ;;  %v13831_v12 = vpack.c.bf16 %v6909_v48, %v6903_v32  ;;  %v929_v1 = vadd.s32 3, %v925_v45 }
 0x14e   :  { %19425 = vst [vmem:[#allocation41_spill] sm:$0xff] %v13826_v35  ;;  %19426 = vst [vmem:[#allocation42_spill] sm:$0xff] %v13828_v58  ;;  %v916_v34 = vand.u32 2147483647, %v915_v36  ;;  %vm4148_vm9 = vcmp.lt.s32.totalorder %v13784_v43, 2  ;;  %vm997_vm10 = vc.u32 %v13809_v33, %v13812_v51  ;;  %v998_v29 = vadd.s32 1, %v13813_v24  ;;  %8838 = vmatmul.mubr.bf16.gmra.mxu1 %v13826_v35  ;;  %8654 = vmatprep.mubr.bf16.mxu0 %v13828_v58 }
 0x14f   :  { %19427 = vst [vmem:[#allocation43_spill] sm:$0xff] %v13831_v12  ;;  %vm4149_vm11 = vcmp.eq.s32.totalorder %v13784_v43, 0  ;;  %v19196_v40 = vand.u32 2147483647, %v13757_v20  ;;  %v1054_v23 = vadd.s32 1, %v11116_v30  ;;  %8847 = vmatprep.mubr.bf16.mxu1 %v13831_v12  ;;  %vm827_vm12 = vcmp.lt.s32.totalorder %v826_v14, 2 }
 0x150   :  { %v919_v63 = vmul.f32 %v918_v53, %v916_v34  ;;  %vm828_vm13 = vcmp.eq.s32.totalorder %v826_v14, 0  ;;  %vm4152_vm14 = vcmp.eq.s32.totalorder %v13784_v43, 2  ;;  %v999_v4 = vsel %vm997_vm10, %v998_v29, %v13813_v24 }
 0x151   :  { %vm831_vm15 = vcmp.eq.s32.totalorder %v826_v14, 2  ;;  %v1000_v28 = vadd.s32 %v999_v4, %v995_v22  ;;  %vm1055_vm0 = vcmp.gt.s32.totalorder %v1054_v23, 0  ;;  %v13844_v3 = vand.u32 3, %v929_v1  ;;  %v12107_v14 = vld [vmem:[#allocation2 + $0x524] ss:$16 sps:$4 sm:$0xff]  }
 0x152   :  { %v12270_v6 = vpop.eup %12269  ;;  %v920_v57 = vxor.u32 2147483648, %v919_v63  ;;  %v13846_v62 = vand.u32 3, %v925_v45  ;;  %v1056_v38 = vsel %vm1055_vm0, %v1054_v23, 0  ;;  %v1051_v24 = vand.u32 8388607, %v19196_v40  ;;  %v54_v45 = vld [vmem:[%s19134_s0 + $0x50] sm:$0xff]  ;;  %8896 = vmatprep.subr.bf16.mxu0 %v12107_v14 }
 0x153   :  { %v12272_v47 = vpop.eup %12271  ;;  %v832_v7 = vxor.u32 2147483648, %v12270_v6  ;;  %v1001_v36 = vadd.s32 536870912, %v1000_v28  ;;  %v1058_v22 = vand.u32 31, %v1056_v38  ;;  %vm932_vm2 = vcmp.eq.s32.totalorder %v13844_v3, 0 }
 0x154   :  { %v829_v32 = vxor.u32 2147483648, %v12272_v47  ;;  %v921_v48 = vsel %vm838_vm8, %v920_v57, %v919_v63  ;;  %vm4255_vm8 = vcmp.eq.s32.totalorder %v13846_v62, 2  ;;  %vm4252_vm3 = vcmp.eq.s32.totalorder %v13846_v62, 0 }
 0x155   :  { %v833_v53 = vsel %vm831_vm15, %v832_v7, %v12272_v47  ;;  %v924_v18 = vsel %vm13768_vm4, %v13487_v26, %v921_v48  ;;  %v4154_v34 = vsel %vm4152_vm14, %v832_v7, %v12272_v47  ;;  %v13863_v29 = vshrl.u32 %v1001_v36, 30  ;;  %v12108_v48 = vld [vmem:[#allocation2 + $0x128] ss:$16 sps:$4 sm:$0xff]  }
 0x156   :  { %v830_v30 = vsel %vm828_vm13, %v12270_v6, %v829_v32  ;;  %12273 = vcosq.f32 %v924_v18  ;;  %v4151_v1 = vsel %vm4149_vm11, %v12270_v6, %v829_v32  ;;  %v1059_v23 = vsub.s32 32, %v1058_v22  ;;  %v12105_v32 = vld [vmem:[#allocation2 + $0x520] ss:$16 sps:$4 sm:$0xff]  }
 0x157   :  { %v834_v63 = vsel %vm827_vm12, %v830_v30, %v833_v53  ;;  %12275 = vsinq.f32 %v924_v18  ;;  %v4155_v60 = vsel %vm4148_vm9, %v4151_v1, %v4154_v34  ;;  %v1003_v57 = vshll.u32 %v13863_v29, 30  ;;  %v12110_v34 = vld [vmem:[#allocation2 + $0x12c] ss:$16 sps:$4 sm:$0xff]   ;;  %8897 = vmatpush2.bf16.msra.mxu0 %v12105_v32 }
 0x158   :  { %v835_v4 = vsel %vm824_vm5, nan, %v834_v63  ;;  %v13871_v47 = vshrl.u32 %v1056_v38, 5  ;;  %v13873_v7 = vmul.f32 0.017453277, %v54_v45  ;;  %v1064_v6 = vshll.u32 %v19378_v8, %v1058_v22  ;;  %9089 = vmatprep.subr.bf16.mxu1 %v12110_v34 }
 0x159   :  { %7245 = vperm.xlu0 %11923, %v835_v4   ;;  %v4156_v43 = vsel %vm824_vm5, nan, %v4155_v60  ;;  %v13878_v36 = vsub.s32 %v1000_v28, %v1003_v57  ;;  %v1065_v53 = vshrl.u32 %v19379_v56, %v1059_v23  ;;  %v1067_v18 = vshll.u32 %v19379_v56, %v1058_v22  ;;  %9090 = vmatpush2.bf16.msra.mxu1 %v12108_v48 }
 0x15a   :  { %v1061_v38 = vshll.u32 %v19377_v50, %v1058_v22  ;;  %v1062_v45 = vshrl.u32 %v19378_v8, %v1059_v23  ;;  %v1068_v30 = vshrl.u32 %v19380_v9, %v1059_v23  ;;  %v1070_v1 = vshll.u32 %v19380_v9, %v1058_v22 }
 0x15b   :  { %v1006_v13 = vsub.s32 0, %v13878_v36  ;;  %v1052_v28 = vor.u32 8388608, %v1051_v24  ;;  %v1066_v63 = vor.u32 %v1065_v53, %v1064_v6  ;;  %v1071_v60 = vshrl.u32 %v19381_v41, %v1059_v23 }
 0x15c   :  { %vm931_vm4 = vcmp.lt.s32.totalorder %v13844_v3, 2  ;;  %vm935_vm6 = vcmp.eq.s32.totalorder %v13844_v3, 2  ;;  %vm4251_vm7 = vcmp.lt.s32.totalorder %v13846_v62, 2  ;;  %v1069_v4 = vor.u32 %v1068_v30, %v1067_v18 }
 0x15d   :  { %9673 = vperm.xlu0 %11923, %v4156_v43   ;;  %v1073_v57 = vshll.u32 %v19381_v41, %v1058_v22  ;;  %v1074_v14 = vshrl.u32 %v19395_v27, %v1059_v23  ;;  %vm928_vm1 = vweird.f32 %v13487_v26  ;;  %v11113_v24 = vmin.u32 %v1006_v13, %v13878_v36 }
 0x15e   :  { %v1072_v6 = vor.u32 %v1071_v60, %v1070_v1  ;;  %vm1076_vm5 = vcmp.lt.s32.totalorder %v13871_v47, 1  ;;  %v1151_v32 = vand.u32 2139095040, %v13873_v7  ;;  %v1060_v53 = vshrl.u32 %v19377_v50, %v1059_v23 }
 0x15f   :  { %v1063_v43 = vor.u32 %v1062_v45, %v1061_v38  ;;  %v1075_v34 = vor.u32 %v1074_v14, %v1073_v57  ;;  %vm1079_vm9 = vcmp.lt.s32.totalorder %v13871_v47, 4  ;;  %v996_v22 = vadd.s32 %v13812_v51, %v13809_v33 }
 0x160   :  { %v1008_v18 = vclz %v11113_v24  ;;  %vm1078_vm10 = vcmp.lt.s32.totalorder %v13871_v47, 3  ;;  %v13905_v48 = vshll.u32 %v1052_v28, 8  ;;  %vm1077_vm11 = vcmp.lt.s32.totalorder %v13871_v47, 2 }
 0x161   :  { %v1081_v30 = vsel %vm1079_vm9, %v1069_v4, 2102212464  ;;  %v1085_v1 = vsel %vm1079_vm9, %v1072_v6, 920167782  ;;  %v1088_v13 = vsel %vm1076_vm5, %v1066_v63, %v1069_v4  ;;  %v1026_v38 = vsub.s32 4, %v13863_v29 }
 0x162   :  { %v11114_v23 = vadd.s32 4294967294, %v1008_v18  ;;  %v1089_v45 = vsel %vm1079_vm9, %v1075_v34, 1326507024  ;;  %v1152_v60 = vshrl.u32 %v1151_v32, 23  ;;  %v1080_v33 = vsel %vm1076_vm5, %v1060_v53, %v1063_v43 }
 0x163   :  { %v12274_v57 = vpop.eup %12273  ;;  %v1082_v51 = vsel %vm1078_vm10, %v1066_v63, %v1081_v30  ;;  %v1084_v28 = vsel %vm1076_vm5, %v1063_v43, %v1066_v63  ;;  %v1090_v14 = vsel %vm1078_vm10, %v1072_v6, %v1089_v45  ;;  %v1086_v34 = vsel %vm1078_vm10, %v1069_v4, %v1085_v1 }
 0x164   :  { %v12276_v24 = vpop.eup %12275  ;;  %v936_v40 = vxor.u32 2147483648, %v12274_v57  ;;  %vm11115_vm12 = vcmp.lt.s32.totalorder %v11114_v23, 0  ;;  %v1091_v32 = vsel %vm1077_vm11, %v1088_v13, %v1090_v14  ;;  %vm942_vm13 = vcmp.lt.s32.totalorder %v13607_v42, 0 }
 0x165   :  { %v933_v18 = vxor.u32 2147483648, %v12276_v24  ;;  %v1011_v53 = vsel %vm11115_vm12, 0, %v11114_v23  ;;  %v13924_v16 = vmul.u32.u64.low %v13905_v48, %v1091_v32  ;;  %v13925_v30 = vmul.u32.u64.high %v13905_v48, %v1091_v32, %v13924_v16 }
 0x166   :  { %v937_v63 = vsel %vm935_vm6, %v936_v40, %v12276_v24  ;;  %v4257_v6 = vsel %vm4255_vm8, %v936_v40, %v12276_v24  ;;  %v1012_v43 = vsub.s32 32, %v1011_v53  ;;  %v1013_v45 = vshll.u32 %v13878_v36, %v1011_v53  ;;  %v6900_v36 = vld [vmem:[%s19135_s1 + $0x540] sm:$0xff]  ;;  %v6906_v24 = vld [vmem:[%s19135_s1 + $0x570] sm:$0xff] }
 0x167   :  { %v934_v4 = vsel %vm932_vm2, %v12274_v57, %v933_v18  ;;  %v4254_v1 = vsel %vm4252_vm3, %v12274_v57, %v933_v18  ;;  %v1016_v13 = vsub.s32 4294967266, %v1011_v53  ;;  %v1087_v23 = vsel %vm1077_vm11, %v1084_v28, %v1086_v34  ;;  %v55_v18 = vld [vmem:[%s19134_s0 + $0x58] sm:$0xff] }
 0x168   :  { %v938_v16 = vsel %vm931_vm4, %v934_v4, %v937_v63  ;;  %v4258_v14 = vsel %vm4251_vm7, %v4254_v1, %v4257_v6  ;;  %v1014_v40 = vshrl.u32 %v996_v22, %v1012_v43  ;;  %v1083_v3 = vsel %vm1077_vm11, %v1080_v33, %v1082_v51  ;;  %v6902_v51 = vld [vmem:[%s19135_s1 + $0x550] sm:$0xff] }
 0x169   :  { %v939_v57 = vsel %vm928_vm1, nan, %v938_v16  ;;  %v1017_v28 = vadd.s32 127, %v1016_v13  ;;  %v13954_v22 = vmul.u32.u64.low %v13905_v48, %v1087_v23  ;;  %v13955_v34 = vmul.u32.u64.high %v13905_v48, %v1087_v23, %v13954_v22 }
 0x16a   :  { %7250 = vperm.xlu1 %11924, %v939_v57   ;;  %v1015_v62 = vor.u32 %v1014_v40, %v1013_v45  ;;  %v11120_v32 = vadd.s32 4294967169, %v1152_v60  ;;  %v4259_v53 = vsel %vm928_vm1, nan, %v4258_v14  ;;  %v1027_v47 = vsel %vm942_vm13, %v1026_v38, %v13863_v29  ;;  %v6908_v60 = vld [vmem:[%s19135_s1 + $0x580] sm:$0xff] }
 0x16b   :  { %v1018_v63 = vshll.u32 %v1017_v28, 23  ;;  %v13966_v33 = vpack.c.bf16 %v6906_v24, %v6900_v36  ;;  %v19429_v6 = vand.u32 2147483647, %v13607_v42  ;;  %v1099_v43 = vmul.u32 %v13905_v48, %v1083_v3 }
 0x16c   :  { %v19198_v29 = vand.u32 2147483647, %v13873_v7  ;;  %v1158_v38 = vadd.s32 1, %v11120_v32  ;;  %v1022_v4 = vcvt.s32.f32 %v1015_v62  ;;  %vm1101_vm15 = vc.u32 %v13925_v30, %v13954_v22 }
 0x16d   :  { %19428 = vst [vmem:[#allocation44_spill] sm:$0xff] %v13966_v33  ;;  %vm13976_vm14 = vcmp.le.f32.partialorder %v19429_v6, 0.7853982  ;;  %v1019_v45 = vor.u32 4788187, %v1018_v63  ;;  %8655 = vmatmul.mubr.bf16.gmra.mxu0 %v13966_v33  ;;  %v1102_v23 = vadd.s32 1, %v13955_v34  ;;  %v13990_v48 = vpack.c.bf16 %v6908_v60, %v6902_v51 }
 0x16e   :  { %v13984_v1 = vmul.f32 0.017453277, %v55_v18  ;;  %9678 = vperm.xlu1 %11924, %v4259_v53   ;;  %v1029_v13 = vsel %vm13976_vm14, 0, %v1027_v47  ;;  %vm1159_vm0 = vcmp.gt.s32.totalorder %v1158_v38, 0  ;;  %v1155_v36 = vand.u32 8388607, %v19198_v29 }
 0x16f   :  { %19432 = vst [vmem:[#allocation45_spill] sm:$0xff] %v13990_v48  ;;  %v1020_v16 = vand.u32 2147483647, %v1019_v45  ;;  %v1160_v14 = vsel %vm1159_vm0, %v1158_v38, 0  ;;  %v1103_v40 = vsel %vm1101_vm15, %v1102_v23, %v13955_v34  ;;  %8848 = vmatmul.mubr.bf16.gmra.mxu1 %v13990_v48  ;;  %v1033_v28 = vadd.s32 3, %v1029_v13 }
 0x170   :  { %v1162_v24 = vand.u32 31, %v1160_v14  ;;  %v1104_v3 = vadd.s32 %v1103_v40, %v1099_v43  ;;  %v1255_v62 = vand.u32 2139095040, %v13984_v1  ;;  %v13997_v32 = vshrl.u32 %v1160_v14, 5 }
 0x171   :  { %v1023_v57 = vmul.f32 %v1022_v4, %v1020_v16  ;;  %v1156_v29 = vor.u32 8388608, %v1155_v36  ;;  %v14014_v48 = vand.u32 3, %v1033_v28  ;;  %v14019_v58 = vand.u32 3, %v1029_v13 }
 0x172   :  { %v1163_v18 = vsub.s32 32, %v1162_v24  ;;  %v1165_v53 = vshll.u32 %v19377_v50, %v1162_v24  ;;  %v1168_v63 = vshll.u32 %v19378_v8, %v1162_v24  ;;  %v1105_v34 = vadd.s32 536870912, %v1104_v3 }
 0x173   :  { %v1024_v47 = vxor.u32 2147483648, %v1023_v57  ;;  %v1171_v51 = vshll.u32 %v19379_v56, %v1162_v24  ;;  %v1174_v60 = vshll.u32 %v19380_v9, %v1162_v24  ;;  %v1177_v45 = vshll.u32 %v19381_v41, %v1162_v24 }
 0x174   :  { %v1166_v6 = vshrl.u32 %v19378_v8, %v1163_v18  ;;  %v1169_v38 = vshrl.u32 %v19379_v56, %v1163_v18  ;;  %v1172_v43 = vshrl.u32 %v19380_v9, %v1163_v18  ;;  %v1106_v23 = vshrl.u32 %v1105_v34, 30 }
 0x175   :  { %v1025_v4 = vsel %vm942_vm13, %v1024_v47, %v1023_v57  ;;  %v1175_v16 = vshrl.u32 %v19381_v41, %v1163_v18  ;;  %v1178_v14 = vshrl.u32 %v19395_v27, %v1163_v18  ;;  %v1256_v35 = vshrl.u32 %v1255_v62, 23 }
 0x176   :  { %v1028_v40 = vsel %vm13976_vm14, %v13607_v42, %v1025_v4  ;;  %v1107_v12 = vshll.u32 %v1106_v23, 30  ;;  %v1167_v24 = vor.u32 %v1166_v6, %v1165_v53  ;;  %v1170_v47 = vor.u32 %v1169_v38, %v1168_v63 }
 0x177   :  { %12277 = vcosq.f32 %v1028_v40  ;;  %v1176_v52 = vor.u32 %v1175_v16, %v1174_v60  ;;  %v1179_v33 = vor.u32 %v1178_v14, %v1177_v45  ;;  %v1173_v34 = vor.u32 %v1172_v43, %v1171_v51 }
 0x178   :  { %12279 = vsinq.f32 %v1028_v40  ;;  %v14016_v57 = vsub.s32 %v1104_v3, %v1107_v12  ;;  %vm1183_vm8 = vcmp.lt.s32.totalorder %v13997_v32, 4  ;;  %vm1180_vm2 = vcmp.lt.s32.totalorder %v13997_v32, 1 }
 0x179   :  { %vm1046_vm3 = vcmp.lt.s32.totalorder %v13757_v20, 0  ;;  %v1164_v36 = vshrl.u32 %v19377_v50, %v1163_v18  ;;  %vm1182_vm4 = vcmp.lt.s32.totalorder %v13997_v32, 3  ;;  %v14026_v28 = vshll.u32 %v1156_v29, 8 }
 0x17a   :  { %v1110_v26 = vsub.s32 0, %v14016_v57  ;;  %vm1181_vm6 = vcmp.lt.s32.totalorder %v13997_v32, 2  ;;  %v1189_v12 = vsel %vm1183_vm8, %v1176_v52, 920167782  ;;  %v1193_v3 = vsel %vm1183_vm8, %v1179_v33, 1326507024 }
 0x17b   :  { %v11124_v62 = vadd.s32 4294967169, %v1256_v35  ;;  %vm1036_vm7 = vcmp.eq.s32.totalorder %v14014_v48, 0  ;;  %v1185_v53 = vsel %vm1183_vm8, %v1173_v34, 2102212464  ;;  %v1188_v63 = vsel %vm1180_vm2, %v1167_v24, %v1170_v47 }
 0x17c   :  { %v11117_v13 = vmin.u32 %v1110_v26, %v14016_v57  ;;  %v1192_v18 = vsel %vm1180_vm2, %v1170_v47, %v1173_v34  ;;  %vm1035_vm1 = vcmp.lt.s32.totalorder %v14014_v48, 2  ;;  %vm1039_vm5 = vcmp.eq.s32.totalorder %v14014_v48, 2 }
 0x17d   :  { %vm4354_vm9 = vcmp.lt.s32.totalorder %v14019_v58, 2  ;;  %v1190_v35 = vsel %vm1182_vm4, %v1173_v34, %v1189_v12  ;;  %v1194_v33 = vsel %vm1182_vm4, %v1176_v52, %v1193_v3  ;;  %vm1032_vm10 = vweird.f32 %v13607_v42 }
 0x17e   :  { %v1112_v29 = vclz %v11117_v13  ;;  %v1130_v51 = vsub.s32 4, %v1106_v23  ;;  %v1184_v60 = vsel %vm1180_vm2, %v1164_v36, %v1167_v24  ;;  %v19205_v6 = vand.u32 2147483647, %v13984_v1 }
 0x17f   :  { %v1186_v38 = vsel %vm1182_vm4, %v1170_v47, %v1185_v53  ;;  %v1191_v43 = vsel %vm1181_vm6, %v1188_v63, %v1190_v35  ;;  %v1195_v45 = vsel %vm1181_vm6, %v1192_v18, %v1194_v33  ;;  %v1262_v4 = vadd.s32 1, %v11124_v62 }
 0x180   :  { %v19433_v52 = vand.u32 2147483647, %v13757_v20  ;;  %v11118_v14 = vadd.s32 4294967294, %v1112_v29  ;;  %vm4355_vm12 = vcmp.eq.s32.totalorder %v14019_v58, 0  ;;  %vm4358_vm13 = vcmp.eq.s32.totalorder %v14019_v58, 2 }
 0x181   :  { %v14060_v40 = vmul.u32.u64.low %v14026_v28, %v1195_v45  ;;  %v14061_v24 = vmul.u32.u64.high %v14026_v28, %v1195_v45, %v14060_v40  ;;  %v14065_v47 = vmul.u32.u64.low %v14026_v28, %v1191_v43  ;;  %v14066_v34 = vmul.u32.u64.high %v14026_v28, %v1191_v43, %v14065_v47 }
 0x182   :  { %vm14054_vm11 = vcmp.le.f32.partialorder %v19433_v52, 0.7853982  ;;  %vm1263_vm14 = vcmp.gt.s32.totalorder %v1262_v4, 0  ;;  %v1100_v26 = vadd.s32 %v13954_v22, %v13925_v30  ;;  %vm11119_vm15 = vcmp.lt.s32.totalorder %v11118_v14, 0 }
 0x183   :  { %v1187_v36 = vsel %vm1181_vm6, %v1184_v60, %v1186_v38  ;;  %v1264_v12 = vsel %vm1263_vm14, %v1262_v4, 0  ;;  %v1115_v62 = vsel %vm11119_vm15, 0, %v11118_v14  ;;  %v1131_v13 = vsel %vm1046_vm3, %v1130_v51, %v1106_v23 }
 0x184   :  { %v12278_v3 = vpop.eup %12277  ;;  %v1259_v53 = vand.u32 8388607, %v19205_v6  ;;  %v1266_v63 = vand.u32 31, %v1264_v12  ;;  %v1116_v33 = vsub.s32 32, %v1115_v62  ;;  %v1117_v29 = vshll.u32 %v14016_v57, %v1115_v62  ;;  %v12113_v6 = vld [vmem:[#allocation2 + $0x504] ss:$16 sps:$4 sm:$0xff]  }
 0x185   :  { %v12280_v18 = vpop.eup %12279  ;;  %v1040_v35 = vxor.u32 2147483648, %v12278_v3  ;;  %v1120_v30 = vsub.s32 4294967266, %v1115_v62  ;;  %v1203_v32 = vmul.u32 %v14026_v28, %v1187_v36  ;;  %vm1205_vm0 = vc.u32 %v14061_v24, %v14065_v47  ;;  %8898 = vmatprep.subr.bf16.mxu0 %v12113_v6 }
 0x186   :  { %v1037_v22 = vxor.u32 2147483648, %v12280_v18  ;;  %v1206_v60 = vadd.s32 1, %v14066_v34  ;;  %v1118_v51 = vshrl.u32 %v1100_v26, %v1116_v33  ;;  %v1267_v4 = vsub.s32 32, %v1266_v63 }
 0x187   :  { %v1041_v23 = vsel %vm1039_vm5, %v1040_v35, %v12280_v18  ;;  %v1121_v38 = vadd.s32 127, %v1120_v30  ;;  %v4360_v43 = vsel %vm4358_vm13, %v1040_v35, %v12280_v18  ;;  %v14099_v62 = vsel %vm14054_vm11, 0, %v1131_v13  ;;  %v56_v13 = vld [vmem:[%s19134_s0 + $0x60] sm:$0xff] }
 0x188   :  { %v1038_v57 = vsel %vm1036_vm7, %v12278_v3, %v1037_v22  ;;  %v4357_v45 = vsel %vm4355_vm12, %v12278_v3, %v1037_v22  ;;  %v1207_v28 = vsel %vm1205_vm0, %v1206_v60, %v14066_v34  ;;  %v1119_v14 = vor.u32 %v1118_v51, %v1117_v29 }
 0x189   :  { %v1042_v52 = vsel %vm1035_vm1, %v1038_v57, %v1041_v23  ;;  %v1122_v40 = vshll.u32 %v1121_v38, 23  ;;  %v4361_v26 = vsel %vm4354_vm9, %v4357_v45, %v4360_v43  ;;  %v1208_v18 = vadd.s32 %v1207_v28, %v1203_v32 }
 0x18a   :  { %v1043_v36 = vsel %vm1032_vm10, nan, %v1042_v52  ;;  %v1260_v3 = vor.u32 8388608, %v1259_v53  ;;  %v1126_v35 = vcvt.s32.f32 %v1119_v14  ;;  %v4362_v48 = vsel %vm1032_vm10, nan, %v4361_v26  ;;  %v12111_v26 = vld [vmem:[#allocation2 + $0x500] ss:$16 sps:$4 sm:$0xff]  }
 0x18b   :  { %7255 = vperm.xlu0 %11923, %v1043_v36   ;;  %v1123_v34 = vor.u32 4788187, %v1122_v40  ;;  %v1269_v33 = vshll.u32 %v19377_v50, %v1266_v63  ;;  %v1209_v29 = vadd.s32 536870912, %v1208_v18  ;;  %v1270_v58 = vshrl.u32 %v19378_v8, %v1267_v4  ;;  %8899 = vmatpush2.bf16.msra.mxu0 %v12111_v26 }
 0x18c   :  { %v1272_v30 = vshll.u32 %v19378_v8, %v1266_v63  ;;  %v1273_v22 = vshrl.u32 %v19379_v56, %v1267_v4  ;;  %v14110_v32 = vshrl.u32 %v1264_v12, 5  ;;  %v1275_v60 = vshll.u32 %v19379_v56, %v1266_v63 }
 0x18d   :  { %v1124_v53 = vand.u32 2147483647, %v1123_v34  ;;  %v1278_v42 = vshll.u32 %v19380_v9, %v1266_v63  ;;  %v14114_v23 = vshrl.u32 %v1209_v29, 30  ;;  %v1276_v51 = vshrl.u32 %v19380_v9, %v1267_v4 }
 0x18e   :  { %v1279_v38 = vshrl.u32 %v19381_v41, %v1267_v4  ;;  %v1281_v43 = vshll.u32 %v19381_v41, %v1266_v63  ;;  %v1282_v45 = vshrl.u32 %v19395_v27, %v1267_v4  ;;  %v14120_v28 = vmul.f32 0.017453277, %v56_v13  ;;  %v12114_v13 = vld [vmem:[#allocation2 + $0x108] ss:$16 sps:$4 sm:$0xff]  }
 0x18f   :  { %v1127_v57 = vmul.f32 %v1126_v35, %v1124_v53  ;;  %9683 = vperm.xlu0 %11923, %v4362_v48   ;;  %v1137_v12 = vadd.s32 3, %v14099_v62  ;;  %v1211_v52 = vshll.u32 %v14114_v23, 30  ;;  %v1271_v14 = vor.u32 %v1270_v58, %v1269_v33  ;;  %v12116_v53 = vld [vmem:[#allocation2 + $0x10c] ss:$16 sps:$4 sm:$0xff]  }
 0x190   :  { %v1274_v40 = vor.u32 %v1273_v22, %v1272_v30  ;;  %v1280_v34 = vor.u32 %v1279_v38, %v1278_v42  ;;  %v1283_v29 = vor.u32 %v1282_v45, %v1281_v43  ;;  %vm1284_vm8 = vcmp.lt.s32.totalorder %v14110_v32, 1  ;;  %9091 = vmatprep.subr.bf16.mxu1 %v12116_v53 }
 0x191   :  { %v1128_v36 = vxor.u32 2147483648, %v1127_v57  ;;  %v14125_v63 = vsub.s32 %v1208_v18, %v1211_v52  ;;  %v1277_v35 = vor.u32 %v1276_v51, %v1275_v60  ;;  %vm1287_vm2 = vcmp.lt.s32.totalorder %v14110_v32, 4  ;;  %9092 = vmatpush2.bf16.msra.mxu1 %v12114_v13 }
 0x192   :  { %v14128_v48 = vshll.u32 %v1260_v3, 8  ;;  %v1268_v58 = vshrl.u32 %v19377_v50, %v1267_v4  ;;  %vm1285_vm4 = vcmp.lt.s32.totalorder %v14110_v32, 2  ;;  %vm1286_vm6 = vcmp.lt.s32.totalorder %v14110_v32, 3 }
 0x193   :  { %v1129_v33 = vsel %vm1046_vm3, %v1128_v36, %v1127_v57  ;;  %v1214_v30 = vsub.s32 0, %v14125_v63  ;;  %v1289_v3 = vsel %vm1287_vm2, %v1277_v35, 2102212464  ;;  %v1292_v22 = vsel %vm1284_vm8, %v1271_v14, %v1274_v40  ;;  %v6913_v36 = vld [vmem:[%s19135_s1 + $0x5a8] sm:$0xff] }
 0x194   :  { %v1132_v18 = vsel %vm14054_vm11, %v13757_v20, %v1129_v33  ;;  %v1293_v4 = vsel %vm1287_vm2, %v1280_v34, 920167782  ;;  %v1297_v6 = vsel %vm1287_vm2, %v1283_v29, 1326507024  ;;  %v1359_v16 = vand.u32 2139095040, %v14120_v28 }
 0x195   :  { %12281 = vcosq.f32 %v1132_v18  ;;  %v11121_v60 = vmin.u32 %v1214_v30, %v14125_v63  ;;  %v1294_v42 = vsel %vm1286_vm6, %v1277_v35, %v1293_v4  ;;  %v1296_v51 = vsel %vm1284_vm8, %v1274_v40, %v1277_v35  ;;  %v6921_v35 = vld [vmem:[%s19135_s1 + $0x5e8] sm:$0xff] }
 0x196   :  { %12283 = vsinq.f32 %v1132_v18  ;;  %v1288_v38 = vsel %vm1284_vm8, %v1268_v58, %v1271_v14  ;;  %v1290_v43 = vsel %vm1286_vm6, %v1274_v40, %v1289_v3  ;;  %v1295_v57 = vsel %vm1285_vm4, %v1292_v22, %v1294_v42 }
 0x197   :  { %v1298_v45 = vsel %vm1286_vm6, %v1280_v34, %v1297_v6  ;;  %v14162_v52 = vand.u32 3, %v14099_v62  ;;  %v1216_v26 = vclz %v11121_v60  ;;  %vm1150_vm3 = vcmp.lt.s32.totalorder %v13873_v7, 0  ;;  %v6919_v62 = vld [vmem:[%s19135_s1 + $0x5d8] sm:$0xff] }
 0x198   :  { %v1299_v14 = vsel %vm1285_vm4, %v1296_v51, %v1298_v45  ;;  %v14171_v40 = vmul.u32.u64.low %v14128_v48, %v1295_v57  ;;  %v14172_v29 = vmul.u32.u64.high %v14128_v48, %v1295_v57, %v14171_v40  ;;  %v6915_v34 = vld [vmem:[%s19135_s1 + $0x5b8] sm:$0xff]  ;;  %v1291_v53 = vsel %vm1285_vm4, %v1288_v38, %v1290_v43 }
 0x199   :  { %v11122_v13 = vadd.s32 4294967294, %v1216_v26  ;;  %v14187_v33 = vmul.u32.u64.low %v14128_v48, %v1299_v14  ;;  %v14188_v58 = vmul.u32.u64.high %v14128_v48, %v1299_v14, %v14187_v33  ;;  %v1138_v18 = vand.u32 3, %v1137_v12 }
 0x19a   :  { %v19436_v30 = vand.u32 2147483647, %v13873_v7  ;;  %v1234_v22 = vsub.s32 4, %v14114_v23  ;;  %v1360_v4 = vshrl.u32 %v1359_v16, 23  ;;  %vm4457_vm1 = vcmp.lt.s32.totalorder %v14162_v52, 2 }
 0x19b   :  { %v1204_v32 = vadd.s32 %v14065_v47, %v14061_v24  ;;  %vm11123_vm5 = vcmp.lt.s32.totalorder %v11122_v13, 0  ;;  %v14200_v6 = vpack.c.bf16 %v6919_v62, %v6913_v36  ;;  %v14202_v60 = vpack.c.bf16 %v6921_v35, %v6915_v34 }
 0x19c   :  { %vm14192_vm7 = vcmp.le.f32.partialorder %v19436_v30, 0.7853982  ;;  %vm1136_vm9 = vweird.f32 %v13757_v20  ;;  %v1219_v12 = vsel %vm11123_vm5, 0, %v11122_v13  ;;  %v1307_v42 = vmul.u32 %v14128_v48, %v1291_v53 }
 0x19d   :  { %19439 = vst [vmem:[#allocation46_spill] sm:$0xff] %v14202_v60  ;;  %v1310_v51 = vadd.s32 1, %v14172_v29  ;;  %v11128_v38 = vadd.s32 4294967169, %v1360_v4  ;;  %vm4458_vm10 = vcmp.eq.s32.totalorder %v14162_v52, 0  ;;  %v1220_v16 = vsub.s32 32, %v1219_v12  ;;  %8664 = vmatprep.mubr.bf16.mxu0 %v14200_v6  ;;  %8857 = vmatprep.mubr.bf16.mxu1 %v14202_v60 }
 0x19e   :  { %v1221_v43 = vshll.u32 %v14125_v63, %v1219_v12  ;;  %v1224_v57 = vsub.s32 4294967266, %v1219_v12  ;;  %vm4461_vm11 = vcmp.eq.s32.totalorder %v14162_v52, 2  ;;  %v1235_v24 = vsel %vm1150_vm3, %v1234_v22, %v14114_v23 }
 0x19f   :  { %vm1309_vm12 = vc.u32 %v14188_v58, %v14171_v40  ;;  %v1366_v47 = vadd.s32 1, %v11128_v38  ;;  %v1222_v48 = vshrl.u32 %v1204_v32, %v1220_v16  ;;  %v1356_v63 = vand.u32 2147483647, %v14120_v28  ;;  %v57_v16 = vld [vmem:[%s19134_s0 + $0x68] sm:$0xff] }
 0x1a0   :  { %v1225_v45 = vadd.s32 127, %v1224_v57  ;;  %v1311_v26 = vsel %vm1309_vm12, %v1310_v51, %v14172_v29  ;;  %vm1139_vm13 = vcmp.lt.s32.totalorder %v1138_v18, 2  ;;  %vm1143_vm14 = vcmp.eq.s32.totalorder %v1138_v18, 2 }
 0x1a1   :  { %v1312_v36 = vadd.s32 %v1311_v26, %v1307_v42  ;;  %vm1367_vm15 = vcmp.gt.s32.totalorder %v1366_v47, 0  ;;  %v1223_v62 = vor.u32 %v1222_v48, %v1221_v43  ;;  %v1237_v23 = vsel %vm14192_vm7, 0, %v1235_v24 }
 0x1a2   :  { %v12282_v14 = vpop.eup %12281  ;;  %v1226_v34 = vshll.u32 %v1225_v45, 23  ;;  %v1368_v35 = vsel %vm1367_vm15, %v1366_v47, 0  ;;  %vm1140_vm0 = vcmp.eq.s32.totalorder %v1138_v18, 0  ;;  %v1363_v32 = vand.u32 8388607, %v1356_v63 }
 0x1a3   :  { %v12284_v13 = vpop.eup %12283  ;;  %v1144_v53 = vxor.u32 2147483648, %v12282_v14  ;;  %v1313_v33 = vadd.s32 536870912, %v1312_v36  ;;  %v1370_v30 = vand.u32 31, %v1368_v35  ;;  %v1230_v4 = vcvt.s32.f32 %v1223_v62 }
 0x1a4   :  { %v1141_v22 = vxor.u32 2147483648, %v12284_v13  ;;  %v1227_v29 = vor.u32 4788187, %v1226_v34  ;;  %v1241_v51 = vadd.s32 3, %v1237_v23  ;;  %v14249_v52 = vand.u32 3, %v1237_v23 }
 0x1a5   :  { %v1145_v12 = vsel %vm1143_vm14, %v1144_v53, %v12284_v13  ;;  %v4463_v42 = vsel %vm4461_vm11, %v1144_v53, %v12284_v13  ;;  %v14226_v38 = vshrl.u32 %v1313_v33, 30  ;;  %v1371_v47 = vsub.s32 32, %v1370_v30 }
 0x1a6   :  { %v1142_v43 = vsel %vm1140_vm0, %v12282_v14, %v1141_v22  ;;  %v4460_v57 = vsel %vm4458_vm10, %v12282_v14, %v1141_v22  ;;  %v1228_v24 = vand.u32 2147483647, %v1227_v29  ;;  %v1364_v13 = vor.u32 8388608, %v1363_v32 }
 0x1a7   :  { %v1146_v48 = vsel %vm1139_vm13, %v1142_v43, %v1145_v12  ;;  %v4464_v45 = vsel %vm4457_vm1, %v4460_v57, %v4463_v42  ;;  %v1315_v26 = vshll.u32 %v14226_v38, 30  ;;  %v14239_v53 = vmul.f32 0.017453277, %v57_v16 }
 0x1a8   :  { %v1147_v62 = vsel %vm1136_vm9, nan, %v1146_v48  ;;  %v1231_v34 = vmul.f32 %v1230_v4, %v1228_v24  ;;  %v14241_v33 = vand.u32 3, %v1241_v51  ;;  %v14245_v14 = vadd.s32 %v14171_v40, %v14188_v58 }
 0x1a9   :  { %7260 = vperm.xlu1 %11924, %v1147_v62   ;;  %v14247_v18 = vsub.s32 %v1312_v36, %v1315_v26  ;;  %v4465_v22 = vsel %vm1136_vm9, nan, %v4464_v45  ;;  %v1373_v4 = vshll.u32 %v19377_v50, %v1370_v30  ;;  %v1374_v32 = vshrl.u32 %v19378_v8, %v1371_v47 }
 0x1aa   :  { %v1232_v29 = vxor.u32 2147483648, %v1231_v34  ;;  %v1376_v42 = vshll.u32 %v19378_v8, %v1370_v30  ;;  %v1377_v51 = vshrl.u32 %v19379_v56, %v1371_v47  ;;  %v1379_v40 = vshll.u32 %v19379_v56, %v1370_v30 }
 0x1ab   :  { %v1318_v12 = vsub.s32 0, %v14247_v18  ;;  %v1380_v36 = vshrl.u32 %v19380_v9, %v1371_v47  ;;  %v14262_v20 = vshll.u32 %v1364_v13, 8  ;;  %v1463_v23 = vand.u32 2139095040, %v14239_v53 }
 0x1ac   :  { %v1233_v58 = vsel %vm1150_vm3, %v1232_v29, %v1231_v34  ;;  %v1369_v57 = vshrl.u32 %v1368_v35, 5  ;;  %v1460_v24 = vand.u32 2147483647, %v14239_v53  ;;  %v1372_v48 = vshrl.u32 %v19377_v50, %v1371_v47 }
 0x1ad   :  { %9688 = vperm.xlu1 %11924, %v4465_v22   ;;  %v1236_v16 = vsel %vm14192_vm7, %v13873_v7, %v1233_v58  ;;  %v11125_v43 = vmin.u32 %v1318_v12, %v14247_v18  ;;  %v1375_v45 = vor.u32 %v1374_v32, %v1373_v4  ;;  %v1382_v26 = vshll.u32 %v19380_v9, %v1370_v30 }
 0x1ae   :  { %12285 = vcosq.f32 %v1236_v16  ;;  %v1378_v34 = vor.u32 %v1377_v51, %v1376_v42  ;;  %v1381_v13 = vor.u32 %v1380_v36, %v1379_v40  ;;  %v1383_v22 = vshrl.u32 %v19381_v41, %v1371_v47 }
 0x1af   :  { %12287 = vsinq.f32 %v1236_v16  ;;  %v1320_v62 = vclz %v11125_v43  ;;  %v1385_v3 = vshll.u32 %v19381_v41, %v1370_v30  ;;  %v1386_v29 = vshrl.u32 %v19395_v27, %v1371_v47 }
 0x1b0   :  { %v1464_v12 = vshrl.u32 %v1463_v23, 23  ;;  %vm1254_vm8 = vcmp.lt.s32.totalorder %v13984_v1, 0  ;;  %vm1388_vm2 = vcmp.lt.s32.totalorder %v1369_v57, 1  ;;  %vm1389_vm4 = vcmp.lt.s32.totalorder %v1369_v57, 2 }
 0x1b1   :  { %v11126_v35 = vadd.s32 4294967294, %v1320_v62  ;;  %vm1390_vm6 = vcmp.lt.s32.totalorder %v1369_v57, 3  ;;  %v1384_v4 = vor.u32 %v1383_v22, %v1382_v26  ;;  %v1387_v32 = vor.u32 %v1386_v29, %v1385_v3 }
 0x1b2   :  { %vm1391_vm3 = vcmp.lt.s32.totalorder %v1369_v57, 4  ;;  %v1392_v58 = vsel %vm1388_vm2, %v1372_v48, %v1375_v45  ;;  %vm1247_vm7 = vcmp.eq.s32.totalorder %v14241_v33, 2  ;;  %v1396_v51 = vsel %vm1388_vm2, %v1375_v45, %v1378_v34 }
 0x1b3   :  { %vm11127_vm1 = vcmp.lt.s32.totalorder %v11126_v35, 0  ;;  %v1393_v42 = vsel %vm1391_vm3, %v1381_v13, 2102212464  ;;  %v1400_v40 = vsel %vm1388_vm2, %v1378_v34, %v1381_v13  ;;  %vm1244_vm5 = vcmp.eq.s32.totalorder %v14241_v33, 0 }
 0x1b4   :  { %v19440_v30 = vand.u32 2147483647, %v13984_v1  ;;  %v1323_v36 = vsel %vm11127_vm1, 0, %v11126_v35  ;;  %v1394_v23 = vsel %vm1390_vm6, %v1378_v34, %v1393_v42  ;;  %v1397_v16 = vsel %vm1391_vm3, %v1384_v4, 920167782  ;;  %v6912_v34 = vld [vmem:[%s19135_s1 + $0x5a0] sm:$0xff] }
 0x1b5   :  { %v1401_v43 = vsel %vm1391_vm3, %v1387_v32, 1326507024  ;;  %vm1243_vm10 = vcmp.lt.s32.totalorder %v14241_v33, 2  ;;  %v1324_v48 = vsub.s32 32, %v1323_v36  ;;  %v1325_v26 = vshll.u32 %v14247_v18, %v1323_v36 }
 0x1b6   :  { %vm14280_vm9 = vcmp.le.f32.partialorder %v19440_v30, 0.7853982  ;;  %v1328_v45 = vsub.s32 4294967266, %v1323_v36  ;;  %v1338_v62 = vsub.s32 4, %v14226_v38  ;;  %vm4560_vm11 = vcmp.lt.s32.totalorder %v14249_v52, 2 }
 0x1b7   :  { %v1395_v22 = vsel %vm1389_vm4, %v1392_v58, %v1394_v23  ;;  %v1398_v3 = vsel %vm1390_vm6, %v1381_v13, %v1397_v16  ;;  %v1402_v29 = vsel %vm1390_vm6, %v1384_v4, %v1401_v43  ;;  %v11132_v35 = vadd.s32 4294967169, %v1464_v12  ;;  %v6918_v58 = vld [vmem:[%s19135_s1 + $0x5d0] sm:$0xff]  ;;  %v6920_v12 = vld [vmem:[%s19135_s1 + $0x5e0] sm:$0xff] }
 0x1b8   :  { %v1326_v32 = vshrl.u32 %v14245_v14, %v1324_v48  ;;  %v1329_v42 = vadd.s32 127, %v1328_v45  ;;  %v1399_v18 = vsel %vm1389_vm4, %v1396_v51, %v1398_v3  ;;  %v1403_v30 = vsel %vm1389_vm4, %v1400_v40, %v1402_v29  ;;  %v6914_v13 = vld [vmem:[%s19135_s1 + $0x5b0] sm:$0xff] }
 0x1b9   :  { %v14308_v4 = vmul.u32.u64.low %v14262_v20, %v1403_v30  ;;  %v14309_v14 = vmul.u32.u64.high %v14262_v20, %v1403_v30, %v14308_v4  ;;  %v14312_v51 = vmul.u32.u64.low %v14262_v20, %v1399_v18  ;;  %v14313_v57 = vmul.u32.u64.high %v14262_v20, %v1399_v18, %v14312_v51 }
 0x1ba   :  { %v1327_v40 = vor.u32 %v1326_v32, %v1325_v26  ;;  %v1330_v36 = vshll.u32 %v1329_v42, 23  ;;  %vm4561_vm12 = vcmp.eq.s32.totalorder %v14249_v52, 0  ;;  %v1470_v23 = vadd.s32 1, %v11132_v35 }
 0x1bb   :  { %v1339_v16 = vsel %vm1254_vm8, %v1338_v62, %v14226_v38  ;;  %vm4564_vm13 = vcmp.eq.s32.totalorder %v14249_v52, 2  ;;  %v14321_v43 = vpack.c.bf16 %v6918_v58, %v6912_v34  ;;  %v14323_v48 = vpack.c.bf16 %v6920_v12, %v6914_v13  ;;  %v12286_v45 = vpop.eup %12285 }
 0x1bc   :  { %v1331_v3 = vor.u32 4788187, %v1330_v36  ;;  %v1334_v29 = vcvt.s32.f32 %v1327_v40  ;;  %v1411_v18 = vmul.u32 %v14262_v20, %v1395_v22  ;;  %vm1471_vm14 = vcmp.gt.s32.totalorder %v1470_v23, 0  ;;  %v12288_v26 = vpop.eup %12287 }
 0x1bd   :  { %19443 = vst [vmem:[#allocation47_spill] sm:$0xff] %v14323_v48  ;;  %v1248_v32 = vxor.u32 2147483648, %v12286_v45  ;;  %vm1413_vm15 = vc.u32 %v14309_v14, %v14312_v51  ;;  %v1414_v35 = vadd.s32 1, %v14313_v57  ;;  %v14331_v38 = vand.u32 8388607, %v1460_v24  ;;  %8665 = vmatmul.mubr.bf16.gmra.mxu0 %v14321_v43  ;;  %8858 = vmatmul.mubr.bf16.gmra.mxu1 %v14323_v48 }
 0x1be   :  { %v1245_v62 = vxor.u32 2147483648, %v12288_v26  ;;  %v1332_v34 = vand.u32 2147483647, %v1331_v3  ;;  %v1341_v20 = vsel %vm14280_vm9, 0, %v1339_v16  ;;  %v1472_v22 = vsel %vm1471_vm14, %v1470_v23, 0  ;;  %9093 = vmatprep.mubr.bf16.mxu1 %v12467_v54 }
 0x1bf   :  { %vm1240_vm0 = vweird.f32 %v13873_v7  ;;  %v1249_v42 = vsel %vm1247_vm7, %v1248_v32, %v12288_v26  ;;  %v4566_v30 = vsel %vm4564_vm13, %v1248_v32, %v12288_v26  ;;  %v1415_v58 = vsel %vm1413_vm15, %v1414_v35, %v14313_v57 }
 0x1c0   :  { %v1246_v13 = vsel %vm1244_vm5, %v12286_v45, %v1245_v62  ;;  %v1335_v12 = vmul.f32 %v1334_v29, %v1332_v34  ;;  %v4563_v4 = vsel %vm4561_vm12, %v12286_v45, %v1245_v62  ;;  %v1416_v40 = vadd.s32 %v1415_v58, %v1411_v18 }
 0x1c1   :  { %v1250_v54 = vsel %vm1243_vm10, %v1246_v13, %v1249_v42  ;;  %v1345_v36 = vadd.s32 3, %v1341_v20  ;;  %v4567_v23 = vsel %vm4560_vm11, %v4563_v4, %v4566_v30  ;;  %v1474_v16 = vand.u32 31, %v1472_v22 }
 0x1c2   :  { %v1251_v3 = vsel %vm1240_vm0, nan, %v1250_v54  ;;  %v1336_v57 = vxor.u32 2147483648, %v1335_v12  ;;  %v1417_v26 = vadd.s32 536870912, %v1416_v40  ;;  %v1468_v32 = vor.u32 8388608, %v14331_v38 }
 0x1c3   :  { %7265 = vperm.xlu0 %11923, %v1251_v3   ;;  %v14355_v29 = vshrl.u32 %v1472_v22, 5  ;;  %v1475_v45 = vsub.s32 32, %v1474_v16  ;;  %v1477_v18 = vshll.u32 %v19377_v50, %v1474_v16  ;;  %v1480_v33 = vshll.u32 %v19378_v8, %v1474_v16 }
 0x1c4   :  { %v1337_v52 = vsel %vm1254_vm8, %v1336_v57, %v1335_v12  ;;  %v4568_v35 = vsel %vm1240_vm0, nan, %v4567_v23  ;;  %v14363_v62 = vshrl.u32 %v1417_v26, 30  ;;  %v1483_v34 = vshll.u32 %v19379_v56, %v1474_v16 }
 0x1c5   :  { %v1340_v38 = vsel %vm14280_vm9, %v13984_v1, %v1337_v52  ;;  %v1478_v22 = vshrl.u32 %v19378_v8, %v1475_v45  ;;  %v1481_v42 = vshrl.u32 %v19379_v56, %v1475_v45  ;;  %v1486_v30 = vshll.u32 %v19380_v9, %v1474_v16  ;;  %9094 = vmatmul.mubr.bf16.vlgmr.msra.gmra.mxu1 %v12497_v17  ;;  %v12120_v52 = vld [vmem:[#allocation2 + $0x4e8] ss:$16 sps:$4 sm:$0xff]  }
 0x1c6   :  { %12289 = vcosq.f32 %v1340_v38  ;;  %v1419_v7 = vshll.u32 %v14363_v62, 30  ;;  %v1484_v58 = vshrl.u32 %v19380_v9, %v1475_v45  ;;  %v1489_v13 = vshll.u32 %v19381_v41, %v1474_v16  ;;  %9103 = vmatprep.mubr.bf16.mxu1 %v12501_v21 }
 0x1c7   :  { %12291 = vsinq.f32 %v1340_v38  ;;  %9693 = vperm.xlu0 %11923, %v4568_v35   ;;  %v1479_v47 = vor.u32 %v1478_v22, %v1477_v18  ;;  %v1482_v12 = vor.u32 %v1481_v42, %v1480_v33  ;;  %v1487_v4 = vshrl.u32 %v19381_v41, %v1475_v45  ;;  %v12119_v18 = vld [vmem:[#allocation2 + $0x2ec] ss:$16 sps:$4 sm:$0xff]  }
 0x1c8   :  { %v14378_v54 = vsub.s32 %v1416_v40, %v1419_v7  ;;  %v1485_v23 = vor.u32 %v1484_v58, %v1483_v34  ;;  %v1490_v17 = vshrl.u32 %v19395_v27, %v1475_v45  ;;  %vm1492_vm8 = vcmp.lt.s32.totalorder %v14355_v29, 1  ;;  %v58_v40 = vld [vmem:[%s19134_s0 + $0x70] sm:$0xff]  ;;  %9254 = vmatprep.subr.bf16.mxu0 %v12119_v18  ;;  %v12122_v42 = vld [vmem:[#allocation2 + $0x4ec] ss:$16 sps:$4 sm:$0xff]  }
 0x1c9   :  { %v14382_v3 = vand.u32 3, %v1341_v20  ;;  %v1476_v57 = vshrl.u32 %v19377_v50, %v1475_v45  ;;  %v1488_v16 = vor.u32 %v1487_v4, %v1486_v30  ;;  %vm1494_vm2 = vcmp.lt.s32.totalorder %v14355_v29, 3  ;;  %9447 = vmatprep.subr.bf16.mxu1 %v12122_v42 }
 0x1ca   :  { %v1422_v21 = vsub.s32 0, %v14378_v54  ;;  %v1491_v26 = vor.u32 %v1490_v17, %v1489_v13  ;;  %vm1493_vm4 = vcmp.lt.s32.totalorder %v14355_v29, 2  ;;  %vm1495_vm6 = vcmp.lt.s32.totalorder %v14355_v29, 4  ;;  %9448 = vmatpush1.bf16.msra.mxu1 %v12120_v52 }
 0x1cb   :  { %vm1358_vm3 = vcmp.lt.s32.totalorder %v14120_v28, 0  ;;  %v1500_v20 = vsel %vm1492_vm8, %v1479_v47, %v1482_v12  ;;  %v1501_v45 = vsel %vm1495_vm6, %v1488_v16, 920167782  ;;  %v14397_v33 = vshll.u32 %v1468_v32, 8 }
 0x1cc   :  { %v14399_v35 = vand.u32 3, %v1345_v36  ;;  %v11129_v34 = vmin.u32 %v1422_v21, %v14378_v54  ;;  %v1497_v38 = vsel %vm1495_vm6, %v1485_v23, 2102212464  ;;  %v1502_v22 = vsel %vm1494_vm2, %v1485_v23, %v1501_v45 }
 0x1cd   :  { %vm4663_vm7 = vcmp.lt.s32.totalorder %v14382_v3, 2  ;;  %v1503_v30 = vsel %vm1493_vm4, %v1500_v20, %v1502_v22  ;;  %v1504_v32 = vsel %vm1492_vm8, %v1482_v12, %v1485_v23  ;;  %v1505_v36 = vsel %vm1495_vm6, %v1491_v26, 1326507024  ;;  %9104 = vmatmul.mubr.bf16.gmra.mxu1 %v12533_v37 }
 0x1ce   :  { %v14413_v7 = vmul.f32 0.017453277, %v58_v40  ;;  %vm1344_vm1 = vweird.f32 %v13984_v1  ;;  %vm4664_vm5 = vcmp.eq.s32.totalorder %v14382_v3, 0  ;;  %v1424_v58 = vclz %v11129_v34  ;;  %9113 = vmatprep.mubr.bf16.mxu1 %v12537_v39 }
 0x1cf   :  { %v1442_v13 = vsub.s32 4, %v14363_v62  ;;  %v1496_v4 = vsel %vm1492_vm8, %v1476_v57, %v1479_v47  ;;  %v1498_v23 = vsel %vm1494_vm2, %v1482_v12, %v1497_v38  ;;  %v1506_v17 = vsel %vm1494_vm2, %v1488_v16, %v1505_v36 }
 0x1d0   :  { %v14427_v37 = vmul.u32.u64.low %v14397_v33, %v1503_v30  ;;  %v14428_v21 = vmul.u32.u64.high %v14397_v33, %v1503_v30, %v14427_v37  ;;  %vm1347_vm9 = vcmp.lt.s32.totalorder %v14399_v35, 2  ;;  %vm4667_vm10 = vcmp.eq.s32.totalorder %v14382_v3, 2  ;;  %v6736_v3 = vld [vmem:[%s19135_s1 + $0x20] sm:$0xff] }
 0x1d1   :  { %vm14435_vm11 = vcmp.le.f32.partialorder %v1356_v63, 0.7853982  ;;  %v11130_v47 = vadd.s32 4294967294, %v1424_v58  ;;  %v1507_v12 = vsel %vm1493_vm4, %v1504_v32, %v1506_v17  ;;  %vm1348_vm12 = vcmp.eq.s32.totalorder %v14399_v35, 0 }
 0x1d2   :  { %v14443_v57 = vmul.u32.u64.low %v14397_v33, %v1507_v12  ;;  %v14444_v16 = vmul.u32.u64.high %v14397_v33, %v1507_v12, %v14443_v57  ;;  %v1567_v26 = vand.u32 2139095040, %v14413_v7  ;;  %vm1351_vm13 = vcmp.eq.s32.totalorder %v14399_v35, 2 }
 0x1d3   :  { %v1412_v63 = vadd.s32 %v14312_v51, %v14309_v14  ;;  %vm11131_vm14 = vcmp.lt.s32.totalorder %v11130_v47, 0  ;;  %v1499_v40 = vsel %vm1493_vm4, %v1496_v4, %v1498_v23  ;;  %v12290_v18 = vpop.eup %12289  ;;  %v1443_v45 = vsel %vm1358_vm3, %v1442_v13, %v14363_v62  ;;  %v6743_v57 = vld [vmem:[%s19135_s1 + $0x58] sm:$0xff] }
 0x1d4   :  { %v1427_v20 = vsel %vm11131_vm14, 0, %v11130_v47  ;;  %v1518_v52 = vadd.s32 1, %v14428_v21  ;;  %v1568_v34 = vshrl.u32 %v1567_v26, 23  ;;  %v12292_v38 = vpop.eup %12291  ;;  %v1352_v22 = vxor.u32 2147483648, %v12290_v18 }
 0x1d5   :  { %v1428_v42 = vsub.s32 32, %v1427_v20  ;;  %v1429_v30 = vshll.u32 %v14378_v54, %v1427_v20  ;;  %v1432_v32 = vsub.s32 4294967266, %v1427_v20  ;;  %v1349_v14 = vxor.u32 2147483648, %v12292_v38  ;;  %9114 = vmatmul.mubr.bf16.gmra.mxu1 %v12569_v59 }
 0x1d6   :  { %v1515_v51 = vmul.u32 %v14397_v33, %v1499_v40  ;;  %vm1517_vm15 = vc.u32 %v14444_v16, %v14427_v37  ;;  %v11136_v29 = vadd.s32 4294967169, %v1568_v34  ;;  %v1353_v62 = vsel %vm1351_vm13, %v1352_v22, %v12292_v38  ;;  %9123 = vmatprep.mubr.bf16.mxu1 %v12573_v61  ;;  %v6737_v61 = vld [vmem:[%s19135_s1 + $0x28] sm:$0xff]  ;;  %v6742_v40 = vld [vmem:[%s19135_s1 + $0x50] sm:$0xff] }
 0x1d7   :  { %v4669_v36 = vsel %vm4667_vm10, %v1352_v22, %v12292_v38  ;;  %v1430_v58 = vshrl.u32 %v1412_v63, %v1428_v42  ;;  %v1433_v13 = vadd.s32 127, %v1432_v32  ;;  %v1350_v54 = vsel %vm1348_vm12, %v12290_v18, %v1349_v14 }
 0x1d8   :  { %v4666_v33 = vsel %vm4664_vm5, %v12290_v18, %v1349_v14  ;;  %v1519_v4 = vsel %vm1517_vm15, %v1518_v52, %v14428_v21  ;;  %v1564_v59 = vand.u32 2147483647, %v14413_v7  ;;  %v1354_v23 = vsel %vm1347_vm9, %v1350_v54, %v1353_v62  ;;  %v59_v62 = vld [vmem:[%s19134_s0 + $0x78] sm:$0xff] }
 0x1d9   :  { %v4670_v17 = vsel %vm4663_vm7, %v4666_v33, %v4669_v36  ;;  %v1431_v47 = vor.u32 %v1430_v58, %v1429_v30  ;;  %v1434_v12 = vshll.u32 %v1433_v13, 23  ;;  %v1355_v21 = vsel %vm1344_vm1, nan, %v1354_v23 }
 0x1da   :  { %v1445_v35 = vsel %vm14435_vm11, 0, %v1443_v45  ;;  %v1520_v26 = vadd.s32 %v1519_v4, %v1515_v51  ;;  %v1574_v63 = vadd.s32 1, %v11136_v29  ;;  %7270 = vperm.xlu1 %11924, %v1355_v21   ;;  %v4671_v52 = vsel %vm1344_vm1, nan, %v4670_v17  ;;  %v12117_v45 = vld [vmem:[#allocation2 + $0x2e8] ss:$16 sps:$4 sm:$0xff]  }
 0x1db   :  { %v1435_v18 = vor.u32 4788187, %v1434_v12  ;;  %v1438_v20 = vcvt.s32.f32 %v1431_v47  ;;  %v14494_v38 = vpack.c.bf16 %v6743_v57, %v6737_v61  ;;  %v1449_v42 = vadd.s32 3, %v1445_v35 }
 0x1dc   :  { %v1521_v34 = vadd.s32 536870912, %v1520_v26  ;;  %vm1575_vm0 = vcmp.gt.s32.totalorder %v1574_v63, 0  ;;  %v14496_v32 = vpack.c.bf16 %v6742_v40, %v6736_v3  ;;  %v1571_v51 = vand.u32 8388607, %v1564_v59 }
 0x1dd   :  { %v1436_v22 = vand.u32 2147483647, %v1435_v18  ;;  %v1576_v30 = vsel %vm1575_vm0, %v1574_v63, 0  ;;  %8900 = vmatprep.mubr.bf16.mxu0 %v14494_v38  ;;  %9124 = vmatmul.mubr.bf16.gmra.mxu1 %v12605_v15  ;;  %v14510_v54 = vand.u32 3, %v1449_v42  ;;  %v14512_v33 = vand.u32 3, %v1445_v35 }
 0x1de   :  { %v14498_v14 = vshrl.u32 %v1521_v34, 30  ;;  %v1578_v29 = vand.u32 31, %v1576_v30  ;;  %9698 = vperm.xlu1 %11924, %v4671_v52   ;;  %8901 = vmatmul.mubr.bf16.vlgmr.msra.gmra.mxu0 %v14496_v32  ;;  %v1572_v4 = vor.u32 8388608, %v1571_v51  ;;  %v14517_v17 = vmul.f32 0.017453277, %v59_v62 }
 0x1df   :  { %v1439_v1 = vmul.f32 %v1438_v20, %v1436_v22  ;;  %9255 = vmatpush1.bf16.msra.mxu0 %v12117_v45  ;;  %9133 = vmatprep.mubr.bf16.mxu1 %v12609_v19  ;;  %v1516_v63 = vadd.s32 %v14427_v37, %v14444_v16  ;;  %v1577_v3 = vshrl.u32 %v1576_v30, 5  ;;  %vm1462_vm8 = vcmp.lt.s32.totalorder %v14239_v53, 0 }
 0x1e0   :  { %v1523_v36 = vshll.u32 %v14498_v14, 30  ;;  %v1579_v58 = vsub.s32 32, %v1578_v29  ;;  %v1581_v23 = vshll.u32 %v19377_v50, %v1578_v29  ;;  %v1584_v61 = vshll.u32 %v19378_v8, %v1578_v29 }
 0x1e1   :  { %v1440_v13 = vxor.u32 2147483648, %v1439_v1  ;;  %v1587_v35 = vshll.u32 %v19379_v56, %v1578_v29  ;;  %v1590_v40 = vshll.u32 %v19380_v9, %v1578_v29  ;;  %v14535_v39 = vshll.u32 %v1572_v4, 8 }
 0x1e2   :  { %v14514_v15 = vsub.s32 %v1520_v26, %v1523_v36  ;;  %v1582_v12 = vshrl.u32 %v19378_v8, %v1579_v58  ;;  %v1585_v19 = vshrl.u32 %v19379_v56, %v1579_v58  ;;  %v1588_v26 = vshrl.u32 %v19380_v9, %v1579_v58 }
 0x1e3   :  { %v1441_v47 = vsel %vm1358_vm3, %v1440_v13, %v1439_v1  ;;  %v1580_v20 = vshrl.u32 %v19377_v50, %v1579_v58  ;;  %v1591_v45 = vshrl.u32 %v19381_v41, %v1579_v58  ;;  %v1593_v22 = vshll.u32 %v19381_v41, %v1578_v29 }
 0x1e4   :  { %v1444_v57 = vsel %vm14435_vm11, %v14120_v28, %v1441_v47  ;;  %v1526_v21 = vsub.s32 0, %v14514_v15  ;;  %v1583_v52 = vor.u32 %v1582_v12, %v1581_v23  ;;  %v1586_v34 = vor.u32 %v1585_v19, %v1584_v61 }
 0x1e5   :  { %12293 = vcosq.f32 %v1444_v57  ;;  %9134 = vmatmul.mubr.bf16.gmra.mxu1 %v12680_v0  ;;  %v1589_v16 = vor.u32 %v1588_v26, %v1587_v35  ;;  %v1668_v42 = vand.u32 2147483647, %v14517_v17  ;;  %v1671_v30 = vand.u32 2139095040, %v14517_v17 }
 0x1e6   :  { %12295 = vsinq.f32 %v1444_v57  ;;  %v11133_v18 = vmin.u32 %v1526_v21, %v14514_v15  ;;  %9143 = vmatprep.mubr.bf16.mxu1 %v12684_v2  ;;  %v1592_v51 = vor.u32 %v1591_v45, %v1590_v40  ;;  %v1594_v1 = vshrl.u32 %v19395_v27, %v1579_v58 }
 0x1e7   :  { %vm1596_vm2 = vcmp.lt.s32.totalorder %v1577_v3, 1  ;;  %vm1597_vm4 = vcmp.lt.s32.totalorder %v1577_v3, 2  ;;  %vm1598_vm6 = vcmp.lt.s32.totalorder %v1577_v3, 3  ;;  %vm1599_vm3 = vcmp.lt.s32.totalorder %v1577_v3, 4 }
 0x1e8   :  { %v1528_v37 = vclz %v11133_v18  ;;  %v1600_v62 = vsel %vm1596_vm2, %v1580_v20, %v1583_v52  ;;  %vm1452_vm7 = vcmp.eq.s32.totalorder %v14510_v54, 0  ;;  %v1595_v2 = vor.u32 %v1594_v1, %v1593_v22 }
 0x1e9   :  { %v1601_v29 = vsel %vm1599_vm3, %v1589_v16, 2102212464  ;;  %v1604_v36 = vsel %vm1596_vm2, %v1583_v52, %v1586_v34  ;;  %v1605_v13 = vsel %vm1599_vm3, %v1592_v51, 920167782  ;;  %vm1451_vm1 = vcmp.lt.s32.totalorder %v14510_v54, 2 }
 0x1ea   :  { %v11134_v0 = vadd.s32 4294967294, %v1528_v37  ;;  %v1602_v4 = vsel %vm1598_vm6, %v1586_v34, %v1601_v29  ;;  %v1606_v58 = vsel %vm1598_vm6, %v1589_v16, %v1605_v13  ;;  %v1608_v23 = vsel %vm1596_vm2, %v1586_v34, %v1589_v16 }
 0x1eb   :  { %vm1448_vm9 = vweird.f32 %v14120_v28  ;;  %v1546_v12 = vsub.s32 4, %v14498_v14  ;;  %v1607_v61 = vsel %vm1597_vm4, %v1604_v36, %v1606_v58  ;;  %v1609_v19 = vsel %vm1599_vm3, %v1595_v2, 1326507024 }
 0x1ec   :  { %vm11135_vm5 = vcmp.lt.s32.totalorder %v11134_v0, 0  ;;  %v1610_v26 = vsel %vm1598_vm6, %v1592_v51, %v1609_v19  ;;  %vm14560_vm10 = vcmp.le.f32.partialorder %v1460_v24, 0.7853982  ;;  %v1603_v18 = vsel %vm1597_vm4, %v1600_v62, %v1602_v4 }
 0x1ed   :  { %v1531_v47 = vsel %vm11135_vm5, 0, %v11134_v0  ;;  %9144 = vmatmul.mubr.bf16.gmra.mxu1 %v12728_v31  ;;  %v1611_v20 = vsel %vm1597_vm4, %v1608_v23, %v1610_v26  ;;  %v14567_v52 = vmul.u32.u64.low %v14535_v39, %v1607_v61  ;;  %v14568_v34 = vmul.u32.u64.high %v14535_v39, %v1607_v61, %v14567_v52 }
 0x1ee   :  { %v1532_v57 = vsub.s32 32, %v1531_v47  ;;  %v1533_v21 = vshll.u32 %v14514_v15, %v1531_v47  ;;  %v1536_v35 = vsub.s32 4294967266, %v1531_v47  ;;  %9153 = vmatprep.mubr.bf16.mxu1 %v12745_v44  ;;  %vm1455_vm11 = vcmp.eq.s32.totalorder %v14510_v54, 2 }
 0x1ef   :  { %v14573_v31 = vmul.u32.u64.low %v14535_v39, %v1611_v20  ;;  %v14574_v22 = vmul.u32.u64.high %v14535_v39, %v1611_v20, %v14573_v31  ;;  %vm4766_vm12 = vcmp.lt.s32.totalorder %v14512_v33, 2  ;;  %vm4767_vm13 = vcmp.eq.s32.totalorder %v14512_v33, 0 }
 0x1f0   :  { %v1534_v15 = vshrl.u32 %v1516_v63, %v1532_v57  ;;  %v1537_v45 = vadd.s32 127, %v1536_v35  ;;  %v1672_v24 = vshrl.u32 %v1671_v30, 23  ;;  %v1547_v44 = vsel %vm1462_vm8, %v1546_v12, %v14498_v14  ;;  %v60_v57 = vld [vmem:[%s19134_s0 + $0x80] sm:$0xff] }
 0x1f1   :  { %vm4770_vm14 = vcmp.eq.s32.totalorder %v14512_v33, 2  ;;  %v1619_v1 = vmul.u32 %v14535_v39, %v1603_v18  ;;  %v1622_v0 = vadd.s32 1, %v14568_v34  ;;  %v14587_v30 = vand.u32 8388607, %v1668_v42 }
 0x1f2   :  { %v12294_v3 = vpop.eup %12293  ;;  %v1535_v37 = vor.u32 %v1534_v15, %v1533_v21  ;;  %v1538_v16 = vshll.u32 %v1537_v45, 23  ;;  %v11140_v62 = vadd.s32 4294967169, %v1672_v24  ;;  %vm1621_vm15 = vc.u32 %v14574_v22, %v14567_v52 }
 0x1f3   :  { %v12296_v63 = vpop.eup %12295  ;;  %v1456_v51 = vxor.u32 2147483648, %v12294_v3  ;;  %v1623_v47 = vsel %vm1621_vm15, %v1622_v0, %v14568_v34  ;;  %v14613_v34 = vmul.f32 0.017453277, %v60_v57  ;;  %vm1566_vm4 = vcmp.lt.s32.totalorder %v14413_v7, 0 }
 0x1f4   :  { %v1453_v2 = vxor.u32 2147483648, %v12296_v63  ;;  %v1539_v29 = vor.u32 4788187, %v1538_v16  ;;  %v1542_v36 = vcvt.s32.f32 %v1535_v37  ;;  %v1678_v4 = vadd.s32 1, %v11140_v62 }
 0x1f5   :  { %v1457_v13 = vsel %vm1455_vm11, %v1456_v51, %v12296_v63  ;;  %v4772_v14 = vsel %vm4770_vm14, %v1456_v51, %v12296_v63  ;;  %9154 = vmatmul.mubr.bf16.gmra.mxu1 %v12749_v46  ;;  %v1624_v19 = vadd.s32 %v1623_v47, %v1619_v1  ;;  %v1549_v46 = vsel %vm14560_vm10, 0, %v1547_v44 }
 0x1f6   :  { %v1454_v39 = vsel %vm1452_vm7, %v12294_v3, %v1453_v2  ;;  %v1540_v58 = vand.u32 2147483647, %v1539_v29  ;;  %v4769_v23 = vsel %vm4767_vm13, %v12294_v3, %v1453_v2  ;;  %vm1679_vm0 = vcmp.gt.s32.totalorder %v1678_v4, 0  ;;  %9163 = vmatprep.mubr.bf16.mxu1 %v12766_v5  ;;  %v12123_v2 = vld [vmem:[#allocation2 + $0x2c8] ss:$16 sps:$4 sm:$0xff]  }
 0x1f7   :  { %v1458_v12 = vsel %vm1451_vm1, %v1454_v39, %v1457_v13  ;;  %v4773_v61 = vsel %vm4766_vm12, %v4769_v23, %v4772_v14  ;;  %v1680_v54 = vsel %vm1679_vm0, %v1678_v4, 0  ;;  %v1625_v26 = vadd.s32 536870912, %v1624_v19  ;;  %v12125_v29 = vld [vmem:[#allocation2 + $0x2cc] ss:$16 sps:$4 sm:$0xff]   ;;  %v19448_v4 = vld [vmem:[#allocation22_spill] sm:$0xff] }
 0x1f8   :  { %v1459_v21 = vsel %vm1448_vm9, nan, %v1458_v12  ;;  %v1543_v35 = vmul.f32 %v1542_v36, %v1540_v58  ;;  %v1682_v33 = vand.u32 31, %v1680_v54  ;;  %v4774_v20 = vsel %vm1448_vm9, nan, %v4773_v61  ;;  %v12126_v36 = vld [vmem:[#allocation2 + $0x4c8] ss:$16 sps:$4 sm:$0xff]   ;;  %9256 = vmatprep.subr.bf16.mxu0 %v12125_v29 }
 0x1f9   :  { %7275 = vperm.xlu0 %11923, %v1459_v21   ;;  %v1553_v15 = vadd.s32 3, %v1549_v46  ;;  %v14615_v45 = vshrl.u32 %v1625_v26, 30  ;;  %v1676_v5 = vor.u32 8388608, %v14587_v30  ;;  %v14620_v3 = vshrl.u32 %v1680_v54, 5  ;;  %v12128_v14 = vld [vmem:[#allocation2 + $0x4cc] ss:$16 sps:$4 sm:$0xff]   ;;  %9257 = vmatpush1.bf16.msra.mxu0 %v12123_v2 }
 0x1fa   :  { %v1544_v18 = vxor.u32 2147483648, %v1543_v35  ;;  %v1683_v31 = vsub.s32 32, %v1682_v33  ;;  %v1685_v37 = vshll.u32 %v19377_v50, %v1682_v33  ;;  %v1688_v16 = vshll.u32 %v19378_v8, %v1682_v33  ;;  %9449 = vmatprep.subr.bf16.mxu1 %v12128_v14 }
 0x1fb   :  { %v1627_v44 = vshll.u32 %v14615_v45, 30  ;;  %v1691_v63 = vshll.u32 %v19379_v56, %v1682_v33  ;;  %v1694_v51 = vshll.u32 %v19380_v9, %v1682_v33  ;;  %v1697_v13 = vshll.u32 %v19381_v41, %v1682_v33  ;;  %9450 = vmatpush1.bf16.msra.mxu1 %v12126_v36 }
 0x1fc   :  { %v1545_v24 = vsel %vm1462_vm8, %v1544_v18, %v1543_v35  ;;  %v1686_v1 = vshrl.u32 %v19378_v8, %v1683_v31  ;;  %v1689_v0 = vshrl.u32 %v19379_v56, %v1683_v31  ;;  %v1692_v62 = vshrl.u32 %v19380_v9, %v1683_v31 }
 0x1fd   :  { %v1548_v28 = vsel %vm14560_vm10, %v14239_v53, %v1545_v24  ;;  %9703 = vperm.xlu0 %11923, %v4774_v20   ;;  %9164 = vmatmul.mubr.bf16.gmra.mxu1 %v12770_v49  ;;  %v14634_v40 = vsub.s32 %v1624_v19, %v1627_v44  ;;  %v1695_v30 = vshrl.u32 %v19381_v41, %v1683_v31  ;;  %v14639_v39 = vand.u32 3, %v1553_v15 }
 0x1fe   :  { %12297 = vcosq.f32 %v1548_v28  ;;  %9173 = vmatprep.mubr.bf16.mxu1 %v19448_v4  ;;  %v14641_v58 = vand.u32 3, %v1549_v46  ;;  %v1687_v23 = vor.u32 %v1686_v1, %v1685_v37  ;;  %v1690_v47 = vor.u32 %v1689_v0, %v1688_v16  ;;  %v19449_v16 = vld [vmem:[#allocation24_spill] sm:$0xff]  ;;  %v19450_v1 = vld [vmem:[#allocation26_spill] sm:$0xff] }
 0x1ff   :  { %12299 = vsinq.f32 %v1548_v28  ;;  %v1630_v12 = vsub.s32 0, %v14634_v40  ;;  %v1693_v49 = vor.u32 %v1692_v62, %v1691_v63  ;;  %v1696_v61 = vor.u32 %v1695_v30, %v1694_v51 }
 0x200   :  { %v1698_v19 = vshrl.u32 %v19395_v27, %v1683_v31  ;;  %v1684_v57 = vshrl.u32 %v19377_v50, %v1683_v31  ;;  %vm1700_vm8 = vcmp.lt.s32.totalorder %v14620_v3, 1  ;;  %vm1703_vm2 = vcmp.lt.s32.totalorder %v14620_v3, 4 }
 0x201   :  { %v1775_v21 = vand.u32 2139095040, %v14613_v34  ;;  %v11137_v35 = vmin.u32 %v1630_v12, %v14634_v40  ;;  %vm1702_vm6 = vcmp.lt.s32.totalorder %v14620_v3, 3  ;;  %v14652_v54 = vshll.u32 %v1676_v5, 8 }
 0x202   :  { %v1699_v46 = vor.u32 %v1698_v19, %v1697_v13  ;;  %vm4870_vm3 = vcmp.eq.s32.totalorder %v14641_v58, 0  ;;  %vm1701_vm7 = vcmp.lt.s32.totalorder %v14620_v3, 2  ;;  %v1705_v26 = vsel %vm1703_vm2, %v1693_v49, 2102212464 }
 0x203   :  { %v1708_v33 = vsel %vm1700_vm8, %v1687_v23, %v1690_v47  ;;  %v1709_v18 = vsel %vm1703_vm2, %v1696_v61, 920167782  ;;  %vm1555_vm1 = vcmp.lt.s32.totalorder %v14639_v39, 2  ;;  %vm4869_vm5 = vcmp.lt.s32.totalorder %v14641_v58, 2 }
 0x204   :  { %vm4873_vm9 = vcmp.eq.s32.totalorder %v14641_v58, 2  ;;  %v1632_v20 = vclz %v11137_v35  ;;  %v1712_v15 = vsel %vm1700_vm8, %v1690_v47, %v1693_v49  ;;  %vm1552_vm10 = vweird.f32 %v14239_v53 }
 0x205   :  { %v1704_v5 = vsel %vm1700_vm8, %v1684_v57, %v1687_v23  ;;  %v1710_v31 = vsel %vm1702_vm6, %v1693_v49, %v1709_v18  ;;  %v1713_v24 = vsel %vm1703_vm2, %v1699_v46, 1326507024  ;;  %v1776_v37 = vshrl.u32 %v1775_v21, 23  ;;  %9174 = vmatmul.mubr.bf16.gmra.mxu1 %v19449_v16 }
 0x206   :  { %v11138_v28 = vadd.s32 4294967294, %v1632_v20  ;;  %v1706_v44 = vsel %vm1702_vm6, %v1690_v47, %v1705_v26  ;;  %v1711_v63 = vsel %vm1701_vm7, %v1708_v33, %v1710_v31  ;;  %v1714_v51 = vsel %vm1702_vm6, %v1696_v61, %v1713_v24  ;;  %9183 = vmatprep.mubr.bf16.mxu1 %v19450_v1  ;;  %v19454_v31 = vld [vmem:[#allocation30_spill] sm:$0xff] }
 0x207   :  { %v1650_v0 = vsub.s32 4, %v14615_v45  ;;  %v1715_v62 = vsel %vm1701_vm7, %v1712_v15, %v1714_v51  ;;  %v14686_v2 = vmul.u32.u64.low %v14652_v54, %v1711_v63  ;;  %v14687_v29 = vmul.u32.u64.high %v14652_v54, %v1711_v63, %v14686_v2  ;;  %v6748_v63 = vld [vmem:[%s19135_s1 + $0x80] sm:$0xff]  ;;  %v6754_v51 = vld [vmem:[%s19135_s1 + $0xb0] sm:$0xff] }
 0x208   :  { %vm14692_vm11 = vcmp.le.f32.partialorder %v1564_v59, 0.7853982  ;;  %v1620_v30 = vadd.s32 %v14567_v52, %v14574_v22  ;;  %vm11139_vm12 = vcmp.lt.s32.totalorder %v11138_v28, 0  ;;  %vm1556_vm13 = vcmp.eq.s32.totalorder %v14639_v39, 0 }
 0x209   :  { %v14699_v13 = vmul.u32.u64.low %v14652_v54, %v1715_v62  ;;  %v14700_v14 = vmul.u32.u64.high %v14652_v54, %v1715_v62, %v14699_v13  ;;  %v1635_v4 = vsel %vm11139_vm12, 0, %v11138_v28  ;;  %v1707_v23 = vsel %vm1701_vm7, %v1704_v5, %v1706_v44  ;;  %v6755_v44 = vld [vmem:[%s19135_s1 + $0xb8] sm:$0xff] }
 0x20a   :  { %v11144_v47 = vadd.s32 4294967169, %v1776_v37  ;;  %vm1559_vm14 = vcmp.eq.s32.totalorder %v14639_v39, 2  ;;  %v1636_v59 = vsub.s32 32, %v1635_v4  ;;  %v1637_v49 = vshll.u32 %v14634_v40, %v1635_v4  ;;  %v19453_v40 = vld [vmem:[#allocation28_spill] sm:$0xff] }
 0x20b   :  { %v12298_v12 = vpop.eup %12297  ;;  %v1640_v61 = vsub.s32 4294967266, %v1635_v4  ;;  %v1651_v19 = vsel %vm1566_vm4, %v1650_v0, %v14615_v45  ;;  %v1726_v57 = vadd.s32 1, %v14687_v29  ;;  %v1723_v26 = vmul.u32 %v14652_v54, %v1707_v23  ;;  %v6749_v54 = vld [vmem:[%s19135_s1 + $0x88] sm:$0xff] }
 0x20c   :  { %v12300_v52 = vpop.eup %12299  ;;  %v1560_v22 = vxor.u32 2147483648, %v12298_v12  ;;  %v1782_v21 = vadd.s32 1, %v11144_v47  ;;  %v1638_v3 = vshrl.u32 %v1620_v30, %v1636_v59  ;;  %vm1725_vm15 = vc.u32 %v14700_v14, %v14686_v2 }
 0x20d   :  { %v1557_v35 = vxor.u32 2147483648, %v12300_v52  ;;  %v1641_v46 = vadd.s32 127, %v1640_v61  ;;  %9184 = vmatmul.mubr.bf16.gmra.mxu1 %v19453_v40  ;;  %v1727_v16 = vsel %vm1725_vm15, %v1726_v57, %v14687_v29  ;;  %v1772_v0 = vand.u32 2147483647, %v14613_v34 }
 0x20e   :  { %v1561_v33 = vsel %vm1559_vm14, %v1560_v22, %v12300_v52  ;;  %v4875_v18 = vsel %vm4873_vm9, %v1560_v22, %v12300_v52  ;;  %vm1783_vm0 = vcmp.gt.s32.totalorder %v1782_v21, 0  ;;  %v1639_v15 = vor.u32 %v1638_v3, %v1637_v49  ;;  %9193 = vmatprep.mubr.bf16.mxu1 %v19454_v31 }
 0x20f   :  { %v1558_v45 = vsel %vm1556_vm13, %v12298_v12, %v1557_v35  ;;  %v4872_v20 = vsel %vm4870_vm3, %v12298_v12, %v1557_v35  ;;  %v1642_v5 = vshll.u32 %v1641_v46, 23  ;;  %v1784_v28 = vsel %vm1783_vm0, %v1782_v21, 0 }
 0x210   :  { %v1562_v24 = vsel %vm1555_vm1, %v1558_v45, %v1561_v33  ;;  %v4876_v37 = vsel %vm4869_vm5, %v4872_v20, %v4875_v18  ;;  %v1646_v1 = vcvt.s32.f32 %v1639_v15  ;;  %v1653_v62 = vsel %vm14692_vm11, 0, %v1651_v19  ;;  %v19456_v20 = vld [vmem:[#allocation34_spill] sm:$0xff] }
 0x211   :  { %v1563_v39 = vsel %vm1552_vm10, nan, %v1562_v24  ;;  %v1643_v58 = vor.u32 4788187, %v1642_v5  ;;  %v1728_v29 = vadd.s32 %v1727_v16, %v1723_v26  ;;  %v1786_v30 = vand.u32 31, %v1784_v28  ;;  %v19455_v26 = vld [vmem:[#allocation32_spill] sm:$0xff] }
 0x212   :  { %7280 = vperm.xlu1 %11924, %v1563_v39   ;;  %v4877_v13 = vsel %vm1552_vm10, nan, %v4876_v37  ;;  %v14746_v23 = vpack.c.bf16 %v6755_v44, %v6749_v54  ;;  %v14748_v47 = vpack.c.bf16 %v6754_v51, %v6748_v63  ;;  %v1657_v61 = vadd.s32 3, %v1653_v62 }
 0x213   :  { %v1644_v4 = vand.u32 2147483647, %v1643_v58  ;;  %v1729_v12 = vadd.s32 536870912, %v1728_v29  ;;  %v1787_v59 = vsub.s32 32, %v1786_v30  ;;  %v1779_v52 = vand.u32 8388607, %v1772_v0 }
 0x214   :  { %8910 = vmatprep.mubr.bf16.mxu0 %v14746_v23  ;;  %v1789_v19 = vshll.u32 %v19377_v50, %v1786_v30  ;;  %v1792_v53 = vshll.u32 %v19378_v8, %v1786_v30  ;;  %v1798_v57 = vshll.u32 %v19380_v9, %v1786_v30  ;;  %v1785_v18 = vshrl.u32 %v1784_v28, 5 }
 0x215   :  { %v1647_v49 = vmul.f32 %v1646_v1, %v1644_v4  ;;  %v1730_v22 = vshrl.u32 %v1729_v12, 30  ;;  %8911 = vmatmul.mubr.bf16.gmra.mxu0 %v14748_v47  ;;  %v1790_v35 = vshrl.u32 %v19378_v8, %v1787_v59  ;;  %v1793_v3 = vshrl.u32 %v19379_v56, %v1787_v59  ;;  %9194 = vmatmul.mubr.bf16.gmra.mxu1 %v19455_v26  ;;  %v61_v4 = vld [vmem:[%s19134_s0 + $0x88] sm:$0xff] }
 0x216   :  { %9708 = vperm.xlu1 %11924, %v4877_v13   ;;  %v1799_v46 = vshrl.u32 %v19381_v41, %v1787_v59  ;;  %v1795_v40 = vshll.u32 %v19379_v56, %v1786_v30  ;;  %v1796_v45 = vshrl.u32 %v19380_v9, %v1787_v59  ;;  %9203 = vmatprep.mubr.bf16.mxu1 %v19456_v20  ;;  %v14766_v5 = vand.u32 3, %v1657_v61 }
 0x217   :  { %v1648_v21 = vxor.u32 2147483648, %v1647_v49  ;;  %v1731_v33 = vshll.u32 %v1730_v22, 30  ;;  %v1801_v54 = vshll.u32 %v19381_v41, %v1786_v30  ;;  %v1802_v31 = vshrl.u32 %v19395_v27, %v1787_v59 }
 0x218   :  { %v1780_v16 = vor.u32 8388608, %v1779_v52  ;;  %v1788_v28 = vshrl.u32 %v19377_v50, %v1787_v59  ;;  %v1791_v44 = vor.u32 %v1790_v35, %v1789_v19  ;;  %v1794_v63 = vor.u32 %v1793_v3, %v1792_v53 }
 0x219   :  { %v1649_v15 = vsel %vm1566_vm4, %v1648_v21, %v1647_v49  ;;  %v14773_v37 = vsub.s32 %v1728_v29, %v1731_v33  ;;  %v1800_v51 = vor.u32 %v1799_v46, %v1798_v57  ;;  %v1797_v58 = vor.u32 %v1796_v45, %v1795_v40  ;;  %v19459_v49 = vld [vmem:[#allocation36_spill] sm:$0xff] }
 0x21a   :  { %v1652_v24 = vsel %vm14692_vm11, %v14413_v7, %v1649_v15  ;;  %vm1804_vm8 = vcmp.lt.s32.totalorder %v1785_v18, 1  ;;  %vm14779_vm2 = vcmp.le.f32.partialorder %v1668_v42, 0.7853982  ;;  %vm1670_vm4 = vcmp.lt.s32.totalorder %v14517_v17, 0 }
 0x21b   :  { %12301 = vcosq.f32 %v1652_v24  ;;  %v1734_v39 = vsub.s32 0, %v14773_v37  ;;  %v1803_v36 = vor.u32 %v1802_v31, %v1801_v54  ;;  %vm1807_vm6 = vcmp.lt.s32.totalorder %v1785_v18, 4  ;;  %v6761_v31 = vld [vmem:[%s19135_s1 + $0xe8] sm:$0xff] }
 0x21c   :  { %12303 = vsinq.f32 %v1652_v24  ;;  %v1754_v30 = vsub.s32 4, %v1730_v22  ;;  %vm1806_vm3 = vcmp.lt.s32.totalorder %v1785_v18, 3  ;;  %v1820_v13 = vshll.u32 %v1780_v16, 8 }
 0x21d   :  { %v11141_v29 = vmin.u32 %v1734_v39, %v14773_v37  ;;  %vm1805_vm7 = vcmp.lt.s32.totalorder %v1785_v18, 2  ;;  %v1809_v12 = vsel %vm1807_vm6, %v1797_v58, 2102212464  ;;  %v1812_v42 = vsel %vm1804_vm8, %v1791_v44, %v1794_v63  ;;  %9204 = vmatmul.mubr.bf16.gmra.mxu1 %v19459_v49  ;;  %v6767_v18 = vld [vmem:[%s19135_s1 + $0x118] sm:$0xff] }
 0x21e   :  { %v1813_v59 = vsel %vm1807_vm6, %v1800_v51, 920167782  ;;  %vm1663_vm1 = vcmp.eq.s32.totalorder %v14766_v5, 2  ;;  %v14793_v52 = vand.u32 3, %v1653_v62  ;;  %v1808_v19 = vsel %vm1804_vm8, %v1788_v28, %v1791_v44  ;;  %9213 = vmatprep.mubr.bf16.mxu1 %v13440_v55 }
 0x21f   :  { %v1736_v61 = vclz %v11141_v29  ;;  %v1816_v53 = vsel %vm1804_vm8, %v1794_v63, %v1797_v58  ;;  %vm1660_vm5 = vcmp.eq.s32.totalorder %v14766_v5, 0  ;;  %v1810_v57 = vsel %vm1806_vm3, %v1794_v63, %v1809_v12 }
 0x220   :  { %v1814_v21 = vsel %vm1806_vm3, %v1797_v58, %v1813_v59  ;;  %v1817_v35 = vsel %vm1807_vm6, %v1803_v36, 1326507024  ;;  %v14802_v3 = vmul.f32 0.017453277, %v61_v4  ;;  %vm1659_vm9 = vcmp.lt.s32.totalorder %v14766_v5, 2 }
 0x221   :  { %v11142_v62 = vadd.s32 4294967294, %v1736_v61  ;;  %v1755_v46 = vsel %vm1670_vm4, %v1754_v30, %v1730_v22  ;;  %v1815_v26 = vsel %vm1805_vm7, %v1812_v42, %v1814_v21  ;;  %v1818_v55 = vsel %vm1806_vm3, %v1800_v51, %v1817_v35 }
 0x222   :  { %vm1656_vm10 = vweird.f32 %v14413_v7  ;;  %v1811_v33 = vsel %vm1805_vm7, %v1808_v19, %v1810_v57  ;;  %v1819_v40 = vsel %vm1805_vm7, %v1816_v53, %v1818_v55  ;;  %v1724_v15 = vadd.s32 %v14686_v2, %v14700_v14 }
 0x223   :  { %v14812_v45 = vmul.u32.u64.low %v1820_v13, %v1815_v26  ;;  %v14813_v20 = vmul.u32.u64.high %v1820_v13, %v1815_v26, %v14812_v45  ;;  %vm11143_vm11 = vcmp.lt.s32.totalorder %v11142_v62, 0  ;;  %v1757_v16 = vsel %vm14779_vm2, 0, %v1755_v46 }
 0x224   :  { %v14818_v54 = vmul.u32.u64.low %v1820_v13, %v1819_v40  ;;  %v14819_v22 = vmul.u32.u64.high %v1820_v13, %v1819_v40, %v14818_v54  ;;  %v1739_v24 = vsel %vm11143_vm11, 0, %v11142_v62  ;;  %vm4972_vm12 = vcmp.lt.s32.totalorder %v14793_v52, 2 }
 0x225   :  { %v1879_v2 = vand.u32 2139095040, %v14802_v3  ;;  %v1740_v14 = vsub.s32 32, %v1739_v24  ;;  %v1741_v28 = vshll.u32 %v14773_v37, %v1739_v24  ;;  %v1744_v44 = vsub.s32 4294967266, %v1739_v24 }
 0x226   :  { %v1827_v63 = vmul.u32 %v1820_v13, %v1811_v33  ;;  %vm4973_vm13 = vcmp.eq.s32.totalorder %v14793_v52, 0  ;;  %v1830_v51 = vadd.s32 1, %v14813_v20  ;;  %v14834_v58 = vpack.c.bf16 %v6767_v18, %v6761_v31 }
 0x227   :  { %v1880_v39 = vshrl.u32 %v1879_v2, 23  ;;  %v1742_v29 = vshrl.u32 %v1724_v15, %v1740_v14  ;;  %v1745_v30 = vadd.s32 127, %v1744_v44  ;;  %vm4976_vm14 = vcmp.eq.s32.totalorder %v14793_v52, 2  ;;  %v62_v2 = vld [vmem:[%s19134_s0 + $0x90] sm:$0xff] }
 0x228   :  { %v12302_v36 = vpop.eup %12301  ;;  %vm1829_vm15 = vc.u32 %v14819_v22, %v14812_v45  ;;  %v1761_v37 = vadd.s32 3, %v1757_v16  ;;  %8920 = vmatprep.mubr.bf16.mxu0 %v14834_v58  ;;  %v1876_v21 = vand.u32 2147483647, %v14802_v3  ;;  %v14861_v14 = vand.u32 3, %v1757_v16 }
 0x229   :  { %v12304_v4 = vpop.eup %12303  ;;  %v1664_v12 = vxor.u32 2147483648, %v12302_v36  ;;  %v1831_v13 = vsel %vm1829_vm15, %v1830_v51, %v14813_v20  ;;  %v11148_v42 = vadd.s32 4294967169, %v1880_v39  ;;  %v1743_v49 = vor.u32 %v1742_v29, %v1741_v28 }
 0x22a   :  { %v1661_v59 = vxor.u32 2147483648, %v12304_v4  ;;  %v1746_v61 = vshll.u32 %v1745_v30, 23  ;;  %v1832_v19 = vadd.s32 %v1831_v13, %v1827_v63  ;;  %v14863_v28 = vand.u32 3, %v1761_v37 }
 0x22b   :  { %v1665_v53 = vsel %vm1663_vm1, %v1664_v12, %v12304_v4  ;;  %v4978_v57 = vsel %vm4976_vm14, %v1664_v12, %v12304_v4  ;;  %v1886_v35 = vadd.s32 1, %v11148_v42  ;;  %v1750_v26 = vcvt.s32.f32 %v1743_v49 }
 0x22c   :  { %v1662_v62 = vsel %vm1660_vm5, %v12302_v36, %v1661_v59  ;;  %v1747_v46 = vor.u32 4788187, %v1746_v61  ;;  %v4975_v55 = vsel %vm4973_vm13, %v12302_v36, %v1661_v59  ;;  %v1833_v20 = vadd.s32 536870912, %v1832_v19 }
 0x22d   :  { %v1666_v33 = vsel %vm1659_vm9, %v1662_v62, %v1665_v53  ;;  %v4979_v40 = vsel %vm4972_vm12, %v4975_v55, %v4978_v57  ;;  %vm1887_vm0 = vcmp.gt.s32.totalorder %v1886_v35, 0  ;;  %v1883_v63 = vand.u32 8388607, %v1876_v21  ;;  %v12132_v55 = vld [vmem:[#allocation2 + $0x4a8] ss:$16 sps:$4 sm:$0xff]  }
 0x22e   :  { %v1667_v15 = vsel %vm1656_vm10, nan, %v1666_v33  ;;  %v1748_v54 = vand.u32 2147483647, %v1747_v46  ;;  %v1888_v31 = vsel %vm1887_vm0, %v1886_v35, 0  ;;  %v14854_v18 = vshrl.u32 %v1833_v20, 30 }
 0x22f   :  { %7285 = vperm.xlu0 %11923, %v1667_v15   ;;  %v1890_v24 = vand.u32 31, %v1888_v31  ;;  %v4980_v52 = vsel %vm1656_vm10, nan, %v4979_v40  ;;  %v14868_v36 = vshrl.u32 %v1888_v31, 5  ;;  %v14871_v30 = vmul.f32 0.017453277, %v62_v2 }
 0x230   :  { %v1751_v5 = vmul.f32 %v1750_v26, %v1748_v54  ;;  %v1835_v44 = vshll.u32 %v14854_v18, 30  ;;  %v1828_v61 = vadd.s32 %v14812_v45, %v14819_v22  ;;  %v1884_v53 = vor.u32 8388608, %v1883_v63  ;;  %v12129_v46 = vld [vmem:[#allocation2 + $0x2a8] ss:$16 sps:$4 sm:$0xff]   ;;  %v12131_v26 = vld [vmem:[#allocation2 + $0x2ac] ss:$16 sps:$4 sm:$0xff]  }
 0x231   :  { %v1891_v51 = vsub.s32 32, %v1890_v24  ;;  %v1893_v29 = vshll.u32 %v19377_v50, %v1890_v24  ;;  %v1896_v4 = vshll.u32 %v19378_v8, %v1890_v24  ;;  %v1899_v12 = vshll.u32 %v19379_v56, %v1890_v24  ;;  %v12134_v20 = vld [vmem:[#allocation2 + $0x4ac] ss:$16 sps:$4 sm:$0xff]   ;;  %9258 = vmatprep.subr.bf16.mxu0 %v12131_v26 }
 0x232   :  { %v1752_v39 = vxor.u32 2147483648, %v1751_v5  ;;  %v14873_v7 = vsub.s32 %v1832_v19, %v1835_v44  ;;  %v1902_v59 = vshll.u32 %v19380_v9, %v1890_v24  ;;  %v1905_v40 = vshll.u32 %v19381_v41, %v1890_v24  ;;  %9259 = vmatpush1.bf16.msra.mxu0 %v12129_v46  ;;  %9451 = vmatprep.subr.bf16.mxu1 %v12134_v20 }
 0x233   :  { %9713 = vperm.xlu0 %11923, %v4980_v52   ;;  %v1894_v16 = vshrl.u32 %v19378_v8, %v1891_v51  ;;  %v1897_v13 = vshrl.u32 %v19379_v56, %v1891_v51  ;;  %v1900_v42 = vshrl.u32 %v19380_v9, %v1891_v51  ;;  %v1892_v57 = vshrl.u32 %v19377_v50, %v1891_v51 }
 0x234   :  { %v1753_v37 = vsel %vm1670_vm4, %v1752_v39, %v1751_v5  ;;  %v1838_v19 = vsub.s32 0, %v14873_v7  ;;  %v1903_v62 = vshrl.u32 %v19381_v41, %v1891_v51  ;;  %vm1774_vm8 = vcmp.lt.s32.totalorder %v14613_v34, 0  ;;  %9452 = vmatpush1.bf16.msra.mxu1 %v12132_v55 }
 0x235   :  { %v1756_v49 = vsel %vm14779_vm2, %v14517_v17, %v1753_v37  ;;  %v1895_v35 = vor.u32 %v1894_v16, %v1893_v29  ;;  %v1898_v1 = vor.u32 %v1897_v13, %v1896_v4  ;;  %v1901_v45 = vor.u32 %v1900_v42, %v1899_v12 }
 0x236   :  { %12305 = vcosq.f32 %v1756_v49  ;;  %v11145_v33 = vmin.u32 %v1838_v19, %v14873_v7  ;;  %v1904_v22 = vor.u32 %v1903_v62, %v1902_v59  ;;  %v1906_v15 = vshrl.u32 %v19395_v27, %v1891_v51 }
 0x237   :  { %12307 = vsinq.f32 %v1756_v49  ;;  %vm1908_vm2 = vcmp.lt.s32.totalorder %v14868_v36, 1  ;;  %vm1909_vm4 = vcmp.lt.s32.totalorder %v14868_v36, 2  ;;  %v1924_v31 = vshll.u32 %v1884_v53, 8 }
 0x238   :  { %v1840_v54 = vclz %v11145_v33  ;;  %v1983_v2 = vand.u32 2139095040, %v14871_v30  ;;  %v1907_v5 = vor.u32 %v1906_v15, %v1905_v40  ;;  %vm1910_vm6 = vcmp.lt.s32.totalorder %v14868_v36, 3 }
 0x239   :  { %vm1911_vm3 = vcmp.lt.s32.totalorder %v14868_v36, 4  ;;  %v1912_v24 = vsel %vm1908_vm2, %v1892_v57, %v1895_v35  ;;  %vm14904_vm7 = vcmp.le.f32.partialorder %v1772_v0, 0.7853982  ;;  %v1916_v51 = vsel %vm1908_vm2, %v1895_v35, %v1898_v1 }
 0x23a   :  { %v11146_v44 = vadd.s32 4294967294, %v1840_v54  ;;  %v1913_v63 = vsel %vm1911_vm3, %v1901_v45, 2102212464  ;;  %v1917_v39 = vsel %vm1911_vm3, %v1904_v22, 920167782  ;;  %v1920_v4 = vsel %vm1908_vm2, %v1898_v1, %v1901_v45 }
 0x23b   :  { %v1914_v29 = vsel %vm1910_vm6, %v1898_v1, %v1913_v63  ;;  %v1918_v16 = vsel %vm1910_vm6, %v1901_v45, %v1917_v39  ;;  %v1921_v12 = vsel %vm1911_vm3, %v1907_v5, 1326507024  ;;  %vm5075_vm1 = vcmp.lt.s32.totalorder %v14861_v14, 2 }
 0x23c   :  { %vm11147_vm5 = vcmp.lt.s32.totalorder %v11146_v44, 0  ;;  %v1858_v0 = vsub.s32 4, %v14854_v18  ;;  %v1919_v37 = vsel %vm1909_vm4, %v1916_v51, %v1918_v16  ;;  %v1922_v13 = vsel %vm1910_vm6, %v1904_v22, %v1921_v12 }
 0x23d   :  { %vm1760_vm9 = vweird.f32 %v14517_v17  ;;  %v1843_v42 = vsel %vm11147_vm5, 0, %v11146_v44  ;;  %v1923_v59 = vsel %vm1909_vm4, %v1920_v4, %v1922_v13  ;;  %v1915_v62 = vsel %vm1909_vm4, %v1912_v24, %v1914_v29 }
 0x23e   :  { %v14925_v49 = vmul.u32.u64.low %v1924_v31, %v1919_v37  ;;  %v14926_v19 = vmul.u32.u64.high %v1924_v31, %v1919_v37, %v14925_v49  ;;  %v1844_v53 = vsub.s32 32, %v1843_v42  ;;  %v1845_v57 = vshll.u32 %v14873_v7, %v1843_v42 }
 0x23f   :  { %v1848_v35 = vsub.s32 4294967266, %v1843_v42  ;;  %vm5076_vm10 = vcmp.eq.s32.totalorder %v14861_v14, 0  ;;  %v14933_v46 = vmul.u32.u64.low %v1924_v31, %v1923_v59  ;;  %v14934_v26 = vmul.u32.u64.high %v1924_v31, %v1923_v59, %v14933_v46 }
 0x240   :  { %v1984_v55 = vshrl.u32 %v1983_v2, 23  ;;  %vm5079_vm11 = vcmp.eq.s32.totalorder %v14861_v14, 2  ;;  %v1846_v33 = vshrl.u32 %v1828_v61, %v1844_v53  ;;  %v1859_v40 = vsel %vm1774_vm8, %v1858_v0, %v14854_v18 }
 0x241   :  { %v1849_v1 = vadd.s32 127, %v1848_v35  ;;  %vm1763_vm12 = vcmp.lt.s32.totalorder %v14863_v28, 2  ;;  %vm1767_vm13 = vcmp.eq.s32.totalorder %v14863_v28, 2  ;;  %v1931_v36 = vmul.u32 %v1924_v31, %v1915_v62 }
 0x242   :  { %v1934_v7 = vadd.s32 1, %v14926_v19  ;;  %v1847_v45 = vor.u32 %v1846_v33, %v1845_v57  ;;  %v1980_v15 = vand.u32 2147483647, %v14871_v30  ;;  %v11152_v54 = vadd.s32 4294967169, %v1984_v55 }
 0x243   :  { %v12306_v20 = vpop.eup %12305  ;;  %v1850_v22 = vshll.u32 %v1849_v1, 23  ;;  %vm1764_vm14 = vcmp.eq.s32.totalorder %v14863_v28, 0  ;;  %v1861_v18 = vsel %vm14904_vm7, 0, %v1859_v40  ;;  %vm1933_vm15 = vc.u32 %v14934_v26, %v14925_v49 }
 0x244   :  { %v12308_v2 = vpop.eup %12307  ;;  %v1768_v61 = vxor.u32 2147483648, %v12306_v20  ;;  %v1854_v24 = vcvt.s32.f32 %v1847_v45  ;;  %v1935_v44 = vsel %vm1933_vm15, %v1934_v7, %v14926_v19  ;;  %v1990_v29 = vadd.s32 1, %v11152_v54  ;;  %v63_v7 = vld [vmem:[%s19134_s0 + $0x98] sm:$0xff] }
 0x245   :  { %v1765_v5 = vxor.u32 2147483648, %v12308_v2  ;;  %v1851_v31 = vor.u32 4788187, %v1850_v22  ;;  %v1936_v39 = vadd.s32 %v1935_v44, %v1931_v36  ;;  %v1987_v0 = vand.u32 8388607, %v1980_v15 }
 0x246   :  { %v1769_v63 = vsel %vm1767_vm13, %v1768_v61, %v12308_v2  ;;  %v5081_v51 = vsel %vm5079_vm11, %v1768_v61, %v12308_v2  ;;  %vm1991_vm0 = vcmp.gt.s32.totalorder %v1990_v29, 0  ;;  %v1865_v53 = vadd.s32 3, %v1861_v18 }
 0x247   :  { %v1766_v16 = vsel %vm1764_vm14, %v12306_v20, %v1765_v5  ;;  %v5078_v4 = vsel %vm5076_vm10, %v12306_v20, %v1765_v5  ;;  %v1852_v12 = vand.u32 2147483647, %v1851_v31  ;;  %v1937_v42 = vadd.s32 536870912, %v1936_v39 }
 0x248   :  { %v1770_v37 = vsel %vm1763_vm12, %v1766_v16, %v1769_v63  ;;  %v5082_v13 = vsel %vm5075_vm1, %v5078_v4, %v5081_v51  ;;  %v1992_v57 = vsel %vm1991_vm0, %v1990_v29, 0  ;;  %v14971_v1 = vand.u32 3, %v1865_v53 }
 0x249   :  { %v1771_v59 = vsel %vm1760_vm9, nan, %v1770_v37  ;;  %v1855_v19 = vmul.f32 %v1854_v24, %v1852_v12  ;;  %v14964_v35 = vshrl.u32 %v1937_v42, 30  ;;  %v1994_v62 = vand.u32 31, %v1992_v57 }
 0x24a   :  { %7290 = vperm.xlu1 %11924, %v1771_v59   ;;  %v5083_v46 = vsel %vm1760_vm9, nan, %v5082_v13  ;;  %v1988_v40 = vor.u32 8388608, %v1987_v0  ;;  %v14988_v31 = vand.u32 3, %v1861_v18  ;;  %v14990_v52 = vmul.f32 0.017453277, %v63_v7 }
 0x24b   :  { %v1856_v28 = vxor.u32 2147483648, %v1855_v19  ;;  %v1939_v55 = vshll.u32 %v14964_v35, 30  ;;  %v1995_v14 = vsub.s32 32, %v1994_v62  ;;  %v1997_v36 = vshll.u32 %v19377_v50, %v1994_v62 }
 0x24c   :  { %v2000_v45 = vshll.u32 %v19378_v8, %v1994_v62  ;;  %v2003_v22 = vshll.u32 %v19379_v56, %v1994_v62  ;;  %v2006_v61 = vshll.u32 %v19380_v9, %v1994_v62  ;;  %v1993_v24 = vshrl.u32 %v1992_v57, 5 }
 0x24d   :  { %v1857_v33 = vsel %vm1774_vm8, %v1856_v28, %v1855_v19  ;;  %v14980_v20 = vsub.s32 %v1936_v39, %v1939_v55  ;;  %v1998_v54 = vshrl.u32 %v19378_v8, %v1995_v14  ;;  %v2001_v2 = vshrl.u32 %v19379_v56, %v1995_v14 }
 0x24e   :  { %9718 = vperm.xlu1 %11924, %v5083_v46   ;;  %v1860_v17 = vsel %vm14904_vm7, %v14613_v34, %v1857_v33  ;;  %v2004_v44 = vshrl.u32 %v19380_v9, %v1995_v14  ;;  %v2007_v63 = vshrl.u32 %v19381_v41, %v1995_v14  ;;  %v1996_v39 = vshrl.u32 %v19377_v50, %v1995_v14 }
 0x24f   :  { %12309 = vcosq.f32 %v1860_v17  ;;  %v1942_v5 = vsub.s32 0, %v14980_v20  ;;  %v1999_v29 = vor.u32 %v1998_v54, %v1997_v36  ;;  %v2002_v16 = vor.u32 %v2001_v2, %v2000_v45 }
 0x250   :  { %12311 = vsinq.f32 %v1860_v17  ;;  %v2005_v4 = vor.u32 %v2004_v44, %v2003_v22  ;;  %v2008_v12 = vor.u32 %v2007_v63, %v2006_v61  ;;  %v2009_v0 = vshll.u32 %v19381_v41, %v1994_v62 }
 0x251   :  { %v11149_v51 = vmin.u32 %v1942_v5, %v14980_v20  ;;  %v14997_v37 = vshll.u32 %v1988_v40, 8  ;;  %vm1871_vm8 = vcmp.eq.s32.totalorder %v14971_v1, 2  ;;  %vm1878_vm2 = vcmp.lt.s32.totalorder %v14802_v3, 0 }
 0x252   :  { %v1932_v18 = vadd.s32 %v14925_v49, %v14934_v26  ;;  %v1962_v42 = vsub.s32 4, %v14964_v35  ;;  %vm5182_vm4 = vcmp.eq.s32.totalorder %v14988_v31, 2  ;;  %v2087_v59 = vand.u32 2139095040, %v14990_v52 }
 0x253   :  { %v1944_v13 = vclz %v11149_v51  ;;  %vm1868_vm6 = vcmp.eq.s32.totalorder %v14971_v1, 0  ;;  %vm5179_vm3 = vcmp.eq.s32.totalorder %v14988_v31, 0  ;;  %v2010_v19 = vshrl.u32 %v19395_v27, %v1995_v14  ;;  %v6760_v51 = vld [vmem:[%s19135_s1 + $0xe0] sm:$0xff] }
 0x254   :  { %vm2012_vm7 = vcmp.lt.s32.totalorder %v1993_v24, 1  ;;  %vm2013_vm1 = vcmp.lt.s32.totalorder %v1993_v24, 2  ;;  %vm2014_vm5 = vcmp.lt.s32.totalorder %v1993_v24, 3  ;;  %vm1867_vm9 = vcmp.lt.s32.totalorder %v14971_v1, 2 }
 0x255   :  { %v11150_v53 = vadd.s32 4294967294, %v1944_v13  ;;  %vm5178_vm10 = vcmp.lt.s32.totalorder %v14988_v31, 2  ;;  %vm2015_vm11 = vcmp.lt.s32.totalorder %v1993_v24, 4  ;;  %v2016_v49 = vsel %vm2012_vm7, %v1996_v39, %v1999_v29 }
 0x256   :  { %v2020_v26 = vsel %vm2012_vm7, %v1999_v29, %v2002_v16  ;;  %vm1864_vm12 = vweird.f32 %v14613_v34  ;;  %v2011_v57 = vor.u32 %v2010_v19, %v2009_v0  ;;  %v2017_v62 = vsel %vm2015_vm11, %v2005_v4, 2102212464 }
 0x257   :  { %v2021_v46 = vsel %vm2015_vm11, %v2008_v12, 920167782  ;;  %v2024_v28 = vsel %vm2012_vm7, %v2002_v16, %v2005_v4  ;;  %vm11151_vm13 = vcmp.lt.s32.totalorder %v11150_v53, 0  ;;  %v2018_v55 = vsel %vm2014_vm5, %v2002_v16, %v2017_v62 }
 0x258   :  { %v2022_v14 = vsel %vm2014_vm5, %v2005_v4, %v2021_v46  ;;  %v2088_v33 = vshrl.u32 %v2087_v59, 23  ;;  %v1947_v40 = vsel %vm11151_vm13, 0, %v11150_v53  ;;  %v2019_v36 = vsel %vm2013_vm1, %v2016_v49, %v2018_v55 }
 0x259   :  { %v2023_v7 = vsel %vm2013_vm1, %v2020_v26, %v2022_v14  ;;  %v2025_v17 = vsel %vm2015_vm11, %v2011_v57, 1326507024  ;;  %v1948_v45 = vsub.s32 32, %v1947_v40  ;;  %v1949_v22 = vshll.u32 %v14980_v20, %v1947_v40  ;;  %v6766_v20 = vld [vmem:[%s19135_s1 + $0x110] sm:$0xff] }
 0x25a   :  { %v1952_v54 = vsub.s32 4294967266, %v1947_v40  ;;  %v2026_v2 = vsel %vm2014_vm5, %v2008_v12, %v2025_v17  ;;  %v15020_v5 = vmul.u32.u64.low %v14997_v37, %v2023_v7  ;;  %v15021_v44 = vmul.u32.u64.high %v14997_v37, %v2023_v7, %v15020_v5  ;;  %v6773_v40 = vld [vmem:[%s19135_s1 + $0x148] sm:$0xff] }
 0x25b   :  { %v2027_v61 = vsel %vm2013_vm1, %v2024_v28, %v2026_v2  ;;  %v2084_v63 = vand.u32 2147483647, %v14990_v52  ;;  %v1950_v29 = vshrl.u32 %v1932_v18, %v1948_v45  ;;  %v1963_v13 = vsel %vm1878_vm2, %v1962_v42, %v14964_v35 }
 0x25c   :  { %v12310_v39 = vpop.eup %12309  ;;  %v1953_v16 = vadd.s32 127, %v1952_v54  ;;  %v15032_v24 = vmul.u32.u64.low %v14997_v37, %v2027_v61  ;;  %v15033_v4 = vmul.u32.u64.high %v14997_v37, %v2027_v61, %v15032_v24  ;;  %v2035_v59 = vmul.u32 %v14997_v37, %v2019_v36  ;;  %v6779_v36 = vld [vmem:[%s19135_s1 + $0x178] sm:$0xff] }
 0x25d   :  { %v12312_v12 = vpop.eup %12311  ;;  %v1872_v0 = vxor.u32 2147483648, %v12310_v39  ;;  %v11156_v19 = vadd.s32 4294967169, %v2088_v33  ;;  %v1951_v49 = vor.u32 %v1950_v29, %v1949_v22  ;;  %v15039_v57 = vpack.c.bf16 %v6766_v20, %v6760_v51 }
 0x25e   :  { %v1869_v53 = vxor.u32 2147483648, %v12312_v12  ;;  %v1954_v26 = vshll.u32 %v1953_v16, 23  ;;  %v2038_v46 = vadd.s32 1, %v15021_v44  ;;  %vm2037_vm14 = vc.u32 %v15033_v4, %v15020_v5 }
 0x25f   :  { %v1873_v18 = vsel %vm1871_vm8, %v1872_v0, %v12312_v12  ;;  %v5184_v62 = vsel %vm5182_vm4, %v1872_v0, %v12312_v12  ;;  %v2094_v28 = vadd.s32 1, %v11156_v19  ;;  %v1958_v37 = vcvt.s32.f32 %v1951_v49  ;;  %8921 = vmatmul.mubr.bf16.gmra.mxu0 %v15039_v57  ;;  %v12135_v19 = vld [vmem:[#allocation2 + $0x288] ss:$16 sps:$4 sm:$0xff]  }
 0x260   :  { %v1870_v35 = vsel %vm1868_vm6, %v12310_v39, %v1869_v53  ;;  %v1955_v42 = vor.u32 4788187, %v1954_v26  ;;  %v5181_v55 = vsel %vm5179_vm3, %v12310_v39, %v1869_v53  ;;  %vm15067_vm15 = vcmp.le.f32.partialorder %v1876_v21, 0.7853982  ;;  %v12137_v53 = vld [vmem:[#allocation2 + $0x28c] ss:$16 sps:$4 sm:$0xff]  }
 0x261   :  { %v1874_v14 = vsel %vm1867_vm9, %v1870_v35, %v1873_v18  ;;  %v5185_v33 = vsel %vm5178_vm10, %v5181_v55, %v5184_v62  ;;  %v2039_v17 = vsel %vm2037_vm14, %v2038_v46, %v15021_v44  ;;  %v1965_v45 = vsel %vm15067_vm15, 0, %v1963_v13  ;;  %v12138_v49 = vld [vmem:[#allocation2 + $0x488] ss:$16 sps:$4 sm:$0xff]   ;;  %9260 = vmatprep.subr.bf16.mxu0 %v12137_v53 }
 0x262   :  { %v1875_v7 = vsel %vm1864_vm12, nan, %v1874_v14  ;;  %v1956_v31 = vand.u32 2147483647, %v1955_v42  ;;  %v2040_v22 = vadd.s32 %v2039_v17, %v2035_v59  ;;  %v2091_v54 = vand.u32 8388607, %v2084_v63  ;;  %9261 = vmatpush1.bf16.msra.mxu0 %v12135_v19 }
 0x263   :  { %7295 = vperm.xlu0 %11923, %v1875_v7   ;;  %vm2095_vm0 = vcmp.gt.s32.totalorder %v2094_v28, 0  ;;  %v5186_v61 = vsel %vm1864_vm12, nan, %v5185_v33  ;;  %v15078_v51 = vpack.c.bf16 %v6779_v36, %v6773_v40  ;;  %v1969_v44 = vadd.s32 3, %v1965_v45  ;;  %v64_v40 = vld [vmem:[%s19134_s0 + $0xa0] sm:$0xff] }
 0x264   :  { %v1959_v2 = vmul.f32 %v1958_v37, %v1956_v31  ;;  %v2096_v21 = vsel %vm2095_vm0, %v2094_v28, 0  ;;  %v2041_v20 = vadd.s32 536870912, %v2040_v22  ;;  %v2092_v24 = vor.u32 8388608, %v2091_v54  ;;  %v12140_v28 = vld [vmem:[#allocation2 + $0x48c] ss:$16 sps:$4 sm:$0xff]  }
 0x265   :  { %v2098_v39 = vand.u32 31, %v2096_v21  ;;  %8930 = vmatprep.mubr.bf16.mxu0 %v15078_v51  ;;  %v15083_v12 = vshrl.u32 %v2096_v21, 5  ;;  %9453 = vmatprep.subr.bf16.mxu1 %v12140_v28  ;;  %v15105_v36 = vand.u32 3, %v1969_v44  ;;  %v15107_v7 = vand.u32 3, %v1965_v45 }
 0x266   :  { %v1960_v29 = vxor.u32 2147483648, %v1959_v2  ;;  %v15081_v16 = vshrl.u32 %v2041_v20, 30  ;;  %9454 = vmatpush1.bf16.msra.mxu1 %v12138_v49  ;;  %v15114_v21 = vmul.f32 0.017453277, %v64_v40  ;;  %vm1982_vm4 = vcmp.lt.s32.totalorder %v14871_v30, 0 }
 0x267   :  { %9723 = vperm.xlu0 %11923, %v5186_v61   ;;  %v2099_v0 = vsub.s32 32, %v2098_v39  ;;  %v2101_v13 = vshll.u32 %v19377_v50, %v2098_v39  ;;  %v2104_v59 = vshll.u32 %v19378_v8, %v2098_v39  ;;  %v2107_v62 = vshll.u32 %v19379_v56, %v2098_v39 }
 0x268   :  { %v1961_v34 = vsel %vm1878_vm2, %v1960_v29, %v1959_v2  ;;  %v2043_v18 = vshll.u32 %v15081_v16, 30  ;;  %v2110_v46 = vshll.u32 %v19380_v9, %v2098_v39  ;;  %v2113_v33 = vshll.u32 %v19381_v41, %v2098_v39 }
 0x269   :  { %v1964_v26 = vsel %vm15067_vm15, %v14802_v3, %v1961_v34  ;;  %v2102_v35 = vshrl.u32 %v19378_v8, %v2099_v0  ;;  %v2105_v42 = vshrl.u32 %v19379_v56, %v2099_v0  ;;  %v2108_v37 = vshrl.u32 %v19380_v9, %v2099_v0 }
 0x26a   :  { %12313 = vcosq.f32 %v1964_v26  ;;  %v15098_v55 = vsub.s32 %v2040_v22, %v2043_v18  ;;  %v2111_v14 = vshrl.u32 %v19381_v41, %v2099_v0  ;;  %v2114_v2 = vshrl.u32 %v19395_v27, %v2099_v0 }
 0x26b   :  { %12315 = vsinq.f32 %v1964_v26  ;;  %v2103_v1 = vor.u32 %v2102_v35, %v2101_v13  ;;  %v2106_v31 = vor.u32 %v2105_v42, %v2104_v59  ;;  %v2109_v22 = vor.u32 %v2108_v37, %v2107_v62 }
 0x26c   :  { %v2046_v17 = vsub.s32 0, %v15098_v55  ;;  %v2112_v54 = vor.u32 %v2111_v14, %v2110_v46  ;;  %v2100_v61 = vshrl.u32 %v19377_v50, %v2099_v0  ;;  %vm2116_vm8 = vcmp.lt.s32.totalorder %v15083_v12, 1 }
 0x26d   :  { %vm2119_vm2 = vcmp.lt.s32.totalorder %v15083_v12, 4  ;;  %v2115_v20 = vor.u32 %v2114_v2, %v2113_v33  ;;  %vm2118_vm6 = vcmp.lt.s32.totalorder %v15083_v12, 3  ;;  %v15119_v39 = vshll.u32 %v2092_v24, 8 }
 0x26e   :  { %v11153_v45 = vmin.u32 %v2046_v17, %v15098_v55  ;;  %vm2117_vm3 = vcmp.lt.s32.totalorder %v15083_v12, 2  ;;  %v2121_v29 = vsel %vm2119_vm2, %v2109_v22, 2102212464  ;;  %v2124_v44 = vsel %vm2116_vm8, %v2103_v1, %v2106_v31 }
 0x26f   :  { %v2125_v0 = vsel %vm2119_vm2, %v2112_v54, 920167782  ;;  %vm5281_vm7 = vcmp.lt.s32.totalorder %v15107_v7, 2  ;;  %vm5282_vm1 = vcmp.eq.s32.totalorder %v15107_v7, 0  ;;  %vm5285_vm5 = vcmp.eq.s32.totalorder %v15107_v7, 2  ;;  %v6778_v7 = vld [vmem:[%s19135_s1 + $0x170] sm:$0xff] }
 0x270   :  { %v2048_v34 = vclz %v11153_v45  ;;  %v2128_v24 = vsel %vm2116_vm8, %v2106_v31, %v2109_v22  ;;  %vm1968_vm9 = vweird.f32 %v14802_v3  ;;  %v2120_v13 = vsel %vm2116_vm8, %v2100_v61, %v2103_v1 }
 0x271   :  { %v2126_v59 = vsel %vm2118_vm6, %v2109_v22, %v2125_v0  ;;  %v2129_v19 = vsel %vm2119_vm2, %v2115_v20, 1326507024  ;;  %v2191_v53 = vand.u32 2139095040, %v15114_v21  ;;  %vm15143_vm10 = vcmp.le.f32.partialorder %v1980_v15, 0.7853982 }
 0x272   :  { %v11154_v26 = vadd.s32 4294967294, %v2048_v34  ;;  %v2122_v18 = vsel %vm2118_vm6, %v2106_v31, %v2121_v29  ;;  %v2127_v62 = vsel %vm2117_vm3, %v2124_v44, %v2126_v59  ;;  %v2130_v46 = vsel %vm2118_vm6, %v2112_v54, %v2129_v19 }
 0x273   :  { %v2066_v28 = vsub.s32 4, %v15081_v16  ;;  %v2131_v35 = vsel %vm2117_vm3, %v2128_v24, %v2130_v46  ;;  %v15157_v15 = vmul.u32.u64.low %v15119_v39, %v2127_v62  ;;  %v15158_v42 = vmul.u32.u64.high %v15119_v39, %v2127_v62, %v15157_v15 }
 0x274   :  { %v2036_v37 = vadd.s32 %v15020_v5, %v15033_v4  ;;  %vm11155_vm11 = vcmp.lt.s32.totalorder %v11154_v26, 0  ;;  %v15164_v14 = vmul.u32.u64.low %v15119_v39, %v2131_v35  ;;  %v15165_v33 = vmul.u32.u64.high %v15119_v39, %v2131_v35, %v15164_v14 }
 0x275   :  { %vm1971_vm12 = vcmp.lt.s32.totalorder %v15105_v36, 2  ;;  %vm1975_vm13 = vcmp.eq.s32.totalorder %v15105_v36, 2  ;;  %v2051_v40 = vsel %vm11155_vm11, 0, %v11154_v26  ;;  %v2123_v1 = vsel %vm2117_vm3, %v2120_v13, %v2122_v18  ;;  %v65_v18 = vld [vmem:[%s19134_s0 + $0xa8] sm:$0xff] }
 0x276   :  { %v2052_v17 = vsub.s32 32, %v2051_v40  ;;  %v2053_v22 = vshll.u32 %v15098_v55, %v2051_v40  ;;  %v2056_v54 = vsub.s32 4294967266, %v2051_v40  ;;  %v2192_v2 = vshrl.u32 %v2191_v53, 23 }
 0x277   :  { %v12314_v31 = vpop.eup %12313  ;;  %vm1972_vm14 = vcmp.eq.s32.totalorder %v15105_v36, 0  ;;  %v2067_v61 = vsel %vm1982_vm4, %v2066_v28, %v15081_v16  ;;  %v2142_v45 = vadd.s32 1, %v15158_v42  ;;  %v2139_v44 = vmul.u32 %v15119_v39, %v2123_v1  ;;  %v6772_v36 = vld [vmem:[%s19135_s1 + $0x140] sm:$0xff] }
 0x278   :  { %v12316_v5 = vpop.eup %12315  ;;  %v1976_v4 = vxor.u32 2147483648, %v12314_v31  ;;  %v2054_v29 = vshrl.u32 %v2036_v37, %v2052_v17  ;;  %v2057_v12 = vadd.s32 127, %v2056_v54  ;;  %vm2141_vm15 = vc.u32 %v15165_v33, %v15157_v15 }
 0x279   :  { %v1973_v20 = vxor.u32 2147483648, %v12316_v5  ;;  %v11160_v34 = vadd.s32 4294967169, %v2192_v2  ;;  %v2069_v53 = vsel %vm15143_vm10, 0, %v2067_v61  ;;  %v2143_v26 = vsel %vm2141_vm15, %v2142_v45, %v15158_v42 }
 0x27a   :  { %v1977_v55 = vsel %vm1975_vm13, %v1976_v4, %v12316_v5  ;;  %v5287_v0 = vsel %vm5285_vm5, %v1976_v4, %v12316_v5  ;;  %v2055_v13 = vor.u32 %v2054_v29, %v2053_v22  ;;  %v2058_v59 = vshll.u32 %v2057_v12, 23 }
 0x27b   :  { %v1974_v24 = vsel %vm1972_vm14, %v12314_v31, %v1973_v20  ;;  %v5284_v16 = vsel %vm5282_vm1, %v12314_v31, %v1973_v20  ;;  %v2144_v35 = vadd.s32 %v2143_v26, %v2139_v44  ;;  %v2198_v42 = vadd.s32 1, %v11160_v34 }
 0x27c   :  { %v1978_v19 = vsel %vm1971_vm12, %v1974_v24, %v1977_v55  ;;  %v5288_v39 = vsel %vm5281_vm7, %v5284_v16, %v5287_v0  ;;  %v2059_v46 = vor.u32 4788187, %v2058_v59  ;;  %v2062_v28 = vcvt.s32.f32 %v2055_v13 }
 0x27d   :  { %v1979_v62 = vsel %vm1968_vm9, nan, %v1978_v19  ;;  %v5289_v37 = vsel %vm1968_vm9, nan, %v5288_v39  ;;  %v2073_v40 = vadd.s32 3, %v2069_v53  ;;  %v15206_v1 = vmul.f32 0.017453277, %v65_v18 }
 0x27e   :  { %7300 = vperm.xlu1 %11924, %v1979_v62   ;;  %v2060_v14 = vand.u32 2147483647, %v2059_v46  ;;  %v2145_v31 = vadd.s32 536870912, %v2144_v35  ;;  %v2188_v17 = vand.u32 2147483647, %v15114_v21  ;;  %vm2199_vm0 = vcmp.gt.s32.totalorder %v2198_v42, 0 }
 0x27f   :  { %v15209_v22 = vpack.c.bf16 %v6778_v7, %v6772_v36  ;;  %v2200_v2 = vsel %vm2199_vm0, %v2198_v42, 0  ;;  %v15214_v61 = vand.u32 3, %v2073_v40  ;;  %v2295_v12 = vand.u32 2139095040, %v15206_v1 }
 0x280   :  { %v2063_v54 = vmul.f32 %v2062_v28, %v2060_v14  ;;  %v15211_v5 = vshrl.u32 %v2145_v31, 30  ;;  %v2202_v4 = vand.u32 31, %v2200_v2  ;;  %v2195_v20 = vand.u32 8388607, %v2188_v17 }
 0x281   :  { %8931 = vmatmul.mubr.bf16.gmra.mxu0 %v15209_v22  ;;  %v15222_v55 = vand.u32 3, %v2069_v53  ;;  %v2292_v34 = vand.u32 2147483647, %v15206_v1  ;;  %v2296_v62 = vshrl.u32 %v2295_v12, 23  ;;  %v2201_v49 = vshrl.u32 %v2200_v2, 5 }
 0x282   :  { %9728 = vperm.xlu1 %11924, %v5289_v37   ;;  %v2064_v3 = vxor.u32 2147483648, %v2063_v54  ;;  %v2147_v45 = vshll.u32 %v15211_v5, 30  ;;  %v2203_v29 = vsub.s32 32, %v2202_v4  ;;  %v2205_v0 = vshll.u32 %v19377_v50, %v2202_v4 }
 0x283   :  { %v2208_v13 = vshll.u32 %v19378_v8, %v2202_v4  ;;  %v2211_v59 = vshll.u32 %v19379_v56, %v2202_v4  ;;  %v2214_v53 = vshll.u32 %v19380_v9, %v2202_v4  ;;  %v2196_v18 = vor.u32 8388608, %v2195_v20 }
 0x284   :  { %v2065_v44 = vsel %vm1982_vm4, %v2064_v3, %v2063_v54  ;;  %v15229_v16 = vsub.s32 %v2144_v35, %v2147_v45  ;;  %v2206_v19 = vshrl.u32 %v19378_v8, %v2203_v29  ;;  %v2209_v39 = vshrl.u32 %v19379_v56, %v2203_v29 }
 0x285   :  { %v2068_v24 = vsel %vm15143_vm10, %v14871_v30, %v2065_v44  ;;  %v2212_v46 = vshrl.u32 %v19380_v9, %v2203_v29  ;;  %v2215_v28 = vshrl.u32 %v19381_v41, %v2203_v29  ;;  %v2204_v7 = vshrl.u32 %v19377_v50, %v2203_v29 }
 0x286   :  { %12317 = vcosq.f32 %v2068_v24  ;;  %v2150_v26 = vsub.s32 0, %v15229_v16  ;;  %v2207_v35 = vor.u32 %v2206_v19, %v2205_v0  ;;  %v2210_v42 = vor.u32 %v2209_v39, %v2208_v13 }
 0x287   :  { %12319 = vsinq.f32 %v2068_v24  ;;  %v2140_v37 = vadd.s32 %v15157_v15, %v15165_v33  ;;  %v2213_v14 = vor.u32 %v2212_v46, %v2211_v59  ;;  %v2216_v40 = vor.u32 %v2215_v28, %v2214_v53 }
 0x288   :  { %v11157_v36 = vmin.u32 %v2150_v26, %v15229_v16  ;;  %v2217_v31 = vshll.u32 %v19381_v41, %v2202_v4  ;;  %vm2079_vm8 = vcmp.eq.s32.totalorder %v15214_v61, 2  ;;  %vm5388_vm2 = vcmp.eq.s32.totalorder %v15222_v55, 2 }
 0x289   :  { %v15246_v2 = vshll.u32 %v2196_v18, 8  ;;  %v11164_v3 = vadd.s32 4294967169, %v2296_v62  ;;  %v15250_v45 = vand.u32 8388607, %v2292_v34  ;;  %vm2076_vm4 = vcmp.eq.s32.totalorder %v15214_v61, 0 }
 0x28a   :  { %v2152_v54 = vclz %v11157_v36  ;;  %vm5385_vm6 = vcmp.eq.s32.totalorder %v15222_v55, 0  ;;  %v2218_v15 = vshrl.u32 %v19395_v27, %v2203_v29  ;;  %vm2220_vm3 = vcmp.lt.s32.totalorder %v2201_v49, 1 }
 0x28b   :  { %vm2221_vm7 = vcmp.lt.s32.totalorder %v2201_v49, 2  ;;  %vm2222_vm1 = vcmp.lt.s32.totalorder %v2201_v49, 3  ;;  %vm2075_vm5 = vcmp.lt.s32.totalorder %v15214_v61, 2  ;;  %vm5384_vm9 = vcmp.lt.s32.totalorder %v15222_v55, 2 }
 0x28c   :  { %v11158_v33 = vadd.s32 4294967294, %v2152_v54  ;;  %vm2223_vm10 = vcmp.lt.s32.totalorder %v2201_v49, 4  ;;  %v2224_v4 = vsel %vm2220_vm3, %v2204_v7, %v2207_v35  ;;  %v2228_v20 = vsel %vm2220_vm3, %v2207_v35, %v2210_v42 }
 0x28d   :  { %vm2072_vm11 = vweird.f32 %v14871_v30  ;;  %v2219_v12 = vor.u32 %v2218_v15, %v2217_v31  ;;  %v2225_v44 = vsel %vm2223_vm10, %v2213_v14, 2102212464  ;;  %v2229_v0 = vsel %vm2223_vm10, %v2216_v40, 920167782 }
 0x28e   :  { %v2232_v24 = vsel %vm2220_vm3, %v2210_v42, %v2213_v14  ;;  %vm2086_vm12 = vcmp.lt.s32.totalorder %v14990_v52, 0  ;;  %vm11159_vm13 = vcmp.lt.s32.totalorder %v11158_v33, 0  ;;  %v2226_v29 = vsel %vm2222_vm1, %v2210_v42, %v2225_v44 }
 0x28f   :  { %v2230_v13 = vsel %vm2222_vm1, %v2213_v14, %v2229_v0  ;;  %v2302_v59 = vadd.s32 1, %v11164_v3  ;;  %v2155_v19 = vsel %vm11159_vm13, 0, %v11158_v33  ;;  %v2227_v39 = vsel %vm2221_vm7, %v2224_v4, %v2226_v29 }
 0x290   :  { %v2231_v53 = vsel %vm2221_vm7, %v2228_v20, %v2230_v13  ;;  %v2233_v26 = vsel %vm2223_vm10, %v2219_v12, 1326507024  ;;  %v2156_v18 = vsub.s32 32, %v2155_v19  ;;  %v2157_v62 = vshll.u32 %v15229_v16, %v2155_v19 }
 0x291   :  { %v2160_v46 = vsub.s32 4294967266, %v2155_v19  ;;  %v2234_v28 = vsel %vm2222_vm1, %v2216_v40, %v2233_v26  ;;  %v15270_v7 = vmul.u32.u64.low %v15246_v2, %v2231_v53  ;;  %v15271_v35 = vmul.u32.u64.high %v15246_v2, %v2231_v53, %v15270_v7 }
 0x292   :  { %v2235_v36 = vsel %vm2221_vm7, %v2232_v24, %v2234_v28  ;;  %v2300_v42 = vor.u32 8388608, %v15250_v45  ;;  %v2158_v31 = vshrl.u32 %v2140_v37, %v2156_v18  ;;  %v2170_v40 = vsub.s32 4, %v15211_v5 }
 0x293   :  { %v12318_v14 = vpop.eup %12317  ;;  %v2161_v54 = vadd.s32 127, %v2160_v46  ;;  %v15276_v3 = vmul.u32.u64.low %v15246_v2, %v2235_v36  ;;  %v15277_v15 = vmul.u32.u64.high %v15246_v2, %v2235_v36, %v15276_v3  ;;  %v2243_v49 = vmul.u32 %v15246_v2, %v2227_v39 }
 0x294   :  { %v12320_v16 = vpop.eup %12319  ;;  %v2080_v33 = vxor.u32 2147483648, %v12318_v14  ;;  %vm2303_vm14 = vcmp.gt.s32.totalorder %v2302_v59, 0  ;;  %v2159_v20 = vor.u32 %v2158_v31, %v2157_v62  ;;  %v2246_v0 = vadd.s32 1, %v15271_v35 }
 0x295   :  { %v2077_v4 = vxor.u32 2147483648, %v12320_v16  ;;  %v2162_v12 = vshll.u32 %v2161_v54, 23  ;;  %v2304_v44 = vsel %vm2303_vm14, %v2302_v59, 0  ;;  %v66_v59 = vld [vmem:[%s19134_s0 + $0xb0] sm:$0xff]  ;;  %v2171_v53 = vsel %vm2086_vm12, %v2170_v40, %v15211_v5 }
 0x296   :  { %v2081_v45 = vsel %vm2079_vm8, %v2080_v33, %v12320_v16  ;;  %v5390_v37 = vsel %vm5388_vm2, %v2080_v33, %v12320_v16  ;;  %v15286_v24 = vshrl.u32 %v2304_v44, 5  ;;  %v2166_v2 = vcvt.s32.f32 %v2159_v20 }
 0x297   :  { %v2078_v29 = vsel %vm2076_vm4, %v12318_v14, %v2077_v4  ;;  %v2163_v13 = vor.u32 4788187, %v2162_v12  ;;  %v5387_v19 = vsel %vm5385_vm6, %v12318_v14, %v2077_v4  ;;  %vm2245_vm15 = vc.u32 %v15277_v15, %v15270_v7 }
 0x298   :  { %v2082_v39 = vsel %vm2075_vm5, %v2078_v29, %v2081_v45  ;;  %v5391_v26 = vsel %vm5384_vm9, %v5387_v19, %v5390_v37  ;;  %vm15308_vm0 = vcmp.le.f32.partialorder %v2084_v63, 0.7853982  ;;  %v2247_v46 = vsel %vm2245_vm15, %v2246_v0, %v15271_v35  ;;  %v12141_v0 = vld [vmem:[#allocation2 + $0x268] ss:$16 sps:$4 sm:$0xff]   ;;  %v12143_v29 = vld [vmem:[#allocation2 + $0x26c] ss:$16 sps:$4 sm:$0xff]  }
 0x299   :  { %v2083_v18 = vsel %vm2072_vm11, nan, %v2082_v39  ;;  %v2164_v61 = vand.u32 2147483647, %v2163_v13  ;;  %v2248_v5 = vadd.s32 %v2247_v46, %v2243_v49  ;;  %v2306_v28 = vand.u32 31, %v2304_v44  ;;  %v12144_v13 = vld [vmem:[#allocation2 + $0x468] ss:$16 sps:$4 sm:$0xff]   ;;  %9262 = vmatprep.subr.bf16.mxu0 %v12143_v29 }
 0x29a   :  { %7305 = vperm.xlu0 %11923, %v2083_v18   ;;  %v15313_v55 = vshll.u32 %v2300_v42, 8  ;;  %v15315_v36 = vmul.f32 0.017453277, %v66_v59  ;;  %v2173_v31 = vsel %vm15308_vm0, 0, %v2171_v53  ;;  %v5392_v63 = vsel %vm2072_vm11, nan, %v5391_v26  ;;  %9263 = vmatpush1.bf16.msra.mxu0 %v12141_v0  ;;  %v6791_v0 = vld [vmem:[%s19135_s1 + $0x1d8] sm:$0xff] }
 0x29b   :  { %v2167_v14 = vmul.f32 %v2166_v2, %v2164_v61  ;;  %vm2324_vm8 = vcmp.lt.s32.totalorder %v15286_v24, 1  ;;  %v2249_v54 = vadd.s32 536870912, %v2248_v5  ;;  %v2307_v3 = vsub.s32 32, %v2306_v28  ;;  %v12146_v53 = vld [vmem:[#allocation2 + $0x46c] ss:$16 sps:$4 sm:$0xff]  }
 0x29c   :  { %v2309_v35 = vshll.u32 %v19377_v50, %v2306_v28  ;;  %vm2327_vm2 = vcmp.lt.s32.totalorder %v15286_v24, 4  ;;  %v2312_v42 = vshll.u32 %v19378_v8, %v2306_v28  ;;  %v2315_v33 = vshll.u32 %v19379_v56, %v2306_v28  ;;  %9455 = vmatprep.subr.bf16.mxu1 %v12146_v53 }
 0x29d   :  { %v2168_v16 = vxor.u32 2147483648, %v2167_v14  ;;  %v2318_v40 = vshll.u32 %v19380_v9, %v2306_v28  ;;  %v15327_v49 = vshrl.u32 %v2249_v54, 30  ;;  %v2310_v30 = vshrl.u32 %v19378_v8, %v2307_v3  ;;  %9456 = vmatpush1.bf16.msra.mxu1 %v12144_v13 }
 0x29e   :  { %9733 = vperm.xlu0 %11923, %v5392_v63   ;;  %v2313_v4 = vshrl.u32 %v19379_v56, %v2307_v3  ;;  %v2321_v20 = vshll.u32 %v19381_v41, %v2306_v28  ;;  %v2316_v44 = vshrl.u32 %v19380_v9, %v2307_v3  ;;  %v2319_v45 = vshrl.u32 %v19381_v41, %v2307_v3 }
 0x29f   :  { %v2169_v12 = vsel %vm2086_vm12, %v2168_v16, %v2167_v14  ;;  %v2322_v37 = vshrl.u32 %v19395_v27, %v2307_v3  ;;  %v2251_v19 = vshll.u32 %v15327_v49, 30  ;;  %v2308_v59 = vshrl.u32 %v19377_v50, %v2307_v3 }
 0x2a0   :  { %v2172_v2 = vsel %vm15308_vm0, %v14990_v52, %v2169_v12  ;;  %v2311_v39 = vor.u32 %v2310_v30, %v2309_v35  ;;  %v2314_v26 = vor.u32 %v2313_v4, %v2312_v42  ;;  %v2317_v18 = vor.u32 %v2316_v44, %v2315_v33 }
 0x2a1   :  { %12321 = vcosq.f32 %v2172_v2  ;;  %v2320_v61 = vor.u32 %v2319_v45, %v2318_v40  ;;  %v15342_v46 = vsub.s32 %v2248_v5, %v2251_v19  ;;  %v2323_v28 = vor.u32 %v2322_v37, %v2321_v20  ;;  %v6785_v37 = vld [vmem:[%s19135_s1 + $0x1a8] sm:$0xff] }
 0x2a2   :  { %12323 = vsinq.f32 %v2172_v2  ;;  %vm2326_vm4 = vcmp.lt.s32.totalorder %v15286_v24, 3  ;;  %v2177_v62 = vadd.s32 3, %v2173_v31  ;;  %vm2325_vm6 = vcmp.lt.s32.totalorder %v15286_v24, 2 }
 0x2a3   :  { %v2329_v14 = vsel %vm2327_vm2, %v2317_v18, 2102212464  ;;  %v2332_v63 = vsel %vm2324_vm8, %v2311_v39, %v2314_v26  ;;  %v15350_v54 = vand.u32 3, %v2173_v31  ;;  %v2254_v5 = vsub.s32 0, %v15342_v46 }
 0x2a4   :  { %v2328_v3 = vsel %vm2324_vm8, %v2308_v59, %v2311_v39  ;;  %v2333_v35 = vsel %vm2327_vm2, %v2320_v61, 920167782  ;;  %v2330_v16 = vsel %vm2326_vm4, %v2314_v26, %v2329_v14  ;;  %v2336_v33 = vsel %vm2324_vm8, %v2314_v26, %v2317_v18 }
 0x2a5   :  { %v2334_v42 = vsel %vm2326_vm4, %v2317_v18, %v2333_v35  ;;  %v2337_v31 = vsel %vm2327_vm2, %v2323_v28, 1326507024  ;;  %vm2190_vm3 = vcmp.lt.s32.totalorder %v15114_v21, 0  ;;  %v11161_v40 = vmin.u32 %v2254_v5, %v15342_v46 }
 0x2a6   :  { %v2335_v30 = vsel %vm2325_vm6, %v2332_v63, %v2334_v42  ;;  %v2338_v4 = vsel %vm2326_vm4, %v2320_v61, %v2337_v31  ;;  %v2178_v20 = vand.u32 3, %v2177_v62  ;;  %vm15386_vm7 = vcmp.le.f32.partialorder %v2188_v17, 0.7853982 }
 0x2a7   :  { %v2339_v12 = vsel %vm2325_vm6, %v2336_v33, %v2338_v4  ;;  %v15374_v44 = vmul.u32.u64.low %v15313_v55, %v2335_v30  ;;  %v15375_v45 = vmul.u32.u64.high %v15313_v55, %v2335_v30, %v15374_v44  ;;  %v2256_v13 = vclz %v11161_v40 }
 0x2a8   :  { %v2274_v2 = vsub.s32 4, %v15327_v49  ;;  %v2331_v19 = vsel %vm2325_vm6, %v2328_v3, %v2330_v16  ;;  %vm2176_vm1 = vweird.f32 %v14990_v52  ;;  %vm5487_vm5 = vcmp.lt.s32.totalorder %v15350_v54, 2 }
 0x2a9   :  { %v15396_v59 = vmul.u32.u64.low %v15313_v55, %v2339_v12  ;;  %v15397_v39 = vmul.u32.u64.high %v15313_v55, %v2339_v12, %v15396_v59  ;;  %v2399_v53 = vand.u32 2139095040, %v15315_v36  ;;  %vm5488_vm9 = vcmp.eq.s32.totalorder %v15350_v54, 0 }
 0x2aa   :  { %vm5491_vm10 = vcmp.eq.s32.totalorder %v15350_v54, 2  ;;  %v11162_v17 = vadd.s32 4294967294, %v2256_v13  ;;  %v15402_v26 = vpack.c.bf16 %v6791_v0, %v6785_v37  ;;  %vm2179_vm11 = vcmp.lt.s32.totalorder %v2178_v20, 2  ;;  %v67_v59 = vld [vmem:[%s19134_s0 + $0xb8] sm:$0xff] }
 0x2ab   :  { %v2347_v24 = vmul.u32 %v15313_v55, %v2331_v19  ;;  %v2350_v18 = vadd.s32 1, %v15375_v45  ;;  %v2396_v61 = vand.u32 2147483647, %v15315_v36  ;;  %v2244_v28 = vadd.s32 %v15270_v7, %v15277_v15 }
 0x2ac   :  { %vm11163_vm12 = vcmp.lt.s32.totalorder %v11162_v17, 0  ;;  %v2275_v62 = vsel %vm2190_vm3, %v2274_v2, %v15327_v49  ;;  %v2400_v14 = vshrl.u32 %v2399_v53, 23  ;;  %8940 = vmatprep.mubr.bf16.mxu0 %v15402_v26  ;;  %vm2180_vm13 = vcmp.eq.s32.totalorder %v2178_v20, 0 }
 0x2ad   :  { %vm2183_vm14 = vcmp.eq.s32.totalorder %v2178_v20, 2  ;;  %v2259_v63 = vsel %vm11163_vm12, 0, %v11162_v17  ;;  %vm2349_vm15 = vc.u32 %v15397_v39, %v15374_v44  ;;  %v2277_v49 = vsel %vm15386_vm7, 0, %v2275_v62 }
 0x2ae   :  { %v12322_v55 = vpop.eup %12321  ;;  %v2260_v5 = vsub.s32 32, %v2259_v63  ;;  %v2261_v3 = vshll.u32 %v15342_v46, %v2259_v63  ;;  %v2264_v35 = vsub.s32 4294967266, %v2259_v63  ;;  %v2351_v7 = vsel %vm2349_vm15, %v2350_v18, %v15375_v45 }
 0x2af   :  { %v12324_v15 = vpop.eup %12323  ;;  %v2184_v16 = vxor.u32 2147483648, %v12322_v55  ;;  %v2352_v42 = vadd.s32 %v2351_v7, %v2347_v24  ;;  %v11168_v33 = vadd.s32 4294967169, %v2400_v14  ;;  %v2403_v4 = vand.u32 8388607, %v2396_v61 }
 0x2b0   :  { %v2181_v31 = vxor.u32 2147483648, %v12324_v15  ;;  %v2262_v40 = vshrl.u32 %v2244_v28, %v2260_v5  ;;  %v2265_v30 = vadd.s32 127, %v2264_v35  ;;  %v2281_v14 = vadd.s32 3, %v2277_v49 }
 0x2b1   :  { %v2185_v12 = vsel %vm2183_vm14, %v2184_v16, %v12324_v15  ;;  %v5493_v46 = vsel %vm5491_vm10, %v2184_v16, %v12324_v15  ;;  %v2353_v37 = vadd.s32 536870912, %v2352_v42  ;;  %v2406_v45 = vadd.s32 1, %v11168_v33 }
 0x2b2   :  { %v2182_v0 = vsel %vm2180_vm13, %v12322_v55, %v2181_v31  ;;  %v5490_v13 = vsel %vm5488_vm9, %v12322_v55, %v2181_v31  ;;  %v2263_v2 = vor.u32 %v2262_v40, %v2261_v3  ;;  %v2266_v19 = vshll.u32 %v2265_v30, 23 }
 0x2b3   :  { %v2186_v53 = vsel %vm2179_vm11, %v2182_v0, %v2185_v12  ;;  %v5494_v17 = vsel %vm5487_vm5, %v5490_v13, %v5493_v46  ;;  %v15433_v24 = vshrl.u32 %v2353_v37, 30  ;;  %vm2407_vm0 = vcmp.gt.s32.totalorder %v2406_v45, 0 }
 0x2b4   :  { %v2187_v18 = vsel %vm2176_vm1, nan, %v2186_v53  ;;  %v2267_v28 = vor.u32 4788187, %v2266_v19  ;;  %v2270_v62 = vcvt.s32.f32 %v2263_v2  ;;  %v2408_v55 = vsel %vm2407_vm0, %v2406_v45, 0 }
 0x2b5   :  { %7310 = vperm.xlu1 %11924, %v2187_v18   ;;  %v2355_v63 = vshll.u32 %v15433_v24, 30  ;;  %v15438_v5 = vmul.f32 0.017453277, %v67_v59  ;;  %v5495_v20 = vsel %vm2176_vm1, nan, %v5494_v17  ;;  %v2410_v3 = vand.u32 31, %v2408_v55 }
 0x2b6   :  { %v2268_v54 = vand.u32 2147483647, %v2267_v28  ;;  %v2404_v7 = vor.u32 8388608, %v2403_v4  ;;  %v15444_v33 = vand.u32 3, %v2281_v14  ;;  %v15448_v12 = vand.u32 3, %v2277_v49 }
 0x2b7   :  { %v15442_v35 = vsub.s32 %v2352_v42, %v2355_v63  ;;  %v2411_v16 = vsub.s32 32, %v2410_v3  ;;  %v2503_v40 = vand.u32 2139095040, %v15438_v5  ;;  %v2413_v52 = vshll.u32 %v19377_v50, %v2410_v3 }
 0x2b8   :  { %v2271_v15 = vmul.f32 %v2270_v62, %v2268_v54  ;;  %v2348_v42 = vadd.s32 %v15374_v44, %v15397_v39  ;;  %v15455_v37 = vshll.u32 %v2404_v7, 8  ;;  %v2500_v45 = vand.u32 2147483647, %v15438_v5 }
 0x2b9   :  { %9738 = vperm.xlu1 %11924, %v5495_v20   ;;  %v2358_v31 = vsub.s32 0, %v15442_v35  ;;  %v2414_v46 = vshrl.u32 %v19378_v8, %v2411_v16  ;;  %v2409_v13 = vshrl.u32 %v2408_v55, 5  ;;  %v2416_v49 = vshll.u32 %v19378_v8, %v2410_v3 }
 0x2ba   :  { %v2272_v30 = vxor.u32 2147483648, %v2271_v15  ;;  %v2417_v2 = vshrl.u32 %v19379_v56, %v2411_v16  ;;  %v2412_v44 = vshrl.u32 %v19377_v50, %v2411_v16  ;;  %v2504_v39 = vshrl.u32 %v2503_v40, 23 }
 0x2bb   :  { %v11165_v4 = vmin.u32 %v2358_v31, %v15442_v35  ;;  %v2415_v53 = vor.u32 %v2414_v46, %v2413_v52  ;;  %v2419_v17 = vshll.u32 %v19379_v56, %v2410_v3  ;;  %v2420_v18 = vshrl.u32 %v19380_v9, %v2411_v16 }
 0x2bc   :  { %v2273_v0 = vsel %vm2190_vm3, %v2272_v30, %v2271_v15  ;;  %v2422_v62 = vshll.u32 %v19380_v9, %v2410_v3  ;;  %v2423_v14 = vshrl.u32 %v19381_v41, %v2411_v16  ;;  %v2418_v63 = vor.u32 %v2417_v2, %v2416_v49 }
 0x2bd   :  { %v2276_v19 = vsel %vm15386_vm7, %v15114_v21, %v2273_v0  ;;  %v2360_v59 = vclz %v11165_v4  ;;  %v2421_v55 = vor.u32 %v2420_v18, %v2419_v17  ;;  %v2425_v29 = vshll.u32 %v19381_v41, %v2410_v3 }
 0x2be   :  { %12325 = vcosq.f32 %v2276_v19  ;;  %v2426_v20 = vshrl.u32 %v19395_v27, %v2411_v16  ;;  %vm2294_vm8 = vcmp.lt.s32.totalorder %v15206_v1, 0  ;;  %v2424_v54 = vor.u32 %v2423_v14, %v2422_v62  ;;  %v6784_v62 = vld [vmem:[%s19135_s1 + $0x1a0] sm:$0xff]  ;;  %v6790_v14 = vld [vmem:[%s19135_s1 + $0x1d0] sm:$0xff] }
 0x2bf   :  { %12327 = vsinq.f32 %v2276_v19  ;;  %v11166_v28 = vadd.s32 4294967294, %v2360_v59  ;;  %vm2428_vm4 = vcmp.lt.s32.totalorder %v2409_v13, 1  ;;  %vm2429_vm6 = vcmp.lt.s32.totalorder %v2409_v13, 2 }
 0x2c0   :  { %v2427_v15 = vor.u32 %v2426_v20, %v2425_v29  ;;  %vm2430_vm3 = vcmp.lt.s32.totalorder %v2409_v13, 3  ;;  %vm2431_vm7 = vcmp.lt.s32.totalorder %v2409_v13, 4  ;;  %vm2287_vm1 = vcmp.eq.s32.totalorder %v15444_v33, 2  ;;  %v6797_v20 = vld [vmem:[%s19135_s1 + $0x208] sm:$0xff] }
 0x2c1   :  { %vm11167_vm2 = vcmp.lt.s32.totalorder %v11166_v28, 0  ;;  %v2433_v3 = vsel %vm2431_vm7, %v2421_v55, 2102212464  ;;  %vm2284_vm5 = vcmp.eq.s32.totalorder %v15444_v33, 0  ;;  %vm15479_vm9 = vcmp.le.f32.partialorder %v2292_v34, 0.7853982 }
 0x2c2   :  { %v2363_v7 = vsel %vm11167_vm2, 0, %v11166_v28  ;;  %vm5591_vm10 = vcmp.eq.s32.totalorder %v15448_v12, 0  ;;  %v2432_v52 = vsel %vm2428_vm4, %v2412_v44, %v2415_v53  ;;  %v2434_v46 = vsel %vm2430_vm3, %v2418_v63, %v2433_v3 }
 0x2c3   :  { %v2364_v31 = vsub.s32 32, %v2363_v7  ;;  %v2365_v40 = vshll.u32 %v15442_v35, %v2363_v7  ;;  %v2368_v30 = vsub.s32 4294967266, %v2363_v7  ;;  %v2436_v4 = vsel %vm2428_vm4, %v2415_v53, %v2418_v63 }
 0x2c4   :  { %v2437_v35 = vsel %vm2431_vm7, %v2424_v54, 920167782  ;;  %vm2283_vm11 = vcmp.lt.s32.totalorder %v15444_v33, 2  ;;  %vm5590_vm12 = vcmp.lt.s32.totalorder %v15448_v12, 2  ;;  %v2440_v2 = vsel %vm2428_vm4, %v2418_v63, %v2421_v55 }
 0x2c5   :  { %v2366_v0 = vshrl.u32 %v2348_v42, %v2364_v31  ;;  %v2369_v49 = vadd.s32 127, %v2368_v30  ;;  %v2438_v34 = vsel %vm2430_vm3, %v2421_v55, %v2437_v35  ;;  %vm2280_vm13 = vweird.f32 %v15114_v21 }
 0x2c6   :  { %v2378_v19 = vsub.s32 4, %v15433_v24  ;;  %v2439_v59 = vsel %vm2429_vm6, %v2436_v4, %v2438_v34  ;;  %v2441_v44 = vsel %vm2431_vm7, %v2427_v15, 1326507024  ;;  %v11172_v53 = vadd.s32 4294967169, %v2504_v39 }
 0x2c7   :  { %v2367_v17 = vor.u32 %v2366_v0, %v2365_v40  ;;  %v2370_v18 = vshll.u32 %v2369_v49, 23  ;;  %v2435_v42 = vsel %vm2429_vm6, %v2432_v52, %v2434_v46  ;;  %v2442_v28 = vsel %vm2430_vm3, %v2424_v54, %v2441_v44  ;;  %v6803_v54 = vld [vmem:[%s19135_s1 + $0x238] sm:$0xff] }
 0x2c8   :  { %v2443_v63 = vsel %vm2429_vm6, %v2440_v2, %v2442_v28  ;;  %v15506_v55 = vmul.u32.u64.low %v15455_v37, %v2439_v59  ;;  %v15507_v29 = vmul.u32.u64.high %v15455_v37, %v2439_v59, %v15506_v55  ;;  %v2510_v39 = vadd.s32 1, %v11172_v53 }
 0x2c9   :  { %v2371_v7 = vor.u32 4788187, %v2370_v18  ;;  %v2374_v15 = vcvt.s32.f32 %v2367_v17  ;;  %v15517_v31 = vmul.u32.u64.low %v15455_v37, %v2443_v63  ;;  %v15518_v13 = vmul.u32.u64.high %v15455_v37, %v2443_v63, %v15517_v31 }
 0x2ca   :  { %v2379_v40 = vsel %vm2294_vm8, %v2378_v19, %v15433_v24  ;;  %vm5594_vm14 = vcmp.eq.s32.totalorder %v15448_v12, 2  ;;  %vm2511_vm15 = vcmp.gt.s32.totalorder %v2510_v39, 0  ;;  %v15524_v30 = vpack.c.bf16 %v6790_v14, %v6784_v62 }
 0x2cb   :  { %v12326_v3 = vpop.eup %12325  ;;  %v2372_v52 = vand.u32 2147483647, %v2371_v7  ;;  %v2451_v46 = vmul.u32 %v15455_v37, %v2435_v42  ;;  %v2512_v4 = vsel %vm2511_vm15, %v2510_v39, 0  ;;  %v15527_v35 = vpack.c.bf16 %v6803_v54, %v6797_v20 }
 0x2cc   :  { %v12328_v0 = vpop.eup %12327  ;;  %v2288_v49 = vxor.u32 2147483648, %v12326_v3  ;;  %v2454_v34 = vadd.s32 1, %v15507_v29  ;;  %v15532_v2 = vand.u32 8388607, %v2500_v45  ;;  %v2514_v24 = vand.u32 31, %v2512_v4  ;;  %8941 = vmatmul.mubr.bf16.gmra.mxu0 %v15524_v30 }
 0x2cd   :  { %v2285_v19 = vxor.u32 2147483648, %v12328_v0  ;;  %v2375_v59 = vmul.f32 %v2374_v15, %v2372_v52  ;;  %v2381_v44 = vsel %vm15479_vm9, 0, %v2379_v40  ;;  %vm2453_vm0 = vc.u32 %v15518_v13, %v15506_v55  ;;  %8950 = vmatprep.mubr.bf16.mxu0 %v15527_v35 }
 0x2ce   :  { %v2289_v37 = vsel %vm2287_vm1, %v2288_v49, %v12328_v0  ;;  %v5596_v53 = vsel %vm5594_vm14, %v2288_v49, %v12328_v0  ;;  %v2455_v17 = vsel %vm2453_vm0, %v2454_v34, %v15507_v29  ;;  %v2515_v18 = vsub.s32 32, %v2514_v24  ;;  %v12149_v0 = vld [vmem:[#allocation2 + $0x24c] ss:$16 sps:$4 sm:$0xff]  }
 0x2cf   :  { %v2286_v42 = vsel %vm2284_vm5, %v12326_v3, %v2285_v19  ;;  %v2376_v28 = vxor.u32 2147483648, %v2375_v59  ;;  %v5593_v62 = vsel %vm5591_vm10, %v12326_v3, %v2285_v19  ;;  %v2456_v14 = vadd.s32 %v2455_v17, %v2451_v46  ;;  %v12150_v19 = vld [vmem:[#allocation2 + $0x448] ss:$16 sps:$4 sm:$0xff]   ;;  %9264 = vmatprep.subr.bf16.mxu0 %v12149_v0 }
 0x2d0   :  { %v2290_v63 = vsel %vm2283_vm11, %v2286_v42, %v2289_v37  ;;  %v5597_v39 = vsel %vm5590_vm12, %v5593_v62, %v5596_v53  ;;  %v15553_v20 = vshrl.u32 %v2512_v4, 5  ;;  %v2517_v54 = vshll.u32 %v19377_v50, %v2514_v24  ;;  %v12147_v4 = vld [vmem:[#allocation2 + $0x248] ss:$16 sps:$4 sm:$0xff]  }
 0x2d1   :  { %v2291_v29 = vsel %vm2280_vm13, nan, %v2290_v63  ;;  %v2377_v7 = vsel %vm2294_vm8, %v2376_v28, %v2375_v59  ;;  %v5598_v15 = vsel %vm2280_vm13, nan, %v5597_v39  ;;  %v2457_v31 = vadd.s32 536870912, %v2456_v14  ;;  %v12152_v59 = vld [vmem:[#allocation2 + $0x44c] ss:$16 sps:$4 sm:$0xff]   ;;  %9265 = vmatpush1.bf16.msra.mxu0 %v12147_v4 }
 0x2d2   :  { %7315 = vperm.xlu0 %11923, %v2291_v29   ;;  %v2380_v33 = vsel %vm15479_vm9, %v15206_v1, %v2377_v7  ;;  %v2518_v12 = vshrl.u32 %v19378_v8, %v2515_v18  ;;  %v2520_v40 = vshll.u32 %v19378_v8, %v2514_v24  ;;  %v2521_v3 = vshrl.u32 %v19379_v56, %v2515_v18 }
 0x2d3   :  { %12329 = vcosq.f32 %v2380_v33  ;;  %v15568_v52 = vshrl.u32 %v2457_v31, 30  ;;  %v2523_v46 = vshll.u32 %v19379_v56, %v2514_v24  ;;  %v2524_v21 = vshrl.u32 %v19380_v9, %v2515_v18  ;;  %9457 = vmatprep.subr.bf16.mxu1 %v12152_v59 }
 0x2d4   :  { %12331 = vsinq.f32 %v2380_v33  ;;  %v2385_v49 = vadd.s32 3, %v2381_v44  ;;  %v2508_v16 = vor.u32 8388608, %v15532_v2  ;;  %v2526_v34 = vshll.u32 %v19380_v9, %v2514_v24  ;;  %9458 = vmatpush1.bf16.msra.mxu1 %v12150_v19  ;;  %v69_v19 = vld [vmem:[%s19134_s0 + $0xc8] sm:$0xff] }
 0x2d5   :  { %v2459_v37 = vshll.u32 %v15568_v52, 30  ;;  %v2519_v53 = vor.u32 %v2518_v12, %v2517_v54  ;;  %v2522_v17 = vor.u32 %v2521_v3, %v2520_v40  ;;  %v2527_v42 = vshrl.u32 %v19381_v41, %v2515_v18  ;;  %v68_v40 = vld [vmem:[%s19134_s0 + $0xc0] sm:$0xff] }
 0x2d6   :  { %9743 = vperm.xlu0 %11923, %v5598_v15   ;;  %v2516_v28 = vshrl.u32 %v19377_v50, %v2515_v18  ;;  %v2529_v62 = vshll.u32 %v19381_v41, %v2514_v24  ;;  %v2530_v63 = vshrl.u32 %v19395_v27, %v2515_v18  ;;  %vm2532_vm8 = vcmp.lt.s32.totalorder %v15553_v20, 1 }
 0x2d7   :  { %v15580_v2 = vand.u32 3, %v2381_v44  ;;  %v15582_v39 = vsub.s32 %v2456_v14, %v2459_v37  ;;  %v2525_v29 = vor.u32 %v2524_v21, %v2523_v46  ;;  %v2528_v54 = vor.u32 %v2527_v42, %v2526_v34 }
 0x2d8   :  { %v2386_v7 = vand.u32 3, %v2385_v49  ;;  %v2531_v31 = vor.u32 %v2530_v63, %v2529_v62  ;;  %vm2534_vm2 = vcmp.lt.s32.totalorder %v15553_v20, 3  ;;  %vm2535_vm4 = vcmp.lt.s32.totalorder %v15553_v20, 4 }
 0x2d9   :  { %v2462_v24 = vsub.s32 0, %v15582_v39  ;;  %vm2533_vm6 = vcmp.lt.s32.totalorder %v15553_v20, 2  ;;  %v2537_v18 = vsel %vm2535_vm4, %v2525_v29, 2102212464  ;;  %v2540_v44 = vsel %vm2532_vm8, %v2519_v53, %v2522_v17 }
 0x2da   :  { %v2536_v14 = vsel %vm2532_vm8, %v2516_v28, %v2519_v53  ;;  %v2541_v15 = vsel %vm2535_vm4, %v2528_v54, 920167782  ;;  %v2545_v33 = vsel %vm2535_vm4, %v2531_v31, 1326507024  ;;  %v2548_v12 = vshll.u32 %v2508_v16, 8 }
 0x2db   :  { %vm2384_vm3 = vweird.f32 %v15206_v1  ;;  %v11169_v3 = vmin.u32 %v2462_v24, %v15582_v39  ;;  %v2538_v46 = vsel %vm2534_vm2, %v2522_v17, %v2537_v18  ;;  %v2542_v21 = vsel %vm2534_vm2, %v2525_v29, %v2541_v15 }
 0x2dc   :  { %v2544_v4 = vsel %vm2532_vm8, %v2522_v17, %v2525_v29  ;;  %vm5693_vm7 = vcmp.lt.s32.totalorder %v15580_v2, 2  ;;  %vm2398_vm1 = vcmp.lt.s32.totalorder %v15315_v36, 0  ;;  %v2543_v0 = vsel %vm2533_vm6, %v2540_v44, %v2542_v21 }
 0x2dd   :  { %v2546_v49 = vsel %vm2534_vm2, %v2528_v54, %v2545_v33  ;;  %vm5694_vm5 = vcmp.eq.s32.totalorder %v15580_v2, 0  ;;  %vm5697_vm9 = vcmp.eq.s32.totalorder %v15580_v2, 2  ;;  %v2464_v16 = vclz %v11169_v3 }
 0x2de   :  { %v15611_v34 = vmul.f32 0.017453277, %v68_v40  ;;  %v2539_v59 = vsel %vm2533_vm6, %v2536_v14, %v2538_v46  ;;  %v2547_v37 = vsel %vm2533_vm6, %v2544_v4, %v2546_v49  ;;  %vm2387_vm10 = vcmp.lt.s32.totalorder %v2386_v7, 2 }
 0x2df   :  { %v15620_v53 = vmul.u32.u64.low %v2548_v12, %v2543_v0  ;;  %v15621_v17 = vmul.u32.u64.high %v2548_v12, %v2543_v0, %v15620_v53  ;;  %v11170_v42 = vadd.s32 4294967294, %v2464_v16  ;;  %vm2388_vm11 = vcmp.eq.s32.totalorder %v2386_v7, 0 }
 0x2e0   :  { %v15624_v28 = vmul.u32.u64.low %v2548_v12, %v2547_v37  ;;  %v15625_v62 = vmul.u32.u64.high %v2548_v12, %v2547_v37, %v15624_v28  ;;  %v12330_v63 = vpop.eup %12329  ;;  %vm2391_vm12 = vcmp.eq.s32.totalorder %v2386_v7, 2  ;;  %v2482_v29 = vsub.s32 4, %v15568_v52 }
 0x2e1   :  { %v15628_v54 = vmul.f32 0.017453277, %v69_v19  ;;  %v12332_v31 = vpop.eup %12331  ;;  %v2392_v24 = vxor.u32 2147483648, %v12330_v63  ;;  %v2452_v20 = vadd.s32 %v15506_v55, %v15518_v13  ;;  %vm11171_vm13 = vcmp.lt.s32.totalorder %v11170_v42, 0 }
 0x2e2   :  { %v2555_v18 = vmul.u32 %v2548_v12, %v2539_v59  ;;  %v2389_v44 = vxor.u32 2147483648, %v12332_v31  ;;  %v2467_v14 = vsel %vm11171_vm13, 0, %v11170_v42  ;;  %v2558_v15 = vadd.s32 1, %v15621_v17 }
 0x2e3   :  { %v2607_v33 = vand.u32 2139095040, %v15611_v34  ;;  %v2393_v40 = vsel %vm2391_vm12, %v2392_v24, %v12332_v31  ;;  %v5699_v3 = vsel %vm5697_vm9, %v2392_v24, %v12332_v31  ;;  %v2468_v46 = vsub.s32 32, %v2467_v14 }
 0x2e4   :  { %v2469_v21 = vshll.u32 %v15582_v39, %v2467_v14  ;;  %v2390_v4 = vsel %vm2388_vm11, %v12330_v63, %v2389_v44  ;;  %v5696_v55 = vsel %vm5694_vm5, %v12330_v63, %v2389_v44  ;;  %v2472_v13 = vsub.s32 4294967266, %v2467_v14 }
 0x2e5   :  { %v2483_v12 = vsel %vm2398_vm1, %v2482_v29, %v15568_v52  ;;  %v2394_v0 = vsel %vm2387_vm10, %v2390_v4, %v2393_v40  ;;  %v5700_v49 = vsel %vm5693_vm7, %v5696_v55, %v5699_v3  ;;  %v2470_v16 = vshrl.u32 %v2452_v20, %v2468_v46 }
 0x2e6   :  { %vm2557_vm14 = vc.u32 %v15625_v62, %v15620_v53  ;;  %v2395_v39 = vsel %vm2384_vm3, nan, %v2394_v0  ;;  %v2473_v19 = vadd.s32 127, %v2472_v13  ;;  %v2604_v37 = vand.u32 2147483647, %v15611_v34 }
 0x2e7   :  { %v2559_v59 = vsel %vm2557_vm14, %v2558_v15, %v15621_v17  ;;  %7320 = vperm.xlu1 %11924, %v2395_v39   ;;  %vm15654_vm15 = vcmp.le.f32.partialorder %v2396_v61, 0.7853982  ;;  %v2471_v2 = vor.u32 %v2470_v16, %v2469_v21  ;;  %v2608_v42 = vshrl.u32 %v2607_v33, 23  ;;  %v6796_v17 = vld [vmem:[%s19135_s1 + $0x200] sm:$0xff]  ;;  %v6802_v61 = vld [vmem:[%s19135_s1 + $0x230] sm:$0xff] }
 0x2e8   :  { %v2560_v7 = vadd.s32 %v2559_v59, %v2555_v18  ;;  %v5701_v28 = vsel %vm2384_vm3, nan, %v5700_v49  ;;  %v2474_v63 = vshll.u32 %v2473_v19, 23  ;;  %v2711_v29 = vand.u32 2139095040, %v15628_v54 }
 0x2e9   :  { %v2485_v31 = vsel %vm15654_vm15, 0, %v2483_v12  ;;  %v11176_v20 = vadd.s32 4294967169, %v2608_v42  ;;  %v2478_v44 = vcvt.s32.f32 %v2471_v2  ;;  %v2611_v1 = vand.u32 8388607, %v2604_v37 }
 0x2ea   :  { %v2561_v24 = vadd.s32 536870912, %v2560_v7  ;;  %v2475_v18 = vor.u32 4788187, %v2474_v63  ;;  %v2712_v14 = vshrl.u32 %v2711_v29, 23  ;;  %v2708_v40 = vand.u32 2147483647, %v15628_v54 }
 0x2eb   :  { %9748 = vperm.xlu1 %11924, %v5701_v28   ;;  %v2614_v33 = vadd.s32 1, %v11176_v20  ;;  %v15672_v3 = vpack.c.bf16 %v6802_v61, %v6796_v17  ;;  %v2489_v21 = vadd.s32 3, %v2485_v31  ;;  %v2612_v12 = vor.u32 8388608, %v2611_v1 }
 0x2ec   :  { %v2562_v15 = vshrl.u32 %v2561_v24, 30  ;;  %v2476_v46 = vand.u32 2147483647, %v2475_v18  ;;  %v11180_v55 = vadd.s32 4294967169, %v2712_v14  ;;  %v15679_v19 = vand.u32 8388607, %v2708_v40 }
 0x2ed   :  { %vm2615_vm0 = vcmp.gt.s32.totalorder %v2614_v33, 0  ;;  %8951 = vmatmul.mubr.bf16.gmra.mxu0 %v15672_v3  ;;  %vm2502_vm8 = vcmp.lt.s32.totalorder %v15438_v5, 0  ;;  %v15682_v2 = vand.u32 3, %v2489_v21  ;;  %v15685_v28 = vand.u32 3, %v2485_v31 }
 0x2ee   :  { %v2563_v4 = vshll.u32 %v2562_v15, 30  ;;  %v2479_v13 = vmul.f32 %v2478_v44, %v2476_v46  ;;  %v2616_v0 = vsel %vm2615_vm0, %v2614_v33, 0  ;;  %v2586_v16 = vsub.s32 4, %v2562_v15 }
 0x2ef   :  { %v2618_v39 = vand.u32 31, %v2616_v0  ;;  %v15687_v63 = vadd.s32 1, %v11180_v55  ;;  %v2556_v29 = vadd.s32 %v15620_v53, %v15625_v62  ;;  %v15693_v61 = vshll.u32 %v2612_v12, 8  ;;  %v70_v62 = vld [vmem:[%s19134_s0 + $0xd0] sm:$0xff] }
 0x2f0   :  { %v15675_v49 = vsub.s32 %v2560_v7, %v2563_v4  ;;  %v2480_v59 = vxor.u32 2147483648, %v2479_v13  ;;  %v2587_v31 = vsel %vm2502_vm8, %v2586_v16, %v2562_v15  ;;  %v2716_v18 = vor.u32 8388608, %v15679_v19 }
 0x2f1   :  { %v2619_v17 = vsub.s32 32, %v2618_v39  ;;  %v2621_v44 = vshll.u32 %v19377_v50, %v2618_v39  ;;  %v2624_v1 = vshll.u32 %v19378_v8, %v2618_v39  ;;  %v2627_v53 = vshll.u32 %v19379_v56, %v2618_v39 }
 0x2f2   :  { %v2566_v42 = vsub.s32 0, %v15675_v49  ;;  %v2481_v7 = vsel %vm2398_vm1, %v2480_v59, %v2479_v13  ;;  %vm15707_vm2 = vcmp.le.f32.partialorder %v2500_v45, 0.7853982  ;;  %v2617_v14 = vshrl.u32 %v2616_v0, 5 }
 0x2f3   :  { %v2484_v24 = vsel %vm15654_vm15, %v15315_v36, %v2481_v7  ;;  %vm2719_vm4 = vcmp.gt.s32.totalorder %v15687_v63, 0  ;;  %v2620_v15 = vshrl.u32 %v19377_v50, %v2619_v17  ;;  %v2622_v33 = vshrl.u32 %v19378_v8, %v2619_v17 }
 0x2f4   :  { %v11173_v20 = vmin.u32 %v2566_v42, %v15675_v49  ;;  %12333 = vcosq.f32 %v2484_v24  ;;  %v2625_v46 = vshrl.u32 %v19379_v56, %v2619_v17  ;;  %v2628_v21 = vshrl.u32 %v19380_v9, %v2619_v17 }
 0x2f5   :  { %12335 = vsinq.f32 %v2484_v24  ;;  %v2630_v55 = vshll.u32 %v19380_v9, %v2618_v39  ;;  %v2631_v45 = vshrl.u32 %v19381_v41, %v2619_v17  ;;  %v2633_v13 = vshll.u32 %v19381_v41, %v2618_v39 }
 0x2f6   :  { %v2568_v52 = vclz %v11173_v20  ;;  %v2623_v12 = vor.u32 %v2622_v33, %v2621_v44  ;;  %v2626_v16 = vor.u32 %v2625_v46, %v2624_v1  ;;  %v2629_v0 = vor.u32 %v2628_v21, %v2627_v53 }
 0x2f7   :  { %v2634_v59 = vshrl.u32 %v19395_v27, %v2619_v17  ;;  %vm2495_vm6 = vcmp.eq.s32.totalorder %v15682_v2, 2  ;;  %vm5800_vm7 = vcmp.eq.s32.totalorder %v15685_v28, 2  ;;  %v2632_v42 = vor.u32 %v2631_v45, %v2630_v55 }
 0x2f8   :  { %v11174_v4 = vadd.s32 4294967294, %v2568_v52  ;;  %vm2636_vm1 = vcmp.lt.s32.totalorder %v2617_v14, 1  ;;  %vm2637_vm5 = vcmp.lt.s32.totalorder %v2617_v14, 2  ;;  %vm2492_vm9 = vcmp.eq.s32.totalorder %v15682_v2, 0 }
 0x2f9   :  { %vm5797_vm10 = vcmp.eq.s32.totalorder %v15685_v28, 0  ;;  %v2635_v24 = vor.u32 %v2634_v59, %v2633_v13  ;;  %vm2638_vm11 = vcmp.lt.s32.totalorder %v2617_v14, 3  ;;  %vm2639_vm12 = vcmp.lt.s32.totalorder %v2617_v14, 4 }
 0x2fa   :  { %vm11175_vm3 = vcmp.lt.s32.totalorder %v11174_v4, 0  ;;  %vm2491_vm13 = vcmp.lt.s32.totalorder %v15682_v2, 2  ;;  %vm5796_vm14 = vcmp.lt.s32.totalorder %v15685_v28, 2  ;;  %v2640_v44 = vsel %vm2636_vm1, %v2620_v15, %v2623_v12 }
 0x2fb   :  { %v2571_v7 = vsel %vm11175_vm3, 0, %v11174_v4  ;;  %vm2488_vm15 = vweird.f32 %v15315_v36  ;;  %v2641_v1 = vsel %vm2639_vm12, %v2629_v0, 2102212464  ;;  %v2644_v53 = vsel %vm2636_vm1, %v2623_v12, %v2626_v16 }
 0x2fc   :  { %v2572_v39 = vsub.s32 32, %v2571_v7  ;;  %v2573_v17 = vshll.u32 %v15675_v49, %v2571_v7  ;;  %v2576_v20 = vsub.s32 4294967266, %v2571_v7  ;;  %v2645_v52 = vsel %vm2639_vm12, %v2632_v42, 920167782 }
 0x2fd   :  { %v2648_v33 = vsel %vm2636_vm1, %v2626_v16, %v2629_v0  ;;  %v2642_v4 = vsel %vm2638_vm11, %v2626_v16, %v2641_v1  ;;  %v2646_v49 = vsel %vm2638_vm11, %v2629_v0, %v2645_v52  ;;  %v15737_v55 = vsel %vm15707_vm2, 0, %v2587_v31 }
 0x2fe   :  { %v2574_v46 = vshrl.u32 %v2556_v29, %v2572_v39  ;;  %v2577_v21 = vadd.s32 127, %v2576_v20  ;;  %v2643_v15 = vsel %vm2637_vm5, %v2640_v44, %v2642_v4  ;;  %v2647_v45 = vsel %vm2637_vm5, %v2644_v53, %v2646_v49 }
 0x2ff   :  { %v2649_v13 = vsel %vm2639_vm12, %v2635_v24, 1326507024  ;;  %v2720_v29 = vsel %vm2719_vm4, %v15687_v63, 0  ;;  %v15748_v0 = vmul.u32.u64.low %v15693_v61, %v2647_v45  ;;  %v15749_v31 = vmul.u32.u64.high %v15693_v61, %v2647_v45, %v15748_v0 }
 0x300   :  { %v2575_v12 = vor.u32 %v2574_v46, %v2573_v17  ;;  %v2578_v59 = vshll.u32 %v2577_v21, 23  ;;  %v2650_v7 = vsel %vm2638_vm11, %v2632_v42, %v2649_v13  ;;  %v15752_v39 = vshrl.u32 %v2720_v29, 5 }
 0x301   :  { %v2651_v16 = vsel %vm2637_vm5, %v2648_v33, %v2650_v7  ;;  %v12334_v20 = vpop.eup %12333  ;;  %v15759_v63 = vadd.s32 3, %v15737_v55  ;;  %v2722_v14 = vand.u32 31, %v2720_v29  ;;  %v15763_v52 = vshll.u32 %v2716_v18, 8 }
 0x302   :  { %v2579_v44 = vor.u32 4788187, %v2578_v59  ;;  %v2582_v24 = vcvt.s32.f32 %v2575_v12  ;;  %v15755_v17 = vmul.u32.u64.low %v15693_v61, %v2651_v16  ;;  %v15756_v1 = vmul.u32.u64.high %v15693_v61, %v2651_v16, %v15755_v17  ;;  %v12336_v42 = vpop.eup %12335 }
 0x303   :  { %v2496_v53 = vxor.u32 2147483648, %v12334_v20  ;;  %v2493_v33 = vxor.u32 2147483648, %v12336_v42  ;;  %v2659_v21 = vmul.u32 %v15693_v61, %v2643_v15  ;;  %vm2740_vm0 = vcmp.lt.s32.totalorder %v15752_v39, 1 }
 0x304   :  { %v2580_v46 = vand.u32 2147483647, %v2579_v44  ;;  %v2662_v45 = vadd.s32 1, %v15749_v31  ;;  %v2723_v13 = vsub.s32 32, %v2722_v14  ;;  %vm2742_vm4 = vcmp.lt.s32.totalorder %v15752_v39, 3 }
 0x305   :  { %v2497_v4 = vsel %vm2495_vm6, %v2496_v53, %v12336_v42  ;;  %v5802_v49 = vsel %vm5800_vm7, %v2496_v53, %v12336_v42  ;;  %v2494_v19 = vsel %vm2492_vm9, %v12334_v20, %v2493_v33  ;;  %v5799_v12 = vsel %vm5797_vm10, %v12334_v20, %v2493_v33 }
 0x306   :  { %v2583_v18 = vmul.f32 %v2582_v24, %v2580_v46  ;;  %vm2743_vm3 = vcmp.lt.s32.totalorder %v15752_v39, 4  ;;  %v2498_v61 = vsel %vm2491_vm13, %v2494_v19, %v2497_v4  ;;  %v5803_v15 = vsel %vm5796_vm14, %v5799_v12, %v5802_v49 }
 0x307   :  { %vm2661_vm6 = vc.u32 %v15756_v1, %v15748_v0  ;;  %v2724_v59 = vshrl.u32 %v19377_v50, %v2723_v13  ;;  %v2499_v7 = vsel %vm2488_vm15, nan, %v2498_v61  ;;  %v5804_v16 = vsel %vm2488_vm15, nan, %v5803_v15 }
 0x308   :  { %v2584_v29 = vxor.u32 2147483648, %v2583_v18  ;;  %v2663_v20 = vsel %vm2661_vm6, %v2662_v45, %v15749_v31  ;;  %7325 = vperm.xlu0 %11923, %v2499_v7   ;;  %v2725_v44 = vshll.u32 %v19377_v50, %v2722_v14  ;;  %v2726_v28 = vshrl.u32 %v19378_v8, %v2723_v13  ;;  %v12153_v7 = vld [vmem:[#allocation2 + $0x228] ss:$16 sps:$4 sm:$0xff]  }
 0x309   :  { %v2664_v2 = vadd.s32 %v2663_v20, %v2659_v21  ;;  %v2728_v24 = vshll.u32 %v19378_v8, %v2722_v14  ;;  %v2729_v42 = vshrl.u32 %v19379_v56, %v2723_v13  ;;  %v2731_v53 = vshll.u32 %v19379_v56, %v2722_v14 }
 0x30a   :  { %v2585_v17 = vsel %vm2502_vm8, %v2584_v29, %v2583_v18  ;;  %v2732_v36 = vshrl.u32 %v19380_v9, %v2723_v13  ;;  %v2727_v46 = vor.u32 %v2726_v28, %v2725_v44  ;;  %v2734_v21 = vshll.u32 %v19380_v9, %v2722_v14  ;;  %v12155_v29 = vld [vmem:[#allocation2 + $0x22c] ss:$16 sps:$4 sm:$0xff]  }
 0x30b   :  { %v2588_v31 = vsel %vm15707_vm2, %v15438_v5, %v2585_v17  ;;  %v2665_v33 = vadd.s32 536870912, %v2664_v2  ;;  %v2730_v4 = vor.u32 %v2729_v42, %v2728_v24  ;;  %v2735_v45 = vshrl.u32 %v19381_v41, %v2723_v13  ;;  %9266 = vmatprep.subr.bf16.mxu0 %v12155_v29 }
 0x30c   :  { %12337 = vcosq.f32 %v2588_v31  ;;  %v2733_v49 = vor.u32 %v2732_v36, %v2731_v53  ;;  %9753 = vperm.xlu0 %11923, %v5804_v16   ;;  %v2737_v18 = vshll.u32 %v19381_v41, %v2722_v14  ;;  %v2738_v12 = vshrl.u32 %v19395_v27, %v2723_v13  ;;  %v12156_v16 = vld [vmem:[#allocation2 + $0x428] ss:$16 sps:$4 sm:$0xff]   ;;  %v12158_v13 = vld [vmem:[#allocation2 + $0x42c] ss:$16 sps:$4 sm:$0xff]   ;;  %9267 = vmatpush1.bf16.msra.mxu0 %v12153_v7 }
 0x30d   :  { %12339 = vsinq.f32 %v2588_v31  ;;  %v15803_v19 = vshrl.u32 %v2665_v33, 30  ;;  %v2736_v61 = vor.u32 %v2735_v45, %v2734_v21  ;;  %vm2741_vm8 = vcmp.lt.s32.totalorder %v15752_v39, 2  ;;  %9459 = vmatprep.subr.bf16.mxu1 %v12158_v13  ;;  %v6815_v7 = vld [vmem:[%s19135_s1 + $0x298] sm:$0xff] }
 0x30e   :  { %v2745_v15 = vsel %vm2743_vm3, %v2733_v49, 2102212464  ;;  %v2739_v44 = vor.u32 %v2738_v12, %v2737_v18  ;;  %v2748_v14 = vsel %vm2740_vm0, %v2727_v46, %v2730_v4  ;;  %v2744_v28 = vsel %vm2740_vm0, %v2724_v59, %v2727_v46  ;;  %9460 = vmatpush1.bf16.msra.mxu1 %v12156_v16 }
 0x30f   :  { %v2667_v20 = vshll.u32 %v15803_v19, 30  ;;  %v2746_v24 = vsel %vm2742_vm4, %v2730_v4, %v2745_v15  ;;  %v2749_v17 = vsel %vm2743_vm3, %v2736_v61, 920167782  ;;  %v2752_v42 = vsel %vm2740_vm0, %v2730_v4, %v2733_v49  ;;  %v6809_v15 = vld [vmem:[%s19135_s1 + $0x268] sm:$0xff] }
 0x310   :  { %v2750_v36 = vsel %vm2742_vm4, %v2733_v49, %v2749_v17  ;;  %v2753_v31 = vsel %vm2743_vm3, %v2739_v44, 1326507024  ;;  %v5898_v59 = vand.u32 3, %v15737_v55  ;;  %v15835_v21 = vmul.f32 0.017453277, %v70_v62 }
 0x311   :  { %v15824_v53 = vsub.s32 %v2664_v2, %v2667_v20  ;;  %v2751_v33 = vsel %vm2741_vm8, %v2748_v14, %v2750_v36  ;;  %v2754_v46 = vsel %vm2742_vm4, %v2736_v61, %v2753_v31  ;;  %v2594_v2 = vand.u32 3, %v15759_v63 }
 0x312   :  { %v2747_v49 = vsel %vm2741_vm8, %v2744_v28, %v2746_v24  ;;  %v2755_v45 = vsel %vm2741_vm8, %v2752_v42, %v2754_v46  ;;  %v15848_v12 = vmul.u32.u64.low %v15763_v52, %v2751_v33  ;;  %v15849_v61 = vmul.u32.u64.high %v15763_v52, %v2751_v33, %v15848_v12 }
 0x313   :  { %v2670_v4 = vsub.s32 0, %v15824_v53  ;;  %v15844_v55 = vmul.u32.u64.low %v15763_v52, %v2755_v45  ;;  %v15845_v18 = vmul.u32.u64.high %v15763_v52, %v2755_v45, %v15844_v55  ;;  %vm2592_vm2 = vweird.f32 %v15438_v5 }
 0x314   :  { %v19206_v62 = vand.u32 2147483647, %v15835_v21  ;;  %vm5899_vm7 = vcmp.lt.s32.totalorder %v5898_v59, 2  ;;  %vm5900_vm1 = vcmp.eq.s32.totalorder %v5898_v59, 0  ;;  %vm2606_vm5 = vcmp.lt.s32.totalorder %v15611_v34, 0 }
 0x315   :  { %v11177_v63 = vmin.u32 %v2670_v4, %v15824_v53  ;;  %v2815_v39 = vand.u32 2139095040, %v15835_v21  ;;  %vm5903_vm9 = vcmp.eq.s32.totalorder %v5898_v59, 2  ;;  %v2690_v20 = vsub.s32 4, %v15803_v19 }
 0x316   :  { %v2763_v44 = vmul.u32 %v15763_v52, %v2747_v49  ;;  %vm2595_vm10 = vcmp.lt.s32.totalorder %v2594_v2, 2  ;;  %vm2765_vm11 = vc.u32 %v15845_v18, %v15848_v12  ;;  %v2766_v14 = vadd.s32 1, %v15849_v61 }
 0x317   :  { %v2672_v29 = vclz %v11177_v63  ;;  %v2816_v16 = vshrl.u32 %v2815_v39, 23  ;;  %vm2596_vm12 = vcmp.eq.s32.totalorder %v2594_v2, 0  ;;  %vm2599_vm13 = vcmp.eq.s32.totalorder %v2594_v2, 2 }
 0x318   :  { %v15868_v24 = vpack.c.bf16 %v6815_v7, %v6809_v15  ;;  %v2660_v36 = vadd.s32 %v15748_v0, %v15756_v1  ;;  %v2767_v52 = vsel %vm2765_vm11, %v2766_v14, %v15849_v61  ;;  %v2691_v46 = vsel %vm2606_vm5, %v2690_v20, %v15803_v19 }
 0x319   :  { %v12338_v13 = vpop.eup %12337  ;;  %v11178_v28 = vadd.s32 4294967294, %v2672_v29  ;;  %v11184_v31 = vadd.s32 4294967169, %v2816_v16  ;;  %v2768_v4 = vadd.s32 %v2767_v52, %v2763_v44  ;;  %vm15887_vm15 = vcmp.le.f32.partialorder %v2604_v37, 0.7853982 }
 0x31a   :  { %v12340_v17 = vpop.eup %12339  ;;  %v2600_v42 = vxor.u32 2147483648, %v12338_v13  ;;  %8960 = vmatprep.mubr.bf16.mxu0 %v15868_v24  ;;  %vm2710_vm4 = vcmp.lt.s32.totalorder %v15628_v54, 0  ;;  %v2764_v5 = vadd.s32 %v15848_v12, %v15845_v18  ;;  %vm15927_vm3 = vcmp.le.f32.partialorder %v2708_v40, 0.7853982 }
 0x31b   :  { %v2597_v33 = vxor.u32 2147483648, %v12340_v17  ;;  %vm11179_vm14 = vcmp.lt.s32.totalorder %v11178_v28, 0  ;;  %v2822_v63 = vadd.s32 1, %v11184_v31  ;;  %v2769_v29 = vadd.s32 536870912, %v2768_v4 }
 0x31c   :  { %v2601_v49 = vsel %vm2599_vm13, %v2600_v42, %v12340_v17  ;;  %v5905_v45 = vsel %vm5903_vm9, %v2600_v42, %v12340_v17  ;;  %v2675_v55 = vsel %vm11179_vm14, 0, %v11178_v28  ;;  %v2819_v17 = vand.u32 8388607, %v19206_v62 }
 0x31d   :  { %v2598_v39 = vsel %vm2596_vm12, %v12338_v13, %v2597_v33  ;;  %v5902_v0 = vsel %vm5900_vm1, %v12338_v13, %v2597_v33  ;;  %v2676_v1 = vsub.s32 32, %v2675_v55  ;;  %v2677_v61 = vshll.u32 %v15824_v53, %v2675_v55  ;;  %v71_v13 = vld [vmem:[%s19134_s0 + $0xd8] sm:$0xff] }
 0x31e   :  { %v2602_v15 = vsel %vm2595_vm10, %v2598_v39, %v2601_v49  ;;  %v5906_v7 = vsel %vm5899_vm7, %v5902_v0, %v5905_v45  ;;  %v2680_v19 = vsub.s32 4294967266, %v2675_v55  ;;  %vm2823_vm0 = vcmp.gt.s32.totalorder %v2822_v63, 0 }
 0x31f   :  { %v2603_v20 = vsel %vm2592_vm2, nan, %v2602_v15  ;;  %v2678_v14 = vshrl.u32 %v2660_v36, %v2676_v1  ;;  %v2693_v53 = vsel %vm15887_vm15, 0, %v2691_v46  ;;  %v2770_v59 = vshrl.u32 %v2769_v29, 30 }
 0x320   :  { %7330 = vperm.xlu1 %11924, %v2603_v20   ;;  %v2681_v16 = vadd.s32 127, %v2680_v19  ;;  %v2824_v2 = vsel %vm2823_vm0, %v2822_v63, 0  ;;  %v5907_v28 = vsel %vm2592_vm2, nan, %v5906_v7  ;;  %v15901_v33 = vmul.f32 0.017453277, %v71_v13 }
 0x321   :  { %v2679_v37 = vor.u32 %v2678_v14, %v2677_v61  ;;  %v2826_v42 = vand.u32 31, %v2824_v2  ;;  %v2771_v52 = vshll.u32 %v2770_v59, 30  ;;  %v15903_v45 = vadd.s32 3, %v2693_v53 }
 0x322   :  { %v2682_v36 = vshll.u32 %v2681_v16, 23  ;;  %v15909_v63 = vand.u32 3, %v2693_v53  ;;  %v2820_v39 = vor.u32 8388608, %v2819_v17  ;;  %v2794_v15 = vsub.s32 4, %v2770_v59 }
 0x323   :  { %v2827_v31 = vsub.s32 32, %v2826_v42  ;;  %v2686_v49 = vcvt.s32.f32 %v2679_v37  ;;  %v15905_v55 = vsub.s32 %v2768_v4, %v2771_v52  ;;  %v2829_v7 = vshll.u32 %v19377_v50, %v2826_v42 }
 0x324   :  { %9758 = vperm.xlu1 %11924, %v5907_v28   ;;  %v2683_v46 = vor.u32 4788187, %v2682_v36  ;;  %v2832_v29 = vshll.u32 %v19378_v8, %v2826_v42  ;;  %v2835_v20 = vshll.u32 %v19379_v56, %v2826_v42  ;;  %v2838_v16 = vshll.u32 %v19380_v9, %v2826_v42 }
 0x325   :  { %v2774_v61 = vsub.s32 0, %v15905_v55  ;;  %v2830_v19 = vshrl.u32 %v19378_v8, %v2827_v31  ;;  %v2833_v4 = vshrl.u32 %v19379_v56, %v2827_v31  ;;  %v2836_v14 = vshrl.u32 %v19380_v9, %v2827_v31 }
 0x326   :  { %v2684_v1 = vand.u32 2147483647, %v2683_v46  ;;  %v2825_v53 = vshrl.u32 %v2824_v2, 5  ;;  %v2839_v13 = vshrl.u32 %v19381_v41, %v2827_v31  ;;  %v15922_v28 = vshll.u32 %v2820_v39, 8 }
 0x327   :  { %v11181_v12 = vmin.u32 %v2774_v61, %v15905_v55  ;;  %v2919_v37 = vand.u32 2139095040, %v15901_v33  ;;  %v2795_v46 = vsel %vm2710_vm4, %v2794_v15, %v2770_v59  ;;  %v2831_v2 = vor.u32 %v2830_v19, %v2829_v7 }
 0x328   :  { %v2687_v18 = vmul.f32 %v2686_v49, %v2684_v1  ;;  %v2828_v49 = vshrl.u32 %v19377_v50, %v2827_v31  ;;  %v2834_v1 = vor.u32 %v2833_v4, %v2832_v29  ;;  %v2841_v39 = vshll.u32 %v19381_v41, %v2826_v42 }
 0x329   :  { %v2776_v52 = vclz %v11181_v12  ;;  %v2842_v61 = vshrl.u32 %v19395_v27, %v2827_v31  ;;  %v2837_v40 = vor.u32 %v2836_v14, %v2835_v20  ;;  %v2840_v48 = vor.u32 %v2839_v13, %v2838_v16 }
 0x32a   :  { %v2688_v17 = vxor.u32 2147483648, %v2687_v18  ;;  %vm2844_vm6 = vcmp.lt.s32.totalorder %v2825_v53, 1  ;;  %vm2847_vm8 = vcmp.lt.s32.totalorder %v2825_v53, 4  ;;  %vm2845_vm7 = vcmp.lt.s32.totalorder %v2825_v53, 2 }
 0x32b   :  { %v11182_v0 = vadd.s32 4294967294, %v2776_v52  ;;  %v2843_v60 = vor.u32 %v2842_v61, %v2841_v39  ;;  %v2849_v59 = vsel %vm2847_vm8, %v2837_v40, 2102212464  ;;  %vm2846_vm1 = vcmp.lt.s32.totalorder %v2825_v53, 3 }
 0x32c   :  { %v2689_v62 = vsel %vm2606_vm5, %v2688_v17, %v2687_v18  ;;  %v2848_v31 = vsel %vm2844_vm6, %v2828_v49, %v2831_v2  ;;  %v2852_v44 = vsel %vm2844_vm6, %v2831_v2, %v2834_v1  ;;  %v2853_v29 = vsel %vm2847_vm8, %v2840_v48, 920167782  ;;  %v6808_v49 = vld [vmem:[%s19135_s1 + $0x260] sm:$0xff] }
 0x32d   :  { %v2692_v12 = vsel %vm15887_vm15, %v15611_v34, %v2689_v62  ;;  %vm11183_vm2 = vcmp.lt.s32.totalorder %v11182_v0, 0  ;;  %v2850_v62 = vsel %vm2846_vm1, %v2834_v1, %v2849_v59  ;;  %v2856_v4 = vsel %vm2844_vm6, %v2834_v1, %v2837_v40 }
 0x32e   :  { %12341 = vcosq.f32 %v2692_v12  ;;  %v2779_v42 = vsel %vm11183_vm2, 0, %v11182_v0  ;;  %v2857_v20 = vsel %vm2847_vm8, %v2843_v60, 1326507024  ;;  %v2854_v16 = vsel %vm2846_vm1, %v2837_v40, %v2853_v29  ;;  %v6814_v60 = vld [vmem:[%s19135_s1 + $0x290] sm:$0xff] }
 0x32f   :  { %12343 = vsinq.f32 %v2692_v12  ;;  %v2780_v15 = vsub.s32 32, %v2779_v42  ;;  %v2781_v7 = vshll.u32 %v15905_v55, %v2779_v42  ;;  %v2784_v19 = vsub.s32 4294967266, %v2779_v42 }
 0x330   :  { %v2858_v0 = vsel %vm2846_vm1, %v2840_v48, %v2857_v20  ;;  %v2797_v13 = vsel %vm15927_vm3, 0, %v2795_v46  ;;  %v2855_v17 = vsel %vm2845_vm7, %v2852_v44, %v2854_v16  ;;  %v2920_v52 = vshrl.u32 %v2919_v37, 23  ;;  %v6821_v46 = vld [vmem:[%s19135_s1 + $0x2c8] sm:$0xff]  ;;  %v6827_v37 = vld [vmem:[%s19135_s1 + $0x2f8] sm:$0xff] }
 0x331   :  { %v2782_v18 = vshrl.u32 %v2764_v5, %v2780_v15  ;;  %v2785_v14 = vadd.s32 127, %v2784_v19  ;;  %v2859_v55 = vsel %vm2845_vm7, %v2856_v4, %v2858_v0  ;;  %v2851_v39 = vsel %vm2845_vm7, %v2848_v31, %v2850_v62 }
 0x332   :  { %v15959_v48 = vmul.u32.u64.low %v15922_v28, %v2859_v55  ;;  %v15960_v1 = vmul.u32.u64.high %v15922_v28, %v2859_v55, %v15959_v48  ;;  %v15970_v61 = vmul.u32.u64.low %v15922_v28, %v2855_v17  ;;  %v15971_v40 = vmul.u32.u64.high %v15922_v28, %v2855_v17, %v15970_v61 }
 0x333   :  { %v2783_v5 = vor.u32 %v2782_v18, %v2781_v7  ;;  %v2786_v2 = vshll.u32 %v2785_v14, 23  ;;  %v11188_v12 = vadd.s32 4294967169, %v2920_v52  ;;  %vm2696_vm5 = vweird.f32 %v15611_v34  ;;  %v72_v18 = vld [vmem:[%s19134_s0 + $0xe0] sm:$0xff] }
 0x334   :  { %v2698_v59 = vand.u32 3, %v15903_v45  ;;  %v15976_v7 = vpack.c.bf16 %v6814_v60, %v6808_v49  ;;  %vm6002_vm9 = vcmp.lt.s32.totalorder %v15909_v63, 2  ;;  %vm6003_vm10 = vcmp.eq.s32.totalorder %v15909_v63, 0 }
 0x335   :  { %v2787_v42 = vor.u32 4788187, %v2786_v2  ;;  %v2790_v15 = vcvt.s32.f32 %v2783_v5  ;;  %v2926_v53 = vadd.s32 1, %v11188_v12  ;;  %v15980_v31 = vpack.c.bf16 %v6827_v37, %v6821_v46 }
 0x336   :  { %v2801_v44 = vadd.s32 3, %v2797_v13  ;;  %v2867_v62 = vmul.u32 %v15922_v28, %v2851_v39  ;;  %vm2869_vm11 = vc.u32 %v15960_v1, %v15970_v61  ;;  %8961 = vmatmul.mubr.bf16.gmra.mxu0 %v15976_v7  ;;  %vm6006_vm12 = vcmp.eq.s32.totalorder %v15909_v63, 2 }
 0x337   :  { %19480 = vst [vmem:[#allocation22_spill] sm:$0xff] %v15980_v31  ;;  %v2788_v19 = vand.u32 2147483647, %v2787_v42  ;;  %v2870_v45 = vadd.s32 1, %v15971_v40  ;;  %v19481_v29 = vand.u32 2147483647, %v15901_v33  ;;  %8970 = vmatprep.mubr.bf16.mxu0 %v15980_v31 }
 0x338   :  { %vm2927_vm13 = vcmp.gt.s32.totalorder %v2926_v53, 0  ;;  %vm2699_vm14 = vcmp.lt.s32.totalorder %v2698_v59, 2  ;;  %vm2700_vm15 = vcmp.eq.s32.totalorder %v2698_v59, 0  ;;  %vm2703_vm0 = vcmp.eq.s32.totalorder %v2698_v59, 2 }
 0x339   :  { %v15990_v4 = vand.u32 8388607, %v19481_v29  ;;  %v2791_v20 = vmul.f32 %v2790_v15, %v2788_v19  ;;  %v2928_v28 = vsel %vm2927_vm13, %v2926_v53, 0  ;;  %v15996_v16 = vand.u32 3, %v2797_v13  ;;  %v12159_v29 = vld [vmem:[#allocation2 + $0x208] ss:$16 sps:$4 sm:$0xff]  }
 0x33a   :  { %v2871_v0 = vsel %vm2869_vm11, %v2870_v45, %v15971_v40  ;;  %v2930_v17 = vand.u32 31, %v2928_v28  ;;  %v15999_v60 = vand.u32 3, %v2801_v44  ;;  %v16002_v37 = vmul.f32 0.017453277, %v72_v18 }
 0x33b   :  { %v12342_v14 = vpop.eup %12341  ;;  %v2792_v49 = vxor.u32 2147483648, %v2791_v20  ;;  %v2872_v5 = vadd.s32 %v2871_v0, %v2867_v62  ;;  %v2924_v48 = vor.u32 8388608, %v15990_v4  ;;  %v12161_v4 = vld [vmem:[#allocation2 + $0x20c] ss:$16 sps:$4 sm:$0xff]   ;;  %vm2814_vm6 = vcmp.lt.s32.totalorder %v15835_v21, 0 }
 0x33c   :  { %v12344_v55 = vpop.eup %12343  ;;  %v2704_v52 = vxor.u32 2147483648, %v12342_v14  ;;  %v2931_v46 = vsub.s32 32, %v2930_v17  ;;  %v2933_v19 = vshll.u32 %v19377_v50, %v2930_v17  ;;  %v2936_v18 = vshll.u32 %v19378_v8, %v2930_v17  ;;  %v12164_v0 = vld [vmem:[#allocation2 + $0x40c] ss:$16 sps:$4 sm:$0xff]   ;;  %9268 = vmatprep.subr.bf16.mxu0 %v12161_v4 }
 0x33d   :  { %v2701_v2 = vxor.u32 2147483648, %v12344_v55  ;;  %v2793_v13 = vsel %vm2710_vm4, %v2792_v49, %v2791_v20  ;;  %v2873_v12 = vadd.s32 536870912, %v2872_v5  ;;  %9269 = vmatpush1.bf16.msra.mxu0 %v12159_v29  ;;  %9461 = vmatprep.subr.bf16.mxu1 %v12164_v0  ;;  %vm6106_vm4 = vcmp.eq.s32.totalorder %v15996_v16, 0 }
 0x33e   :  { %v2705_v39 = vsel %vm2703_vm0, %v2704_v52, %v12344_v55  ;;  %v6008_v40 = vsel %vm6006_vm12, %v2704_v52, %v12344_v55  ;;  %v2796_v15 = vsel %vm15927_vm3, %v15628_v54, %v2793_v13  ;;  %v2934_v36 = vshrl.u32 %v19378_v8, %v2931_v46 }
 0x33f   :  { %v2702_v42 = vsel %vm2700_vm15, %v12342_v14, %v2701_v2  ;;  %v6005_v53 = vsel %vm6003_vm10, %v12342_v14, %v2701_v2  ;;  %12345 = vcosq.f32 %v2796_v15  ;;  %v16018_v45 = vshrl.u32 %v2873_v12, 30  ;;  %v12162_v14 = vld [vmem:[#allocation2 + $0x408] ss:$16 sps:$4 sm:$0xff]  }
 0x340   :  { %v2706_v44 = vsel %vm2699_vm14, %v2702_v42, %v2705_v39  ;;  %v6009_v62 = vsel %vm6002_vm9, %v6005_v53, %v6008_v40  ;;  %12347 = vsinq.f32 %v2796_v15  ;;  %v2929_v55 = vshrl.u32 %v2928_v28, 5  ;;  %9462 = vmatpush1.bf16.msra.mxu1 %v12162_v14 }
 0x341   :  { %v2707_v20 = vsel %vm2696_vm5, nan, %v2706_v44  ;;  %v2875_v59 = vshll.u32 %v16018_v45, 30  ;;  %v2937_v63 = vshrl.u32 %v19379_v56, %v2931_v46  ;;  %v2939_v52 = vshll.u32 %v19379_v56, %v2930_v17 }
 0x342   :  { %7335 = vperm.xlu0 %11923, %v2707_v20   ;;  %v6010_v49 = vsel %vm2696_vm5, nan, %v6009_v62  ;;  %v2940_v2 = vshrl.u32 %v19380_v9, %v2931_v46  ;;  %v2942_v39 = vshll.u32 %v19380_v9, %v2930_v17  ;;  %v2943_v13 = vshrl.u32 %v19381_v41, %v2931_v46 }
 0x343   :  { %v16032_v40 = vsub.s32 %v2872_v5, %v2875_v59  ;;  %v2935_v12 = vor.u32 %v2934_v36, %v2933_v19  ;;  %v2945_v28 = vshll.u32 %v19381_v41, %v2930_v17  ;;  %v2938_v42 = vor.u32 %v2937_v63, %v2936_v18 }
 0x344   :  { %v2941_v15 = vor.u32 %v2940_v2, %v2939_v52  ;;  %v2944_v53 = vor.u32 %v2943_v13, %v2942_v39  ;;  %v2946_v44 = vshrl.u32 %v19395_v27, %v2931_v46  ;;  %vm6109_vm3 = vcmp.eq.s32.totalorder %v15996_v16, 2 }
 0x345   :  { %v2878_v34 = vsub.s32 0, %v16032_v40  ;;  %vm2948_vm8 = vcmp.lt.s32.totalorder %v2929_v55, 1  ;;  %v3023_v5 = vand.u32 2139095040, %v16002_v37  ;;  %vm2803_vm2 = vcmp.lt.s32.totalorder %v15999_v60, 2 }
 0x346   :  { %9763 = vperm.xlu0 %11923, %v6010_v49   ;;  %vm6105_vm7 = vcmp.lt.s32.totalorder %v15996_v16, 2  ;;  %v2932_v17 = vshrl.u32 %v19377_v50, %v2931_v46  ;;  %v2947_v19 = vor.u32 %v2946_v44, %v2945_v28  ;;  %vm2951_vm1 = vcmp.lt.s32.totalorder %v2929_v55, 4 }
 0x347   :  { %v2964_v62 = vshll.u32 %v2924_v48, 8  ;;  %vm2800_vm5 = vweird.f32 %v15628_v54  ;;  %v11185_v29 = vmin.u32 %v2878_v34, %v16032_v40  ;;  %vm2949_vm9 = vcmp.lt.s32.totalorder %v2929_v55, 2 }
 0x348   :  { %vm2950_vm10 = vcmp.lt.s32.totalorder %v2929_v55, 3  ;;  %v2953_v4 = vsel %vm2951_vm1, %v2941_v15, 2102212464  ;;  %v2956_v20 = vsel %vm2948_vm8, %v2935_v12, %v2938_v42  ;;  %v2957_v36 = vsel %vm2951_vm1, %v2944_v53, 920167782 }
 0x349   :  { %v2960_v18 = vsel %vm2948_vm8, %v2938_v42, %v2941_v15  ;;  %v2961_v14 = vsel %vm2951_vm1, %v2947_v19, 1326507024  ;;  %vm2804_vm11 = vcmp.eq.s32.totalorder %v15999_v60, 0  ;;  %v19482_v46 = vand.u32 2147483647, %v15835_v21 }
 0x34a   :  { %v2880_v48 = vclz %v11185_v29  ;;  %v2898_v59 = vsub.s32 4, %v16018_v45  ;;  %v3024_v63 = vshrl.u32 %v3023_v5, 23  ;;  %v2952_v52 = vsel %vm2948_vm8, %v2932_v17, %v2935_v12 }
 0x34b   :  { %vm16051_vm12 = vcmp.le.f32.partialorder %v19482_v46, 0.7853982  ;;  %v2954_v49 = vsel %vm2950_vm10, %v2938_v42, %v2953_v4  ;;  %v2958_v2 = vsel %vm2950_vm10, %v2941_v15, %v2957_v36  ;;  %v2962_v39 = vsel %vm2950_vm10, %v2944_v53, %v2961_v14 }
 0x34c   :  { %vm2807_vm13 = vcmp.eq.s32.totalorder %v15999_v60, 2  ;;  %v11186_v13 = vadd.s32 4294967294, %v2880_v48  ;;  %v2959_v28 = vsel %vm2949_vm9, %v2956_v20, %v2958_v2  ;;  %v2963_v44 = vsel %vm2949_vm9, %v2960_v18, %v2962_v39  ;;  %v12346_v34 = vpop.eup %12345  ;;  %v73_v60 = vld [vmem:[%s19134_s0 + $0xe8] sm:$0xff] }
 0x34d   :  { %v16060_v19 = vmul.u32.u64.low %v2964_v62, %v2963_v44  ;;  %v16061_v46 = vmul.u32.u64.high %v2964_v62, %v2963_v44, %v16060_v19  ;;  %v16063_v29 = vmul.u32.u64.low %v2964_v62, %v2959_v28  ;;  %v16064_v31 = vmul.u32.u64.high %v2964_v62, %v2959_v28, %v16063_v29  ;;  %v12348_v5 = vpop.eup %12347 }
 0x34e   :  { %v2808_v12 = vxor.u32 2147483648, %v12346_v34  ;;  %v2868_v42 = vadd.s32 %v15970_v61, %v15960_v1  ;;  %vm11187_vm14 = vcmp.lt.s32.totalorder %v11186_v13, 0  ;;  %v2955_v15 = vsel %vm2949_vm9, %v2952_v52, %v2954_v49 }
 0x34f   :  { %v2805_v53 = vxor.u32 2147483648, %v12348_v5  ;;  %v2883_v17 = vsel %vm11187_vm14, 0, %v11186_v13  ;;  %v2899_v4 = vsel %vm2814_vm6, %v2898_v59, %v16018_v45  ;;  %v11192_v20 = vadd.s32 4294967169, %v3024_v63 }
 0x350   :  { %v2809_v36 = vsel %vm2807_vm13, %v2808_v12, %v12348_v5  ;;  %v6111_v18 = vsel %vm6109_vm3, %v2808_v12, %v12348_v5  ;;  %v2884_v14 = vsub.s32 32, %v2883_v17  ;;  %v2885_v48 = vshll.u32 %v16032_v40, %v2883_v17 }
 0x351   :  { %v2806_v1 = vsel %vm2804_vm11, %v12346_v34, %v2805_v53  ;;  %v6108_v61 = vsel %vm6106_vm4, %v12346_v34, %v2805_v53  ;;  %v2888_v55 = vsub.s32 4294967266, %v2883_v17  ;;  %v2971_v52 = vmul.u32 %v2964_v62, %v2955_v15 }
 0x352   :  { %v2810_v45 = vsel %vm2803_vm2, %v2806_v1, %v2809_v36  ;;  %v6112_v59 = vsel %vm6105_vm7, %v6108_v61, %v6111_v18  ;;  %v2886_v63 = vshrl.u32 %v2868_v42, %v2884_v14  ;;  %vm2973_vm15 = vc.u32 %v16061_v46, %v16063_v29 }
 0x353   :  { %v2811_v40 = vsel %vm2800_vm5, nan, %v2810_v45  ;;  %v2889_v49 = vadd.s32 127, %v2888_v55  ;;  %v2901_v2 = vsel %vm16051_vm12, 0, %v2899_v4  ;;  %v2974_v39 = vadd.s32 1, %v16064_v31 }
 0x354   :  { %7340 = vperm.xlu1 %11924, %v2811_v40   ;;  %v2887_v16 = vor.u32 %v2886_v63, %v2885_v48  ;;  %v3030_v62 = vadd.s32 1, %v11192_v20  ;;  %v6113_v13 = vsel %vm2800_vm5, nan, %v6112_v59  ;;  %v2905_v34 = vadd.s32 3, %v2901_v2 }
 0x355   :  { %v2890_v28 = vshll.u32 %v2889_v49, 23  ;;  %v2975_v44 = vsel %vm2973_vm15, %v2974_v39, %v16064_v31  ;;  %v16099_v5 = vmul.f32 0.017453277, %v73_v60  ;;  %v19211_v15 = vand.u32 2147483647, %v16002_v37 }
 0x356   :  { %v2976_v19 = vadd.s32 %v2975_v44, %v2971_v52  ;;  %vm3031_vm0 = vcmp.gt.s32.totalorder %v3030_v62, 0  ;;  %v2894_v42 = vcvt.s32.f32 %v2887_v16  ;;  %v16102_v36 = vand.u32 3, %v2905_v34 }
 0x357   :  { %v2891_v12 = vor.u32 4788187, %v2890_v28  ;;  %v3032_v53 = vsel %vm3031_vm0, %v3030_v62, 0  ;;  %v16104_v31 = vand.u32 3, %v2901_v2  ;;  %v3027_v48 = vand.u32 8388607, %v19211_v15 }
 0x358   :  { %9768 = vperm.xlu1 %11924, %v6113_v13   ;;  %v2977_v17 = vadd.s32 536870912, %v2976_v19  ;;  %v3034_v4 = vand.u32 31, %v3032_v53  ;;  %v3127_v1 = vand.u32 2139095040, %v16099_v5  ;;  %v3033_v39 = vshrl.u32 %v3032_v53, 5  ;;  %v12167_v15 = vld [vmem:[#allocation2 + $0x3ec] ss:$16 sps:$4 sm:$0xff]  }
 0x359   :  { %v2892_v20 = vand.u32 2147483647, %v2891_v12  ;;  %vm2918_vm4 = vcmp.lt.s32.totalorder %v15901_v33, 0  ;;  %v3028_v12 = vor.u32 8388608, %v3027_v48  ;;  %v2972_v48 = vadd.s32 %v16063_v29, %v16061_v46  ;;  %9270 = vmatprep.subr.bf16.mxu0 %v12167_v15 }
 0x35a   :  { %v2978_v54 = vshrl.u32 %v2977_v17, 30  ;;  %v3035_v18 = vsub.s32 32, %v3034_v4  ;;  %v3037_v55 = vshll.u32 %v19377_v50, %v3034_v4  ;;  %v3040_v52 = vshll.u32 %v19378_v8, %v3034_v4 }
 0x35b   :  { %v2895_v14 = vmul.f32 %v2894_v42, %v2892_v20  ;;  %v3043_v45 = vshll.u32 %v19379_v56, %v3034_v4  ;;  %v3046_v60 = vshll.u32 %v19380_v9, %v3034_v4  ;;  %v3049_v13 = vshll.u32 %v19381_v41, %v3034_v4  ;;  %v74_v4 = vld [vmem:[%s19134_s0 + $0xf0] sm:$0xff] }
 0x35c   :  { %v2979_v61 = vshll.u32 %v2978_v54, 30  ;;  %v3038_v63 = vshrl.u32 %v19378_v8, %v3035_v18  ;;  %v3041_v40 = vshrl.u32 %v19379_v56, %v3035_v18  ;;  %v3044_v49 = vshrl.u32 %v19380_v9, %v3035_v18 }
 0x35d   :  { %v2896_v59 = vxor.u32 2147483648, %v2895_v14  ;;  %v3047_v16 = vshrl.u32 %v19381_v41, %v3035_v18  ;;  %v3050_v28 = vshrl.u32 %v19395_v27, %v3035_v18  ;;  %v3128_v44 = vshrl.u32 %v3127_v1, 23 }
 0x35e   :  { %v16115_v2 = vsub.s32 %v2976_v19, %v2979_v61  ;;  %v3036_v42 = vshrl.u32 %v19377_v50, %v3035_v18  ;;  %v3039_v53 = vor.u32 %v3038_v63, %v3037_v55  ;;  %v3042_v17 = vor.u32 %v3041_v40, %v3040_v52 }
 0x35f   :  { %v2897_v62 = vsel %vm2814_vm6, %v2896_v59, %v2895_v14  ;;  %v3045_v20 = vor.u32 %v3044_v49, %v3043_v45  ;;  %v19485_v14 = vand.u32 2147483647, %v15901_v33  ;;  %v3048_v0 = vor.u32 %v3047_v16, %v3046_v60 }
 0x360   :  { %v2900_v34 = vsel %vm16051_vm12, %v15835_v21, %v2897_v62  ;;  %v2982_v19 = vsub.s32 0, %v16115_v2  ;;  %vm3052_vm6 = vcmp.lt.s32.totalorder %v3033_v39, 1  ;;  %v3051_v61 = vor.u32 %v3050_v28, %v3049_v13 }
 0x361   :  { %12349 = vcosq.f32 %v2900_v34  ;;  %vm16131_vm3 = vcmp.le.f32.partialorder %v19485_v14, 0.7853982  ;;  %v19210_v18 = vand.u32 2147483647, %v16099_v5  ;;  %v11196_v55 = vadd.s32 4294967169, %v3128_v44 }
 0x362   :  { %12351 = vsinq.f32 %v2900_v34  ;;  %v11189_v1 = vmin.u32 %v2982_v19, %v16115_v2  ;;  %v3002_v45 = vsub.s32 4, %v2978_v54  ;;  %vm3054_vm8 = vcmp.lt.s32.totalorder %v3033_v39, 3 }
 0x363   :  { %v16139_v59 = vshll.u32 %v3028_v12, 8  ;;  %vm3053_vm2 = vcmp.lt.s32.totalorder %v3033_v39, 2  ;;  %vm3055_vm7 = vcmp.lt.s32.totalorder %v3033_v39, 4  ;;  %v3056_v63 = vsel %vm3052_vm6, %v3036_v42, %v3039_v53 }
 0x364   :  { %v2984_v52 = vclz %v11189_v1  ;;  %v3060_v40 = vsel %vm3052_vm6, %v3039_v53, %v3042_v17  ;;  %vm2911_vm1 = vcmp.eq.s32.totalorder %v16102_v36, 2  ;;  %v3057_v60 = vsel %vm3055_vm7, %v3045_v20, 2102212464 }
 0x365   :  { %v3061_v46 = vsel %vm3055_vm7, %v3048_v0, 920167782  ;;  %v3064_v29 = vsel %vm3052_vm6, %v3042_v17, %v3045_v20  ;;  %vm2908_vm5 = vcmp.eq.s32.totalorder %v16102_v36, 0  ;;  %vm6209_vm9 = vcmp.eq.s32.totalorder %v16104_v31, 0 }
 0x366   :  { %v11190_v49 = vadd.s32 4294967294, %v2984_v52  ;;  %v3058_v16 = vsel %vm3054_vm8, %v3042_v17, %v3057_v60  ;;  %v3062_v62 = vsel %vm3054_vm8, %v3045_v20, %v3061_v46  ;;  %v3065_v13 = vsel %vm3055_vm7, %v3051_v61, 1326507024  ;;  %v6826_v20 = vld [vmem:[%s19135_s1 + $0x2f0] sm:$0xff] }
 0x367   :  { %v3134_v28 = vadd.s32 1, %v11196_v55  ;;  %vm2907_vm10 = vcmp.lt.s32.totalorder %v16102_v36, 2  ;;  %v3003_v44 = vsel %vm2918_vm4, %v3002_v45, %v2978_v54  ;;  %vm6208_vm12 = vcmp.lt.s32.totalorder %v16104_v31, 2  ;;  %v6820_v54 = vld [vmem:[%s19135_s1 + $0x2c0] sm:$0xff] }
 0x368   :  { %vm11191_vm11 = vcmp.lt.s32.totalorder %v11190_v49, 0  ;;  %v3063_v34 = vsel %vm3053_vm2, %v3060_v40, %v3062_v62  ;;  %v3066_v19 = vsel %vm3054_vm8, %v3048_v0, %v3065_v13  ;;  %vm2904_vm13 = vweird.f32 %v15835_v21  ;;  %v6833_v40 = vld [vmem:[%s19135_s1 + $0x328] sm:$0xff] }
 0x369   :  { %v2987_v12 = vsel %vm11191_vm11, 0, %v11190_v49  ;;  %v3067_v42 = vsel %vm3053_vm2, %v3064_v29, %v3066_v19  ;;  %v16158_v53 = vmul.u32.u64.low %v16139_v59, %v3063_v34  ;;  %v16159_v17 = vmul.u32.u64.high %v16139_v59, %v3063_v34, %v16158_v53  ;;  %v6839_v49 = vld [vmem:[%s19135_s1 + $0x358] sm:$0xff] }
 0x36a   :  { %v2988_v14 = vsub.s32 32, %v2987_v12  ;;  %v2989_v1 = vshll.u32 %v16115_v2, %v2987_v12  ;;  %v2992_v0 = vsub.s32 4294967266, %v2987_v12  ;;  %v3059_v61 = vsel %vm3053_vm2, %v3056_v63, %v3058_v16 }
 0x36b   :  { %v3005_v55 = vsel %vm16131_vm3, 0, %v3003_v44  ;;  %v16173_v52 = vmul.u32.u64.low %v16139_v59, %v3067_v42  ;;  %v16174_v45 = vmul.u32.u64.high %v16139_v59, %v3067_v42, %v16173_v52  ;;  %vm3135_vm14 = vcmp.gt.s32.totalorder %v3134_v28, 0 }
 0x36c   :  { %v2990_v2 = vshrl.u32 %v2972_v48, %v2988_v14  ;;  %v2993_v60 = vadd.s32 127, %v2992_v0  ;;  %v3136_v39 = vsel %vm3135_vm14, %v3134_v28, 0  ;;  %v16182_v63 = vpack.c.bf16 %v6826_v20, %v6820_v54 }
 0x36d   :  { %v3075_v46 = vmul.u32 %v16139_v59, %v3059_v61  ;;  %v3078_v29 = vadd.s32 1, %v16159_v17  ;;  %v3131_v16 = vand.u32 8388607, %v19210_v18  ;;  %v3138_v62 = vand.u32 31, %v3136_v39  ;;  %v16238_v18 = vpop.f32.mrf.mxu1 }
 0x36e   :  { %19488 = vst [vmem:[#allocation24_spill] sm:$0xff] %v16182_v63  ;;  %v12350_v13 = vpop.eup %12349  ;;  %v2991_v44 = vor.u32 %v2990_v2, %v2989_v1  ;;  %v2994_v34 = vshll.u32 %v2993_v60, 23  ;;  %vm6212_vm15 = vcmp.eq.s32.totalorder %v16104_v31, 2  ;;  %8971 = vmatmul.mubr.bf16.gmra.mxu0 %v16182_v63  ;;  %v16190_v48 = vpack.c.bf16 %v6839_v49, %v6833_v40  ;;  %19492 = vst [vmem:[#allocation32_spill] sm:$0xff] %v16238_v18 }
 0x36f   :  { %v12352_v28 = vpop.eup %12351  ;;  %v2912_v19 = vxor.u32 2147483648, %v12350_v13  ;;  %v16192_v12 = vadd.s32 3, %v3005_v55  ;;  %vm3077_vm0 = vc.u32 %v16174_v45, %v16158_v53  ;;  %v3139_v59 = vsub.s32 32, %v3138_v62 }
 0x370   :  { %19489 = vst [vmem:[#allocation26_spill] sm:$0xff] %v16190_v48  ;;  %v2909_v42 = vxor.u32 2147483648, %v12352_v28  ;;  %v2995_v54 = vor.u32 4788187, %v2994_v34  ;;  %v2998_v20 = vcvt.s32.f32 %v2991_v44  ;;  %v3079_v14 = vsel %vm3077_vm0, %v3078_v29, %v16159_v17  ;;  %8980 = vmatprep.mubr.bf16.mxu0 %v16190_v48  ;;  %v12170_v48 = vld [vmem:[#allocation2 + $0x5ec] ss:$16 sps:$4 sm:$0xff]  }
 0x371   :  { %v2913_v1 = vsel %vm2911_vm1, %v2912_v19, %v12352_v28  ;;  %v6214_v0 = vsel %vm6212_vm15, %v2912_v19, %v12352_v28  ;;  %v3080_v61 = vadd.s32 %v3079_v14, %v3075_v46  ;;  %v3132_v52 = vor.u32 8388608, %v3131_v16  ;;  %v16211_v46 = vpop.permute.xlu0 %7215  ;;  %9463 = vmatprep.subr.bf16.mxu1 %v12170_v48 }
 0x372   :  { %v2910_v40 = vsel %vm2908_vm5, %v12350_v13, %v2909_v42  ;;  %v2996_v49 = vand.u32 2147483647, %v2995_v54  ;;  %v6211_v2 = vsel %vm6209_vm9, %v12350_v13, %v2909_v42  ;;  %v16204_v60 = vshrl.u32 %v3136_v39, 5  ;;  %19490 = vst [vmem:[#allocation28_spill] sm:$0xff] %v16211_v46  ;;  %v12168_v46 = vld [vmem:[#allocation2 + $0x5e8] ss:$16 sps:$4 sm:$0xff]  }
 0x373   :  { %v2914_v17 = vsel %vm2907_vm10, %v2910_v40, %v2913_v1  ;;  %v6215_v29 = vsel %vm6208_vm12, %v6211_v2, %v6214_v0  ;;  %v3081_v44 = vadd.s32 536870912, %v3080_v61  ;;  %v3141_v34 = vshll.u32 %v19377_v50, %v3138_v62  ;;  %9464 = vmatpush2.bf16.msra.mxu1 %v12168_v46 }
 0x374   :  { %v2915_v16 = vsel %vm2904_vm13, nan, %v2914_v17  ;;  %v2999_v28 = vmul.f32 %v2998_v20, %v2996_v49  ;;  %v6216_v13 = vsel %vm2904_vm13, nan, %v6215_v29  ;;  %v3142_v39 = vshrl.u32 %v19378_v8, %v3139_v59 }
 0x375   :  { %7345 = vperm.xlu0 %11923, %v2915_v16   ;;  %v16218_v36 = vshrl.u32 %v3081_v44, 30  ;;  %v3144_v31 = vshll.u32 %v19378_v8, %v3138_v62  ;;  %v3145_v19 = vshrl.u32 %v19379_v56, %v3139_v59  ;;  %v3147_v42 = vshll.u32 %v19379_v56, %v3138_v62  ;;  %v16236_v16 = vpop.f32.mrf.mxu0 }
 0x376   :  { %v3000_v54 = vxor.u32 2147483648, %v2999_v28  ;;  %v3148_v14 = vshrl.u32 %v19380_v9, %v3139_v59  ;;  %v3150_v1 = vshll.u32 %v19380_v9, %v3138_v62  ;;  %v3151_v20 = vshrl.u32 %v19381_v41, %v3139_v59  ;;  %19491 = vst [vmem:[#allocation30_spill] sm:$0xff] %v16236_v16 }
 0x377   :  { %v16226_v21 = vand.u32 3, %v3005_v55  ;;  %v3083_v0 = vshll.u32 %v16218_v36, 30  ;;  %v3153_v40 = vshll.u32 %v19381_v41, %v3138_v62  ;;  %v16230_v49 = vshll.u32 %v3132_v52, 8  ;;  %v12165_v55 = vld [vmem:[#allocation2 + $0x3e8] ss:$16 sps:$4 sm:$0xff]  }
 0x378   :  { %v3001_v2 = vsel %vm2918_vm4, %v3000_v54, %v2999_v28  ;;  %v3140_v17 = vshrl.u32 %v19377_v50, %v3139_v59  ;;  %v3143_v29 = vor.u32 %v3142_v39, %v3141_v34  ;;  %v3154_v44 = vshrl.u32 %v19395_v27, %v3139_v59  ;;  %v16245_v34 = vpop.permute.xlu1 %9643  ;;  %v16247_v59 = vpop.permute.xlu0 %7220  ;;  %9271 = vmatpush2.bf16.msra.mxu0 %v12165_v55 }
 0x379   :  { %v3004_v62 = vsel %vm16131_vm3, %v15901_v33, %v3001_v2  ;;  %9773 = vperm.xlu0 %11923, %v6216_v13   ;;  %v16243_v52 = vsub.s32 %v3080_v61, %v3083_v0  ;;  %v3146_v28 = vor.u32 %v3145_v19, %v3144_v31  ;;  %v3152_v54 = vor.u32 %v3151_v20, %v3150_v1  ;;  %v16253_v13 = vpop.f32.mrf.mxu0  ;;  %v16255_v61 = vpop.f32.mrf.mxu1  ;;  %v12171_v19 = vld [vmem:[#allocation2 + $0x3c8] ss:$16 sps:$4 sm:$0xff]   ;;  %v12176_v0 = vld [vmem:[#allocation2 + $0x5cc] ss:$16 sps:$4 sm:$0xff]  }
 0x37a   :  { %19493 = vst [vmem:[#allocation34_spill] sm:$0xff] %v16245_v34  ;;  %19494 = vst [vmem:[#allocation36_spill] sm:$0xff] %v16247_v59  ;;  %12353 = vcosq.f32 %v3004_v62  ;;  %v3149_v39 = vor.u32 %v3148_v14, %v3147_v42  ;;  %v3155_v18 = vor.u32 %v3154_v44, %v3153_v40  ;;  %vm3156_vm4 = vcmp.lt.s32.totalorder %v16204_v60, 1  ;;  %v12173_v42 = vld [vmem:[#allocation2 + $0x3cc] ss:$16 sps:$4 sm:$0xff]   ;;  %9465 = vmatprep.subr.bf16.mxu1 %v12176_v0 }
 0x37b   :  { %19495 = vst [vmem:[#allocation48_spill] sm:$0xff] %v16253_v13  ;;  %19496 = vst [vmem:[#allocation49_spill] sm:$0xff] %v16255_v61  ;;  %12355 = vsinq.f32 %v3004_v62  ;;  %vm3022_vm3 = vcmp.lt.s32.totalorder %v16002_v37, 0  ;;  %v3086_v31 = vsub.s32 0, %v16243_v52  ;;  %vm3158_vm6 = vcmp.lt.s32.totalorder %v16204_v60, 3  ;;  %v16264_v14 = vpop.f32.mrf.mxu0  ;;  %v16266_v1 = vpop.f32.mrf.mxu1  ;;  %9272 = vmatprep.subr.bf16.mxu0 %v12173_v42 }
 0x37c   :  { %vm3157_vm8 = vcmp.lt.s32.totalorder %v16204_v60, 2  ;;  %vm3159_vm2 = vcmp.lt.s32.totalorder %v16204_v60, 4  ;;  %v3160_v15 = vsel %vm3156_vm4, %v3140_v17, %v3143_v29  ;;  %19497 = vst [vmem:[#allocation50_spill] sm:$0xff] %v16264_v14  ;;  %19498 = vst [vmem:[#allocation51_spill] sm:$0xff] %v16266_v1  ;;  %v12174_v20 = vld [vmem:[#allocation2 + $0x5c8] ss:$16 sps:$4 sm:$0xff]   ;;  %v3164_v2 = vsel %vm3156_vm4, %v3143_v29, %v3146_v28  ;;  %v16275_v55 = vpop.permute.xlu1 %9648  ;;  %v16277_v46 = vpop.permute.xlu0 %7225  ;;  %9273 = vmatpush2.bf16.msra.mxu0 %v12171_v19 }
 0x37d   :  { %v11193_v40 = vmin.u32 %v3086_v31, %v16243_v52  ;;  %v3161_v48 = vsel %vm3159_vm2, %v3149_v39, 2102212464  ;;  %v3165_v44 = vsel %vm3159_vm2, %v3152_v54, 920167782  ;;  %19499 = vst [vmem:[#allocation52_spill] sm:$0xff] %v16275_v55  ;;  %19500 = vst [vmem:[#allocation53_spill] sm:$0xff] %v16277_v46  ;;  %v3168_v31 = vsel %vm3156_vm4, %v3146_v28, %v3149_v39  ;;  %v16287_v1 = vpop.f32.mrf.mxu0  ;;  %v16289_v14 = vpop.f32.mrf.mxu1  ;;  %9214 = vmatmul.mubr.bf16.gmra.mxu1 %v13484_v10 }
 0x37e   :  { %v3162_v17 = vsel %vm3158_vm6, %v3146_v28, %v3161_v48  ;;  %v3166_v62 = vsel %vm3158_vm6, %v3149_v39, %v3165_v44  ;;  %v3169_v29 = vsel %vm3159_vm2, %v3155_v18, 1326507024  ;;  %19501 = vst [vmem:[#allocation54_spill] sm:$0xff] %v16287_v1  ;;  %19502 = vst [vmem:[#allocation55_spill] sm:$0xff] %v16289_v14  ;;  %v19503_v42 = vand.u32 2147483647, %v16002_v37  ;;  %9223 = vmatprep.mubr.bf16.mxu1 %v13678_v25 }
 0x37f   :  { %v3088_v44 = vclz %v11193_v40  ;;  %v16298_v55 = vmul.f32 0.017453277, %v74_v4  ;;  %v12177_v28 = vld [vmem:[#allocation2 + $0x3a8] ss:$16 sps:$4 sm:$0xff]   ;;  %v12179_v39 = vld [vmem:[#allocation2 + $0x3ac] ss:$16 sps:$4 sm:$0xff]   ;;  %v16304_v0 = vsel %vm3157_vm8, %v3160_v15, %v3162_v17  ;;  %v3167_v10 = vsel %vm3157_vm8, %v3164_v2, %v3166_v62  ;;  %v16310_v40 = vpop.f32.mrf.mxu0  ;;  %v16312_v4 = vpop.f32.mrf.mxu1  ;;  %9466 = vmatpush2.bf16.msra.mxu1 %v12174_v20 }
 0x380   :  { %vm16294_vm7 = vcmp.le.f32.partialorder %v19503_v42, 0.7853982  ;;  %v3106_v18 = vsub.s32 4, %v16218_v36  ;;  %v3170_v42 = vsel %vm3158_vm6, %v3152_v54, %v3169_v29  ;;  %19506 = vst [vmem:[#allocation56_spill] sm:$0xff] %v16310_v40  ;;  %19507 = vst [vmem:[#allocation57_spill] sm:$0xff] %v16312_v4  ;;  %v16321_v2 = vpop.permute.xlu1 %7230  ;;  %v16323_v62 = vpop.permute.xlu0 %9653  ;;  %9274 = vmatprep.subr.bf16.mxu0 %v12179_v39  ;;  %vm3008_vm1 = vweird.f32 %v15901_v33 }
 0x381   :  { %v12180_v19 = vld [vmem:[#allocation2 + $0x5a8] ss:$16 sps:$4 sm:$0xff]   ;;  %v12182_v46 = vld [vmem:[#allocation2 + $0x5ac] ss:$16 sps:$4 sm:$0xff]   ;;  %v11194_v25 = vadd.s32 4294967294, %v3088_v44  ;;  %v3171_v14 = vsel %vm3157_vm8, %v3168_v31, %v3170_v42  ;;  %v16317_v15 = vmul.u32.u64.low %v16230_v49, %v3167_v10  ;;  %v16318_v17 = vmul.u32.u64.high %v16230_v49, %v3167_v10, %v16317_v15  ;;  %19508 = vst [vmem:[#allocation58_spill] sm:$0xff] %v16321_v2  ;;  %v16334_v31 = vpop.f32.mrf.mxu0  ;;  %v16336_v29 = vpop.f32.mrf.mxu1  ;;  %9275 = vmatpush2.bf16.msra.mxu0 %v12177_v28 }
 0x382   :  { %19509 = vst [vmem:[#allocation59_spill] sm:$0xff] %v16323_v62  ;;  %v16327_v54 = vand.u32 3, %v16192_v12  ;;  %vm6311_vm5 = vcmp.lt.s32.totalorder %v16226_v21, 2  ;;  %v16331_v60 = vmul.u32.u64.low %v16230_v49, %v3171_v14  ;;  %v16332_v20 = vmul.u32.u64.high %v16230_v49, %v3171_v14, %v16331_v60  ;;  %19510 = vst [vmem:[#allocation60_spill] sm:$0xff] %v16334_v31  ;;  %9467 = vmatprep.subr.bf16.mxu1 %v12182_v46  ;;  %v12185_v44 = vld [vmem:[#allocation2 + $0x38c] ss:$16 sps:$4 sm:$0xff]  }
 0x383   :  { %19511 = vst [vmem:[#allocation61_spill] sm:$0xff] %v16336_v29  ;;  %vm6312_vm9 = vcmp.eq.s32.totalorder %v16226_v21, 0  ;;  %vm6315_vm10 = vcmp.eq.s32.totalorder %v16226_v21, 2  ;;  %v3076_v12 = vadd.s32 %v16158_v53, %v16174_v45  ;;  %vm11195_vm11 = vcmp.lt.s32.totalorder %v11194_v25, 0  ;;  %v12183_v39 = vld [vmem:[#allocation2 + $0x388] ss:$16 sps:$4 sm:$0xff]   ;;  %v16348_v60 = vpop.f32.mrf.mxu0  ;;  %v16350_v62 = vpop.f32.mrf.mxu1  ;;  %9468 = vmatpush2.bf16.msra.mxu1 %v12180_v19  ;;  %9276 = vmatprep.subr.bf16.mxu0 %v12185_v44 }
 0x384   :  { %v3091_v10 = vsel %vm11195_vm11, 0, %v11194_v25  ;;  %v3107_v14 = vsel %vm3022_vm3, %v3106_v18, %v16218_v36  ;;  %v3179_v42 = vmul.u32 %v16230_v49, %v16304_v0  ;;  %v3231_v46 = vand.u32 2139095040, %v16298_v55  ;;  %19512 = vst [vmem:[#allocation62_spill] sm:$0xff] %v16348_v60  ;;  %19513 = vst [vmem:[#allocation63_spill] sm:$0xff] %v16350_v62  ;;  %v12186_v53 = vld [vmem:[#allocation2 + $0x588] ss:$16 sps:$4 sm:$0xff]   ;;  %v16354_v36 = vpop.permute.xlu1 %9658  ;;  %v16356_v18 = vpop.permute.xlu0 %7235 }
 0x385   :  { %v12188_v45 = vld [vmem:[#allocation2 + $0x58c] ss:$16 sps:$4 sm:$0xff]   ;;  %v3092_v28 = vsub.s32 32, %v3091_v10  ;;  %v3093_v25 = vshll.u32 %v16243_v52, %v3091_v10  ;;  %v3096_v29 = vsub.s32 4294967266, %v3091_v10  ;;  %v3182_v4 = vadd.s32 1, %v16318_v17  ;;  %19514 = vst [vmem:[#allocation64_spill] sm:$0xff] %v16354_v36  ;;  %v16362_v0 = vpop.f32.mrf.mxu0  ;;  %v16364_v19 = vpop.f32.mrf.mxu1  ;;  %9224 = vmatmul.mubr.bf16.gmra.mxu1 %v13721_v11  ;;  %9277 = vmatpush2.bf16.msra.mxu0 %v12183_v39 }
 0x386   :  { %19515 = vst [vmem:[#allocation65_spill] sm:$0xff] %v16356_v18  ;;  %vm3011_vm12 = vcmp.lt.s32.totalorder %v16327_v54, 2  ;;  %vm3012_vm13 = vcmp.eq.s32.totalorder %v16327_v54, 0  ;;  %vm3181_vm14 = vc.u32 %v16332_v20, %v16317_v15  ;;  %v3232_v49 = vshrl.u32 %v3231_v46, 23  ;;  %19516 = vst [vmem:[#allocation66_spill] sm:$0xff] %v16362_v0  ;;  %9469 = vmatprep.subr.bf16.mxu1 %v12188_v45  ;;  %v19518_v31 = vld [vmem:[#allocation42_spill] sm:$0xff] }
 0x387   :  { %19517 = vst [vmem:[#allocation67_spill] sm:$0xff] %v16364_v19  ;;  %v12354_v52 = vpop.eup %12353  ;;  %vm3015_vm15 = vcmp.eq.s32.totalorder %v16327_v54, 2  ;;  %v3094_v44 = vshrl.u32 %v3076_v12, %v3092_v28  ;;  %v3097_v10 = vadd.s32 127, %v3096_v29  ;;  %v3183_v62 = vsel %vm3181_vm14, %v3182_v4, %v16318_v17  ;;  %v12189_v36 = vld [vmem:[#allocation2 + $0x368] ss:$16 sps:$4 sm:$0xff]   ;;  %9233 = vmatprep.mubr.bf16.mxu1 %v19518_v31  ;;  %v16374_v0 = vpop.f32.mrf.mxu0  ;;  %9470 = vmatpush2.bf16.msra.mxu1 %v12186_v53 }
 0x388   :  { %v12191_v60 = vld [vmem:[#allocation2 + $0x36c] ss:$16 sps:$4 sm:$0xff]   ;;  %v12356_v46 = vpop.eup %12355  ;;  %v3016_v40 = vxor.u32 2147483648, %v12354_v52  ;;  %v16372_v19 = vsel %vm16294_vm7, 0, %v3107_v14  ;;  %v3184_v45 = vadd.s32 %v3183_v62, %v3179_v42  ;;  %v11200_v11 = vadd.s32 4294967169, %v3232_v49  ;;  %19519 = vst [vmem:[#allocation42_spill] sm:$0xff] %v16374_v0  ;;  %v16376_v61 = vpop.f32.mrf.mxu1 }
 0x389   :  { %19520 = vst [vmem:[#allocation68_spill] sm:$0xff] %v16376_v61  ;;  %v12192_v29 = vld [vmem:[#allocation2 + $0x568] ss:$16 sps:$4 sm:$0xff]   ;;  %v3013_v4 = vxor.u32 2147483648, %v12356_v46  ;;  %v3095_v17 = vor.u32 %v3094_v44, %v3093_v25  ;;  %v3098_v12 = vshll.u32 %v3097_v10, 23  ;;  %v16379_v31 = vpop.permute.xlu1 %7240  ;;  %v16381_v28 = vpop.permute.xlu0 %9663  ;;  %9278 = vmatprep.subr.bf16.mxu0 %v12191_v60  ;;  %v16467_v63 = vand.u32 3, %v16372_v19 }
 0x38a   :  { %19521 = vst [vmem:[#allocation69_spill] sm:$0xff] %v16379_v31  ;;  %19522 = vst [vmem:[#allocation70_spill] sm:$0xff] %v16381_v28  ;;  %v12194_v14 = vld [vmem:[#allocation2 + $0x56c] ss:$16 sps:$4 sm:$0xff]   ;;  %v3017_v62 = vsel %vm3015_vm15, %v3016_v40, %v12356_v46  ;;  %v6317_v42 = vsel %vm6315_vm10, %v3016_v40, %v12356_v46  ;;  %v3185_v49 = vadd.s32 536870912, %v3184_v45  ;;  %v3238_v53 = vadd.s32 1, %v11200_v11  ;;  %v16387_v34 = vpop.f32.mrf.mxu0  ;;  %v16389_v25 = vpop.f32.mrf.mxu1  ;;  %9279 = vmatpush2.bf16.msra.mxu0 %v12189_v36 }
 0x38b   :  { %v12197_v44 = vld [vmem:[#allocation2 + $0x34c] ss:$16 sps:$4 sm:$0xff]   ;;  %v3014_v10 = vsel %vm3012_vm13, %v12354_v52, %v3013_v4  ;;  %v6314_v60 = vsel %vm6312_vm9, %v12354_v52, %v3013_v4  ;;  %v3099_v39 = vor.u32 4788187, %v3098_v12  ;;  %v3102_v2 = vcvt.s32.f32 %v3095_v17  ;;  %9471 = vmatprep.subr.bf16.mxu1 %v12194_v14  ;;  %v12195_v1 = vld [vmem:[#allocation2 + $0x348] ss:$16 sps:$4 sm:$0xff]  }
 0x38c   :  { %v12200_v13 = vld [vmem:[#allocation2 + $0x54c] ss:$16 sps:$4 sm:$0xff]   ;;  %v3018_v40 = vsel %vm3011_vm12, %v3014_v10, %v3017_v62  ;;  %v6318_v46 = vsel %vm6311_vm5, %v6314_v60, %v6317_v42  ;;  %v16399_v11 = vshrl.u32 %v3185_v49, 30  ;;  %vm3239_vm0 = vcmp.gt.s32.totalorder %v3238_v53, 0  ;;  %v16401_v16 = vpop.f32.mrf.mxu0  ;;  %v16403_v59 = vpop.f32.mrf.mxu1  ;;  %9472 = vmatpush2.bf16.msra.mxu1 %v12192_v29  ;;  %9280 = vmatprep.subr.bf16.mxu0 %v12197_v44  ;;  %v12198_v52 = vld [vmem:[#allocation2 + $0x548] ss:$16 sps:$4 sm:$0xff]  }
 0x38d   :  { %19523 = vst [vmem:[#allocation71_spill] sm:$0xff] %v16401_v16  ;;  %19524 = vst [vmem:[#allocation72_spill] sm:$0xff] %v16403_v59  ;;  %v3019_v36 = vsel %vm3008_vm1, nan, %v3018_v40  ;;  %v3100_v4 = vand.u32 2147483647, %v3099_v39  ;;  %v3240_v21 = vsel %vm3239_vm0, %v3238_v53, 0  ;;  %v16411_v12 = vpop.permute.xlu1 %9668  ;;  %v16413_v14 = vpop.permute.xlu0 %7245  ;;  %9473 = vmatprep.subr.bf16.mxu1 %v12200_v13  ;;  %vm3112_vm13 = vweird.f32 %v16002_v37 }
 0x38e   :  { %v19525_v54 = vand.u32 2147483647, %v16298_v55  ;;  %19526 = vst [vmem:[#allocation73_spill] sm:$0xff] %v16411_v12  ;;  %19527 = vst [vmem:[#allocation74_spill] sm:$0xff] %v16413_v14  ;;  %7350 = vperm.xlu1 %11924, %v3019_v36   ;;  %v3187_v62 = vshll.u32 %v16399_v11, 30  ;;  %v16416_v29 = vand.u32 31, %v3240_v21  ;;  %v16421_v39 = vpop.f32.mrf.mxu0  ;;  %v16423_v49 = vpop.f32.mrf.mxu1  ;;  %9281 = vmatpush2.bf16.msra.mxu0 %v12195_v1 }
 0x38f   :  { %v75_v42 = vld [vmem:[%s19134_s0 + $0xf8] sm:$0xff]  ;;  %19528 = vst [vmem:[#allocation75_spill] sm:$0xff] %v16421_v39  ;;  %19529 = vst [vmem:[#allocation76_spill] sm:$0xff] %v16423_v49  ;;  %v19530_v44 = vld [vmem:[#allocation44_spill] sm:$0xff]  ;;  %v6319_v53 = vsel %vm3008_vm1, nan, %v6318_v46  ;;  %v3103_v10 = vmul.f32 %v3102_v2, %v3100_v4  ;;  %v3113_v40 = vadd.s32 3, %v16372_v19 }
 0x390   :  { %v16409_v17 = vand.u32 8388607, %v19525_v54  ;;  %9234 = vmatmul.mubr.bf16.gmra.mxu1 %v19530_v44  ;;  %v12201_v13 = vld [vmem:[#allocation2 + $0x328] ss:$16 sps:$4 sm:$0xff]   ;;  %v12203_v60 = vld [vmem:[#allocation2 + $0x32c] ss:$16 sps:$4 sm:$0xff]   ;;  %v16430_v36 = vsub.s32 %v3184_v45, %v3187_v62  ;;  %v16433_v39 = vpop.f32.mrf.mxu0  ;;  %v16435_v49 = vpop.f32.mrf.mxu1  ;;  %v3245_v62 = vshll.u32 %v19377_v50, %v16416_v29  ;;  %v3251_v12 = vshll.u32 %v19379_v56, %v16416_v29 }
 0x391   :  { %9243 = vmatprep.mubr.bf16.mxu1 %v14200_v6  ;;  %v3243_v54 = vsub.s32 32, %v16416_v29  ;;  %9474 = vmatpush2.bf16.msra.mxu1 %v12198_v52  ;;  %v12204_v44 = vld [vmem:[#allocation2 + $0x528] ss:$16 sps:$4 sm:$0xff]   ;;  %v12206_v33 = vld [vmem:[#allocation2 + $0x52c] ss:$16 sps:$4 sm:$0xff]   ;;  %v3104_v46 = vxor.u32 2147483648, %v3103_v10  ;;  %v16440_v4 = vpop.permute.xlu1 %7250  ;;  %v16442_v6 = vpop.permute.xlu0 %9673  ;;  %v3248_v52 = vshll.u32 %v19378_v8, %v16416_v29 }
 0x392   :  { %v3236_v1 = vor.u32 8388608, %v16409_v17  ;;  %v16438_v2 = vmul.f32 0.017453277, %v75_v42  ;;  %19531 = vst [vmem:[#allocation44_spill] sm:$0xff] %v16440_v4  ;;  %19532 = vst [vmem:[#allocation77_spill] sm:$0xff] %v16442_v6  ;;  %9282 = vmatprep.subr.bf16.mxu0 %v12203_v60  ;;  %9778 = vperm.xlu1 %11924, %v6319_v53   ;;  %v3190_v45 = vsub.s32 0, %v16430_v36  ;;  %v16451_v17 = vpop.f32.mrf.mxu0  ;;  %v16453_v42 = vpop.f32.mrf.mxu1 }
 0x393   :  { %19533 = vst [vmem:[#allocation78_spill] sm:$0xff] %v16453_v42  ;;  %9475 = vmatprep.subr.bf16.mxu1 %v12206_v33  ;;  %v12209_v59 = vld [vmem:[#allocation2 + $0x30c] ss:$16 sps:$4 sm:$0xff]   ;;  %v3105_v53 = vsel %vm3022_vm3, %v3104_v46, %v3103_v10  ;;  %v3246_v60 = vshrl.u32 %v19378_v8, %v3243_v54  ;;  %v3249_v6 = vshrl.u32 %v19379_v56, %v3243_v54  ;;  %v12207_v16 = vld [vmem:[#allocation2 + $0x308] ss:$16 sps:$4 sm:$0xff]   ;;  %v16463_v0 = vand.u32 3, %v3113_v40 }
 0x394   :  { %v3252_v28 = vshrl.u32 %v19380_v9, %v3243_v54  ;;  %9283 = vmatpush2.bf16.msra.mxu0 %v12201_v13  ;;  %v12212_v61 = vld [vmem:[#allocation2 + $0x50c] ss:$16 sps:$4 sm:$0xff]   ;;  %v3108_v31 = vsel %vm16294_vm7, %v16002_v37, %v3105_v53  ;;  %v11197_v33 = vmin.u32 %v3190_v45, %v16430_v36  ;;  %v16469_v10 = vpop.f32.mrf.mxu0  ;;  %v16471_v46 = vpop.f32.mrf.mxu1  ;;  %v12210_v13 = vld [vmem:[#allocation2 + $0x508] ss:$16 sps:$4 sm:$0xff]   ;;  %v3180_v42 = vadd.s32 %v16317_v15, %v16332_v20 }
 0x395   :  { %19534 = vst [vmem:[#allocation79_spill] sm:$0xff] %v16469_v10  ;;  %19535 = vst [vmem:[#allocation80_spill] sm:$0xff] %v16471_v46  ;;  %9476 = vmatpush2.bf16.msra.mxu1 %v12204_v44  ;;  %9284 = vmatprep.subr.bf16.mxu0 %v12209_v59  ;;  %12357 = vcosq.f32 %v3108_v31  ;;  %v16476_v40 = vshrl.u32 %v3240_v21, 5  ;;  %v16478_v53 = vpop.permute.xlu1 %9678  ;;  %v16480_v45 = vpop.permute.xlu0 %7255  ;;  %vm3126_vm4 = vcmp.lt.s32.totalorder %v16099_v5, 0  ;;  %v3244_v59 = vshrl.u32 %v19377_v50, %v3243_v54 }
 0x396   :  { %19536 = vst [vmem:[#allocation81_spill] sm:$0xff] %v16478_v53  ;;  %19537 = vst [vmem:[#allocation82_spill] sm:$0xff] %v16480_v45  ;;  %9477 = vmatprep.subr.bf16.mxu1 %v12212_v61  ;;  %12359 = vsinq.f32 %v3108_v31  ;;  %v3192_v19 = vclz %v11197_v33  ;;  %v3247_v44 = vor.u32 %v3246_v60, %v3245_v62  ;;  %v16484_v46 = vpop.f32.mrf.mxu0  ;;  %v16486_v10 = vpop.f32.mrf.mxu1  ;;  %v3250_v15 = vor.u32 %v3249_v6, %v3248_v52 }
 0x397   :  { %19538 = vst [vmem:[#allocation83_spill] sm:$0xff] %v16484_v46  ;;  %19539 = vst [vmem:[#allocation84_spill] sm:$0xff] %v16486_v10  ;;  %v3253_v20 = vor.u32 %v3252_v28, %v3251_v12  ;;  %v3254_v21 = vshll.u32 %v19380_v9, %v16416_v29  ;;  %v16491_v48 = vshll.u32 %v3236_v1, 8  ;;  %v3255_v31 = vshrl.u32 %v19381_v41, %v3243_v54 }
 0x398   :  { %9244 = vmatmul.mubr.bf16.gmra.mxu1 %v14321_v43  ;;  %9285 = vmatpush2.bf16.msra.mxu0 %v12207_v16  ;;  %v11198_v61 = vadd.s32 4294967294, %v3192_v19  ;;  %v3257_v62 = vshll.u32 %v19381_v41, %v16416_v29  ;;  %v3258_v60 = vshrl.u32 %v19395_v27, %v3243_v54  ;;  %v16498_v33 = vpop.f32.mrf.mxu0  ;;  %v16500_v43 = vpop.f32.mrf.mxu1  ;;  %vm3260_vm3 = vcmp.lt.s32.totalorder %v16476_v40, 1 }
 0x399   :  { %9479 = vmatprep.mubr.bf16.mxu1 %v14494_v38  ;;  %9478 = vmatpush2.bf16.msra.mxu1 %v12210_v13  ;;  %vm3261_vm6 = vcmp.lt.s32.totalorder %v16476_v40, 2  ;;  %vm3262_vm8 = vcmp.lt.s32.totalorder %v16476_v40, 3  ;;  %v3335_v38 = vand.u32 2139095040, %v16438_v2  ;;  %v16506_v16 = vpop.permute.xlu1 %7260  ;;  %v16508_v28 = vpop.permute.xlu0 %9683  ;;  %vm3119_vm2 = vcmp.eq.s32.totalorder %v16463_v0, 2 }
 0x39a   :  { %19540 = vst [vmem:[#allocation85_spill] sm:$0xff] %v16506_v16  ;;  %19541 = vst [vmem:[#allocation86_spill] sm:$0xff] %v16508_v28  ;;  %v19542_v12 = vand.u32 2147483647, %v16099_v5  ;;  %vm11199_vm1 = vcmp.lt.s32.totalorder %v11198_v61, 0  ;;  %v3256_v54 = vor.u32 %v3255_v31, %v3254_v21  ;;  %v3259_v1 = vor.u32 %v3258_v60, %v3257_v62  ;;  %v16518_v6 = vpop.f32.mrf.mxu0  ;;  %v16520_v52 = vpop.f32.mrf.mxu1 }
 0x39b   :  { %vm3263_vm5 = vcmp.lt.s32.totalorder %v16476_v40, 4  ;;  %19545 = vst [vmem:[#allocation87_spill] sm:$0xff] %v16518_v6  ;;  %19546 = vst [vmem:[#allocation88_spill] sm:$0xff] %v16520_v52  ;;  %vm3116_vm9 = vcmp.eq.s32.totalorder %v16463_v0, 0  ;;  %v3195_v13 = vsel %vm11199_vm1, 0, %v11198_v61  ;;  %vm6415_vm10 = vcmp.eq.s32.totalorder %v16467_v63, 0 }
 0x39c   :  { %vm16513_vm7 = vcmp.le.f32.partialorder %v19542_v12, 0.7853982  ;;  %v3264_v19 = vsel %vm3260_vm3, %v3244_v59, %v3247_v44  ;;  %v3265_v12 = vsel %vm3263_vm5, %v3253_v20, 2102212464  ;;  %v3268_v21 = vsel %vm3260_vm3, %v3247_v44, %v3250_v15  ;;  %v16535_v10 = vpop.f32.mrf.mxu0  ;;  %v16537_v59 = vpop.f32.mrf.mxu1 }
 0x39d   :  { %vm3115_vm11 = vcmp.lt.s32.totalorder %v16463_v0, 2  ;;  %v3196_v31 = vsub.s32 32, %v3195_v13  ;;  %v3197_v62 = vshll.u32 %v16430_v36, %v3195_v13  ;;  %v3200_v60 = vsub.s32 4294967266, %v3195_v13  ;;  %19547 = vst [vmem:[#allocation89_spill] sm:$0xff] %v16535_v10  ;;  %19548 = vst [vmem:[#allocation90_spill] sm:$0xff] %v16537_v59  ;;  %v16546_v28 = vpop.permute.xlu1 %9688  ;;  %v16548_v53 = vpop.permute.xlu0 %7265 }
 0x39e   :  { %vm6414_vm12 = vcmp.lt.s32.totalorder %v16467_v63, 2  ;;  %v3272_v61 = vsel %vm3260_vm3, %v3250_v15, %v3253_v20  ;;  %v3266_v44 = vsel %vm3262_vm8, %v3250_v15, %v3265_v12  ;;  %v3269_v46 = vsel %vm3263_vm5, %v3256_v54, 920167782  ;;  %19549 = vst [vmem:[#allocation91_spill] sm:$0xff] %v16546_v28  ;;  %19550 = vst [vmem:[#allocation92_spill] sm:$0xff] %v16548_v53  ;;  %v16554_v15 = vpop.f32.mrf.mxu0  ;;  %v16556_v12 = vpop.f32.mrf.mxu1 }
 0x39f   :  { %v3273_v36 = vsel %vm3263_vm5, %v3259_v1, 1326507024  ;;  %v3336_v13 = vshrl.u32 %v3335_v38, 23  ;;  %v3198_v52 = vshrl.u32 %v3180_v42, %v3196_v31  ;;  %v3201_v10 = vadd.s32 127, %v3200_v60  ;;  %19551 = vst [vmem:[#allocation93_spill] sm:$0xff] %v16554_v15  ;;  %19552 = vst [vmem:[#allocation94_spill] sm:$0xff] %v16556_v12 }
 0x3a0   :  { %v3270_v59 = vsel %vm3262_vm8, %v3253_v20, %v3269_v46  ;;  %v3274_v6 = vsel %vm3262_vm8, %v3256_v54, %v3273_v36  ;;  %9480 = vmatmul.mubr.bf16.vlgmr.msra.gmra.mxu1 %v14496_v32  ;;  %v19553_v38 = vsub.s32 4, %v16399_v11  ;;  %v6832_v36 = vld [vmem:[%s19135_s1 + $0x320] sm:$0xff]  ;;  %vm6418_vm14 = vcmp.eq.s32.totalorder %v16467_v63, 2 }
 0x3a1   :  { %v3271_v42 = vsel %vm3261_vm6, %v3268_v21, %v3270_v59  ;;  %v3275_v46 = vsel %vm3261_vm6, %v3272_v61, %v3274_v6  ;;  %v11204_v20 = vadd.s32 4294967169, %v3336_v13  ;;  %9489 = vmatprep.mubr.bf16.mxu1 %v14746_v23  ;;  %v3199_v54 = vor.u32 %v3198_v52, %v3197_v62  ;;  %v16579_v21 = vpop.f32.mrf.mxu0  ;;  %v16581_v6 = vpop.f32.mrf.mxu1 }
 0x3a2   :  { %v3211_v1 = vsel %vm3126_vm4, %v19553_v38, %v16399_v11  ;;  %v3202_v31 = vshll.u32 %v3201_v10, 23  ;;  %v16570_v60 = vmul.u32.u64.low %v16491_v48, %v3275_v46  ;;  %v16571_v32 = vmul.u32.u64.high %v16491_v48, %v3275_v46, %v16570_v60  ;;  %v6838_v11 = vld [vmem:[%s19135_s1 + $0x350] sm:$0xff]  ;;  %v16590_v61 = vpop.permute.xlu1 %7270  ;;  %v16592_v59 = vpop.permute.xlu0 %9693 }
 0x3a3   :  { %v3267_v23 = vsel %vm3261_vm6, %v3264_v19, %v3266_v44  ;;  %v16586_v10 = vmul.u32.u64.low %v16491_v48, %v3271_v42  ;;  %v16587_v52 = vmul.u32.u64.high %v16491_v48, %v3271_v42, %v16586_v10  ;;  %v3342_v62 = vadd.s32 1, %v11204_v20  ;;  %19554 = vst [vmem:[#allocation95_spill] sm:$0xff] %v16590_v61  ;;  %19555 = vst [vmem:[#allocation96_spill] sm:$0xff] %v16592_v59  ;;  %v12358_v13 = vpop.eup %12357  ;;  %v16596_v12 = vpop.f32.mrf.mxu0 }
 0x3a4   :  { %v3203_v38 = vor.u32 4788187, %v3202_v31  ;;  %v3206_v46 = vcvt.s32.f32 %v3199_v54  ;;  %19556 = vst [vmem:[#allocation97_spill] sm:$0xff] %v16596_v12  ;;  %v16598_v40 = vpop.f32.mrf.mxu1  ;;  %v12360_v19 = vpop.eup %12359  ;;  %v3120_v44 = vxor.u32 2147483648, %v12358_v13  ;;  %v16602_v42 = vsel %vm16513_vm7, 0, %v3211_v1 }
 0x3a5   :  { %19557 = vst [vmem:[#allocation98_spill] sm:$0xff] %v16598_v40  ;;  %vm3343_vm15 = vcmp.gt.s32.totalorder %v3342_v62, 0  ;;  %v16604_v20 = vpack.c.bf16 %v6838_v11, %v6832_v36  ;;  %v3117_v15 = vxor.u32 2147483648, %v12360_v19  ;;  %v3283_v54 = vmul.u32 %v16491_v48, %v3267_v23  ;;  %v16609_v60 = vpop.f32.mrf.mxu0 }
 0x3a6   :  { %v3204_v31 = vand.u32 2147483647, %v3203_v38  ;;  %vm3285_vm0 = vc.u32 %v16571_v32, %v16586_v10  ;;  %19558 = vst [vmem:[#allocation99_spill] sm:$0xff] %v16609_v60  ;;  %v16611_v59 = vpop.f32.mrf.mxu1  ;;  %v3121_v28 = vsel %vm3119_vm2, %v3120_v44, %v12360_v19  ;;  %v6420_v1 = vsel %vm6418_vm14, %v3120_v44, %v12360_v19  ;;  %v16619_v38 = vpop.permute.xlu1 %9698 }
 0x3a7   :  { %19559 = vst [vmem:[#allocation100_spill] sm:$0xff] %v16611_v59  ;;  %v3286_v36 = vadd.s32 1, %v16587_v52  ;;  %v3344_v11 = vsel %vm3343_vm15, %v3342_v62, 0  ;;  %8981 = vmatmul.mubr.bf16.gmra.mxu0 %v16604_v20  ;;  %19560 = vst [vmem:[#allocation101_spill] sm:$0xff] %v16619_v38  ;;  %v16621_v48 = vpop.permute.xlu0 %7275  ;;  %v3118_v23 = vsel %vm3116_vm9, %v12358_v13, %v3117_v15  ;;  %v6417_v59 = vsel %vm6415_vm10, %v12358_v13, %v3117_v15  ;;  %v16631_v19 = vpop.f32.mrf.mxu0 }
 0x3a8   :  { %19561 = vst [vmem:[#allocation102_spill] sm:$0xff] %v16621_v48  ;;  %v3207_v40 = vmul.f32 %v3206_v46, %v3204_v31  ;;  %v19562_v60 = vand.u32 2147483647, %v16438_v2  ;;  %19563 = vst [vmem:[#allocation103_spill] sm:$0xff] %v16631_v19  ;;  %v16633_v62 = vpop.f32.mrf.mxu1  ;;  %9490 = vmatmul.mubr.bf16.gmra.mxu1 %v14748_v47  ;;  %v3122_v44 = vsel %vm3115_vm11, %v3118_v23, %v3121_v28  ;;  %v3346_v13 = vand.u32 31, %v3344_v11 }
 0x3a9   :  { %19564 = vst [vmem:[#allocation104_spill] sm:$0xff] %v16633_v62  ;;  %v6421_v38 = vsel %vm6414_vm12, %v6417_v59, %v6420_v1  ;;  %v3287_v15 = vsel %vm3285_vm0, %v3286_v36, %v16587_v52  ;;  %9499 = vmatprep.mubr.bf16.mxu1 %v14834_v58  ;;  %v3123_v46 = vsel %vm3112_vm13, nan, %v3122_v44  ;;  %v16647_v47 = vshrl.u32 %v3344_v11, 5  ;;  %v16649_v0 = vpop.f32.mrf.mxu0 }
 0x3aa   :  { %v16629_v12 = vand.u32 8388607, %v19562_v60  ;;  %v3208_v60 = vxor.u32 2147483648, %v3207_v40  ;;  %v3288_v31 = vadd.s32 %v3287_v15, %v3283_v54  ;;  %v16651_v28 = vpop.f32.mrf.mxu1  ;;  %7355 = vperm.xlu0 %11923, %v3123_v46   ;;  %v6422_v63 = vsel %vm3112_vm13, nan, %v6421_v38  ;;  %v16657_v1 = vpop.permute.xlu1 %7280 }
 0x3ab   :  { %19565 = vst [vmem:[#allocation105_spill] sm:$0xff] %v16651_v28  ;;  %v3347_v59 = vsub.s32 32, %v3346_v13  ;;  %v3349_v52 = vshll.u32 %v19377_v50, %v3346_v13  ;;  %v3352_v58 = vshll.u32 %v19378_v8, %v3346_v13  ;;  %19566 = vst [vmem:[#allocation106_spill] sm:$0xff] %v16657_v1  ;;  %v16659_v36 = vpop.permute.xlu0 %9703  ;;  %v3355_v23 = vshll.u32 %v19379_v56, %v3346_v13  ;;  %v16665_v15 = vpop.f32.mrf.mxu0 }
 0x3ac   :  { %19567 = vst [vmem:[#allocation107_spill] sm:$0xff] %v16659_v36  ;;  %v3209_v54 = vsel %vm3126_vm4, %v3208_v60, %v3207_v40  ;;  %v3289_v11 = vadd.s32 536870912, %v3288_v31  ;;  %v3358_v44 = vshll.u32 %v19380_v9, %v3346_v13  ;;  %19568 = vst [vmem:[#allocation108_spill] sm:$0xff] %v16665_v15  ;;  %v16667_v37 = vpop.f32.mrf.mxu1  ;;  %v3361_v19 = vshll.u32 %v19381_v41, %v3346_v13 }
 0x3ad   :  { %19569 = vst [vmem:[#allocation109_spill] sm:$0xff] %v16667_v37  ;;  %v3212_v38 = vsel %vm16513_vm7, %v16099_v5, %v3209_v54  ;;  %v3350_v46 = vshrl.u32 %v19378_v8, %v3347_v59  ;;  %v3353_v62 = vshrl.u32 %v19379_v56, %v3347_v59  ;;  %v3356_v60 = vshrl.u32 %v19380_v9, %v3347_v59  ;;  %v16679_v15 = vpop.f32.mrf.mxu0 }
 0x3ae   :  { %12361 = vcosq.f32 %v3212_v38  ;;  %v16675_v40 = vshrl.u32 %v3289_v11, 30  ;;  %v3359_v36 = vshrl.u32 %v19381_v41, %v3347_v59  ;;  %19570 = vst [vmem:[#allocation110_spill] sm:$0xff] %v16679_v15  ;;  %v16681_v37 = vpop.f32.mrf.mxu1  ;;  %9783 = vperm.xlu0 %11923, %v6422_v63   ;;  %v3362_v8 = vshrl.u32 %v19395_v27, %v3347_v59  ;;  %v16684_v56 = vpop.permute.xlu1 %9708 }
 0x3af   :  { %12363 = vsinq.f32 %v3212_v38  ;;  %v3351_v29 = vor.u32 %v3350_v46, %v3349_v52  ;;  %v3354_v54 = vor.u32 %v3353_v62, %v3352_v58  ;;  %19571 = vst [vmem:[#allocation111_spill] sm:$0xff] %v16684_v56  ;;  %v16686_v13 = vpop.permute.xlu0 %7285  ;;  %v3217_v11 = vadd.s32 3, %v16602_v42  ;;  %v16690_v1 = vpop.f32.mrf.mxu0  ;;  %v6851_v38 = vld [vmem:[%s19135_s1 + $0x3b8] sm:$0xff]  ;;  %v6844_v46 = vld [vmem:[%s19135_s1 + $0x380] sm:$0xff] }
 0x3b0   :  { %19572 = vst [vmem:[#allocation112_spill] sm:$0xff] %v16686_v13  ;;  %v3291_v9 = vshll.u32 %v16675_v40, 30  ;;  %v3357_v28 = vor.u32 %v3356_v60, %v3355_v23  ;;  %v3360_v41 = vor.u32 %v3359_v36, %v3358_v44  ;;  %19573 = vst [vmem:[#allocation113_spill] sm:$0xff] %v16690_v1  ;;  %v16692_v15 = vpop.f32.mrf.mxu1  ;;  %9500 = vmatmul.mubr.bf16.gmra.mxu1 %v15039_v57  ;;  %vm3364_vm4 = vcmp.lt.s32.totalorder %v16647_v47, 1  ;;  %v6850_v60 = vld [vmem:[%s19135_s1 + $0x3b0] sm:$0xff] }
 0x3b1   :  { %19574 = vst [vmem:[#allocation114_spill] sm:$0xff] %v16692_v15  ;;  %v3348_v62 = vshrl.u32 %v19377_v50, %v3347_v59  ;;  %v3363_v63 = vor.u32 %v3362_v8, %v3361_v19  ;;  %vm3366_vm3 = vcmp.lt.s32.totalorder %v16647_v47, 3  ;;  %9509 = vmatprep.mubr.bf16.mxu1 %v15078_v51  ;;  %v3340_v52 = vor.u32 8388608, %v16629_v12  ;;  %v16703_v58 = vpop.f32.mrf.mxu0  ;;  %v6845_v12 = vld [vmem:[%s19135_s1 + $0x388] sm:$0xff] }
 0x3b2   :  { %v16699_v27 = vsub.s32 %v3288_v31, %v3291_v9  ;;  %vm3367_vm6 = vcmp.lt.s32.totalorder %v16647_v47, 4  ;;  %v16705_v36 = vpop.f32.mrf.mxu1  ;;  %vm3365_vm8 = vcmp.lt.s32.totalorder %v16647_v47, 2  ;;  %v3372_v57 = vsel %vm3364_vm4, %v3351_v29, %v3354_v54  ;;  %v16748_v1 = vpop.permute.xlu1 %7290 }
 0x3b3   :  { %19575 = vst [vmem:[#allocation115_spill] sm:$0xff] %v16705_v36  ;;  %v3369_v50 = vsel %vm3367_vm6, %v3357_v28, 2102212464  ;;  %v3373_v51 = vsel %vm3367_vm6, %v3360_v41, 920167782  ;;  %v16717_v19 = vpop.permute.xlu0 %9713  ;;  %v16719_v31 = vand.u32 3, %v3217_v11  ;;  %v16736_v8 = vpop.f32.mrf.mxu0  ;;  %v3368_v11 = vsel %vm3364_vm4, %v3348_v62, %v3351_v29 }
 0x3b4   :  { %19576 = vst [vmem:[#allocation116_spill] sm:$0xff] %v16717_v19  ;;  %v16722_v59 = vand.u32 3, %v16602_v42  ;;  %v3294_v23 = vsub.s32 0, %v16699_v27  ;;  %v3374_v44 = vsel %vm3366_vm3, %v3357_v28, %v3373_v51  ;;  %v16738_v42 = vpop.f32.mrf.mxu1  ;;  %v3370_v9 = vsel %vm3366_vm3, %v3354_v54, %v3369_v50  ;;  %19578 = vst [vmem:[#allocation118_spill] sm:$0xff] %v16748_v1 }
 0x3b5   :  { %19577 = vst [vmem:[#allocation117_spill] sm:$0xff] %v16738_v42  ;;  %v3376_v51 = vsel %vm3364_vm4, %v3354_v54, %v3357_v28  ;;  %v3377_v15 = vsel %vm3367_vm6, %v3363_v63, 1326507024  ;;  %v3375_v56 = vsel %vm3365_vm8, %v3372_v57, %v3374_v44  ;;  %v16755_v29 = vshll.u32 %v3340_v52, 8  ;;  %v16757_v62 = vpop.f32.mrf.mxu0  ;;  %v6857_v52 = vld [vmem:[%s19135_s1 + $0x3e8] sm:$0xff]  ;;  %v6863_v57 = vld [vmem:[%s19135_s1 + $0x418] sm:$0xff] }
 0x3b6   :  { %v11201_v19 = vmin.u32 %v3294_v23, %v16699_v27  ;;  %v3378_v42 = vsel %vm3366_vm3, %v3360_v41, %v3377_v15  ;;  %v16759_v50 = vpop.f32.mrf.mxu1  ;;  %v16763_v54 = vpack.c.bf16 %v6851_v38, %v6845_v12  ;;  %v16765_v63 = vpack.c.bf16 %v6850_v60, %v6844_v46  ;;  %v6856_v60 = vld [vmem:[%s19135_s1 + $0x3e0] sm:$0xff] }
 0x3b7   :  { %19579 = vst [vmem:[#allocation119_spill] sm:$0xff] %v16759_v50  ;;  %v3379_v28 = vsel %vm3365_vm8, %v3376_v51, %v3378_v42  ;;  %v16767_v23 = vpop.permute.xlu0 %7295  ;;  %vm3216_vm2 = vweird.f32 %v16099_v5  ;;  %vm6517_vm7 = vcmp.lt.s32.totalorder %v16722_v59, 2  ;;  %v16773_v41 = vsel %vm3365_vm8, %v3368_v11, %v3370_v9  ;;  %v16781_v12 = vpop.f32.mrf.mxu0  ;;  %v6874_v5 = vld [vmem:[%s19135_s1 + $0x470] sm:$0xff] }
 0x3b8   :  { %19580 = vst [vmem:[#allocation120_spill] sm:$0xff] %v16765_v63  ;;  %19581 = vst [vmem:[#allocation121_spill] sm:$0xff] %v16767_v23  ;;  %v3296_v15 = vclz %v11201_v19  ;;  %v16783_v44 = vpop.f32.mrf.mxu1  ;;  %9510 = vmatmul.mubr.bf16.gmra.mxu1 %v15209_v22  ;;  %v16787_v19 = vmul.u32.u64.low %v16755_v29, %v3379_v28  ;;  %v16788_v38 = vmul.u32.u64.high %v16755_v29, %v3379_v28, %v16787_v19  ;;  %8990 = vmatprep.mubr.bf16.mxu0 %v16763_v54  ;;  %vm3219_vm1 = vcmp.lt.s32.totalorder %v16719_v31, 2  ;;  %v16815_v28 = vpop.permute.xlu1 %9718 }
 0x3b9   :  { %19582 = vst [vmem:[#allocation122_spill] sm:$0xff] %v16781_v12  ;;  %19583 = vst [vmem:[#allocation123_spill] sm:$0xff] %v16783_v44  ;;  %v16791_v47 = vmul.u32.u64.low %v16755_v29, %v3375_v56  ;;  %v16792_v46 = vmul.u32.u64.high %v16755_v29, %v3375_v56, %v16791_v47  ;;  %9519 = vmatprep.mubr.bf16.mxu1 %v15402_v26  ;;  %vm6518_vm5 = vcmp.eq.s32.totalorder %v16722_v59, 0  ;;  %vm6521_vm9 = vcmp.eq.s32.totalorder %v16722_v59, 2  ;;  %8991 = vmatmul.mubr.bf16.gmra.mxu0 %v16765_v63  ;;  %v6862_v56 = vld [vmem:[%s19135_s1 + $0x410] sm:$0xff]  ;;  %v16807_v42 = vpop.f32.mrf.mxu0 }
 0x3ba   :  { %v11202_v22 = vadd.s32 4294967294, %v3296_v15  ;;  %19584 = vst [vmem:[#allocation124_spill] sm:$0xff] %v16807_v42  ;;  %v16809_v26 = vpop.f32.mrf.mxu1  ;;  %vm3220_vm10 = vcmp.eq.s32.totalorder %v16719_v31, 0  ;;  %vm3223_vm11 = vcmp.eq.s32.totalorder %v16719_v31, 2  ;;  %v7374_v9 = vlaneseq  ;;  %19587 = vst [vmem:[#allocation127_spill] sm:$0xff] %v16815_v28 }
 0x3bb   :  { %19585 = vst [vmem:[#allocation125_spill] sm:$0xff] %v16809_v26  ;;  %v12362_v11 = vpop.eup %12361  ;;  %v16813_v51 = vpack.c.bf16 %v6863_v57, %v6857_v52  ;;  %v3284_v44 = vadd.s32 %v16586_v10, %v16571_v32  ;;  %v3387_v12 = vmul.u32 %v16755_v29, %v16773_v41  ;;  %v16821_v26 = vpop.f32.mrf.mxu0  ;;  %vm3389_vm13 = vc.u32 %v16788_v38, %v16791_v47  ;;  %v6869_v32 = vld [vmem:[%s19135_s1 + $0x448] sm:$0xff]  ;;  %v6875_v10 = vld [vmem:[%s19135_s1 + $0x478] sm:$0xff] }
 0x3bc   :  { %v12364_v15 = vpop.eup %12363  ;;  %v3224_v19 = vxor.u32 2147483648, %v12362_v11  ;;  %vm11203_vm12 = vcmp.lt.s32.totalorder %v11202_v22, 0  ;;  %19588 = vst [vmem:[#allocation128_spill] sm:$0xff] %v16821_v26  ;;  %v16823_v42 = vpop.f32.mrf.mxu1  ;;  %v16828_v52 = vpack.c.bf16 %v6862_v56, %v6856_v60  ;;  %v3390_v26 = vadd.s32 1, %v16792_v46 }
 0x3bd   :  { %19586 = vst [vmem:[#allocation126_spill] sm:$0xff] %v16813_v51  ;;  %19589 = vst [vmem:[#allocation129_spill] sm:$0xff] %v16823_v42  ;;  %v3221_v63 = vxor.u32 2147483648, %v12364_v15  ;;  %v3299_v50 = vsel %vm11203_vm12, 0, %v11202_v22  ;;  %9000 = vmatprep.mubr.bf16.mxu0 %v16813_v51  ;;  %v16836_v29 = vpop.permute.xlu0 %9723  ;;  %v16843_v56 = vpop.f32.mrf.mxu0  ;;  %v16869_v59 = vshrl.u32 %v7374_v9, 7  ;;  %vm3230_vm14 = vcmp.lt.s32.totalorder %v16298_v55, 0 }
 0x3be   :  { %19590 = vst [vmem:[#allocation130_spill] sm:$0xff] %v16836_v29  ;;  %v3225_v41 = vsel %vm3223_vm11, %v3224_v19, %v12364_v15  ;;  %v6523_v57 = vsel %vm6521_vm9, %v3224_v19, %v12364_v15  ;;  %v3300_v22 = vsub.s32 32, %v3299_v50  ;;  %v3301_v60 = vshll.u32 %v16699_v27, %v3299_v50  ;;  %19591 = vst [vmem:[#allocation131_spill] sm:$0xff] %v16843_v56  ;;  %v16845_v28 = vpop.f32.mrf.mxu1 }
 0x3bf   :  { %19592 = vst [vmem:[#allocation132_spill] sm:$0xff] %v16845_v28  ;;  %v3222_v42 = vsel %vm3220_vm10, %v12362_v11, %v3221_v63  ;;  %v6520_v51 = vsel %vm6518_vm5, %v12362_v11, %v3221_v63  ;;  %v3304_v29 = vsub.s32 4294967266, %v3299_v50  ;;  %v16856_v19 = vpack.c.bf16 %v6875_v10, %v6869_v32  ;;  %v16858_v56 = vpop.f32.mrf.mxu0  ;;  %19596 = vst [vmem:[#allocation136_spill] sm:$0xff] %v16869_v59 }
 0x3c0   :  { %v3226_v36 = vsel %vm3219_vm1, %v3222_v42, %v3225_v41  ;;  %v6524_v15 = vsel %vm6517_vm7, %v6520_v51, %v6523_v57  ;;  %v3302_v27 = vshrl.u32 %v3284_v44, %v3300_v22  ;;  %19594 = vst [vmem:[#allocation134_spill] sm:$0xff] %v16858_v56  ;;  %v16860_v28 = vpop.f32.mrf.mxu1  ;;  %9520 = vmatmul.mubr.bf16.gmra.mxu1 %v15524_v30  ;;  %v16871_v44 = vpop.permute.xlu1 %7300  ;;  %v16881_v10 = vsub.s32 1, %v16869_v59  ;;  %v7212_v22 = vld [vmem:[%s19136_s2] sm:$0xf] }
 0x3c1   :  { %19593 = vst [vmem:[#allocation133_spill] sm:$0xff] %v16856_v19  ;;  %19595 = vst [vmem:[#allocation135_spill] sm:$0xff] %v16860_v28  ;;  %v3227_v50 = vsel %vm3216_vm2, nan, %v3226_v36  ;;  %v3305_v63 = vadd.s32 127, %v3304_v29  ;;  %v3391_v31 = vsel %vm3389_vm13, %v3390_v26, %v16792_v46  ;;  %9529 = vmatprep.mubr.bf16.mxu1 %v15527_v35  ;;  %v16874_v51 = vpop.f32.mrf.mxu0  ;;  %v6525_v36 = vsel %vm3216_vm2, nan, %v6524_v15  ;;  %9001 = vmatmul.mubr.bf16.gmra.mxu0 %v16828_v52  ;;  %v16884_v46 = vpop.permute.xlu0 %7305  ;;  %v6868_v35 = vld [vmem:[%s19135_s1 + $0x440] sm:$0xff] }
 0x3c2   :  { %19597 = vst [vmem:[#allocation137_spill] sm:$0xff] %v16871_v44  ;;  %7360 = vperm.xlu1 %11924, %v3227_v50   ;;  %v3303_v42 = vor.u32 %v3302_v27, %v3301_v60  ;;  %v3392_v11 = vadd.s32 %v3391_v31, %v3387_v12  ;;  %v16876_v30 = vpop.f32.mrf.mxu1  ;;  %19598 = vst [vmem:[#allocation138_spill] sm:$0xff] %v16881_v10  ;;  %9010 = vmatprep.mubr.bf16.mxu0 %v16856_v19  ;;  %vm3320_vm4 = vweird.f32 %v16298_v55 }
 0x3c3   :  { %v3306_v32 = vshll.u32 %v3305_v63, 23  ;;  %19599 = vst [vmem:[#allocation139_spill] sm:$0xff] %v16884_v46  ;;  %v16893_v12 = vpop.f32.mrf.mxu0  ;;  %v16907_v50 = vrot.slane %v7212_v22, %v16881_v10  ;;  %v16909_v63 = vpack.c.bf16 %v6874_v5, %v6868_v35  ;;  %vm3334_vm7 = vcmp.lt.s32.totalorder %v16438_v2, 0 }
 0x3c4   :  { %v3393_v26 = vadd.s32 536870912, %v3392_v11  ;;  %v16895_v9 = vpop.f32.mrf.mxu1  ;;  %v3310_v41 = vcvt.s32.f32 %v3303_v42  ;;  %v16911_v31 = vpop.permute.xlu1 %9728  ;;  %v3314_v42 = vsub.s32 4, %v16675_v40  ;;  %vm3424_vm10 = vweird.f32 %v16438_v2 }
 0x3c5   :  { %v3307_v29 = vor.u32 4788187, %v3306_v32  ;;  %v16902_v60 = vpop.f32.mrf.mxu0  ;;  %19600 = vst [vmem:[#allocation140_spill] sm:$0xff] %v16909_v63  ;;  %19601 = vst [vmem:[#allocation141_spill] sm:$0xff] %v16911_v31  ;;  %v7411_v35 = vmul.f32 %v16907_v50, %v16356_v18  ;;  %v16925_v5 = vpop.permute.xlu0 %9733 }
 0x3c6   :  { %9788 = vperm.xlu1 %11924, %v6525_v36   ;;  %v16897_v57 = vshrl.u32 %v3393_v26, 30  ;;  %v16904_v15 = vpop.f32.mrf.mxu1  ;;  %19605 = vst [vmem:[#allocation145_spill] sm:$0xff] %v16925_v5  ;;  %v3315_v5 = vsel %vm3230_vm14, %v3314_v42, %v16675_v40 }
 0x3c7   :  { %v3308_v27 = vand.u32 2147483647, %v3307_v29  ;;  %v16915_v32 = vpop.f32.mrf.mxu0  ;;  %v16921_v29 = vsub.s32 0, %v16869_v59 }
 0x3c8   :  { %v3395_v36 = vshll.u32 %v16897_v57, 30  ;;  %19602 = vst [vmem:[#allocation142_spill] sm:$0xff] %v16915_v32  ;;  %v16917_v26 = vpop.f32.mrf.mxu1  ;;  %9530 = vmatmul.mubr.bf16.gmra.mxu1 %v15672_v3  ;;  %v19606_v3 = vand.u32 2147483647, %v16298_v55 }
 0x3c9   :  { %19603 = vst [vmem:[#allocation143_spill] sm:$0xff] %v16917_v26  ;;  %v3311_v28 = vmul.f32 %v3310_v41, %v3308_v27  ;;  %19604 = vst [vmem:[#allocation144_spill] sm:$0xff] %v16921_v29  ;;  %9539 = vmatprep.mubr.bf16.mxu1 %v15868_v24  ;;  %v16931_v32 = vpop.f32.mrf.mxu0  ;;  %9011 = vmatmul.mubr.bf16.gmra.mxu0 %v16909_v63  ;;  %v16950_v10 = vrot.slane %v7212_v22, %v16921_v29  ;;  %v6886_v41 = vld [vmem:[%s19135_s1 + $0x4d0] sm:$0xff] }
 0x3ca   :  { %v16929_v31 = vsub.s32 %v3392_v11, %v3395_v36  ;;  %v16933_v26 = vpop.f32.mrf.mxu1  ;;  %vm16937_vm15 = vcmp.le.f32.partialorder %v19606_v3, 0.7853982  ;;  %v8539_v11 = vadd.f32 %v16387_v34, %v7411_v35  ;;  %v16952_v3 = vpop.permute.xlu1 %7310 }
 0x3cb   :  { %v3312_v27 = vxor.u32 2147483648, %v3311_v28  ;;  %v16945_v36 = vpop.f32.mrf.mxu0  ;;  %19610 = vst [vmem:[#allocation147_spill] sm:$0xff] %v16952_v3  ;;  %v7418_v22 = vmul.f32 %v16950_v10, %v16413_v14  ;;  %v7422_v19 = vmul.f32 %v16950_v10, %v16440_v4  ;;  %v19623_v4 = vld [vmem:[#allocation79_spill] sm:$0xff] }
 0x3cc   :  { %v3398_v24 = vsub.s32 0, %v16929_v31  ;;  %v16947_v59 = vpop.f32.mrf.mxu1  ;;  %v16959_v42 = vadd.f32 %v16389_v25, %v8539_v11 }
 0x3cd   :  { %19609 = vst [vmem:[#allocation146_spill] sm:$0xff] %v16947_v59  ;;  %v3313_v56 = vsel %vm3230_vm14, %v3312_v27, %v3311_v28  ;;  %v16961_v34 = vpop.f32.mrf.mxu0  ;;  %v16967_v28 = vsel %vm16937_vm15, 0, %v3315_v5  ;;  %v16974_v27 = vpop.permute.xlu0 %7315  ;;  %v6880_v5 = vld [vmem:[%s19135_s1 + $0x4a0] sm:$0xff] }
 0x3ce   :  { %v3316_v18 = vsel %vm16937_vm15, %v16298_v55, %v3313_v56  ;;  %v11205_v40 = vmin.u32 %v3398_v24, %v16929_v31  ;;  %19611 = vst [vmem:[#allocation148_spill] sm:$0xff] %v16959_v42  ;;  %v16963_v35 = vpop.f32.mrf.mxu1  ;;  %19613 = vst [vmem:[#allocation150_spill] sm:$0xff] %v16967_v28  ;;  %v6881_v56 = vld [vmem:[%s19135_s1 + $0x4a8] sm:$0xff]  ;;  %v6887_v24 = vld [vmem:[%s19135_s1 + $0x4d8] sm:$0xff]  ;;  %v3321_v29 = vadd.s32 3, %v16967_v28  ;;  %v8551_v28 = vadd.f32 %v19623_v4, %v7422_v19 }
 0x3cf   :  { %19612 = vst [vmem:[#allocation149_spill] sm:$0xff] %v16963_v35  ;;  %12365 = vcosq.f32 %v3316_v18  ;;  %19614 = vst [vmem:[#allocation151_spill] sm:$0xff] %v16974_v27  ;;  %v16985_v11 = vpop.f32.mrf.mxu0  ;;  %v7419_v35 = vmul.f32 %v16907_v50, %v16413_v14  ;;  %v12221_v55 = vld [vmem:[%s19140_s6 + $0x68] sm:$0xff]  }
 0x3d0   :  { %12367 = vsinq.f32 %v3316_v18  ;;  %v3400_v25 = vclz %v11205_v40  ;;  %19615 = vst [vmem:[#allocation152_spill] sm:$0xff] %v16985_v11  ;;  %v16987_v42 = vpop.f32.mrf.mxu1  ;;  %9540 = vmatmul.mubr.bf16.gmra.mxu1 %v15976_v7  ;;  %v8547_v18 = vadd.f32 %v16433_v39, %v7418_v22  ;;  %v19617_v40 = vld [vmem:[#allocation22_spill] sm:$0xff]  ;;  %v17004_v7 = vpack.c.bf16 %v6887_v24, %v6881_v56 }
 0x3d1   :  { %19616 = vst [vmem:[#allocation153_spill] sm:$0xff] %v16987_v42  ;;  %9549 = vmatprep.mubr.bf16.mxu1 %v19617_v40  ;;  %v16997_v59 = vpop.f32.mrf.mxu0  ;;  %v7426_v39 = vmul.f32 %v16950_v10, %v16480_v45  ;;  %v17008_v22 = vpack.c.bf16 %v6886_v41, %v6880_v5  ;;  %v3388_v40 = vadd.s32 %v16791_v47, %v16788_v38  ;;  %v17026_v47 = vpop.permute.xlu0 %9743 }
 0x3d2   :  { %v11206_v63 = vadd.s32 4294967294, %v3400_v25  ;;  %v16999_v11 = vpop.f32.mrf.mxu1  ;;  %v17002_v42 = vadd.f32 %v16435_v49, %v8547_v18  ;;  %19620 = vst [vmem:[#allocation155_spill] sm:$0xff] %v17004_v7  ;;  %v17010_v25 = vpop.permute.xlu1 %9738  ;;  %v8549_v14 = vadd.f32 %v16451_v17, %v7419_v35  ;;  %9020 = vmatprep.mubr.bf16.mxu0 %v17004_v7  ;;  %v7427_v5 = vmul.f32 %v16907_v50, %v16480_v45  ;;  %v19625_v35 = vld [vmem:[#allocation78_spill] sm:$0xff] }
 0x3d3   :  { %19618 = vst [vmem:[#allocation22_spill] sm:$0xff] %v16999_v11  ;;  %19621 = vst [vmem:[#allocation156_spill] sm:$0xff] %v17008_v22  ;;  %v17016_v11 = vpop.f32.mrf.mxu0  ;;  %v8557_v24 = vadd.f32 %v16498_v33, %v7426_v39  ;;  %v7430_v38 = vmul.f32 %v16950_v10, %v16506_v16  ;;  %9021 = vmatmul.mubr.bf16.gmra.mxu0 %v17008_v22  ;;  %v6893_v33 = vld [vmem:[%s19135_s1 + $0x508] sm:$0xff]  ;;  %v17043_v45 = vand.u32 3, %v3321_v29  ;;  %v19631_v29 = vld [vmem:[#allocation89_spill] sm:$0xff] }
 0x3d4   :  { %19619 = vst [vmem:[#allocation154_spill] sm:$0xff] %v17002_v42  ;;  %19622 = vst [vmem:[#allocation157_spill] sm:$0xff] %v17010_v25  ;;  %vm11207_vm0 = vcmp.lt.s32.totalorder %v11206_v63, 0  ;;  %v17018_v49 = vpop.f32.mrf.mxu1  ;;  %v17030_v41 = vadd.f32 %v19625_v35, %v8549_v14  ;;  %v19630_v35 = vld [vmem:[#allocation87_spill] sm:$0xff]  ;;  %v6892_v25 = vld [vmem:[%s19135_s1 + $0x500] sm:$0xff] }
 0x3d5   :  { %v3403_v56 = vsel %vm11207_vm0, 0, %v11206_v63  ;;  %19624 = vst [vmem:[#allocation79_spill] sm:$0xff] %v17026_v47  ;;  %v6899_v63 = vld [vmem:[%s19135_s1 + $0x538] sm:$0xff]  ;;  %v17039_v18 = vpop.f32.mrf.mxu0  ;;  %v17049_v14 = vadd.f32 %v16500_v43, %v8557_v24  ;;  %v8559_v47 = vadd.f32 %v19630_v35, %v7427_v5  ;;  %v8561_v22 = vadd.f32 %v19631_v29, %v7430_v38  ;;  %v19634_v43 = vld [vmem:[#allocation24_spill] sm:$0xff] }
 0x3d6   :  { %v3404_v17 = vsub.s32 32, %v3403_v56  ;;  %v3405_v4 = vshll.u32 %v16929_v31, %v3403_v56  ;;  %v3408_v19 = vsub.s32 4294967266, %v3403_v56  ;;  %19626 = vst [vmem:[#allocation78_spill] sm:$0xff] %v17030_v41  ;;  %v17041_v39 = vpop.f32.mrf.mxu1  ;;  %v19627_v31 = vld [vmem:[#allocation80_spill] sm:$0xff]  ;;  %v7434_v35 = vmul.f32 %v16950_v10, %v16548_v53  ;;  %v6911_v38 = vld [vmem:[%s19135_s1 + $0x598] sm:$0xff] }
 0x3d7   :  { %v17046_v56 = vadd.f32 %v19627_v31, %v8551_v28  ;;  %19629 = vst [vmem:[#allocation158_spill] sm:$0xff] %v17049_v14  ;;  %v6898_v41 = vld [vmem:[%s19135_s1 + $0x530] sm:$0xff]  ;;  %v17059_v7 = vpop.f32.mrf.mxu0  ;;  %v17068_v31 = vpack.c.bf16 %v6899_v63, %v6893_v33  ;;  %vm3324_vm3 = vcmp.eq.s32.totalorder %v17043_v45, 0  ;;  %vm3327_vm6 = vcmp.eq.s32.totalorder %v17043_v45, 2  ;;  %v19649_v14 = vld [vmem:[#allocation99_spill] sm:$0xff] }
 0x3d8   :  { %v3406_v16 = vshrl.u32 %v3388_v40, %v3404_v17  ;;  %v3409_v42 = vadd.s32 127, %v3408_v19  ;;  %19632 = vst [vmem:[#allocation87_spill] sm:$0xff] %v17059_v7  ;;  %v17061_v28 = vpop.f32.mrf.mxu1  ;;  %9550 = vmatmul.mubr.bf16.gmra.mxu1 %v19634_v43  ;;  %v19635_v24 = vld [vmem:[#allocation88_spill] sm:$0xff]  ;;  %v6905_v40 = vld [vmem:[%s19135_s1 + $0x568] sm:$0xff]  ;;  %v17078_v17 = vpop.permute.xlu1 %7320  ;;  %v19639_v19 = vld [vmem:[#allocation26_spill] sm:$0xff]  ;;  %v17084_v63 = vpack.c.bf16 %v6898_v41, %v6892_v25  ;;  %v8567_v7 = vadd.f32 %v16579_v21, %v7434_v35 }
 0x3d9   :  { %19628 = vst [vmem:[#allocation80_spill] sm:$0xff] %v17046_v56  ;;  %19633 = vst [vmem:[#allocation89_spill] sm:$0xff] %v17061_v28  ;;  %v17066_v5 = vadd.f32 %v19635_v24, %v8559_v47  ;;  %9559 = vmatprep.mubr.bf16.mxu1 %v19639_v19  ;;  %v19640_v43 = vld [vmem:[#allocation90_spill] sm:$0xff]  ;;  %v17086_v24 = vpop.f32.mrf.mxu0  ;;  %9030 = vmatprep.mubr.bf16.mxu0 %v17068_v31  ;;  %v7435_v19 = vmul.f32 %v16907_v50, %v16548_v53  ;;  %vm3323_vm8 = vcmp.lt.s32.totalorder %v17043_v45, 2 }
 0x3da   :  { %19637 = vst [vmem:[#allocation88_spill] sm:$0xff] %v17068_v31  ;;  %19638 = vst [vmem:[#allocation159_spill] sm:$0xff] %v17078_v17  ;;  %v3407_v29 = vor.u32 %v3406_v16, %v3405_v4  ;;  %v3410_v47 = vshll.u32 %v3409_v42, 23  ;;  %v17082_v33 = vadd.f32 %v19640_v43, %v8561_v22  ;;  %v17088_v28 = vpop.f32.mrf.mxu1  ;;  %v7438_v16 = vmul.f32 %v16950_v10, %v16590_v61  ;;  %v17097_v42 = vpop.permute.xlu0 %7325  ;;  %v19648_v61 = vld [vmem:[#allocation97_spill] sm:$0xff] }
 0x3db   :  { %19636 = vst [vmem:[#allocation24_spill] sm:$0xff] %v17066_v5  ;;  %19642 = vst [vmem:[#allocation90_spill] sm:$0xff] %v17084_v63  ;;  %v17102_v41 = vpack.c.bf16 %v6911_v38, %v6905_v40  ;;  %v17104_v43 = vpop.f32.mrf.mxu0  ;;  %v17112_v53 = vadd.f32 %v16581_v6, %v8567_v7  ;;  %9031 = vmatmul.mubr.bf16.gmra.mxu0 %v17084_v63  ;;  %v19651_v7 = vand.u32 2147483647, %v16438_v2 }
 0x3dc   :  { %19641 = vst [vmem:[#allocation26_spill] sm:$0xff] %v17082_v33  ;;  %19643 = vst [vmem:[#allocation160_spill] sm:$0xff] %v17097_v42  ;;  %v17099_v22 = vpop.eup %12365  ;;  %v3411_v25 = vor.u32 4788187, %v3410_v47  ;;  %v3414_v4 = vcvt.s32.f32 %v3407_v29  ;;  %v17106_v5 = vpop.f32.mrf.mxu1  ;;  %v8569_v33 = vadd.f32 %v19648_v61, %v7435_v19  ;;  %v8571_v56 = vadd.f32 %v19649_v14, %v7438_v16  ;;  %v19654_v19 = vld [vmem:[#allocation98_spill] sm:$0xff]  ;;  %v19675_v14 = vld [vmem:[#allocation119_spill] sm:$0xff] }
 0x3dd   :  { %19644 = vst [vmem:[#allocation161_spill] sm:$0xff] %v17099_v22  ;;  %19645 = vst [vmem:[#allocation162_spill] sm:$0xff] %v17102_v41  ;;  %v17108_v21 = vpop.eup %12367  ;;  %v7442_v29 = vmul.f32 %v16950_v10, %v16621_v48  ;;  %v17121_v47 = vpop.f32.mrf.mxu0  ;;  %v19650_v6 = vxor.u32 2147483648, %v17099_v22  ;;  %vm17132_vm2 = vcmp.le.f32.partialorder %v19651_v7, 0.7853982  ;;  %9040 = vmatprep.mubr.bf16.mxu0 %v17102_v41 }
 0x3de   :  { %19646 = vst [vmem:[#allocation163_spill] sm:$0xff] %v17108_v21  ;;  %19647 = vst [vmem:[#allocation164_spill] sm:$0xff] %v17112_v53  ;;  %v3412_v38 = vand.u32 2147483647, %v3411_v25  ;;  %v17123_v35 = vpop.f32.mrf.mxu1  ;;  %v17137_v16 = vadd.f32 %v19654_v19, %v8569_v33  ;;  %v19656_v25 = vld [vmem:[#allocation100_spill] sm:$0xff]  ;;  %v6904_v53 = vld [vmem:[%s19135_s1 + $0x560] sm:$0xff]  ;;  %v17149_v7 = vpop.permute.xlu1 %9748 }
 0x3df   :  { %v3329_v61 = vsel %vm3327_vm6, %v19650_v6, %v17108_v21  ;;  %v17140_v40 = vadd.f32 %v19656_v25, %v8571_v56  ;;  %v6910_v6 = vld [vmem:[%s19135_s1 + $0x590] sm:$0xff]  ;;  %19658 = vst [vmem:[#allocation98_spill] sm:$0xff] %v17149_v7  ;;  %v19659_v63 = vxor.u32 2147483648, %v17108_v21  ;;  %v3418_v19 = vsub.s32 4, %v16897_v57  ;;  %v17164_v7 = vpop.f32.mrf.mxu0 }
 0x3e0   :  { %19655 = vst [vmem:[#allocation97_spill] sm:$0xff] %v17137_v16  ;;  %v3415_v56 = vmul.f32 %v3414_v4, %v3412_v38  ;;  %v8577_v25 = vadd.f32 %v16649_v0, %v7442_v29  ;;  %v6917_v16 = vld [vmem:[%s19135_s1 + $0x5c8] sm:$0xff]  ;;  %19660 = vst [vmem:[#allocation100_spill] sm:$0xff] %v17164_v7  ;;  %v17166_v41 = vpop.f32.mrf.mxu1  ;;  %9560 = vmatmul.mubr.bf16.gmra.mxu1 %v16604_v20  ;;  %v7443_v0 = vmul.f32 %v16907_v50, %v16621_v48  ;;  %v19662_v4 = vld [vmem:[#allocation106_spill] sm:$0xff]  ;;  %v17176_v29 = vpop.permute.xlu0 %9753 }
 0x3e1   :  { %19657 = vst [vmem:[#allocation99_spill] sm:$0xff] %v17140_v40  ;;  %v3326_v33 = vsel %vm3324_vm3, %v17099_v22, %v19659_v63  ;;  %v6923_v40 = vld [vmem:[%s19135_s1 + $0x5f8] sm:$0xff]  ;;  %19661 = vst [vmem:[#allocation165_spill] sm:$0xff] %v17166_v41  ;;  %v7446_v38 = vmul.f32 %v16950_v10, %v19662_v4  ;;  %9569 = vmatprep.mubr.bf16.mxu1 %v16763_v54  ;;  %v17184_v45 = vpack.c.bf16 %v6910_v6, %v6904_v53  ;;  %v19665_v48 = vld [vmem:[#allocation108_spill] sm:$0xff] }
 0x3e2   :  { %v3330_v63 = vsel %vm3323_vm8, %v3326_v33, %v3329_v61  ;;  %19663 = vst [vmem:[#allocation166_spill] sm:$0xff] %v17176_v29  ;;  %v3416_v7 = vxor.u32 2147483648, %v3415_v56  ;;  %v19664_v20 = vld [vmem:[#allocation105_spill] sm:$0xff]  ;;  %v17186_v61 = vpop.f32.mrf.mxu0  ;;  %v17188_v33 = vpop.f32.mrf.mxu1  ;;  %v8579_v4 = vadd.f32 %v19665_v48, %v7443_v0  ;;  %v19666_v22 = vld [vmem:[#allocation110_spill] sm:$0xff]  ;;  %v17192_v21 = vpack.c.bf16 %v6923_v40, %v6917_v16  ;;  %v6922_v0 = vld [vmem:[%s19135_s1 + $0x5f0] sm:$0xff] }
 0x3e3   :  { %v3331_v41 = vsel %vm3320_vm4, nan, %v3330_v63  ;;  %v17182_v31 = vadd.f32 %v19664_v20, %v8577_v25  ;;  %v8581_v29 = vadd.f32 %v19666_v22, %v7446_v38  ;;  %v7450_v54 = vmul.f32 %v16950_v10, %v16686_v13  ;;  %v19667_v16 = vld [vmem:[#allocation109_spill] sm:$0xff]  ;;  %9041 = vmatmul.mubr.bf16.gmra.mxu0 %v17184_v45  ;;  %v6916_v63 = vld [vmem:[%s19135_s1 + $0x5c0] sm:$0xff] }
 0x3e4   :  { %7365 = vperm.xlu0 %11923, %v3331_v41   ;;  %v3417_v25 = vsel %vm3334_vm7, %v3416_v7, %v3415_v56  ;;  %v3419_v53 = vsel %vm3334_vm7, %v3418_v19, %v16897_v57  ;;  %v7451_v6 = vmul.f32 %v16907_v50, %v16686_v13  ;;  %v7454_v48 = vmul.f32 %v16950_v10, %v16748_v1  ;;  %v17205_v41 = vpop.f32.mrf.mxu0  ;;  %v17207_v22 = vpop.f32.mrf.mxu1  ;;  %v19680_v1 = vld [vmem:[#allocation124_spill] sm:$0xff] }
 0x3e5   :  { %v3420_v40 = vsel %vm17132_vm2, %v16438_v2, %v3417_v25  ;;  %v17213_v7 = vadd.f32 %v19667_v16, %v8579_v4  ;;  %v17216_v56 = vadd.f32 %v16681_v37, %v8581_v29  ;;  %v17218_v57 = vpop.permute.xlu1 %7330  ;;  %v8587_v19 = vadd.f32 %v16703_v58, %v7450_v54  ;;  %9050 = vmatprep.mubr.bf16.mxu0 %v17192_v21  ;;  %v12223_v2 = vld [vmem:[%s19140_s6 + $0x60] sm:$0xff]  }
 0x3e6   :  { %19669 = vst [vmem:[#allocation108_spill] sm:$0xff] %v17218_v57  ;;  %12369 = vcosq.f32 %v3420_v40  ;;  %v8589_v4 = vadd.f32 %v16736_v8, %v7451_v6  ;;  %v8591_v37 = vadd.f32 %v16757_v62, %v7454_v48  ;;  %v17230_v38 = vpop.f32.mrf.mxu0  ;;  %v17232_v29 = vpop.f32.mrf.mxu1  ;;  %v17236_v20 = vsel %vm17132_vm2, 0, %v3419_v53  ;;  %v19671_v62 = vld [vmem:[#allocation115_spill] sm:$0xff]  ;;  %v19673_v6 = vld [vmem:[#allocation117_spill] sm:$0xff] }
 0x3e7   :  { %19668 = vst [vmem:[#allocation105_spill] sm:$0xff] %v17213_v7  ;;  %12371 = vsinq.f32 %v3420_v40  ;;  %v7458_v58 = vmul.f32 %v16950_v10, %v16767_v23  ;;  %v7459_v54 = vmul.f32 %v16907_v50, %v16767_v23  ;;  %v17243_v8 = vpop.permute.xlu0 %7335  ;;  %v17246_v25 = vadd.f32 %v19671_v62, %v8587_v19  ;;  %v19679_v7 = vld [vmem:[#allocation120_spill] sm:$0xff] }
 0x3e8   :  { %19670 = vst [vmem:[#allocation110_spill] sm:$0xff] %v17243_v8  ;;  %v17249_v48 = vadd.f32 %v19673_v6, %v8589_v4  ;;  %v17252_v53 = vadd.f32 %v19675_v14, %v8591_v37  ;;  %v7462_v40 = vmul.f32 %v16950_v10, %v16871_v44  ;;  %v17256_v16 = vpop.f32.mrf.mxu0  ;;  %v17258_v13 = vpop.f32.mrf.mxu1  ;;  %9570 = vmatmul.mubr.bf16.gmra.mxu1 %v19679_v7  ;;  %v19681_v62 = vld [vmem:[#allocation128_spill] sm:$0xff]  ;;  %v19682_v4 = vld [vmem:[#allocation126_spill] sm:$0xff]  ;;  %v19683_v6 = vld [vmem:[#allocation131_spill] sm:$0xff] }
 0x3e9   :  { %19672 = vst [vmem:[#allocation109_spill] sm:$0xff] %v17246_v25  ;;  %19677 = vst [vmem:[#allocation119_spill] sm:$0xff] %v17256_v16  ;;  %v17261_v23 = vpack.c.bf16 %v6922_v0, %v6916_v63  ;;  %v8597_v19 = vadd.f32 %v19680_v1, %v7458_v58  ;;  %v8599_v25 = vadd.f32 %v19681_v62, %v7459_v54  ;;  %9579 = vmatprep.mubr.bf16.mxu1 %v19682_v4  ;;  %v19684_v0 = vld [vmem:[#allocation125_spill] sm:$0xff]  ;;  %v17284_v62 = vpop.permute.xlu1 %9758  ;;  %v19687_v4 = vld [vmem:[#allocation132_spill] sm:$0xff] }
 0x3ea   :  { %19674 = vst [vmem:[#allocation115_spill] sm:$0xff] %v17249_v48  ;;  %19676 = vst [vmem:[#allocation117_spill] sm:$0xff] %v17252_v53  ;;  %v8601_v37 = vadd.f32 %v19683_v6, %v7462_v40  ;;  %v7466_v14 = vmul.f32 %v16950_v10, %v16884_v46  ;;  %v7467_v16 = vmul.f32 %v16907_v50, %v16884_v46  ;;  %v17273_v7 = vpop.f32.mrf.mxu0  ;;  %v17275_v63 = vpop.f32.mrf.mxu1  ;;  %v3425_v1 = vadd.s32 3, %v17236_v20  ;;  %v19685_v54 = vld [vmem:[#allocation129_spill] sm:$0xff] }
 0x3eb   :  { %19678 = vst [vmem:[#allocation167_spill] sm:$0xff] %v17258_v13  ;;  %v7470_v13 = vmul.f32 %v16950_v10, %v16952_v3  ;;  %v17279_v58 = vadd.f32 %v19684_v0, %v8597_v19  ;;  %v17282_v40 = vadd.f32 %v19685_v54, %v8599_v25  ;;  %19686 = vst [vmem:[#allocation120_spill] sm:$0xff] %v17284_v62  ;;  %v17300_v0 = vpop.permute.xlu0 %9763  ;;  %9051 = vmatmul.mubr.bf16.gmra.mxu0 %v17261_v23  ;;  %v19694_v54 = vld [vmem:[#allocation6_spill] sm:$0xff] }
 0x3ec   :  { %v17287_v6 = vadd.f32 %v19687_v4, %v8601_v37  ;;  %v8607_v46 = vadd.f32 %v16874_v51, %v7466_v14  ;;  %v8609_v3 = vadd.f32 %v16893_v12, %v7467_v16  ;;  %v17292_v48 = vpop.f32.mrf.mxu0  ;;  %v17294_v53 = vpop.f32.mrf.mxu1  ;;  %v7474_v19 = vmul.f32 %v16950_v10, %v16974_v27  ;;  %19688 = vst [vmem:[#allocation124_spill] sm:$0xff] %v17300_v0 }
 0x3ed   :  { %v8611_v44 = vadd.f32 %v16902_v60, %v7470_v13  ;;  %v7475_v25 = vmul.f32 %v16907_v50, %v16974_v27  ;;  %v7478_v60 = vmul.f32 %v16950_v10, %v17078_v17  ;;  %v3426_v14 = vand.u32 3, %v3425_v1  ;;  %9286 = vmatprep.mubr.bf16.mxu0 %v19694_v54  ;;  %v19826_v17 = vld [vmem:[#allocation138_spill] sm:$0xff] }
 0x3ee   :  { %v17304_v51 = vadd.f32 %v16876_v30, %v8607_v46  ;;  %v17307_v12 = vadd.f32 %v16895_v9, %v8609_v3  ;;  %v17314_v16 = vpop.f32.mrf.mxu0  ;;  %v17316_v37 = vpop.f32.mrf.mxu1  ;;  %v8617_v4 = vadd.f32 %v16931_v32, %v7474_v19  ;;  %v7483_v9 = vmul.f32 %v16907_v50, %v17097_v42  ;;  %v19700_v19 = vld [vmem:[#allocation133_spill] sm:$0xff] }
 0x3ef   :  { %v17310_v13 = vadd.f32 %v16904_v15, %v8611_v44  ;;  %19692 = vst [vmem:[#allocation125_spill] sm:$0xff] %v17314_v16  ;;  %19693 = vst [vmem:[#allocation129_spill] sm:$0xff] %v17316_v37  ;;  %v8619_v30 = vadd.f32 %v16945_v36, %v7475_v25  ;;  %v8621_v46 = vadd.f32 %v16961_v34, %v7478_v60  ;;  %v19698_v36 = vld [vmem:[#allocation146_spill] sm:$0xff]  ;;  %v19701_v25 = vld [vmem:[#allocation149_spill] sm:$0xff]  ;;  %vm3428_vm1 = vcmp.eq.s32.totalorder %v3426_v14, 0 }
 0x3f0   :  { %19689 = vst [vmem:[#allocation128_spill] sm:$0xff] %v17304_v51  ;;  %19690 = vst [vmem:[#allocation126_spill] sm:$0xff] %v17307_v12  ;;  %v7482_v44 = vmul.f32 %v16950_v10, %v17097_v42  ;;  %v7486_v15 = vmul.f32 %v16950_v10, %v17218_v57  ;;  %v17328_v3 = vpop.f32.mrf.mxu0  ;;  %v17330_v1 = vpop.f32.mrf.mxu1  ;;  %9580 = vmatmul.mubr.bf16.gmra.mxu1 %v16828_v52  ;;  %v17334_v32 = vadd.f32 %v16933_v26, %v8617_v4  ;;  %v19751_v16 = vld [vmem:[#allocation90_spill] sm:$0xff]  ;;  %v19825_v57 = vld [vmem:[#allocation103_spill] sm:$0xff] }
 0x3f1   :  { %19691 = vst [vmem:[#allocation131_spill] sm:$0xff] %v17310_v13  ;;  %19695 = vst [vmem:[#allocation132_spill] sm:$0xff] %v17328_v3  ;;  %v17337_v34 = vadd.f32 %v19698_v36, %v8619_v30  ;;  %9589 = vmatprep.mubr.bf16.mxu1 %v19700_v19  ;;  %v17341_v60 = vadd.f32 %v19701_v25, %v8621_v46  ;;  %v8629_v42 = vadd.f32 %v17016_v11, %v7483_v9  ;;  %v17356_v46 = vpop.permute.xlu0 %7345 }
 0x3f2   :  { %19696 = vst [vmem:[#allocation6_spill] sm:$0xff] %v17330_v1  ;;  %19697 = vst [vmem:[#allocation168_spill] sm:$0xff] %v17334_v32  ;;  %v8627_v54 = vadd.f32 %v16997_v59, %v7482_v44  ;;  %v8631_v27 = vadd.f32 %v17039_v18, %v7486_v15  ;;  %v17346_v1 = vpop.permute.xlu1 %7340  ;;  %v17348_v52 = vpop.f32.mrf.mxu0  ;;  %vm3431_vm5 = vcmp.eq.s32.totalorder %v3426_v14, 2  ;;  %v7490_v4 = vmul.f32 %v16950_v10, %v17243_v8  ;;  %v19707_v44 = vld [vmem:[#allocation22_spill] sm:$0xff] }
 0x3f3   :  { %19699 = vst [vmem:[#allocation146_spill] sm:$0xff] %v17337_v34  ;;  %19702 = vst [vmem:[#allocation133_spill] sm:$0xff] %v17341_v60  ;;  %v17350_v26 = vpop.eup %12369  ;;  %v7491_v30 = vmul.f32 %v16907_v50, %v17243_v8  ;;  %v17358_v59 = vpop.f32.mrf.mxu1  ;;  %v17367_v15 = vadd.f32 %v17018_v49, %v8629_v42  ;;  %vm3427_vm9 = vcmp.lt.s32.totalorder %v3426_v14, 2  ;;  %v7498_v42 = vmul.f32 %v16950_v10, %v17356_v46 }
 0x3f4   :  { %19703 = vst [vmem:[#allocation149_spill] sm:$0xff] %v17346_v1  ;;  %19704 = vst [vmem:[#allocation169_spill] sm:$0xff] %v17348_v52  ;;  %v17360_v11 = vpop.eup %12371  ;;  %v19297_v18 = vxor.u32 2147483648, %v17350_v26  ;;  %v17364_v9 = vadd.f32 %v19707_v44, %v8627_v54  ;;  %v17370_v36 = vadd.f32 %v17041_v39, %v8631_v27  ;;  %v17372_v19 = vpop.f32.mrf.mxu0  ;;  %v8637_v8 = vadd.f32 %v17086_v24, %v7490_v4  ;;  %v19713_v27 = vld [vmem:[#allocation7_spill] sm:$0xff]  ;;  %v19715_v54 = vld [vmem:[#allocation8_spill] sm:$0xff] }
 0x3f5   :  { %19705 = vst [vmem:[#allocation170_spill] sm:$0xff] %v17356_v46  ;;  %19706 = vst [vmem:[#allocation171_spill] sm:$0xff] %v17358_v59  ;;  %v19298_v25 = vxor.u32 2147483648, %v17360_v11  ;;  %v8639_v59 = vadd.f32 %v17104_v43, %v7491_v30  ;;  %v17377_v52 = vpop.f32.mrf.mxu1  ;;  %9287 = vmatmul.mubr.bf16.vlgmr.msra.gmra.mxu0 %v19713_v27  ;;  %v7494_v39 = vmul.f32 %v16950_v10, %v17346_v1 }
 0x3f6   :  { %19708 = vst [vmem:[#allocation22_spill] sm:$0xff] %v17364_v9  ;;  %19709 = vst [vmem:[#allocation172_spill] sm:$0xff] %v17367_v15  ;;  %v3433_v49 = vsel %vm3431_vm5, %v19297_v18, %v17360_v11  ;;  %v17389_v24 = vpop.f32.mrf.mxu0  ;;  %9296 = vmatprep.mubr.bf16.mxu0 %v19715_v54  ;;  %v17397_v4 = vadd.f32 %v17088_v28, %v8637_v8  ;;  %v7499_v54 = vmul.f32 %v16907_v50, %v17356_v46 }
 0x3f7   :  { %19710 = vst [vmem:[#allocation173_spill] sm:$0xff] %v17370_v36  ;;  %19711 = vst [vmem:[#allocation174_spill] sm:$0xff] %v17372_v19  ;;  %v3430_v43 = vsel %vm3428_vm1, %v17350_v26, %v19298_v25  ;;  %v17400_v30 = vadd.f32 %v17106_v5, %v8639_v59  ;;  %v17402_v44 = vpop.f32.mrf.mxu1  ;;  %v8641_v18 = vadd.f32 %v17121_v47, %v7494_v39  ;;  %v19719_v25 = vld [vmem:[#allocation150_spill] sm:$0xff]  ;;  %v19722_v59 = vld [vmem:[#allocation140_spill] sm:$0xff] }
 0x3f8   :  { %19712 = vst [vmem:[#allocation175_spill] sm:$0xff] %v17377_v52  ;;  %19714 = vst [vmem:[#allocation7_spill] sm:$0xff] %v17389_v24  ;;  %v3434_v27 = vsel %vm3427_vm9, %v3430_v43, %v3433_v49  ;;  %v8647_v24 = vadd.f32 %v17186_v61, %v7498_v42  ;;  %v6619_v28 = vand.u32 3, %v19719_v25  ;;  %v17412_v8 = vpop.f32.mrf.mxu0  ;;  %v12213_v61 = vld [vmem:[%s19140_s6 + $0x78] sm:$0xff]   ;;  %v8649_v49 = vadd.f32 %v17205_v41, %v7499_v54  ;;  %v19727_v39 = vld [vmem:[#allocation163_spill] sm:$0xff] }
 0x3f9   :  { %19716 = vst [vmem:[#allocation8_spill] sm:$0xff] %v17397_v4  ;;  %19717 = vst [vmem:[#allocation176_spill] sm:$0xff] %v17400_v30  ;;  %v3435_v52 = vsel %vm3424_vm10, nan, %v3434_v27  ;;  %v17414_v5 = vpop.f32.mrf.mxu1  ;;  %9590 = vmatmul.mubr.bf16.gmra.mxu1 %v19722_v59  ;;  %v17418_v14 = vadd.f32 %v17123_v35, %v8641_v18  ;;  %v12214_v25 = vld [vmem:[%s19140_s6 + $0x38] sm:$0xff]   ;;  %v19726_v18 = vld [vmem:[#allocation155_spill] sm:$0xff]  ;;  %v19728_v42 = vxor.u32 2147483648, %v19727_v39  ;;  %11561 = vmatprep.subr.bf16.mxu0 %v12213_v61 }
 0x3fa   :  { %19718 = vst [vmem:[#allocation177_spill] sm:$0xff] %v17402_v44  ;;  %19720 = vst [vmem:[#allocation150_spill] sm:$0xff] %v17412_v8  ;;  %7370 = vperm.xlu1 %11924, %v3435_v52   ;;  %v17421_v47 = vadd.f32 %v17188_v33, %v8647_v24  ;;  %vm6620_vm11 = vcmp.lt.s32.totalorder %v6619_v28, 2  ;;  %vm6621_vm12 = vcmp.eq.s32.totalorder %v6619_v28, 0  ;;  %vm6624_vm13 = vcmp.eq.s32.totalorder %v6619_v28, 2  ;;  %v17430_v52 = vpop.f32.mrf.mxu0  ;;  %v12215_v33 = vld [vmem:[%s19140_s6 + $0xf8] sm:$0xff]   ;;  %9599 = vmatprep.mubr.bf16.mxu1 %v19726_v18 }
 0x3fb   :  { %19721 = vst [vmem:[#allocation178_spill] sm:$0xff] %v17414_v5  ;;  %19723 = vst [vmem:[#allocation140_spill] sm:$0xff] %v17418_v14  ;;  %v17432_v35 = vpop.f32.mrf.mxu1  ;;  %v19729_v24 = vld [vmem:[#allocation161_spill] sm:$0xff]  ;;  %v12217_v28 = vld [vmem:[%s19140_s6 + $0x70] sm:$0xff]   ;;  %v17451_v59 = vadd.f32 %v17207_v22, %v8649_v49  ;;  %11562 = vmatpush3.bf16.msra.mxu0 %v12214_v25  ;;  %11673 = vmatprep.subr.bf16.mxu1 %v12215_v33 }
 0x3fc   :  { %19724 = vst [vmem:[#allocation179_spill] sm:$0xff] %v17421_v47  ;;  %19725 = vst [vmem:[#allocation180_spill] sm:$0xff] %v17432_v35  ;;  %v6623_v43 = vsel %vm6621_vm12, %v19729_v24, %v19728_v42  ;;  %v19730_v41 = vxor.u32 2147483648, %v19729_v24  ;;  %v12216_v54 = vld [vmem:[%s19140_s6 + $0xb8] sm:$0xff]   ;;  %v17453_v46 = vpop.f32.mrf.mxu0  ;;  %v12219_v22 = vld [vmem:[%s19140_s6 + $0xf0] sm:$0xff]   ;;  %11563 = vmatprep.subr.bf16.mxu0 %v12217_v28 }
 0x3fd   :  { %19731 = vst [vmem:[#allocation155_spill] sm:$0xff] %v17451_v59  ;;  %v17455_v42 = vpop.f32.mrf.mxu1  ;;  %v19733_v24 = vld [vmem:[#allocation9_spill] sm:$0xff]  ;;  %v19734_v49 = vld [vmem:[#allocation10_spill] sm:$0xff]  ;;  %11674 = vmatpush3.bf16.msra.mxu1 %v12216_v54  ;;  %v19788_v36 = vld [vmem:[#allocation91_spill] sm:$0xff] }
 0x3fe   :  { %v6626_v27 = vsel %vm6624_vm13, %v19730_v41, %v19727_v39  ;;  %19732 = vst [vmem:[#allocation163_spill] sm:$0xff] %v17455_v42  ;;  %9297 = vmatmul.mubr.bf16.gmra.mxu0 %v19733_v24  ;;  %v6722_v39 = vand.u32 3, %v17236_v20  ;;  %v12218_v41 = vld [vmem:[%s19140_s6 + $0x30] sm:$0xff]   ;;  %v17468_v25 = vpop.f32.mrf.mxu0  ;;  %v19736_v20 = vxor.u32 2147483648, %v17360_v11  ;;  %11675 = vmatprep.subr.bf16.mxu1 %v12219_v22  ;;  %v12224_v44 = vld [vmem:[%s19140_s6 + $0x20] sm:$0xff]  }
 0x3ff   :  { %v6627_v18 = vsel %vm6620_vm11, %v6623_v43, %v6626_v27  ;;  %9306 = vmatprep.mubr.bf16.mxu0 %v19734_v49  ;;  %v17470_v43 = vpop.f32.mrf.mxu1  ;;  %v19737_v27 = vxor.u32 2147483648, %v17350_v26  ;;  %v19739_v49 = vld [vmem:[#allocation156_spill] sm:$0xff]  ;;  %11564 = vmatpush3.bf16.msra.mxu0 %v12218_v41  ;;  %v19748_v8 = vld [vmem:[#allocation42_spill] sm:$0xff] }
 0x400   :  { %v6628_v61 = vsel %vm3320_vm4, nan, %v6627_v18  ;;  %19735 = vst [vmem:[#allocation161_spill] sm:$0xff] %v17470_v43  ;;  %vm6723_vm14 = vcmp.lt.s32.totalorder %v6722_v39, 2  ;;  %vm6724_vm15 = vcmp.eq.s32.totalorder %v6722_v39, 0  ;;  %vm6727_vm0 = vcmp.eq.s32.totalorder %v6722_v39, 2  ;;  %v17481_v24 = vpop.f32.mrf.mxu0  ;;  %v12220_v39 = vld [vmem:[%s19140_s6 + $0xb0] sm:$0xff]   ;;  %11565 = vmatprep.subr.bf16.mxu0 %v12221_v55 }
 0x401   :  { %9793 = vperm.xlu0 %11923, %v6628_v61   ;;  %v6726_v33 = vsel %vm6724_vm15, %v17350_v26, %v19736_v20  ;;  %v6729_v18 = vsel %vm6727_vm0, %v19737_v27, %v17360_v11  ;;  %v17483_v61 = vpop.f32.mrf.mxu1  ;;  %9600 = vmatmul.mubr.bf16.gmra.mxu1 %v19739_v49  ;;  %v19741_v11 = vld [vmem:[#allocation88_spill] sm:$0xff]  ;;  %v12222_v27 = vld [vmem:[%s19140_s6 + $0x28] sm:$0xff]   ;;  %v19742_v49 = vld [vmem:[#allocation65_spill] sm:$0xff]  ;;  %vm11005_vm4 = vcmask 15360  }
 0x402   :  { %19738 = vst [vmem:[#allocation9_spill] sm:$0xff] %v17483_v61  ;;  %v6730_v54 = vsel %vm6723_vm14, %v6726_v33, %v6729_v18  ;;  %v17491_v20 = vpop.f32.mrf.mxu0  ;;  %9609 = vmatprep.mubr.bf16.mxu1 %v19741_v11  ;;  %v7410_v5 = vmul.f32 %v16950_v10, %v19742_v49  ;;  %v17501_v33 = vpop.permute.xlu1 %9768  ;;  %11676 = vmatpush3.bf16.msra.mxu1 %v12220_v39  ;;  %v12228_v55 = vld [vmem:[%s19140_s6 + $0xe8] sm:$0xff]   ;;  %v19749_v39 = vld [vmem:[#allocation69_spill] sm:$0xff]  ;;  %v19762_v14 = vld [vmem:[#allocation70_spill] sm:$0xff] }
 0x403   :  { %v6731_v28 = vsel %vm3424_vm10, nan, %v6730_v54  ;;  %v17493_v26 = vpop.f32.mrf.mxu1  ;;  %19743 = vst [vmem:[#allocation156_spill] sm:$0xff] %v17501_v33  ;;  %v19745_v18 = vld [vmem:[#allocation11_spill] sm:$0xff]  ;;  %v19746_v54 = vld [vmem:[#allocation12_spill] sm:$0xff]  ;;  %11566 = vmatpush3.bf16.msra.mxu0 %v12222_v27  ;;  %v7414_v37 = vmul.f32 %v16950_v10, %v19749_v39  ;;  %11677 = vmatprep.subr.bf16.mxu1 %v12228_v55 }
 0x404   :  { %19740 = vst [vmem:[#allocation10_spill] sm:$0xff] %v17493_v26  ;;  %9798 = vperm.xlu1 %11924, %v6731_v28   ;;  %v17506_v41 = vpop.f32.mrf.mxu0  ;;  %v8537_v19 = vadd.f32 %v19748_v8, %v7410_v5  ;;  %11567 = vmatprep.subr.bf16.mxu0 %v12223_v2  ;;  %v12235_v8 = vld [vmem:[%s19140_s6 + $0xe0] sm:$0xff]   ;;  %v19754_v55 = vld [vmem:[#allocation68_spill] sm:$0xff]  ;;  %v19755_v49 = vld [vmem:[#allocation71_spill] sm:$0xff] }
 0x405   :  { %v17508_v22 = vpop.f32.mrf.mxu1  ;;  %v17542_v5 = vld [vmem:[%s19137_s3] sm:$0xf] }
 0x406   :  { %19744 = vst [vmem:[#allocation88_spill] sm:$0xff] %v17508_v22  ;;  %9307 = vmatmul.mubr.bf16.gmra.mxu0 %v19745_v18  ;;  %v17515_v11 = vpop.f32.mrf.mxu0  ;;  %v12225_v18 = vld [vmem:[%s19140_s6 + $0x58] sm:$0xff]   ;;  %v19752_v2 = vld [vmem:[#allocation162_spill] sm:$0xff]  ;;  %v17766_v12 = vrot.slane %v17542_v5, %v19826_v17 }
 0x407   :  { %9316 = vmatprep.mubr.bf16.mxu0 %v19746_v54  ;;  %v17517_v28 = vpop.f32.mrf.mxu1  ;;  %v12230_v54 = vld [vmem:[%s19140_s6 + $0xa8] sm:$0xff]   ;;  %11568 = vmatpush3.bf16.msra.mxu0 %v12224_v44  ;;  %v19757_v44 = vld [vmem:[#allocation144_spill] sm:$0xff] }
 0x408   :  { %19747 = vst [vmem:[#allocation11_spill] sm:$0xff] %v17517_v28  ;;  %v17531_v3 = vpop.f32.mrf.mxu0  ;;  %v8541_v28 = vadd.f32 %v19755_v49, %v7414_v37  ;;  %11569 = vmatprep.subr.bf16.mxu0 %v12225_v18  ;;  %11678 = vmatpush3.bf16.msra.mxu1 %v12230_v54  ;;  %v17561_v61 = vrot.slane %v17542_v5, %v19757_v44  ;;  %v12236_v37 = vld [vmem:[%s19140_s6 + $0xa0] sm:$0xff]  }
 0x409   :  { %v17533_v27 = vpop.f32.mrf.mxu1  ;;  %9610 = vmatmul.mubr.bf16.gmra.mxu1 %v19751_v16  ;;  %v17545_v59 = vpop.permute.xlu1 %7350  ;;  %v12226_v16 = vld [vmem:[%s19140_s6 + $0x18] sm:$0xff]   ;;  %11679 = vmatprep.subr.bf16.mxu1 %v12235_v8  ;;  %v17576_v54 = vld [vmem:[%s19138_s4] sm:$0xf] }
 0x40a   :  { %19750 = vst [vmem:[#allocation12_spill] sm:$0xff] %v17533_v27  ;;  %9619 = vmatprep.mubr.bf16.mxu1 %v19752_v2  ;;  %19753 = vst [vmem:[#allocation42_spill] sm:$0xff] %v17545_v59  ;;  %v8922_v47 = vpop.f32.mrf.mxu0  ;;  %v8730_v27 = vadd.f32 %v19754_v55, %v8537_v19  ;;  %v7502_v22 = vmul.f32 %v16950_v10, %v17545_v59  ;;  %v12227_v2 = vld [vmem:[%s19140_s6 + $0x50] sm:$0xff]   ;;  %v19759_v19 = vld [vmem:[#allocation13_spill] sm:$0xff]  ;;  %v9838_v8 = vmul.f32 %v17561_v61, %v19762_v14 }
 0x40b   :  { %v17554_v26 = vpop.f32.mrf.mxu1  ;;  %11570 = vmatpush3.bf16.msra.mxu0 %v12226_v16  ;;  %v12231_v59 = vld [vmem:[%s19140_s6 + $0x48] sm:$0xff]   ;;  %v12237_v16 = vld [vmem:[%s19140_s6 + $0xd8] sm:$0xff]  }
 0x40c   :  { %19756 = vst [vmem:[#allocation69_spill] sm:$0xff] %v17554_v26  ;;  %v17563_v42 = vpop.f32.mrf.mxu0  ;;  %v8651_v49 = vadd.f32 %v17230_v38, %v7502_v22  ;;  %v8923_v18 = vadd.f32 %v8922_v47, %v8730_v27  ;;  %v19761_v26 = vld [vmem:[#allocation14_spill] sm:$0xff]  ;;  %v19763_v38 = vld [vmem:[#allocation72_spill] sm:$0xff]  ;;  %11571 = vmatprep.subr.bf16.mxu0 %v12227_v2  ;;  %11680 = vmatpush3.bf16.msra.mxu1 %v12236_v37  ;;  %v12232_v37 = vld [vmem:[%s19140_s6 + $0x8] sm:$0xff]  }
 0x40d   :  { %19758 = vst [vmem:[#allocation90_spill] sm:$0xff] %v17563_v42  ;;  %v17570_v55 = vpop.f32.mrf.mxu1  ;;  %v8734_v47 = vadd.f32 %v19763_v38, %v8541_v28  ;;  %v17599_v28 = vrot.slane %v17576_v54, %v19757_v44  ;;  %v19770_v44 = vld [vmem:[#allocation154_spill] sm:$0xff]  ;;  %11681 = vmatprep.subr.bf16.mxu1 %v12237_v16  ;;  %v19827_v14 = vld [vmem:[#allocation25_spill] sm:$0xff] }
 0x40e   :  { %9317 = vmatmul.mubr.bf16.gmra.mxu0 %v19759_v19  ;;  %19760 = vst [vmem:[#allocation162_spill] sm:$0xff] %v17570_v55  ;;  %v8926_v43 = vpop.f32.mrf.mxu0  ;;  %v12229_v19 = vld [vmem:[%s19140_s6 + $0x10] sm:$0xff]   ;;  %v17585_v22 = vadd.f32 %v17232_v29, %v8651_v49  ;;  %v9966_v27 = vadd.f32 %v9838_v8, %v8923_v18  ;;  %v19767_v49 = vld [vmem:[#allocation73_spill] sm:$0xff] }
 0x40f   :  { %9326 = vmatprep.mubr.bf16.mxu0 %v19761_v26  ;;  %v17587_v26 = vpop.f32.mrf.mxu1  ;;  %19766 = vst [vmem:[#allocation144_spill] sm:$0xff] %v17599_v28  ;;  %v8927_v29 = vadd.f32 %v8926_v43, %v8734_v47  ;;  %v9842_v2 = vmul.f32 %v17561_v61, %v19767_v49  ;;  %11572 = vmatpush3.bf16.msra.mxu0 %v12229_v19  ;;  %v12233_v43 = vld [vmem:[%s19140_s6 + $0x40] sm:$0xff]   ;;  %v19771_v47 = vld [vmem:[#allocation77_spill] sm:$0xff] }
 0x410   :  { %19764 = vst [vmem:[#allocation68_spill] sm:$0xff] %v17585_v22  ;;  %19765 = vst [vmem:[#allocation71_spill] sm:$0xff] %v17587_v26  ;;  %v17589_v55 = vpop.f32.mrf.mxu0  ;;  %v10116_v38 = vadd.f32 %v17599_v28, %v9966_v27  ;;  %11573 = vmatprep.subr.bf16.mxu0 %v12231_v59  ;;  %v19772_v27 = vld [vmem:[#allocation15_spill] sm:$0xff]  ;;  %v19776_v59 = vld [vmem:[#allocation80_spill] sm:$0xff] }
 0x411   :  { %v17603_v18 = vpop.f32.mrf.mxu1  ;;  %9620 = vmatmul.mubr.bf16.gmra.mxu1 %v17184_v45  ;;  %v9970_v26 = vadd.f32 %v9842_v2, %v8927_v29  ;;  %v12238_v45 = vld [vmem:[%s19140_s6 + $0x98] sm:$0xff]   ;;  %v19774_v2 = vld [vmem:[#allocation16_spill] sm:$0xff] }
 0x412   :  { %19768 = vst [vmem:[#allocation13_spill] sm:$0xff] %v17603_v18  ;;  %v8932_v8 = vpop.f32.mrf.mxu0  ;;  %9629 = vmatprep.mubr.bf16.mxu1 %v17192_v21  ;;  %v9846_v18 = vmul.f32 %v17561_v61, %v19771_v47  ;;  %11682 = vmatpush3.bf16.msra.mxu1 %v12238_v45 }
 0x413   :  { %v17610_v22 = vpop.f32.mrf.mxu1  ;;  %v8933_v19 = vadd.f32 %v8932_v8, %v19770_v44  ;;  %v10120_v21 = vadd.f32 %v17599_v28, %v9970_v26  ;;  %11574 = vmatpush3.bf16.msra.mxu0 %v12232_v37  ;;  %v12234_v8 = vld [vmem:[%s19140_s6] sm:$0xff]   ;;  %v10244_v44 = vmax.f32 %v10116_v38, 0.0  ;;  %v19777_v26 = vld [vmem:[#allocation81_spill] sm:$0xff] }
 0x414   :  { %19769 = vst [vmem:[#allocation14_spill] sm:$0xff] %v17610_v22  ;;  %v17622_v33 = vpop.f32.mrf.mxu0  ;;  %11575 = vmatprep.subr.bf16.mxu0 %v12233_v43  ;;  %v19780_v43 = vld [vmem:[#allocation158_spill] sm:$0xff] }
 0x415   :  { %v17626_v29 = vpop.f32.mrf.mxu1  ;;  %v9974_v22 = vadd.f32 %v9846_v18, %v8933_v19  ;;  %v10248_v4 = vmax.f32 %v10120_v21, 0.0 }
 0x416   :  { %9327 = vmatmul.mubr.bf16.gmra.mxu0 %v19772_v27  ;;  %19773 = vst [vmem:[#allocation72_spill] sm:$0xff] %v17626_v29  ;;  %v8936_v30 = vpop.f32.mrf.mxu0  ;;  %v9850_v27 = vmul.f32 %v17561_v61, %v19777_v26 }
 0x417   :  { %9336 = vmatprep.mubr.bf16.mxu0 %v19774_v2  ;;  %v17632_v35 = vpop.f32.mrf.mxu1  ;;  %v8937_v16 = vadd.f32 %v8936_v30, %v19776_v59  ;;  %v17639_v18 = vpack.c.bf16 %v10248_v4, %v10244_v44  ;;  %v10124_v38 = vadd.f32 %v17599_v28, %v9974_v22  ;;  %11576 = vmatpush3.bf16.msra.mxu0 %v12234_v8  ;;  %v19781_v2 = vld [vmem:[#allocation86_spill] sm:$0xff]  ;;  %v19783_v44 = vld [vmem:[#allocation17_spill] sm:$0xff] }
 0x418   :  { %19775 = vst [vmem:[#allocation154_spill] sm:$0xff] %v17632_v35  ;;  %v17637_v29 = vpop.f32.mrf.mxu0  ;;  %v9854_v30 = vmul.f32 %v17561_v61, %v19781_v2  ;;  %v19785_v22 = vld [vmem:[#allocation18_spill] sm:$0xff] }
 0x419   :  { %19778 = vst [vmem:[#allocation15_spill] sm:$0xff] %v17639_v18  ;;  %v17641_v37 = vpop.f32.mrf.mxu1  ;;  %9630 = vmatmul.mubr.bf16.gmra.mxu1 %v17261_v23  ;;  %v9978_v19 = vadd.f32 %v9850_v27, %v8937_v16  ;;  %v10252_v16 = vmax.f32 %v10124_v38, 0.0  ;;  %v19792_v38 = vld [vmem:[#allocation96_spill] sm:$0xff] }
 0x41a   :  { %19779 = vst [vmem:[#allocation16_spill] sm:$0xff] %v17641_v37  ;;  %v8942_v21 = vpop.f32.mrf.mxu0 }
 0x41b   :  { %v8943_v45 = vadd.f32 %v8942_v21, %v19780_v43  ;;  %v17648_v59 = vpop.f32.mrf.mxu1  ;;  %v10128_v35 = vadd.f32 %v17599_v28, %v9978_v19  ;;  %v17657_v21 = vpop.permute.xlu0 %9773  ;;  %v19787_v43 = vld [vmem:[#allocation26_spill] sm:$0xff] }
 0x41c   :  { %19782 = vst [vmem:[#allocation80_spill] sm:$0xff] %v17648_v59  ;;  %v17651_v4 = vpop.f32.mrf.mxu0  ;;  %19786 = vst [vmem:[#allocation17_spill] sm:$0xff] %v17657_v21  ;;  %v9858_v59 = vmul.f32 %v17561_v61, %v19788_v36 }
 0x41d   :  { %v9982_v37 = vadd.f32 %v9854_v30, %v8943_v45  ;;  %v17654_v23 = vpop.f32.mrf.mxu1  ;;  %v10256_v8 = vmax.f32 %v10128_v35, 0.0 }
 0x41e   :  { %9337 = vmatmul.mubr.bf16.gmra.mxu0 %v19783_v44  ;;  %19784 = vst [vmem:[#allocation158_spill] sm:$0xff] %v17654_v23  ;;  %v8946_v27 = vpop.f32.mrf.mxu0  ;;  %v9862_v23 = vmul.f32 %v17561_v61, %v19792_v38 }
 0x41f   :  { %9346 = vmatprep.mubr.bf16.mxu0 %v19785_v22  ;;  %v8947_v0 = vadd.f32 %v8946_v27, %v19787_v43  ;;  %v17662_v19 = vpop.f32.mrf.mxu1  ;;  %v17664_v15 = vpack.c.bf16 %v10256_v8, %v10252_v16  ;;  %v10132_v45 = vadd.f32 %v17599_v28, %v9982_v37  ;;  %v12239_v27 = vld [vmem:[%s19140_s6 + $0xd0] sm:$0xff]  }
 0x420   :  { %19789 = vst [vmem:[#allocation18_spill] sm:$0xff] %v17662_v19  ;;  %v17666_v44 = vpop.f32.mrf.mxu0  ;;  %v12240_v16 = vld [vmem:[%s19140_s6 + $0x90] sm:$0xff]   ;;  %11683 = vmatprep.subr.bf16.mxu1 %v12239_v27  ;;  %v19798_v27 = vld [vmem:[#allocation101_spill] sm:$0xff] }
 0x421   :  { %19790 = vst [vmem:[#allocation26_spill] sm:$0xff] %v17664_v15  ;;  %v9986_v30 = vadd.f32 %v9858_v59, %v8947_v0  ;;  %v17669_v22 = vpop.f32.mrf.mxu1  ;;  %v19793_v43 = vld [vmem:[#allocation164_spill] sm:$0xff]  ;;  %v10260_v21 = vmax.f32 %v10132_v45, 0.0  ;;  %11684 = vmatpush3.bf16.msra.mxu1 %v12240_v16  ;;  %v9866_v9 = vmul.f32 %v17561_v61, %v19798_v27  ;;  %v19800_v45 = vld [vmem:[#allocation99_spill] sm:$0xff] }
 0x422   :  { %19791 = vst [vmem:[#allocation181_spill] sm:$0xff] %v17669_v22  ;;  %v8952_v35 = vpop.f32.mrf.mxu0  ;;  %v19795_v22 = vld [vmem:[#allocation19_spill] sm:$0xff] }
 0x423   :  { %v10136_v8 = vadd.f32 %v17599_v28, %v9986_v30  ;;  %v8953_v19 = vadd.f32 %v8952_v35, %v19793_v43  ;;  %v17681_v37 = vpop.f32.mrf.mxu1  ;;  %v19797_v43 = vld [vmem:[#allocation20_spill] sm:$0xff] }
 0x424   :  { %19794 = vst [vmem:[#allocation164_spill] sm:$0xff] %v17681_v37  ;;  %v17683_v0 = vpop.f32.mrf.mxu0 }
 0x425   :  { %v17685_v59 = vpop.permute.xlu0 %7355  ;;  %v10264_v15 = vmax.f32 %v10136_v8, 0.0  ;;  %v9990_v62 = vadd.f32 %v9862_v23, %v8953_v19  ;;  %v17688_v1 = vpop.f32.mrf.mxu1 }
 0x426   :  { %9347 = vmatmul.mubr.bf16.gmra.mxu0 %v19795_v22  ;;  %19796 = vst [vmem:[#allocation19_spill] sm:$0xff] %v17688_v1  ;;  %v7506_v30 = vmul.f32 %v16950_v10, %v17685_v59  ;;  %v7507_v35 = vmul.f32 %v16907_v50, %v17685_v59  ;;  %v8956_v37 = vpop.f32.mrf.mxu0 }
 0x427   :  { %9356 = vmatprep.mubr.bf16.mxu0 %v19797_v43  ;;  %v17697_v60 = vpack.c.bf16 %v10264_v15, %v10260_v21  ;;  %v8957_v22 = vadd.f32 %v8956_v37, %v19800_v45  ;;  %v17700_v23 = vpop.f32.mrf.mxu1  ;;  %v10140_v1 = vadd.f32 %v17599_v28, %v9990_v62  ;;  %v19807_v62 = vld [vmem:[#allocation85_spill] sm:$0xff]  ;;  %v19808_v45 = vld [vmem:[#allocation107_spill] sm:$0xff] }
 0x428   :  { %19801 = vst [vmem:[#allocation99_spill] sm:$0xff] %v17700_v23  ;;  %v8657_v19 = vadd.f32 %v17273_v7, %v7506_v30  ;;  %v8659_v16 = vadd.f32 %v17292_v48, %v7507_v35  ;;  %v17704_v8 = vpop.f32.mrf.mxu0  ;;  %v19806_v48 = vld [vmem:[#allocation44_spill] sm:$0xff] }
 0x429   :  { %19799 = vst [vmem:[#allocation20_spill] sm:$0xff] %v17697_v60  ;;  %v9994_v34 = vadd.f32 %v9866_v9, %v8957_v22  ;;  %v17707_v43 = vpop.f32.mrf.mxu1  ;;  %v7423_v35 = vmul.f32 %v16907_v50, %v19806_v48  ;;  %v7431_v9 = vmul.f32 %v16907_v50, %v19807_v62  ;;  %v19815_v48 = vld [vmem:[#allocation83_spill] sm:$0xff] }
 0x42a   :  { %19802 = vst [vmem:[#allocation182_spill] sm:$0xff] %v17707_v43  ;;  %v17710_v18 = vadd.f32 %v17275_v63, %v8657_v19  ;;  %v17713_v15 = vadd.f32 %v17294_v53, %v8659_v16  ;;  %v8962_v21 = vpop.f32.mrf.mxu0  ;;  %v9870_v63 = vmul.f32 %v17561_v61, %v19808_v45  ;;  %v19809_v53 = vld [vmem:[#allocation21_spill] sm:$0xff]  ;;  %v10268_v19 = vmax.f32 %v10140_v1, 0.0 }
 0x42b   :  { %v10144_v37 = vadd.f32 %v17599_v28, %v9994_v34  ;;  %v8963_v7 = vadd.f32 %v8962_v21, %v17182_v31  ;;  %v17717_v30 = vpop.f32.mrf.mxu1  ;;  %v19811_v31 = vld [vmem:[#allocation23_spill] sm:$0xff]  ;;  %v8553_v60 = vadd.f32 %v19815_v48, %v7423_v35  ;;  %v19820_v35 = vld [vmem:[#allocation106_spill] sm:$0xff] }
 0x42c   :  { %19803 = vst [vmem:[#allocation183_spill] sm:$0xff] %v17710_v18  ;;  %19804 = vst [vmem:[#allocation184_spill] sm:$0xff] %v17713_v15  ;;  %v17725_v22 = vpop.f32.mrf.mxu0  ;;  %v19812_v15 = vld [vmem:[#allocation111_spill] sm:$0xff] }
 0x42d   :  { %19805 = vst [vmem:[#allocation185_spill] sm:$0xff] %v17717_v30  ;;  %v10272_v16 = vmax.f32 %v10144_v37, 0.0  ;;  %v17728_v34 = vpop.f32.mrf.mxu1  ;;  %v9998_v21 = vadd.f32 %v9870_v63, %v8963_v7  ;;  %v9874_v30 = vmul.f32 %v17561_v61, %v19812_v15  ;;  %v19817_v37 = vld [vmem:[#allocation95_spill] sm:$0xff] }
 0x42e   :  { %9357 = vmatmul.mubr.bf16.gmra.mxu0 %v19809_v53  ;;  %19810 = vst [vmem:[#allocation21_spill] sm:$0xff] %v17728_v34  ;;  %v8966_v18 = vpop.f32.mrf.mxu0  ;;  %v19816_v53 = vld [vmem:[#allocation93_spill] sm:$0xff]  ;;  %v7439_v34 = vmul.f32 %v16907_v50, %v19817_v37  ;;  %v12242_v48 = vld [vmem:[%s19140_s6 + $0x88] sm:$0xff]   ;;  %v19824_v37 = vld [vmem:[#allocation94_spill] sm:$0xff] }
 0x42f   :  { %9366 = vmatprep.mubr.bf16.mxu0 %v19811_v31  ;;  %v17733_v43 = vpack.c.bf16 %v10272_v16, %v10268_v19  ;;  %v8967_v23 = vadd.f32 %v8966_v18, %v17216_v56  ;;  %v17736_v62 = vpop.f32.mrf.mxu1  ;;  %v8563_v1 = vadd.f32 %v19816_v53, %v7431_v9  ;;  %v10148_v7 = vadd.f32 %v17599_v28, %v9998_v21  ;;  %v19819_v19 = vld [vmem:[#allocation116_spill] sm:$0xff]  ;;  %v12241_v18 = vld [vmem:[%s19140_s6 + $0xc8] sm:$0xff]  }
 0x430   :  { %19814 = vst [vmem:[#allocation186_spill] sm:$0xff] %v17736_v62  ;;  %v17742_v32 = vpop.f32.mrf.mxu0  ;;  %v9878_v16 = vmul.f32 %v17561_v61, %v19819_v19  ;;  %v7447_v9 = vmul.f32 %v16907_v50, %v19820_v35  ;;  %v8573_v13 = vadd.f32 %v19825_v57, %v7439_v34  ;;  %11685 = vmatprep.subr.bf16.mxu1 %v12241_v18  ;;  %v19828_v35 = vld [vmem:[#allocation78_spill] sm:$0xff] }
 0x431   :  { %19813 = vst [vmem:[#allocation23_spill] sm:$0xff] %v17733_v43  ;;  %v10002_v63 = vadd.f32 %v9874_v30, %v8967_v23  ;;  %v17745_v31 = vpop.f32.mrf.mxu1  ;;  %v19821_v23 = vld [vmem:[#allocation109_spill] sm:$0xff]  ;;  %v8756_v43 = vadd.f32 %v19824_v37, %v8563_v1  ;;  %11686 = vmatpush3.bf16.msra.mxu1 %v12242_v48  ;;  %v9847_v57 = vmul.f32 %v17766_v12, %v19771_v47  ;;  %v19831_v37 = vld [vmem:[#allocation127_spill] sm:$0xff] }
 0x432   :  { %19818 = vst [vmem:[#allocation83_spill] sm:$0xff] %v17745_v31  ;;  %v8972_v56 = vpop.f32.mrf.mxu0  ;;  %v19823_v31 = vld [vmem:[#allocation84_spill] sm:$0xff]  ;;  %v9851_v1 = vmul.f32 %v17766_v12, %v19777_v26 }
 0x433   :  { %v10152_v21 = vadd.f32 %v17599_v28, %v10002_v63  ;;  %v8973_v30 = vadd.f32 %v8972_v56, %v19821_v23  ;;  %v17759_v53 = vpop.f32.mrf.mxu1  ;;  %v8746_v62 = vadd.f32 %v19823_v31, %v8553_v60  ;;  %v8935_v63 = vadd.f32 %v17622_v33, %v19828_v35  ;;  %v19830_v60 = vld [vmem:[#allocation27_spill] sm:$0xff]  ;;  %v19834_v35 = vld [vmem:[#allocation117_spill] sm:$0xff] }
 0x434   :  { %19822 = vst [vmem:[#allocation93_spill] sm:$0xff] %v17759_v53  ;;  %v8974_v51 = vpop.f32.mrf.mxu0  ;;  %v10276_v56 = vmax.f32 %v10148_v7, 0.0  ;;  %v9882_v33 = vmul.f32 %v17561_v61, %v19831_v37  ;;  %v19832_v7 = vld [vmem:[#allocation113_spill] sm:$0xff]  ;;  %v8949_v26 = vadd.f32 %v17666_v44, %v8756_v43 }
 0x435   :  { %v10280_v23 = vmax.f32 %v10152_v21, 0.0  ;;  %v10006_v53 = vadd.f32 %v9878_v16, %v8973_v30  ;;  %v17771_v42 = vpop.f32.mrf.mxu1  ;;  %v8939_v34 = vadd.f32 %v17637_v29, %v8746_v62  ;;  %v8583_v31 = vadd.f32 %v19832_v7, %v7447_v9  ;;  %v19833_v16 = vld [vmem:[#allocation118_spill] sm:$0xff] }
 0x436   :  { %9367 = vmatmul.mubr.bf16.gmra.mxu0 %v19827_v14  ;;  %19829 = vst [vmem:[#allocation109_spill] sm:$0xff] %v17771_v42  ;;  %v8976_v14 = vpop.f32.mrf.mxu0  ;;  %v7455_v18 = vmul.f32 %v16907_v50, %v19833_v16  ;;  %v9855_v62 = vmul.f32 %v17766_v12, %v19781_v2  ;;  %v9859_v9 = vmul.f32 %v17766_v12, %v19788_v36  ;;  %v19838_v42 = vld [vmem:[#allocation114_spill] sm:$0xff] }
 0x437   :  { %9376 = vmatprep.mubr.bf16.mxu0 %v19830_v60  ;;  %v17784_v48 = vpack.c.bf16 %v10280_v23, %v10276_v56  ;;  %v8977_v21 = vadd.f32 %v8976_v14, %v19834_v35  ;;  %v17787_v30 = vpop.f32.mrf.mxu1  ;;  %v19836_v60 = vld [vmem:[#allocation24_spill] sm:$0xff]  ;;  %v10156_v7 = vadd.f32 %v17599_v28, %v10006_v53  ;;  %v9975_v35 = vadd.f32 %v9847_v57, %v8935_v63  ;;  %v19842_v63 = vld [vmem:[#allocation29_spill] sm:$0xff] }
 0x438   :  { %19835 = vst [vmem:[#allocation84_spill] sm:$0xff] %v17787_v30  ;;  %v8945_v29 = vadd.f32 %v17651_v4, %v19836_v60  ;;  %v19837_v23 = vld [vmem:[#allocation104_spill] sm:$0xff]  ;;  %v9979_v30 = vadd.f32 %v9851_v1, %v8939_v34  ;;  %v8776_v16 = vadd.f32 %v19838_v42, %v8583_v31  ;;  %v19839_v4 = vld [vmem:[#allocation122_spill] sm:$0xff]  ;;  %v17804_v2 = vrot.slane %v17576_v54, %v19826_v17  ;;  %v19844_v34 = vld [vmem:[#allocation31_spill] sm:$0xff] }
 0x439   :  { %v10010_v47 = vadd.f32 %v9882_v33, %v8977_v21  ;;  %v17797_v56 = vpop.f32.mrf.mxu1  ;;  %v8766_v14 = vadd.f32 %v19837_v23, %v8573_v13  ;;  %v8593_v60 = vadd.f32 %v19839_v4, %v7455_v18  ;;  %v9987_v33 = vadd.f32 %v9859_v9, %v8949_v26  ;;  %v19841_v21 = vld [vmem:[#allocation97_spill] sm:$0xff]  ;;  %v8978_v9 = vpop.f32.mrf.mxu0  ;;  %v19847_v23 = vld [vmem:[#allocation123_spill] sm:$0xff] }
 0x43a   :  { %19840 = vst [vmem:[#allocation94_spill] sm:$0xff] %v17804_v2  ;;  %v9983_v53 = vadd.f32 %v9855_v62, %v8945_v29  ;;  %v8955_v36 = vadd.f32 %v17683_v0, %v19841_v21  ;;  %v9863_v13 = vmul.f32 %v17766_v12, %v19792_v38  ;;  %v9867_v17 = vmul.f32 %v17766_v12, %v19798_v27  ;;  %v19845_v31 = vld [vmem:[#allocation105_spill] sm:$0xff]  ;;  %v19892_v38 = vld [vmem:[#allocation75_spill] sm:$0xff] }
 0x43b   :  { %v10160_v44 = vadd.f32 %v17599_v28, %v10010_v47  ;;  %v17807_v43 = vpop.f32.mrf.mxu1  ;;  %v8959_v42 = vadd.f32 %v17704_v8, %v8766_v14  ;;  %v10284_v54 = vmax.f32 %v10156_v7, 0.0  ;;  %v10125_v26 = vadd.f32 %v17804_v2, %v9975_v35 }
 0x43c   :  { %v10129_v0 = vadd.f32 %v17804_v2, %v9979_v30  ;;  %v9871_v1 = vmul.f32 %v17766_v12, %v19808_v45  ;;  %v8965_v18 = vadd.f32 %v17725_v22, %v19845_v31  ;;  %v8969_v8 = vadd.f32 %v17742_v32, %v8776_v16  ;;  %v19849_v22 = vld [vmem:[#allocation115_spill] sm:$0xff] }
 0x43d   :  { %v10288_v57 = vmax.f32 %v10160_v44, 0.0  ;;  %v17817_v47 = vpop.f32.mrf.mxu1  ;;  %v9875_v29 = vmul.f32 %v17766_v12, %v19812_v15  ;;  %v8786_v14 = vadd.f32 %v19847_v23, %v8593_v60  ;;  %v10133_v30 = vadd.f32 %v17804_v2, %v9983_v53  ;;  %v19889_v15 = vld [vmem:[#allocation60_spill] sm:$0xff]  ;;  %v19891_v45 = vld [vmem:[#allocation67_spill] sm:$0xff] }
 0x43e   :  { %9377 = vmatmul.mubr.bf16.gmra.mxu0 %v19842_v63  ;;  %19843 = vst [vmem:[#allocation103_spill] sm:$0xff] %v17817_v47  ;;  %v10137_v35 = vadd.f32 %v17804_v2, %v9987_v33  ;;  %v9991_v4 = vadd.f32 %v9863_v13, %v8955_v36  ;;  %v9995_v44 = vadd.f32 %v9867_v17, %v8959_v42  ;;  %v10257_v53 = vmax.f32 %v10129_v0, 0.0  ;;  %v12243_v36 = vld [vmem:[%s19140_s6 + $0xc0] sm:$0xff]   ;;  %v19851_v33 = vld [vmem:[#allocation33_spill] sm:$0xff] }
 0x43f   :  { %9386 = vmatprep.mubr.bf16.mxu0 %v19844_v34  ;;  %v17829_v62 = vpack.c.bf16 %v10288_v57, %v10284_v54  ;;  %v17831_v7 = vpop.f32.mrf.mxu1  ;;  %v8975_v32 = vadd.f32 %v8974_v51, %v19849_v22  ;;  %v9879_v16 = vmul.f32 %v17766_v12, %v19819_v19  ;;  %v8979_v63 = vadd.f32 %v8978_v9, %v8786_v14  ;;  %v12244_v51 = vld [vmem:[%s19140_s6 + $0x80] sm:$0xff]   ;;  %v19887_v19 = vld [vmem:[#allocation56_spill] sm:$0xff] }
 0x440   :  { %19846 = vst [vmem:[#allocation138_spill] sm:$0xff] %v17831_v7  ;;  %v9883_v54 = vmul.f32 %v17766_v12, %v19831_v37  ;;  %v10253_v57 = vmax.f32 %v10125_v26, 0.0  ;;  %v9999_v34 = vadd.f32 %v9871_v1, %v8965_v18  ;;  %v10003_v60 = vadd.f32 %v9875_v29, %v8969_v8  ;;  %v19853_v1 = vld [vmem:[#allocation35_spill] sm:$0xff]  ;;  %11687 = vmatprep.subr.bf16.mxu1 %v12243_v36  ;;  %v19859_v36 = vld [vmem:[#allocation38_spill] sm:$0xff] }
 0x441   :  { %v17836_v21 = vpop.f32.mrf.mxu1  ;;  %v10141_v13 = vadd.f32 %v17804_v2, %v9991_v4  ;;  %v10145_v42 = vadd.f32 %v17804_v2, %v9995_v44  ;;  %v10261_v0 = vmax.f32 %v10133_v30, 0.0  ;;  %v10007_v18 = vadd.f32 %v9879_v16, %v8975_v32  ;;  %11688 = vmatpush3.bf16.msra.mxu1 %v12244_v51 }
 0x442   :  { %19848 = vst [vmem:[#allocation25_spill] sm:$0xff] %v17836_v21  ;;  %v17856_v26 = vpack.c.bf16 %v10257_v53, %v10253_v57  ;;  %v10011_v8 = vadd.f32 %v9883_v54, %v8979_v63  ;;  %v10265_v29 = vmax.f32 %v10137_v35, 0.0  ;;  %v10149_v9 = vadd.f32 %v17804_v2, %v9999_v34  ;;  %v19857_v54 = vld [vmem:[#allocation37_spill] sm:$0xff]  ;;  %v19886_v21 = vld [vmem:[#allocation51_spill] sm:$0xff] }
 0x443   :  { %v17843_v31 = vpop.f32.mrf.mxu1  ;;  %v10153_v23 = vadd.f32 %v17804_v2, %v10003_v60  ;;  %v10269_v44 = vmax.f32 %v10141_v13, 0.0  ;;  %v10273_v57 = vmax.f32 %v10145_v42, 0.0  ;;  %v10157_v53 = vadd.f32 %v17804_v2, %v10007_v18  ;;  %v19860_v13 = vld [vmem:[#allocation28_spill] sm:$0xff] }
 0x444   :  { %19850 = vst [vmem:[#allocation78_spill] sm:$0xff] %v17843_v31  ;;  %v17863_v4 = vpack.c.bf16 %v10265_v29, %v10261_v0  ;;  %v10161_v30 = vadd.f32 %v17804_v2, %v10011_v8  ;;  %v10277_v32 = vmax.f32 %v10149_v9, 0.0  ;;  %v7394_v42 = vmul.f32 %v16950_v10, %v19860_v13  ;;  %v19863_v29 = vld [vmem:[#allocation36_spill] sm:$0xff] }
 0x445   :  { %v17854_v17 = vpop.f32.mrf.mxu1  ;;  %v17871_v16 = vpack.c.bf16 %v10273_v57, %v10269_v44  ;;  %v10281_v63 = vmax.f32 %v10153_v23, 0.0  ;;  %v10285_v51 = vmax.f32 %v10157_v53, 0.0  ;;  %v7395_v8 = vmul.f32 %v16907_v50, %v19860_v13  ;;  %v19864_v23 = vld [vmem:[#allocation30_spill] sm:$0xff]  ;;  %v19866_v53 = vld [vmem:[#allocation39_spill] sm:$0xff] }
 0x446   :  { %9387 = vmatmul.mubr.bf16.gmra.mxu0 %v19851_v33  ;;  %19852 = vst [vmem:[#allocation27_spill] sm:$0xff] %v17854_v17  ;;  %v10289_v33 = vmax.f32 %v10161_v30, 0.0  ;;  %v7399_v9 = vmul.f32 %v16907_v50, %v19863_v29  ;;  %v8517_v44 = vadd.f32 %v19864_v23, %v7394_v42 }
 0x447   :  { %9396 = vmatprep.mubr.bf16.mxu0 %v19853_v1  ;;  %v17861_v14 = vpop.f32.mrf.mxu1  ;;  %v17876_v60 = vpack.c.bf16 %v10281_v63, %v10277_v32  ;;  %v19868_v32 = vld [vmem:[#allocation48_spill] sm:$0xff] }
 0x448   :  { %19854 = vst [vmem:[#allocation113_spill] sm:$0xff] %v17861_v14  ;;  %v17883_v0 = vpack.c.bf16 %v10289_v33, %v10285_v51  ;;  %v8519_v63 = vadd.f32 %v19868_v32, %v7395_v8  ;;  %v19870_v33 = vld [vmem:[#allocation40_spill] sm:$0xff]  ;;  %v19876_v32 = vld [vmem:[#allocation49_spill] sm:$0xff] }
 0x449   :  { %v17865_v22 = vpop.f32.mrf.mxu1  ;;  %v19879_v14 = vld [vmem:[#allocation53_spill] sm:$0xff] }
 0x44a   :  { %19855 = vst [vmem:[#allocation117_spill] sm:$0xff] %v17865_v22  ;;  %v19877_v22 = vld [vmem:[#allocation50_spill] sm:$0xff] }
 0x44b   :  { %v17869_v35 = vpop.f32.mrf.mxu1 }
 0x44c   :  { %19856 = vst [vmem:[#allocation24_spill] sm:$0xff] %v17869_v35  ;;  %v8712_v35 = vadd.f32 %v19876_v32, %v8519_v63 }
 0x44d   :  { %v17874_v34 = vpop.f32.mrf.mxu1 }
 0x44e   :  { %9397 = vmatmul.mubr.bf16.gmra.mxu0 %v19857_v54  ;;  %19858 = vst [vmem:[#allocation104_spill] sm:$0xff] %v17874_v34  ;;  %v7398_v54 = vmul.f32 %v16950_v10, %v19863_v29  ;;  %v19872_v34 = vld [vmem:[#allocation58_spill] sm:$0xff] }
 0x44f   :  { %9406 = vmatprep.mubr.bf16.mxu0 %v19859_v36  ;;  %v17881_v1 = vpop.f32.mrf.mxu1  ;;  %v19869_v36 = vld [vmem:[#allocation54_spill] sm:$0xff]  ;;  %v7407_v42 = vmul.f32 %v16907_v50, %v19872_v34 }
 0x450   :  { %19861 = vst [vmem:[#allocation114_spill] sm:$0xff] %v17881_v1  ;;  %v8523_v51 = vadd.f32 %v19869_v36, %v7399_v9  ;;  %v8521_v9 = vadd.f32 %v19877_v22, %v7398_v54  ;;  %v19878_v36 = vld [vmem:[#allocation55_spill] sm:$0xff]  ;;  %v8905_v22 = vadd.f32 %v17453_v46, %v8712_v35 }
 0x451   :  { %v17885_v18 = vpop.f32.mrf.mxu1  ;;  %v19888_v35 = vld [vmem:[#allocation43_spill] sm:$0xff] }
 0x452   :  { %19862 = vst [vmem:[#allocation122_spill] sm:$0xff] %v17885_v18  ;;  %v19871_v18 = vld [vmem:[#allocation32_spill] sm:$0xff] }
 0x453   :  { %v17892_v57 = vpop.f32.mrf.mxu1  ;;  %v8710_v1 = vadd.f32 %v19871_v18, %v8517_v44  ;;  %v7402_v18 = vmul.f32 %v16950_v10, %v19879_v14  ;;  %v7403_v44 = vmul.f32 %v16907_v50, %v19879_v14 }
 0x454   :  { %19865 = vst [vmem:[#allocation97_spill] sm:$0xff] %v17892_v57  ;;  %v19874_v57 = vld [vmem:[#allocation34_spill] sm:$0xff] }
 0x455   :  { %v17895_v30 = vpop.f32.mrf.mxu1  ;;  %v9823_v63 = vmul.f32 %v17766_v12, %v19874_v57  ;;  %v8527_v46 = vadd.f32 %v19887_v19, %v7402_v18  ;;  %v8529_v7 = vadd.f32 %v19889_v15, %v7403_v44  ;;  %v19894_v19 = vld [vmem:[#allocation134_spill] sm:$0xff]  ;;  %v19895_v15 = vld [vmem:[#allocation136_spill] sm:$0xff] }
 0x456   :  { %9407 = vmatmul.mubr.bf16.gmra.mxu0 %v19866_v53  ;;  %19867 = vst [vmem:[#allocation29_spill] sm:$0xff] %v17895_v30  ;;  %v8903_v53 = vadd.f32 %v17430_v52, %v8710_v1  ;;  %v9822_v30 = vmul.f32 %v17561_v61, %v19874_v57  ;;  %v7406_v52 = vmul.f32 %v16950_v10, %v19872_v34  ;;  %v19880_v1 = vld [vmem:[#allocation66_spill] sm:$0xff]  ;;  %v17954_v44 = vsub.s32 2, %v19895_v15 }
 0x457   :  { %9416 = vmatprep.mubr.bf16.mxu0 %v19870_v33  ;;  %v17905_v23 = vpop.f32.mrf.mxu1  ;;  %v8716_v33 = vadd.f32 %v19878_v36, %v8523_v51  ;;  %v19882_v51 = vld [vmem:[#allocation52_spill] sm:$0xff]  ;;  %v19883_v36 = vld [vmem:[#allocation137_spill] sm:$0xff] }
 0x458   :  { %19873 = vst [vmem:[#allocation31_spill] sm:$0xff] %v17905_v23  ;;  %v8533_v23 = vadd.f32 %v19880_v1, %v7407_v42  ;;  %v9827_v32 = vmul.f32 %v17766_v12, %v19882_v51  ;;  %v7463_v31 = vmul.f32 %v16907_v50, %v19883_v36  ;;  %v9950_v37 = vadd.f32 %v9822_v30, %v8903_v53  ;;  %v19884_v42 = vld [vmem:[#allocation41_spill] sm:$0xff] }
 0x459   :  { %v17910_v8 = vpop.f32.mrf.mxu1  ;;  %v8909_v54 = vadd.f32 %v17481_v24, %v8716_v33  ;;  %v19890_v24 = vld [vmem:[#allocation62_spill] sm:$0xff]  ;;  %v9951_v30 = vadd.f32 %v9823_v63, %v8905_v22  ;;  %v19900_v22 = vld [vmem:[#allocation61_spill] sm:$0xff]  ;;  %v19901_v63 = vld [vmem:[#allocation63_spill] sm:$0xff] }
 0x45a   :  { %19875 = vst [vmem:[#allocation105_spill] sm:$0xff] %v17910_v8  ;;  %v7415_v8 = vmul.f32 %v16907_v50, %v19749_v39  ;;  %v8531_v33 = vadd.f32 %v19890_v24, %v7406_v52  ;;  %v8726_v27 = vadd.f32 %v19891_v45, %v8533_v23  ;;  %v8603_v18 = vadd.f32 %v19894_v19, %v7463_v31  ;;  %v19899_v52 = vld [vmem:[#allocation57_spill] sm:$0xff] }
 0x45b   :  { %v17924_v17 = vpop.f32.mrf.mxu1  ;;  %v17961_v23 = vsub.s32 3, %v19895_v15  ;;  %v8720_v31 = vadd.f32 %v19899_v52, %v8527_v46  ;;  %v10101_v19 = vadd.f32 %v17804_v2, %v9951_v30  ;;  %v12373_v46 = vld [vmem:[%s19136_s2] sm:$0xf] }
 0x45c   :  { %19881 = vst [vmem:[#allocation123_spill] sm:$0xff] %v17924_v17  ;;  %v8714_v17 = vadd.f32 %v19886_v21, %v8521_v9  ;;  %v8543_v57 = vadd.f32 %v19892_v38, %v7415_v8  ;;  %v9826_v21 = vmul.f32 %v17561_v61, %v19882_v51  ;;  %v9955_v9 = vadd.f32 %v9827_v32, %v8909_v54  ;;  %v17958_v38 = vpop.permute.xlu1 %9778  ;;  %v19907_v52 = vld [vmem:[#allocation130_spill] sm:$0xff] }
 0x45d   :  { %v17935_v1 = vpop.f32.mrf.mxu1  ;;  %19897 = vst [vmem:[#allocation37_spill] sm:$0xff] %v17958_v38  ;;  %v8724_v54 = vadd.f32 %v19901_v63, %v8531_v33  ;;  %v19906_v33 = vld [vmem:[#allocation45_spill] sm:$0xff] }
 0x45e   :  { %9417 = vmatmul.mubr.bf16.gmra.mxu0 %v19884_v42  ;;  %19885 = vst [vmem:[#allocation115_spill] sm:$0xff] %v17935_v1  ;;  %v8907_v53 = vadd.f32 %v17468_v25, %v8714_v17  ;;  %v17951_v42 = vadd.f32 %v17599_v28, %v9950_v37  ;;  %v8919_v25 = vadd.f32 %v17531_v3, %v8726_v27  ;;  %v19898_v17 = vld [vmem:[#allocation64_spill] sm:$0xff]  ;;  %v19914_v1 = vld [vmem:[#allocation141_spill] sm:$0xff] }
 0x45f   :  { %9426 = vmatprep.mubr.bf16.mxu0 %v19888_v35  ;;  %v17944_v47 = vpop.f32.mrf.mxu1  ;;  %v9835_v8 = vmul.f32 %v17766_v12, %v19898_v17  ;;  %v8722_v37 = vadd.f32 %v19900_v22, %v8529_v7  ;;  %v19903_v35 = vld [vmem:[#allocation76_spill] sm:$0xff]  ;;  %v10105_v15 = vadd.f32 %v17804_v2, %v9955_v9  ;;  %v17980_v7 = vrot.slane %v12373_v46, %v17954_v44  ;;  %v19911_v22 = vld [vmem:[#allocation46_spill] sm:$0xff] }
 0x460   :  { %19893 = vst [vmem:[#allocation33_spill] sm:$0xff] %v17944_v47  ;;  %v8736_v24 = vadd.f32 %v19903_v35, %v8543_v57  ;;  %v19904_v47 = vld [vmem:[#allocation135_spill] sm:$0xff]  ;;  %v9886_v57 = vmul.f32 %v17561_v61, %v19907_v52  ;;  %v8913_v35 = vadd.f32 %v17491_v20, %v8720_v31  ;;  %v18007_v31 = vpop.permute.xlu0 %9783 }
 0x461   :  { %v17956_v45 = vpop.f32.mrf.mxu1  ;;  %v8796_v3 = vadd.f32 %v19904_v47, %v8603_v18  ;;  %19905 = vst [vmem:[#allocation28_spill] sm:$0xff] %v17980_v7  ;;  %v8915_v47 = vadd.f32 %v17506_v41, %v8722_v37  ;;  %v9963_v18 = vadd.f32 %v9835_v8, %v8919_v25  ;;  %v18002_v41 = vpop.permute.xlu1 %7360  ;;  %v10229_v37 = vmax.f32 %v10101_v19, 0.0 }
 0x462   :  { %19896 = vst [vmem:[#allocation35_spill] sm:$0xff] %v17956_v45  ;;  %v9954_v45 = vadd.f32 %v9826_v21, %v8907_v53  ;;  %v17988_v53 = vrot.slane %v12373_v46, %v17961_v23  ;;  %v19910_v21 = vld [vmem:[#allocation59_spill] sm:$0xff]  ;;  %v9887_v46 = vmul.f32 %v17766_v12, %v19907_v52  ;;  %19913 = vst [vmem:[#allocation48_spill] sm:$0xff] %v18002_v41  ;;  %v10233_v8 = vmax.f32 %v10105_v15, 0.0 }
 0x463   :  { %v17969_v32 = vpop.f32.mrf.mxu1  ;;  %v9831_v9 = vmul.f32 %v17766_v12, %v19910_v21  ;;  %v7508_v20 = vmul.f32 %v17980_v7, %v17685_v59  ;;  %v10113_v15 = vadd.f32 %v17804_v2, %v9963_v18  ;;  %v7512_v18 = vmul.f32 %v17980_v7, %v18002_v41 }
 0x464   :  { %19902 = vst [vmem:[#allocation38_spill] sm:$0xff] %v17969_v32  ;;  %19909 = vst [vmem:[#allocation30_spill] sm:$0xff] %v17988_v53  ;;  %v10104_v25 = vadd.f32 %v17599_v28, %v9954_v45  ;;  %v8917_v32 = vadd.f32 %v17515_v11, %v8724_v54  ;;  %v9834_v45 = vmul.f32 %v17561_v61, %v19898_v17  ;;  %v19917_v17 = vld [vmem:[#allocation47_spill] sm:$0xff] }
 0x465   :  { %v17985_v30 = vpop.f32.mrf.mxu1  ;;  %v9959_v19 = vadd.f32 %v9831_v9, %v8915_v47  ;;  %v7509_v51 = vmul.f32 %v17988_v53, %v17685_v59  ;;  %v8929_v11 = vadd.f32 %v17589_v55, %v8736_v24  ;;  %v9843_v47 = vmul.f32 %v17766_v12, %v19767_v49 }
 0x466   :  { %9427 = vmatmul.mubr.bf16.gmra.mxu0 %v19906_v33  ;;  %19908 = vst [vmem:[#allocation36_spill] sm:$0xff] %v17985_v30  ;;  %v9830_v33 = vmul.f32 %v17561_v61, %v19910_v21  ;;  %v10357_v9 = vpack.c.bf16 %v10233_v8, %v10229_v37  ;;  %v10232_v59 = vmax.f32 %v10104_v25, 0.0  ;;  %v19919_v37 = vld [vmem:[#allocation90_spill] sm:$0xff]  ;;  %v18041_v25 = vpop.permute.xlu0 %7365 }
 0x467   :  { %9436 = vmatprep.mubr.bf16.mxu0 %v19911_v22  ;;  %v8982_v63 = vpop.f32.mrf.mxu0  ;;  %v18000_v30 = vpop.f32.mrf.mxu1 }
 0x468   :  { %v8983_v27 = vadd.f32 %v8982_v63, %v17279_v58  ;;  %19912 = vst [vmem:[#allocation39_spill] sm:$0xff] %v18000_v30  ;;  %v9890_v30 = vmul.f32 %v17561_v61, %v19914_v1 }
 0x469   :  { %v8984_v22 = vpop.f32.mrf.mxu0  ;;  %v18013_v52 = vpop.f32.mrf.mxu1 }
 0x46a   :  { %v10014_v58 = vadd.f32 %v9886_v57, %v8983_v27  ;;  %v8985_v63 = vadd.f32 %v8984_v22, %v17282_v40  ;;  %19915 = vst [vmem:[#allocation54_spill] sm:$0xff] %v18013_v52  ;;  %v9891_v27 = vmul.f32 %v17766_v12, %v19914_v1  ;;  %v19918_v1 = vld [vmem:[#allocation148_spill] sm:$0xff] }
 0x46b   :  { %v8986_v21 = vpop.f32.mrf.mxu0  ;;  %v9235_v57 = vpop.f32.mrf.mxu1  ;;  %v8925_v8 = vadd.f32 %v19919_v37, %v19918_v1  ;;  %v7516_v1 = vmul.f32 %v17980_v7, %v18041_v25  ;;  %v9958_v37 = vadd.f32 %v9830_v33, %v8913_v35 }
 0x46c   :  { %v10015_v54 = vadd.f32 %v9887_v46, %v8985_v63  ;;  %v8987_v40 = vadd.f32 %v8986_v21, %v17287_v6  ;;  %v18026_v52 = vadd.f32 %v9235_v57, %v7508_v20  ;;  %v10164_v55 = vadd.f32 %v17599_v28, %v10014_v58  ;;  %v18032_v46 = vpop.permute.xlu1 %9788  ;;  %v19920_v20 = vld [vmem:[#allocation70_spill] sm:$0xff] }
 0x46d   :  { %v8988_v22 = vpop.f32.mrf.mxu0  ;;  %v9237_v21 = vpop.f32.mrf.mxu1  ;;  %v10109_v63 = vadd.f32 %v17804_v2, %v9959_v19  ;;  %v9839_v57 = vmul.f32 %v17766_v12, %v19920_v20  ;;  %v10241_v19 = vmax.f32 %v10113_v15, 0.0  ;;  %v7517_v15 = vmul.f32 %v17988_v53, %v18041_v25 }
 0x46e   :  { %19916 = vst [vmem:[#allocation40_spill] sm:$0xff] %v18026_v52  ;;  %9437 = vmatmul.mubr.bf16.gmra.mxu0 %v19917_v17  ;;  %v10018_v6 = vadd.f32 %v9890_v30, %v8987_v40  ;;  %v8989_v24 = vadd.f32 %v8988_v22, %v8796_v3  ;;  %v18039_v52 = vadd.f32 %v9237_v21, %v7509_v51 }
 0x46f   :  { %10715 = vmatprep.mubr.bf16.mxu0 %v10357_v9  ;;  %v9962_v17 = vadd.f32 %v9834_v45, %v8917_v32  ;;  %v10165_v30 = vadd.f32 %v17804_v2, %v10015_v54  ;;  %v9239_v40 = vpop.f32.mrf.mxu1  ;;  %v9971_v22 = vadd.f32 %v9843_v47, %v8929_v11  ;;  %v10292_v9 = vmax.f32 %v10164_v55, 0.0 }
 0x470   :  { %19921 = vst [vmem:[#allocation32_spill] sm:$0xff] %v18039_v52  ;;  %v10168_v3 = vadd.f32 %v17599_v28, %v10018_v6  ;;  %v10019_v58 = vadd.f32 %v9891_v27, %v8989_v24  ;;  %v18045_v49 = vadd.f32 %v9239_v40, %v7512_v18  ;;  %v19924_v32 = vmax.f32 %v17951_v42, 0.0  ;;  %v19927_v42 = vld [vmem:[#allocation147_spill] sm:$0xff] }
 0x471   :  { %v18050_v52 = vpop.f32.mrf.mxu1  ;;  %v10237_v54 = vmax.f32 %v10109_v63, 0.0  ;;  %v9967_v27 = vadd.f32 %v9839_v57, %v8925_v8  ;;  %v10112_v11 = vadd.f32 %v17599_v28, %v9962_v17  ;;  %v10293_v47 = vmax.f32 %v10165_v30, 0.0 }
 0x472   :  { %19922 = vst [vmem:[#allocation58_spill] sm:$0xff] %v18045_v49  ;;  %v10296_v51 = vmax.f32 %v10168_v3, 0.0  ;;  %v10169_v21 = vadd.f32 %v17804_v2, %v10019_v58  ;;  %19923 = vst [vmem:[#allocation49_spill] sm:$0xff] %v18050_v52  ;;  %v10356_v45 = vpack.c.bf16 %v10232_v59, %v19924_v32  ;;  %v10121_v6 = vadd.f32 %v17804_v2, %v9971_v22  ;;  %v19931_v32 = vld [vmem:[#allocation142_spill] sm:$0xff] }
 0x473   :  { %v9245_v35 = vpop.f32.mrf.mxu1  ;;  %v10361_v24 = vpack.c.bf16 %v10241_v19, %v10237_v54  ;;  %v7471_v59 = vmul.f32 %v16907_v50, %v19927_v42  ;;  %v10108_v63 = vadd.f32 %v17599_v28, %v9958_v37  ;;  %v10117_v30 = vadd.f32 %v17804_v2, %v9967_v27  ;;  %v19929_v37 = vld [vmem:[#allocation145_spill] sm:$0xff] }
 0x474   :  { %v18057_v18 = vpack.c.bf16 %v10296_v51, %v10292_v9  ;;  %v10297_v33 = vmax.f32 %v10169_v21, 0.0  ;;  %v18062_v3 = vadd.f32 %v9245_v35, %v7516_v1  ;;  %v18074_v58 = vrot.slane %v17542_v5, %v17954_v44  ;;  %v19933_v35 = vld [vmem:[#allocation128_spill] sm:$0xff] }
 0x475   :  { %v18059_v55 = vpop.permute.xlu1 %7370  ;;  %v9247_v57 = vpop.f32.mrf.mxu1  ;;  %v10240_v22 = vmax.f32 %v10112_v11, 0.0  ;;  %v18080_v19 = vrot.slane %v17542_v5, %v17961_v23  ;;  %v9894_v9 = vmul.f32 %v17561_v61, %v19929_v37  ;;  %v10249_v51 = vmax.f32 %v10121_v6, 0.0 }
 0x476   :  { %19925 = vst [vmem:[#allocation50_spill] sm:$0xff] %v18059_v55  ;;  %19926 = vst [vmem:[#allocation55_spill] sm:$0xff] %v18062_v3  ;;  %10716 = vmatmul.mubr.bf16.vlgmr.msra.gmra.mxu0 %v10356_v45  ;;  %v18067_v8 = vpack.c.bf16 %v10297_v33, %v10293_v47  ;;  %v7520_v17 = vmul.f32 %v17980_v7, %v18059_v55  ;;  %v18076_v40 = vadd.f32 %v9247_v57, %v7517_v15  ;;  %v19941_v3 = vld [vmem:[#allocation131_spill] sm:$0xff] }
 0x477   :  { %10723 = vmatprep.mubr.bf16.mxu0 %v10361_v24  ;;  %v9249_v1 = vpop.f32.mrf.mxu1  ;;  %v8613_v45 = vadd.f32 %v19931_v32, %v7471_v59  ;;  %v10236_v54 = vmax.f32 %v10108_v63, 0.0  ;;  %v10245_v15 = vmax.f32 %v10117_v30, 0.0  ;;  %v9895_v5 = vmul.f32 %v17766_v12, %v19929_v37  ;;  %v19937_v30 = vld [vmem:[#allocation126_spill] sm:$0xff]  ;;  %v19938_v32 = vld [vmem:[#allocation157_spill] sm:$0xff]  ;;  %v19964_v55 = vld [vmem:[#allocation87_spill] sm:$0xff] }
 0x478   :  { %19928 = vst [vmem:[#allocation53_spill] sm:$0xff] %v18076_v40  ;;  %v18084_v21 = vadd.f32 %v9249_v1, %v7520_v17 }
 0x479   :  { %v8992_v27 = vpop.f32.mrf.mxu0  ;;  %v18096_v24 = vpop.f32.mrf.mxu1  ;;  %v10360_v6 = vpack.c.bf16 %v10240_v22, %v10236_v54  ;;  %v10365_v17 = vpack.c.bf16 %v10249_v51, %v10245_v15  ;;  %v19940_v22 = vld [vmem:[#allocation143_spill] sm:$0xff] }
 0x47a   :  { %19930 = vst [vmem:[#allocation66_spill] sm:$0xff] %v18084_v21  ;;  %v8993_v11 = vadd.f32 %v8992_v27, %v19933_v35  ;;  %19935 = vst [vmem:[#allocation56_spill] sm:$0xff] %v18096_v24  ;;  %v9898_v27 = vmul.f32 %v17561_v61, %v19938_v32  ;;  %v19939_v21 = vld [vmem:[#allocation159_spill] sm:$0xff]  ;;  %v8806_v54 = vadd.f32 %v19940_v22, %v8613_v45  ;;  %v19946_v22 = vld [vmem:[#allocation152_spill] sm:$0xff] }
 0x47b   :  { %v8994_v57 = vpop.f32.mrf.mxu0  ;;  %v18105_v35 = vpop.f32.mrf.mxu1 }
 0x47c   :  { %v18087_v47 = vpop.permute.xlu0 %9793  ;;  %v10022_v63 = vadd.f32 %v9894_v9, %v8993_v11  ;;  %v8995_v1 = vadd.f32 %v8994_v57, %v19937_v30  ;;  %v9899_v9 = vmul.f32 %v17766_v12, %v19938_v32  ;;  %v19945_v30 = vld [vmem:[#allocation79_spill] sm:$0xff] }
 0x47d   :  { %19932 = vst [vmem:[#allocation41_spill] sm:$0xff] %v18087_v47  ;;  %v18094_v33 = vmul.f32 %v18074_v58, %v18087_v47  ;;  %v18100_v59 = vmul.f32 %v18080_v19, %v18087_v47  ;;  %v8996_v24 = vpop.f32.mrf.mxu0  ;;  %v18115_v15 = vpop.f32.mrf.mxu1 }
 0x47e   :  { %10724 = vmatmul.mubr.bf16.gmra.mxu0 %v10360_v6  ;;  %v10023_v40 = vadd.f32 %v9895_v5, %v8995_v1  ;;  %v10172_v45 = vadd.f32 %v17599_v28, %v10022_v63  ;;  %v9902_v1 = vmul.f32 %v17561_v61, %v19945_v30 }
 0x47f   :  { %19934 = vst [vmem:[#allocation51_spill] sm:$0xff] %v18094_v33  ;;  %19936 = vst [vmem:[#allocation43_spill] sm:$0xff] %v18100_v59  ;;  %v7479_v33 = vmul.f32 %v16907_v50, %v19939_v21  ;;  %10731 = vmatprep.mubr.bf16.mxu0 %v10365_v17  ;;  %v8997_v59 = vadd.f32 %v8996_v24, %v19941_v3  ;;  %v18113_v51 = vpop.permute.xlu1 %9798  ;;  %v8998_v11 = vpop.f32.mrf.mxu0  ;;  %v19949_v21 = vld [vmem:[#allocation168_spill] sm:$0xff] }
 0x480   :  { %19942 = vst [vmem:[#allocation60_spill] sm:$0xff] %v18113_v51  ;;  %v18119_v57 = vmul.f32 %v18074_v58, %v18113_v51  ;;  %v18123_v6 = vmul.f32 %v18080_v19, %v18113_v51  ;;  %v10173_v3 = vadd.f32 %v17804_v2, %v10023_v40  ;;  %v8999_v24 = vadd.f32 %v8998_v11, %v8806_v54  ;;  %v18127_v17 = vpop.f32.mrf.mxu1  ;;  %v19952_v51 = vld [vmem:[#allocation15_spill] sm:$0xff] }
 0x481   :  { %v10026_v5 = vadd.f32 %v9898_v27, %v8997_v59  ;;  %v8623_v52 = vadd.f32 %v19946_v22, %v7479_v33  ;;  %v9002_v32 = vpop.f32.mrf.mxu0  ;;  %v9903_v59 = vmul.f32 %v17766_v12, %v19945_v30  ;;  %v19950_v27 = vld [vmem:[#allocation98_spill] sm:$0xff]  ;;  %v10300_v11 = vmax.f32 %v10172_v45, 0.0 }
 0x482   :  { %19943 = vst [vmem:[#allocation62_spill] sm:$0xff] %v18119_v57  ;;  %19944 = vst [vmem:[#allocation67_spill] sm:$0xff] %v18123_v6  ;;  %v10027_v57 = vadd.f32 %v9899_v9, %v8999_v24  ;;  %v18133_v37 = vpop.f32.mrf.mxu1  ;;  %v19948_v6 = vld [vmem:[#allocation108_spill] sm:$0xff]  ;;  %v9003_v40 = vadd.f32 %v9002_v32, %v19949_v21  ;;  %v9906_v54 = vmul.f32 %v17561_v61, %v19950_v27  ;;  %v10301_v42 = vmax.f32 %v10173_v3, 0.0 }
 0x483   :  { %v10176_v49 = vadd.f32 %v17599_v28, %v10026_v5  ;;  %19947 = vst [vmem:[#allocation75_spill] sm:$0xff] %v18133_v37  ;;  %v7487_v63 = vmul.f32 %v16907_v50, %v19948_v6  ;;  %v9004_v9 = vpop.f32.mrf.mxu0  ;;  %v19953_v6 = vld [vmem:[#allocation146_spill] sm:$0xff]  ;;  %v18149_v21 = vmul.f32 %v18074_v58, %v18007_v31  ;;  %v18153_v32 = vmul.f32 %v18080_v19, %v18007_v31 }
 0x484   :  { %v10177_v5 = vadd.f32 %v17804_v2, %v10027_v57  ;;  %v18143_v24 = vpop.f32.mrf.mxu1  ;;  %v10030_v22 = vadd.f32 %v9902_v1, %v9003_v40  ;;  %v9005_v47 = vadd.f32 %v9004_v9, %v19953_v6  ;;  %v18166_v6 = vmul.f32 %v18080_v19, %v18032_v46  ;;  %v19960_v1 = vld [vmem:[#allocation153_spill] sm:$0xff] }
 0x485   :  { %v10304_v33 = vmax.f32 %v10176_v49, 0.0  ;;  %19951 = vst [vmem:[#allocation134_spill] sm:$0xff] %v18143_v24  ;;  %19954 = vst [vmem:[#allocation136_spill] sm:$0xff] %v18149_v21  ;;  %v9006_v49 = vpop.f32.mrf.mxu0  ;;  %v8816_v40 = vadd.f32 %v19960_v1, %v8623_v52  ;;  %v19961_v9 = vld [vmem:[#allocation133_spill] sm:$0xff]  ;;  %v19963_v24 = vld [vmem:[#allocation166_spill] sm:$0xff]  ;;  %v8633_v52 = vadd.f32 %v19964_v55, %v7487_v63 }
 0x486   :  { %10732 = vmatmul.mubr.bf16.gmra.mxu0 %v19952_v51  ;;  %19955 = vst [vmem:[#allocation57_spill] sm:$0xff] %v18153_v32  ;;  %v10305_v57 = vmax.f32 %v10177_v5, 0.0  ;;  %v18158_v3 = vpop.f32.mrf.mxu1  ;;  %v18162_v51 = vmul.f32 %v18074_v58, %v18032_v46  ;;  %19959 = vst [vmem:[#allocation135_spill] sm:$0xff] %v18166_v6  ;;  %v9007_v32 = vadd.f32 %v9006_v49, %v19961_v9 }
 0x487   :  { %v18155_v45 = vpack.c.bf16 %v10304_v33, %v10300_v11  ;;  %10739 = vmatprep.mubr.bf16.mxu0 %v17856_v26  ;;  %19957 = vst [vmem:[#allocation63_spill] sm:$0xff] %v18158_v3  ;;  %v9907_v11 = vmul.f32 %v17766_v12, %v19950_v27  ;;  %v10180_v26 = vadd.f32 %v17599_v28, %v10030_v22  ;;  %v9008_v5 = vpop.f32.mrf.mxu0  ;;  %v19966_v22 = vld [vmem:[#allocation22_spill] sm:$0xff] }
 0x488   :  { %19958 = vst [vmem:[#allocation76_spill] sm:$0xff] %v18162_v51  ;;  %v10031_v33 = vadd.f32 %v9903_v59, %v9005_v47  ;;  %v18173_v21 = vpack.c.bf16 %v10305_v57, %v10301_v42  ;;  %v18175_v30 = vpop.f32.mrf.mxu1  ;;  %v10034_v51 = vadd.f32 %v9906_v54, %v9007_v32  ;;  %v9009_v3 = vadd.f32 %v9008_v5, %v8816_v40  ;;  %v19967_v59 = vld [vmem:[#allocation149_spill] sm:$0xff]  ;;  %v19968_v5 = vld [vmem:[#allocation120_spill] sm:$0xff] }
 0x489   :  { %19956 = vst [vmem:[#allocation61_spill] sm:$0xff] %v18155_v45  ;;  %19962 = vst [vmem:[#allocation45_spill] sm:$0xff] %v18175_v30  ;;  %v9910_v6 = vmul.f32 %v17561_v61, %v19963_v24  ;;  %v9012_v1 = vpop.f32.mrf.mxu0  ;;  %v9911_v42 = vmul.f32 %v17766_v12, %v19963_v24  ;;  %v7495_v54 = vmul.f32 %v16907_v50, %v19967_v59  ;;  %v10308_v32 = vmax.f32 %v10180_v26, 0.0  ;;  %v19972_v24 = vld [vmem:[#allocation89_spill] sm:$0xff] }
 0x48a   :  { %v18180_v49 = vpop.f32.mrf.mxu1  ;;  %v10184_v9 = vadd.f32 %v17599_v28, %v10034_v51  ;;  %v10035_v27 = vadd.f32 %v9907_v11, %v9009_v3  ;;  %v9013_v47 = vadd.f32 %v9012_v1, %v19966_v22  ;;  %v10181_v57 = vadd.f32 %v17804_v2, %v10031_v33  ;;  %v19970_v11 = vld [vmem:[#allocation26_spill] sm:$0xff]  ;;  %v19971_v1 = vld [vmem:[#allocation172_spill] sm:$0xff]  ;;  %v19975_v45 = vld [vmem:[#allocation173_spill] sm:$0xff] }
 0x48b   :  { %19965 = vst [vmem:[#allocation46_spill] sm:$0xff] %v18180_v49  ;;  %v9014_v40 = vpop.f32.mrf.mxu0  ;;  %v9914_v55 = vmul.f32 %v17561_v61, %v19968_v5  ;;  %v8826_v30 = vadd.f32 %v19972_v24, %v8633_v52 }
 0x48c   :  { %v18191_v63 = vpop.f32.mrf.mxu1  ;;  %v10312_v49 = vmax.f32 %v10184_v9, 0.0  ;;  %v10185_v3 = vadd.f32 %v17804_v2, %v10035_v27  ;;  %v10038_v51 = vadd.f32 %v9910_v6, %v9013_v47  ;;  %v9015_v22 = vadd.f32 %v9014_v40, %v19971_v1  ;;  %v19976_v6 = vld [vmem:[#allocation100_spill] sm:$0xff] }
 0x48d   :  { %19969 = vst [vmem:[#allocation47_spill] sm:$0xff] %v18191_v63  ;;  %v9016_v26 = vpop.f32.mrf.mxu0  ;;  %v9915_v27 = vmul.f32 %v17766_v12, %v19968_v5  ;;  %v8643_v9 = vadd.f32 %v19976_v6, %v7495_v54  ;;  %v10309_v47 = vmax.f32 %v10181_v57, 0.0 }
 0x48e   :  { %10740 = vmatmul.mubr.bf16.gmra.mxu0 %v19970_v11  ;;  %v18198_v33 = vpop.f32.mrf.mxu1  ;;  %v18200_v59 = vpack.c.bf16 %v10312_v49, %v10308_v32  ;;  %v10039_v37 = vadd.f32 %v9911_v42, %v9015_v22  ;;  %v9017_v63 = vadd.f32 %v9016_v26, %v19975_v45  ;;  %v10313_v40 = vmax.f32 %v10185_v3, 0.0  ;;  %v19980_v22 = vld [vmem:[#allocation165_spill] sm:$0xff]  ;;  %v19981_v26 = vld [vmem:[#allocation124_spill] sm:$0xff] }
 0x48f   :  { %10747 = vmatprep.mubr.bf16.mxu0 %v17863_v4  ;;  %19973 = vst [vmem:[#allocation148_spill] sm:$0xff] %v18198_v33  ;;  %v9018_v11 = vpop.f32.mrf.mxu0  ;;  %v7396_v4 = vmul.f32 %v17980_v7, %v19860_v13  ;;  %v10188_v24 = vadd.f32 %v17599_v28, %v10038_v51  ;;  %v8836_v3 = vadd.f32 %v19980_v22, %v8643_v9 }
 0x490   :  { %19974 = vst [vmem:[#allocation90_spill] sm:$0xff] %v18200_v59  ;;  %v18206_v1 = vpop.f32.mrf.mxu1  ;;  %v10042_v52 = vadd.f32 %v9914_v55, %v9017_v63  ;;  %v9019_v49 = vadd.f32 %v9018_v11, %v8826_v30  ;;  %v18211_v42 = vpack.c.bf16 %v10313_v40, %v10309_v47  ;;  %v10189_v32 = vadd.f32 %v17804_v2, %v10039_v37  ;;  %v19984_v11 = vld [vmem:[#allocation20_spill] sm:$0xff] }
 0x491   :  { %19977 = vst [vmem:[#allocation70_spill] sm:$0xff] %v18206_v1  ;;  %v9918_v6 = vmul.f32 %v17561_v61, %v19981_v26  ;;  %v19983_v1 = vld [vmem:[#allocation180_spill] sm:$0xff]  ;;  %v10316_v30 = vmax.f32 %v10188_v24, 0.0  ;;  %v7397_v37 = vmul.f32 %v17988_v53, %v19860_v13  ;;  %v7401_v9 = vmul.f32 %v17988_v53, %v19863_v29 }
 0x492   :  { %19978 = vst [vmem:[#allocation142_spill] sm:$0xff] %v18211_v42  ;;  %v18213_v45 = vpop.f32.mrf.mxu1  ;;  %v10192_v54 = vadd.f32 %v17599_v28, %v10042_v52  ;;  %v10043_v57 = vadd.f32 %v9915_v27, %v9019_v49  ;;  %v18223_v51 = vadd.f32 %v19983_v1, %v7396_v4  ;;  %v7400_v27 = vmul.f32 %v17980_v7, %v19863_v29  ;;  %v19985_v40 = vld [vmem:[#allocation8_spill] sm:$0xff] }
 0x493   :  { %19979 = vst [vmem:[#allocation128_spill] sm:$0xff] %v18213_v45  ;;  %v9022_v47 = vpop.f32.mrf.mxu0  ;;  %v10317_v4 = vmax.f32 %v10189_v32, 0.0 }
 0x494   :  { %v18220_v5 = vpop.f32.mrf.mxu1  ;;  %v10320_v55 = vmax.f32 %v10192_v54, 0.0  ;;  %v10193_v63 = vadd.f32 %v17804_v2, %v10043_v57  ;;  %v9023_v52 = vadd.f32 %v9022_v47, %v19985_v40  ;;  %v9919_v54 = vmul.f32 %v17766_v12, %v19981_v26  ;;  %v19991_v40 = vld [vmem:[#allocation42_spill] sm:$0xff] }
 0x495   :  { %19982 = vst [vmem:[#allocation126_spill] sm:$0xff] %v18220_v5  ;;  %v9024_v49 = vpop.f32.mrf.mxu0  ;;  %v7404_v57 = vmul.f32 %v17980_v7, %v19879_v14  ;;  %v19989_v5 = vld [vmem:[#allocation156_spill] sm:$0xff]  ;;  %v7503_v32 = vmul.f32 %v16907_v50, %v19991_v40 }
 0x496   :  { %10748 = vmatmul.mubr.bf16.gmra.mxu0 %v19984_v11  ;;  %v18235_v1 = vpop.f32.mrf.mxu1  ;;  %v18237_v24 = vpack.c.bf16 %v10320_v55, %v10316_v30  ;;  %v10321_v13 = vmax.f32 %v10193_v63, 0.0  ;;  %v10046_v22 = vadd.f32 %v9918_v6, %v9023_v52  ;;  %v19988_v11 = vld [vmem:[#allocation176_spill] sm:$0xff]  ;;  %v9922_v47 = vmul.f32 %v17561_v61, %v19989_v5  ;;  %v19993_v6 = vld [vmem:[#allocation161_spill] sm:$0xff] }
 0x497   :  { %10755 = vmatprep.mubr.bf16.mxu0 %v17871_v16  ;;  %19986 = vst [vmem:[#allocation143_spill] sm:$0xff] %v18235_v1  ;;  %v9025_v29 = vadd.f32 %v9024_v49, %v19988_v11  ;;  %v7405_v30 = vmul.f32 %v17988_v53, %v19879_v14  ;;  %v7408_v55 = vmul.f32 %v17980_v7, %v19872_v34  ;;  %v9026_v63 = vpop.f32.mrf.mxu0  ;;  %v19994_v11 = vld [vmem:[#allocation140_spill] sm:$0xff]  ;;  %v19996_v14 = vld [vmem:[#allocation163_spill] sm:$0xff] }
 0x498   :  { %19987 = vst [vmem:[#allocation131_spill] sm:$0xff] %v18237_v24  ;;  %v18246_v16 = vpop.f32.mrf.mxu1  ;;  %v18254_v26 = vpack.c.bf16 %v10321_v13, %v10317_v4  ;;  %v18257_v52 = vadd.f32 %v19993_v6, %v7400_v27  ;;  %v7409_v49 = vmul.f32 %v17988_v53, %v19872_v34  ;;  %v9923_v40 = vmul.f32 %v17766_v12, %v19989_v5  ;;  %v19997_v24 = vld [vmem:[#allocation9_spill] sm:$0xff]  ;;  %v19998_v6 = vld [vmem:[#allocation10_spill] sm:$0xff] }
 0x499   :  { %19990 = vst [vmem:[#allocation152_spill] sm:$0xff] %v18246_v16  ;;  %v9027_v16 = vadd.f32 %v9026_v63, %v19994_v11  ;;  %v18267_v45 = vadd.f32 %v19996_v14, %v7397_v37  ;;  %v18270_v33 = vadd.f32 %v19997_v24, %v7401_v9  ;;  %v10196_v4 = vadd.f32 %v17599_v28, %v10046_v22  ;;  %v9028_v13 = vpop.f32.mrf.mxu0  ;;  %v19999_v11 = vld [vmem:[#allocation17_spill] sm:$0xff]  ;;  %v20002_v14 = vld [vmem:[#allocation88_spill] sm:$0xff]  ;;  %v20003_v9 = vld [vmem:[#allocation11_spill] sm:$0xff] }
 0x49a   :  { %19992 = vst [vmem:[#allocation168_spill] sm:$0xff] %v18254_v26  ;;  %v18264_v1 = vpop.f32.mrf.mxu1  ;;  %v10047_v27 = vadd.f32 %v9919_v54, %v9025_v29  ;;  %v18274_v26 = vadd.f32 %v19998_v6, %v7404_v57  ;;  %v9029_v63 = vadd.f32 %v9028_v13, %v8836_v3  ;;  %v9926_v5 = vmul.f32 %v17561_v61, %v19999_v11  ;;  %v20004_v54 = vld [vmem:[#allocation65_spill] sm:$0xff]  ;;  %v20005_v29 = vld [vmem:[#allocation23_spill] sm:$0xff]  ;;  %v20006_v3 = vld [vmem:[#allocation12_spill] sm:$0xff] }
 0x49b   :  { %19995 = vst [vmem:[#allocation15_spill] sm:$0xff] %v18264_v1  ;;  %v10050_v34 = vadd.f32 %v9922_v47, %v9027_v16  ;;  %v20001_v1 = vld [vmem:[#allocation119_spill] sm:$0xff]  ;;  %v18282_v42 = vadd.f32 %v20002_v14, %v7405_v30  ;;  %v18285_v24 = vadd.f32 %v20003_v9, %v7408_v55  ;;  %v7412_v22 = vmul.f32 %v17980_v7, %v20004_v54  ;;  %v9032_v57 = vpop.f32.mrf.mxu0 }
 0x49c   :  { %v18278_v59 = vpop.f32.mrf.mxu1  ;;  %v8653_v37 = vadd.f32 %v20001_v1, %v7503_v32  ;;  %v18291_v47 = vadd.f32 %v20006_v3, %v7409_v49  ;;  %v10051_v13 = vadd.f32 %v9923_v40, %v9029_v63  ;;  %v20007_v6 = vld [vmem:[#allocation179_spill] sm:$0xff]  ;;  %v10324_v30 = vmax.f32 %v10196_v4, 0.0  ;;  %v20012_v4 = vld [vmem:[#allocation69_spill] sm:$0xff] }
 0x49d   :  { %20000 = vst [vmem:[#allocation146_spill] sm:$0xff] %v18278_v59  ;;  %v10200_v16 = vadd.f32 %v17599_v28, %v10050_v34  ;;  %v9033_v1 = vadd.f32 %v9032_v57, %v20007_v6  ;;  %v10197_v55 = vadd.f32 %v17804_v2, %v10047_v27  ;;  %v9034_v14 = vpop.f32.mrf.mxu0  ;;  %v9927_v9 = vmul.f32 %v17766_v12, %v19999_v11  ;;  %v20009_v63 = vld [vmem:[#allocation155_spill] sm:$0xff] }
 0x49e   :  { %10756 = vmatmul.mubr.bf16.gmra.mxu0 %v20005_v29  ;;  %v18296_v32 = vpop.f32.mrf.mxu1  ;;  %v9930_v49 = vmul.f32 %v17561_v61, %v17958_v38  ;;  %v10201_v34 = vadd.f32 %v17804_v2, %v10051_v13  ;;  %v9035_v57 = vadd.f32 %v9034_v14, %v20009_v63  ;;  %v7413_v27 = vmul.f32 %v17988_v53, %v20004_v54  ;;  %v20015_v13 = vld [vmem:[#allocation68_spill] sm:$0xff] }
 0x49f   :  { %10763 = vmatprep.mubr.bf16.mxu0 %v17876_v60  ;;  %20008 = vst [vmem:[#allocation153_spill] sm:$0xff] %v18296_v32  ;;  %v10328_v29 = vmax.f32 %v10200_v16, 0.0  ;;  %v10054_v40 = vadd.f32 %v9926_v5, %v9033_v1  ;;  %v20011_v60 = vld [vmem:[#allocation167_spill] sm:$0xff]  ;;  %v18309_v32 = vadd.f32 %v20012_v4, %v7412_v22  ;;  %v7416_v11 = vmul.f32 %v17980_v7, %v19749_v39  ;;  %v9036_v59 = vpop.f32.mrf.mxu0  ;;  %v20017_v22 = vld [vmem:[#allocation74_spill] sm:$0xff] }
 0x4a0   :  { %v18305_v3 = vpop.f32.mrf.mxu1  ;;  %v8846_v6 = vadd.f32 %v20011_v60, %v8653_v37  ;;  %v7417_v16 = vmul.f32 %v17988_v53, %v19749_v39  ;;  %v9037_v1 = vadd.f32 %v9036_v59, %v20015_v13  ;;  %v9931_v37 = vmul.f32 %v17766_v12, %v17958_v38  ;;  %v20019_v13 = vld [vmem:[#allocation44_spill] sm:$0xff] }
 0x4a1   :  { %20010 = vst [vmem:[#allocation133_spill] sm:$0xff] %v18305_v3  ;;  %20013 = vst [vmem:[#allocation87_spill] sm:$0xff] %v18309_v32  ;;  %v18317_v5 = vpack.c.bf16 %v10328_v29, %v10324_v30  ;;  %v7420_v63 = vmul.f32 %v17980_v7, %v20017_v22  ;;  %v10325_v54 = vmax.f32 %v10197_v55, 0.0  ;;  %v10055_v60 = vadd.f32 %v9927_v9, %v9035_v57  ;;  %v9038_v4 = vpop.f32.mrf.mxu0 }
 0x4a2   :  { %v18322_v14 = vpop.f32.mrf.mxu1  ;;  %v10329_v3 = vmax.f32 %v10201_v34, 0.0  ;;  %v7421_v32 = vmul.f32 %v17988_v53, %v20017_v22  ;;  %v10204_v39 = vadd.f32 %v17599_v28, %v10054_v40  ;;  %v10058_v30 = vadd.f32 %v9930_v49, %v9037_v1  ;;  %v20023_v40 = vld [vmem:[#allocation85_spill] sm:$0xff] }
 0x4a3   :  { %20014 = vst [vmem:[#allocation22_spill] sm:$0xff] %v18317_v5  ;;  %20016 = vst [vmem:[#allocation26_spill] sm:$0xff] %v18322_v14  ;;  %v9039_v29 = vadd.f32 %v9038_v4, %v8846_v6  ;;  %v7424_v38 = vmul.f32 %v17980_v7, %v20019_v13  ;;  %v7425_v14 = vmul.f32 %v17988_v53, %v20019_v13  ;;  %v20020_v5 = vld [vmem:[#allocation82_spill] sm:$0xff]  ;;  %v18337_v9 = vpop.f32.mrf.mxu0 }
 0x4a4   :  { %v18329_v59 = vpop.f32.mrf.mxu1  ;;  %v7428_v55 = vmul.f32 %v17980_v7, %v20020_v5  ;;  %20021 = vst [vmem:[#allocation89_spill] sm:$0xff] %v18337_v9  ;;  %v18340_v34 = vpack.c.bf16 %v10329_v3, %v10325_v54  ;;  %v7429_v49 = vmul.f32 %v17988_v53, %v20020_v5  ;;  %v7432_v57 = vmul.f32 %v17980_v7, %v20023_v40  ;;  %v20025_v4 = vld [vmem:[#allocation162_spill] sm:$0xff] }
 0x4a5   :  { %20018 = vst [vmem:[#allocation172_spill] sm:$0xff] %v18329_v59  ;;  %v10208_v6 = vadd.f32 %v17599_v28, %v10058_v30  ;;  %v10059_v1 = vadd.f32 %v9931_v37, %v9039_v29  ;;  %v18351_v13 = vadd.f32 %v20025_v4, %v7413_v27  ;;  %v20026_v59 = vld [vmem:[#allocation71_spill] sm:$0xff]  ;;  %v7433_v3 = vmul.f32 %v17988_v53, %v20023_v40  ;;  %v18359_v54 = vpop.f32.mrf.mxu0  ;;  %v20029_v27 = vld [vmem:[#allocation14_spill] sm:$0xff] }
 0x4a6   :  { %10764 = vmatmul.mubr.bf16.gmra.mxu0 %v17784_v48  ;;  %20022 = vst [vmem:[#allocation173_spill] sm:$0xff] %v18340_v34  ;;  %v18348_v22 = vpop.f32.mrf.mxu1  ;;  %v18354_v48 = vadd.f32 %v20026_v59, %v7416_v11  ;;  %v10205_v5 = vadd.f32 %v17804_v2, %v10055_v60  ;;  %v20027_v34 = vld [vmem:[#allocation13_spill] sm:$0xff]  ;;  %v10332_v37 = vmax.f32 %v10204_v39, 0.0  ;;  %v18368_v4 = vadd.f32 %v20029_v27, %v7420_v63  ;;  %v20031_v11 = vld [vmem:[#allocation72_spill] sm:$0xff]  ;;  %v20033_v40 = vld [vmem:[#allocation154_spill] sm:$0xff] }
 0x4a7   :  { %10771 = vmatprep.mubr.bf16.mxu0 %v17883_v0  ;;  %20024 = vst [vmem:[#allocation100_spill] sm:$0xff] %v18348_v22  ;;  %v18362_v30 = vadd.f32 %v20027_v34, %v7417_v16  ;;  %v10336_v0 = vmax.f32 %v10208_v6, 0.0  ;;  %v10209_v29 = vadd.f32 %v17804_v2, %v10059_v1  ;;  %v18371_v59 = vadd.f32 %v20031_v11, %v7421_v32  ;;  %v20035_v60 = vld [vmem:[#allocation16_spill] sm:$0xff]  ;;  %v18379_v16 = vpop.f32.mrf.mxu0  ;;  %v20040_v6 = vld [vmem:[#allocation158_spill] sm:$0xff] }
 0x4a8   :  { %v18365_v22 = vpop.f32.mrf.mxu1  ;;  %20030 = vst [vmem:[#allocation180_spill] sm:$0xff] %v18368_v4  ;;  %v18374_v28 = vadd.f32 %v20033_v40, %v7424_v38  ;;  %v18377_v9 = vadd.f32 %v20035_v60, %v7425_v14  ;;  %20037 = vst [vmem:[#allocation161_spill] sm:$0xff] %v18379_v16  ;;  %v20038_v39 = vld [vmem:[#allocation80_spill] sm:$0xff]  ;;  %v18385_v1 = vadd.f32 %v20040_v6, %v7429_v49  ;;  %v20046_v38 = vld [vmem:[#allocation181_spill] sm:$0xff]  ;;  %v10333_v60 = vmax.f32 %v10205_v5, 0.0 }
 0x4a9   :  { %20028 = vst [vmem:[#allocation165_spill] sm:$0xff] %v18365_v22  ;;  %20032 = vst [vmem:[#allocation20_spill] sm:$0xff] %v18371_v59  ;;  %v18382_v34 = vadd.f32 %v20038_v39, %v7428_v55  ;;  %v20042_v22 = vld [vmem:[#allocation18_spill] sm:$0xff]  ;;  %v18390_v27 = vpack.c.bf16 %v10336_v0, %v10332_v37  ;;  %v18395_v11 = vadd.f32 %v20046_v38, %v7433_v3  ;;  %v20048_v14 = vld [vmem:[#allocation92_spill] sm:$0xff]  ;;  %v10337_v55 = vmax.f32 %v10209_v29, 0.0 }
 0x4aa   :  { %20034 = vst [vmem:[#allocation8_spill] sm:$0xff] %v18374_v28  ;;  %20036 = vst [vmem:[#allocation176_spill] sm:$0xff] %v18377_v9  ;;  %v18388_v63 = vadd.f32 %v20042_v22, %v7432_v57  ;;  %v18392_v32 = vpop.f32.mrf.mxu1  ;;  %v7436_v40 = vmul.f32 %v17980_v7, %v20048_v14  ;;  %v18399_v9 = vpop.f32.mrf.mxu0  ;;  %v7510_v49 = vmul.f32 %v16950_v10, %v18002_v41  ;;  %v20049_v37 = vld [vmem:[#allocation95_spill] sm:$0xff]  ;;  %v20051_v39 = vld [vmem:[#allocation102_spill] sm:$0xff] }
 0x4ab   :  { %20039 = vst [vmem:[#allocation140_spill] sm:$0xff] %v18382_v34  ;;  %20041 = vst [vmem:[#allocation163_spill] sm:$0xff] %v18385_v1  ;;  %v7511_v57 = vmul.f32 %v16907_v50, %v18002_v41  ;;  %v7437_v22 = vmul.f32 %v17988_v53, %v20048_v14  ;;  %v7440_v3 = vmul.f32 %v17980_v7, %v20049_v37  ;;  %v20054_v14 = vld [vmem:[#allocation106_spill] sm:$0xff]  ;;  %v20062_v34 = vld [vmem:[#allocation125_spill] sm:$0xff] }
 0x4ac   :  { %20043 = vst [vmem:[#allocation9_spill] sm:$0xff] %v18388_v63  ;;  %20044 = vst [vmem:[#allocation10_spill] sm:$0xff] %v18390_v27  ;;  %v18409_v0 = vpop.f32.mrf.mxu1  ;;  %v7441_v5 = vmul.f32 %v17988_v53, %v20049_v37  ;;  %v7444_v29 = vmul.f32 %v17980_v7, %v20051_v39  ;;  %v7445_v6 = vmul.f32 %v17988_v53, %v20051_v39  ;;  %v18417_v38 = vpop.f32.mrf.mxu0  ;;  %v20055_v27 = vld [vmem:[#allocation112_spill] sm:$0xff]  ;;  %v20064_v59 = vld [vmem:[#allocation19_spill] sm:$0xff] }
 0x4ad   :  { %20045 = vst [vmem:[#allocation119_spill] sm:$0xff] %v18392_v32  ;;  %20047 = vst [vmem:[#allocation88_spill] sm:$0xff] %v18395_v11  ;;  %v18420_v41 = vpack.c.bf16 %v10337_v55, %v10333_v60  ;;  %v7448_v32 = vmul.f32 %v17980_v7, %v20054_v14  ;;  %v7452_v37 = vmul.f32 %v17980_v7, %v20055_v27  ;;  %v20057_v63 = vld [vmem:[#allocation164_spill] sm:$0xff]  ;;  %v20059_v60 = vld [vmem:[#allocation118_spill] sm:$0xff] }
 0x4ae   :  { %20050 = vst [vmem:[#allocation11_spill] sm:$0xff] %v18409_v0  ;;  %20052 = vst [vmem:[#allocation65_spill] sm:$0xff] %v18417_v38  ;;  %10772 = vmatmul.mubr.bf16.gmra.mxu0 %v17829_v62  ;;  %v7449_v0 = vmul.f32 %v17988_v53, %v20054_v14  ;;  %v7453_v11 = vmul.f32 %v17988_v53, %v20055_v27  ;;  %v18431_v39 = vpop.f32.mrf.mxu1  ;;  %v18434_v62 = vadd.f32 %v20057_v63, %v7436_v40  ;;  %v20060_v14 = vld [vmem:[#allocation121_spill] sm:$0xff]  ;;  %v20063_v28 = vld [vmem:[#allocation132_spill] sm:$0xff] }
 0x4af   :  { %20053 = vst [vmem:[#allocation23_spill] sm:$0xff] %v18420_v41  ;;  %10779 = vmatprep.mubr.bf16.mxu0 %v18067_v8  ;;  %20056 = vst [vmem:[#allocation12_spill] sm:$0xff] %v18431_v39  ;;  %v7456_v55 = vmul.f32 %v17980_v7, %v20059_v60  ;;  %v7457_v38 = vmul.f32 %v17988_v53, %v20059_v60  ;;  %v7460_v1 = vmul.f32 %v17980_v7, %v20060_v14  ;;  %v18442_v41 = vpop.f32.mrf.mxu0  ;;  %v20069_v60 = vld [vmem:[#allocation182_spill] sm:$0xff]  ;;  %v20071_v16 = vld [vmem:[#allocation185_spill] sm:$0xff] }
 0x4b0   :  { %20058 = vst [vmem:[#allocation179_spill] sm:$0xff] %v18434_v62  ;;  %20061 = vst [vmem:[#allocation155_spill] sm:$0xff] %v18442_v41  ;;  %v8661_v27 = vadd.f32 %v20062_v34, %v7510_v49  ;;  %v8663_v8 = vadd.f32 %v20063_v28, %v7511_v57  ;;  %v18447_v39 = vadd.f32 %v20064_v59, %v7437_v22  ;;  %v18451_v40 = vpop.f32.mrf.mxu1  ;;  %v20067_v62 = vld [vmem:[#allocation99_spill] sm:$0xff]  ;;  %v20073_v34 = vld [vmem:[#allocation21_spill] sm:$0xff] }
 0x4b1   :  { %v7461_v63 = vmul.f32 %v17988_v53, %v20060_v14  ;;  %20066 = vst [vmem:[#allocation69_spill] sm:$0xff] %v18451_v40  ;;  %v18454_v2 = vadd.f32 %v20067_v62, %v7440_v3  ;;  %v18457_v4 = vadd.f32 %v20069_v60, %v7441_v5  ;;  %v18460_v41 = vadd.f32 %v20071_v16, %v7444_v29  ;;  %v18465_v28 = vpop.f32.mrf.mxu0  ;;  %v20075_v59 = vld [vmem:[#allocation186_spill] sm:$0xff]  ;;  %v20077_v22 = vld [vmem:[#allocation83_spill] sm:$0xff]  ;;  %v20079_v40 = vld [vmem:[#allocation93_spill] sm:$0xff] }
 0x4b2   :  { %20065 = vst [vmem:[#allocation167_spill] sm:$0xff] %v18447_v39  ;;  %v18463_v49 = vadd.f32 %v20073_v34, %v7445_v6  ;;  %v18468_v57 = vadd.f32 %v20075_v59, %v7448_v32  ;;  %v18471_v14 = vadd.f32 %v20077_v22, %v7449_v0  ;;  %v18474_v3 = vadd.f32 %v20079_v40, %v7452_v37  ;;  %v20081_v62 = vld [vmem:[#allocation109_spill] sm:$0xff]  ;;  %v18479_v60 = vpop.f32.mrf.mxu1  ;;  %v20084_v16 = vld [vmem:[#allocation84_spill] sm:$0xff]  ;;  %v20090_v34 = vld [vmem:[#allocation6_spill] sm:$0xff] }
 0x4b3   :  { %20068 = vst [vmem:[#allocation68_spill] sm:$0xff] %v18454_v2  ;;  %20070 = vst [vmem:[#allocation74_spill] sm:$0xff] %v18457_v4  ;;  %v18477_v5 = vadd.f32 %v20081_v62, %v7453_v11  ;;  %v18482_v29 = vadd.f32 %v20084_v16, %v7456_v55  ;;  %v18485_v6 = vadd.f32 %v17797_v56, %v7457_v38  ;;  %v18494_v37 = vpop.f32.mrf.mxu0  ;;  %v20089_v40 = vld [vmem:[#allocation129_spill] sm:$0xff]  ;;  %v20091_v55 = vld [vmem:[#allocation103_spill] sm:$0xff] }
 0x4b4   :  { %20072 = vst [vmem:[#allocation44_spill] sm:$0xff] %v18460_v41  ;;  %20074 = vst [vmem:[#allocation82_spill] sm:$0xff] %v18463_v49  ;;  %v18488_v32 = vadd.f32 %v17807_v43, %v7460_v1  ;;  %v18492_v0 = vmul.f32 %v17980_v7, %v19883_v36  ;;  %v18497_v11 = vadd.f32 %v20089_v40, %v8661_v27  ;;  %v18509_v43 = vpop.f32.mrf.mxu1  ;;  %v20094_v16 = vld [vmem:[#allocation34_spill] sm:$0xff]  ;;  %v20107_v49 = vld [vmem:[#allocation61_spill] sm:$0xff] }
 0x4b5   :  { %20076 = vst [vmem:[#allocation85_spill] sm:$0xff] %v18468_v57  ;;  %20078 = vst [vmem:[#allocation162_spill] sm:$0xff] %v18471_v14  ;;  %v18500_v59 = vadd.f32 %v20090_v34, %v8663_v8  ;;  %v18503_v22 = vadd.f32 %v20091_v55, %v7461_v63  ;;  %v18507_v56 = vmul.f32 %v17561_v61, %v18007_v31  ;;  %v9288_v8 = vpop.f32.mrf.mxu0  ;;  %v12374_v63 = vld [vmem:[%s19138_s4] sm:$0xf] }
 0x4b6   :  { %20080 = vst [vmem:[#allocation71_spill] sm:$0xff] %v18474_v3  ;;  %20082 = vst [vmem:[#allocation13_spill] sm:$0xff] %v18477_v5  ;;  %v18513_v1 = vmul.f32 %v17766_v12, %v18007_v31  ;;  %v18517_v38 = vmul.f32 %v17561_v61, %v18032_v46  ;;  %v18521_v27 = vmul.f32 %v17766_v12, %v18032_v46  ;;  %10780 = vmatmul.mubr.bf16.gmra.mxu0 %v18057_v18  ;;  %v18539_v55 = vpop.f32.mrf.mxu1  ;;  %v20096_v18 = vld [vmem:[#allocation52_spill] sm:$0xff]  ;;  %v20114_v41 = vld [vmem:[#allocation50_spill] sm:$0xff] }
 0x4b7   :  { %20083 = vst [vmem:[#allocation14_spill] sm:$0xff] %v18479_v60  ;;  %20085 = vst [vmem:[#allocation72_spill] sm:$0xff] %v18482_v29  ;;  %v18527_v62 = vrot.slane %v12374_v63, %v17954_v44  ;;  %v9289_v31 = vadd.f32 %v9288_v8, %v18223_v51  ;;  %v9824_v40 = vmul.f32 %v18074_v58, %v20094_v16  ;;  %10787 = vmatprep.mubr.bf16.mxu0 %v18173_v21  ;;  %v20099_v5 = vld [vmem:[#allocation64_spill] sm:$0xff] }
 0x4b8   :  { %20086 = vst [vmem:[#allocation154_spill] sm:$0xff] %v18485_v6  ;;  %20087 = vst [vmem:[#allocation16_spill] sm:$0xff] %v18488_v32  ;;  %v9825_v46 = vmul.f32 %v18080_v19, %v20094_v16  ;;  %v18537_v34 = vrot.slane %v12374_v63, %v17961_v23  ;;  %v7514_v44 = vmul.f32 %v16950_v10, %v18041_v25  ;;  %v20097_v32 = vld [vmem:[#allocation59_spill] sm:$0xff]  ;;  %v18557_v29 = vpop.f32.mrf.mxu1 }
 0x4b9   :  { %20088 = vst [vmem:[#allocation80_spill] sm:$0xff] %v18492_v0  ;;  %20092 = vst [vmem:[#allocation158_spill] sm:$0xff] %v18503_v22  ;;  %v9290_v22 = vpop.f32.mrf.mxu0  ;;  %v9828_v51 = vmul.f32 %v18074_v58, %v20096_v18  ;;  %v9829_v8 = vmul.f32 %v18080_v19, %v20096_v18  ;;  %v9832_v21 = vmul.f32 %v18074_v58, %v20097_v32 }
 0x4ba   :  { %20093 = vst [vmem:[#allocation18_spill] sm:$0xff] %v18509_v43  ;;  %20095 = vst [vmem:[#allocation181_spill] sm:$0xff] %v18539_v55  ;;  %v7515_v16 = vmul.f32 %v16907_v50, %v18041_v25  ;;  %v9482_v23 = vadd.f32 %v18105_v35, %v9289_v31  ;;  %v9291_v63 = vadd.f32 %v9290_v22, %v18267_v45  ;;  %v20100_v31 = vld [vmem:[#allocation73_spill] sm:$0xff]  ;;  %v18581_v60 = vpop.f32.mrf.mxu1 }
 0x4bb   :  { %v18555_v6 = vmul.f32 %v18080_v19, %v20097_v32  ;;  %20098 = vst [vmem:[#allocation92_spill] sm:$0xff] %v18557_v29  ;;  %v9292_v55 = vpop.f32.mrf.mxu0  ;;  %v18561_v18 = vmul.f32 %v18074_v58, %v20099_v5  ;;  %v18565_v43 = vmul.f32 %v18080_v19, %v20099_v5  ;;  %v18569_v25 = vmul.f32 %v18074_v58, %v19920_v20  ;;  %v20102_v5 = vld [vmem:[#allocation169_spill] sm:$0xff] }
 0x4bc   :  { %v18573_v35 = vmul.f32 %v18080_v19, %v19920_v20  ;;  %v9952_v45 = vadd.f32 %v9824_v40, %v9482_v23  ;;  %v9484_v32 = vadd.f32 %v18115_v15, %v9291_v63  ;;  %v9293_v22 = vadd.f32 %v9292_v55, %v18257_v52  ;;  %20101 = vst [vmem:[#allocation95_spill] sm:$0xff] %v18581_v60  ;;  %v20103_v20 = vld [vmem:[#allocation77_spill] sm:$0xff]  ;;  %v20104_v52 = vld [vmem:[#allocation174_spill] sm:$0xff] }
 0x4bd   :  { %v18579_v29 = vmul.f32 %v18074_v58, %v20100_v31  ;;  %v8667_v3 = vadd.f32 %v20102_v5, %v7514_v44  ;;  %v9294_v14 = vpop.f32.mrf.mxu0  ;;  %v18586_v7 = vmul.f32 %v18080_v19, %v20100_v31  ;;  %v18590_v40 = vmul.f32 %v18074_v58, %v20103_v20  ;;  %v20105_v44 = vld [vmem:[#allocation81_spill] sm:$0xff]  ;;  %v18603_v31 = vpop.f32.mrf.mxu1 }
 0x4be   :  { %v18594_v15 = vmul.f32 %v18080_v19, %v20103_v20  ;;  %v8669_v55 = vadd.f32 %v20104_v52, %v7515_v16  ;;  %v9486_v23 = vadd.f32 %v18127_v17, %v9293_v22  ;;  %v9295_v63 = vadd.f32 %v9294_v14, %v18270_v33  ;;  %20106 = vst [vmem:[#allocation102_spill] sm:$0xff] %v18603_v31  ;;  %v20108_v16 = vld [vmem:[#allocation86_spill] sm:$0xff]  ;;  %v20109_v14 = vld [vmem:[#allocation75_spill] sm:$0xff] }
 0x4bf   :  { %v18601_v5 = vmul.f32 %v18074_v58, %v20105_v44  ;;  %v10102_v60 = vadd.f32 %v18527_v62, %v9952_v45  ;;  %v9953_v0 = vadd.f32 %v9825_v46, %v9484_v32  ;;  %v9298_v57 = vpop.f32.mrf.mxu0  ;;  %10788 = vmatmul.mubr.bf16.gmra.mxu0 %v20107_v49  ;;  %v18609_v20 = vmul.f32 %v18080_v19, %v20105_v44  ;;  %v20110_v52 = vld [vmem:[#allocation142_spill] sm:$0xff]  ;;  %v20111_v46 = vld [vmem:[#allocation91_spill] sm:$0xff]  ;;  %v18625_v32 = vpop.f32.mrf.mxu1 }
 0x4c0   :  { %v18613_v17 = vmul.f32 %v18074_v58, %v20108_v16  ;;  %v9956_v33 = vadd.f32 %v9828_v51, %v9486_v23  ;;  %v9488_v22 = vadd.f32 %v20109_v14, %v9295_v63  ;;  %10795 = vmatprep.mubr.bf16.mxu0 %v20110_v52  ;;  %v18619_v45 = vmul.f32 %v18080_v19, %v20108_v16  ;;  %v20113_v44 = vld [vmem:[#allocation171_spill] sm:$0xff] }
 0x4c1   :  { %v18623_v49 = vmul.f32 %v18074_v58, %v20111_v46  ;;  %20112 = vst [vmem:[#allocation106_spill] sm:$0xff] %v18625_v32  ;;  %v18628_v31 = vadd.f32 %v20113_v44, %v8667_v3  ;;  %v7518_v51 = vmul.f32 %v16950_v10, %v20114_v41  ;;  %v7519_v23 = vmul.f32 %v16907_v50, %v20114_v41  ;;  %v9300_v14 = vpop.f32.mrf.mxu0  ;;  %v20115_v16 = vld [vmem:[#allocation175_spill] sm:$0xff]  ;;  %v20116_v44 = vld [vmem:[#allocation134_spill] sm:$0xff] }
 0x4c2   :  { %v9299_v63 = vadd.f32 %v9298_v57, %v18274_v26  ;;  %v18636_v52 = vadd.f32 %v20115_v16, %v8669_v55  ;;  %v10106_v53 = vadd.f32 %v18527_v62, %v9956_v33  ;;  %v9957_v36 = vadd.f32 %v9829_v8, %v9488_v22  ;;  %v20117_v55 = vld [vmem:[#allocation63_spill] sm:$0xff]  ;;  %v18649_v8 = vpop.f32.mrf.mxu1  ;;  %v20119_v22 = vld [vmem:[#allocation150_spill] sm:$0xff] }
 0x4c3   :  { %v9301_v32 = vadd.f32 %v9300_v14, %v18282_v42  ;;  %v10230_v4 = vmax.f32 %v10102_v60, 0.0  ;;  %v10103_v3 = vadd.f32 %v18537_v34, %v9953_v0  ;;  %v9302_v10 = vpop.f32.mrf.mxu0  ;;  %v18644_v50 = vmul.f32 %v18080_v19, %v20111_v46  ;;  %v20118_v42 = vld [vmem:[#allocation7_spill] sm:$0xff] }
 0x4c4   :  { %v9492_v2 = vadd.f32 %v20116_v44, %v9299_v63  ;;  %v10234_v26 = vmax.f32 %v10106_v53, 0.0  ;;  %v10107_v57 = vadd.f32 %v18537_v34, %v9957_v36  ;;  %v9303_v33 = vadd.f32 %v9302_v10, %v18285_v24  ;;  %v20120_v44 = vld [vmem:[#allocation96_spill] sm:$0xff]  ;;  %v20121_v53 = vld [vmem:[#allocation45_spill] sm:$0xff] }
 0x4c5   :  { %v9494_v16 = vadd.f32 %v20117_v55, %v9301_v32  ;;  %v8671_v60 = vadd.f32 %v20118_v42, %v7518_v51  ;;  %v8673_v0 = vadd.f32 %v20119_v22, %v7519_v23  ;;  %v9304_v63 = vpop.f32.mrf.mxu0  ;;  %v18655_v41 = vmul.f32 %v18074_v58, %v20120_v44  ;;  %v20126_v22 = vld [vmem:[#allocation101_spill] sm:$0xff] }
 0x4c6   :  { %v9960_v14 = vadd.f32 %v9832_v21, %v9492_v2  ;;  %v10358_v46 = vpack.c.bf16 %v10234_v26, %v10230_v4  ;;  %v9496_v39 = vadd.f32 %v20121_v53, %v9303_v33  ;;  %v9305_v36 = vadd.f32 %v9304_v63, %v18291_v47  ;;  %v20122_v21 = vld [vmem:[#allocation90_spill] sm:$0xff]  ;;  %v20124_v33 = vld [vmem:[#allocation87_spill] sm:$0xff]  ;;  %v20125_v47 = vld [vmem:[#allocation168_spill] sm:$0xff] }
 0x4c7   :  { %v18661_v24 = vmul.f32 %v18080_v19, %v20120_v44  ;;  %v10231_v32 = vmax.f32 %v10103_v3, 0.0  ;;  %v9961_v23 = vadd.f32 %v18555_v6, %v9494_v16  ;;  %v9308_v2 = vpop.f32.mrf.mxu0  ;;  %10796 = vmatmul.mubr.bf16.gmra.mxu0 %v20122_v21  ;;  %v10235_v10 = vmax.f32 %v10107_v57, 0.0  ;;  %v20123_v4 = vld [vmem:[#allocation46_spill] sm:$0xff]  ;;  %v18674_v3 = vpop.f32.mrf.mxu1  ;;  %v20129_v57 = vld [vmem:[#allocation184_spill] sm:$0xff] }
 0x4c8   :  { %v10110_v51 = vadd.f32 %v18527_v62, %v9960_v14  ;;  %v9964_v55 = vadd.f32 %v18561_v18, %v9496_v39  ;;  %v9498_v26 = vadd.f32 %v20123_v4, %v9305_v36  ;;  %v9309_v42 = vadd.f32 %v9308_v2, %v20124_v33  ;;  %10803 = vmatprep.mubr.bf16.mxu0 %v20125_v47  ;;  %v20127_v14 = vld [vmem:[#allocation177_spill] sm:$0xff]  ;;  %v20128_v16 = vld [vmem:[#allocation178_spill] sm:$0xff]  ;;  %v20131_v33 = vld [vmem:[#allocation47_spill] sm:$0xff] }
 0x4c9   :  { %v18672_v63 = vmul.f32 %v18074_v58, %v20126_v22  ;;  %v18677_v6 = vadd.f32 %v20127_v14, %v8671_v60  ;;  %v18680_v44 = vadd.f32 %v20128_v16, %v8673_v0  ;;  %v9045_v39 = vadd.f32 %v18359_v54, %v20129_v57  ;;  %v9310_v18 = vpop.f32.mrf.mxu0  ;;  %v20130_v36 = vld [vmem:[#allocation41_spill] sm:$0xff] }
 0x4ca   :  { %v10359_v53 = vpack.c.bf16 %v10235_v10, %v10231_v32  ;;  %v18686_v2 = vmul.f32 %v17561_v61, %v20130_v36  ;;  %v10114_v21 = vadd.f32 %v18527_v62, %v9964_v55  ;;  %v9965_v4 = vadd.f32 %v18565_v43, %v9498_v26  ;;  %v18700_v26 = vpop.f32.mrf.mxu1  ;;  %v20133_v57 = vld [vmem:[#allocation89_spill] sm:$0xff] }
 0x4cb   :  { %v9502_v47 = vadd.f32 %v20131_v33, %v9309_v42  ;;  %v18693_v60 = vmul.f32 %v17766_v12, %v20130_v36  ;;  %v10238_v0 = vmax.f32 %v10110_v51, 0.0  ;;  %v10111_v14 = vadd.f32 %v18537_v34, %v9961_v23  ;;  %v9312_v32 = vpop.f32.mrf.mxu0  ;;  %v20132_v42 = vld [vmem:[#allocation183_spill] sm:$0xff]  ;;  %v20134_v23 = vld [vmem:[#allocation148_spill] sm:$0xff] }
 0x4cc   :  { %v9311_v54 = vadd.f32 %v9310_v18, %v18351_v13  ;;  %10876 = vmatprep.mubr.bf16.mxu1 %v10359_v53  ;;  %v10242_v10 = vmax.f32 %v10114_v21, 0.0  ;;  %v10115_v16 = vadd.f32 %v18537_v34, %v9965_v4  ;;  %v9313_v43 = vadd.f32 %v9312_v32, %v18354_v48  ;;  %v20135_v21 = vld [vmem:[#allocation60_spill] sm:$0xff]  ;;  %v20136_v48 = vld [vmem:[#allocation70_spill] sm:$0xff] }
 0x4cd   :  { %v9968_v55 = vadd.f32 %v18569_v25, %v9502_v47  ;;  %10877 = vmatmul.mubr.bf16.vlgmr.msra.gmra.mxu1 %v10358_v46  ;;  %v9043_v36 = vadd.f32 %v20133_v57, %v20132_v42  ;;  %v10063_v51 = vadd.f32 %v18513_v1, %v9045_v39  ;;  %v9049_v13 = vadd.f32 %v18399_v9, %v18500_v59  ;;  %v9314_v53 = vpop.f32.mrf.mxu0  ;;  %v20137_v47 = vld [vmem:[#allocation161_spill] sm:$0xff]  ;;  %v20138_v9 = vld [vmem:[#allocation131_spill] sm:$0xff]  ;;  %v20139_v57 = vld [vmem:[#allocation128_spill] sm:$0xff] }
 0x4ce   :  { %v9504_v18 = vadd.f32 %v20134_v23, %v9311_v54  ;;  %v18710_v4 = vmul.f32 %v17561_v61, %v20135_v21  ;;  %v10362_v25 = vpack.c.bf16 %v10242_v10, %v10238_v0  ;;  %v9506_v46 = vadd.f32 %v20136_v48, %v9313_v43  ;;  %v20140_v10 = vld [vmem:[#allocation180_spill] sm:$0xff]  ;;  %v20141_v23 = vld [vmem:[#allocation173_spill] sm:$0xff]  ;;  %v20143_v48 = vld [vmem:[#allocation126_spill] sm:$0xff] }
 0x4cf   :  { %v9315_v33 = vadd.f32 %v9314_v53, %v18362_v30  ;;  %v9047_v32 = vadd.f32 %v20137_v47, %v18497_v11  ;;  %v10239_v42 = vmax.f32 %v10111_v14, 0.0  ;;  %v9318_v39 = vpop.f32.mrf.mxu0  ;;  %10804 = vmatmul.mubr.bf16.gmra.mxu0 %v20138_v9  ;;  %v10243_v59 = vmax.f32 %v10115_v16, 0.0  ;;  %v18723_v30 = vpop.f32.mrf.mxu1  ;;  %v20142_v14 = vld [vmem:[#allocation94_spill] sm:$0xff]  ;;  %v20145_v9 = vld [vmem:[#allocation155_spill] sm:$0xff] }
 0x4d0   :  { %v9969_v1 = vadd.f32 %v18573_v35, %v9504_v18  ;;  %v10118_v54 = vadd.f32 %v18527_v62, %v9968_v55  ;;  %v9972_v61 = vadd.f32 %v18579_v29, %v9506_v46  ;;  %v9319_v43 = vadd.f32 %v9318_v39, %v20140_v10  ;;  %10811 = vmatprep.mubr.bf16.mxu0 %v20141_v23  ;;  %v20149_v23 = vld [vmem:[#allocation176_spill] sm:$0xff] }
 0x4d1   :  { %v9508_v0 = vadd.f32 %v20139_v57, %v9315_v33  ;;  %v10062_v11 = vadd.f32 %v18507_v56, %v9043_v36  ;;  %v18727_v35 = vadd.f32 %v20142_v14, %v10063_v51  ;;  %v10067_v18 = vadd.f32 %v18521_v27, %v9049_v13  ;;  %v9320_v16 = vpop.f32.mrf.mxu0  ;;  %v20144_v33 = vld [vmem:[#allocation20_spill] sm:$0xff]  ;;  %v18742_v57 = vpop.f32.mrf.mxu1 }
 0x4d2   :  { %v10363_v53 = vpack.c.bf16 %v10243_v59, %v10239_v42  ;;  %v10122_v55 = vadd.f32 %v18527_v62, %v9972_v61  ;;  %v9512_v46 = vadd.f32 %v20143_v48, %v9319_v43  ;;  %v9321_v47 = vadd.f32 %v9320_v16, %v20144_v33  ;;  %v20146_v59 = vld [vmem:[#allocation143_spill] sm:$0xff]  ;;  %v20151_v48 = vld [vmem:[#allocation22_spill] sm:$0xff] }
 0x4d3   :  { %v9973_v29 = vadd.f32 %v18586_v7, %v9508_v0  ;;  %v10066_v39 = vadd.f32 %v18517_v38, %v9047_v32  ;;  %v9055_v56 = vadd.f32 %v20145_v9, %v18636_v52  ;;  %v9947_v36 = vmul.f32 %v17766_v12, %v20135_v21  ;;  %v9322_v51 = vpop.f32.mrf.mxu0  ;;  %v20147_v38 = vld [vmem:[#allocation144_spill] sm:$0xff]  ;;  %v18764_v9 = vpop.f32.mrf.mxu1 }
 0x4d4   :  { %v10119_v27 = vadd.f32 %v18537_v34, %v9969_v1  ;;  %10884 = vmatprep.mubr.bf16.mxu1 %v10363_v53  ;;  %v10246_v13 = vmax.f32 %v10118_v54, 0.0  ;;  %v10250_v42 = vmax.f32 %v10122_v55, 0.0  ;;  %v9514_v61 = vadd.f32 %v20146_v59, %v9321_v47  ;;  %v20148_v21 = vld [vmem:[#allocation8_spill] sm:$0xff]  ;;  %v20154_v47 = vld [vmem:[#allocation23_spill] sm:$0xff] }
 0x4d5   :  { %v10123_v7 = vadd.f32 %v18537_v34, %v9973_v29  ;;  %10885 = vmatmul.mubr.bf16.gmra.mxu1 %v10362_v25  ;;  %v18745_v32 = vadd.f32 %v20147_v38, %v10062_v11  ;;  %v9059_v52 = vadd.f32 %v18494_v37, %v18680_v44  ;;  %v9976_v12 = vadd.f32 %v18590_v40, %v9512_v46  ;;  %v9324_v0 = vpop.f32.mrf.mxu0  ;;  %v20150_v11 = vld [vmem:[#allocation152_spill] sm:$0xff] }
 0x4d6   :  { %v9323_v1 = vadd.f32 %v9322_v51, %v20148_v21  ;;  %v10341_v54 = vmax.f32 %v18727_v35, 0.0  ;;  %v10217_v10 = vadd.f32 %v20142_v14, %v10067_v18  ;;  %v10366_v43 = vpack.c.bf16 %v10250_v42, %v10246_v13  ;;  %v20152_v35 = vld [vmem:[#allocation15_spill] sm:$0xff]  ;;  %v20153_v18 = vld [vmem:[#allocation140_spill] sm:$0xff]  ;;  %v20157_v21 = vld [vmem:[#allocation65_spill] sm:$0xff] }
 0x4d7   :  { %v9325_v25 = vadd.f32 %v9324_v0, %v20149_v23  ;;  %v10247_v16 = vmax.f32 %v10119_v27, 0.0  ;;  %v9977_v53 = vadd.f32 %v18594_v15, %v9514_v61  ;;  %v9328_v29 = vpop.f32.mrf.mxu0  ;;  %10812 = vmatmul.mubr.bf16.gmra.mxu0 %v20151_v48  ;;  %v10251_v37 = vmax.f32 %v10123_v7, 0.0  ;;  %v20155_v7 = vld [vmem:[#allocation146_spill] sm:$0xff]  ;;  %v20158_v23 = vld [vmem:[#allocation153_spill] sm:$0xff] }
 0x4d8   :  { %v9516_v55 = vadd.f32 %v20150_v11, %v9323_v1  ;;  %v18758_v40 = vadd.f32 %v20147_v38, %v10066_v39  ;;  %v10071_v44 = vadd.f32 %v18693_v60, %v9055_v56  ;;  %v9329_v33 = vadd.f32 %v9328_v29, %v20153_v18  ;;  %10819 = vmatprep.mubr.bf16.mxu0 %v20154_v47  ;;  %v20156_v60 = vld [vmem:[#allocation163_spill] sm:$0xff]  ;;  %v18781_v11 = vpop.f32.mrf.mxu1  ;;  %v20160_v48 = vld [vmem:[#allocation133_spill] sm:$0xff] }
 0x4d9   :  { %v9518_v46 = vadd.f32 %v20152_v35, %v9325_v25  ;;  %v10075_v15 = vadd.f32 %v9947_v36, %v9059_v52  ;;  %v10126_v27 = vadd.f32 %v18527_v62, %v9976_v12  ;;  %v9330_v13 = vpop.f32.mrf.mxu0  ;;  %v10367_v42 = vpack.c.bf16 %v10251_v37, %v10247_v16  ;;  %v20159_v16 = vld [vmem:[#allocation9_spill] sm:$0xff]  ;;  %v20161_v35 = vld [vmem:[#allocation88_spill] sm:$0xff] }
 0x4da   :  { %v9980_v51 = vadd.f32 %v18601_v5, %v9516_v55  ;;  %v9522_v59 = vadd.f32 %v20155_v7, %v9329_v33  ;;  %v9331_v56 = vadd.f32 %v9330_v13, %v20156_v60  ;;  %v10345_v61 = vmax.f32 %v10217_v10, 0.0 }
 0x4db   :  { %v9981_v39 = vadd.f32 %v18609_v20, %v9518_v46  ;;  %v9053_v1 = vadd.f32 %v20157_v21, %v18628_v31  ;;  %v9057_v0 = vadd.f32 %v18465_v28, %v18677_v6  ;;  %v10127_v36 = vadd.f32 %v18537_v34, %v9977_v53  ;;  %10892 = vmatprep.mubr.bf16.mxu1 %v10367_v42  ;;  %v9332_v5 = vpop.f32.mrf.mxu0  ;;  %v18794_v42 = vpop.f32.mrf.mxu1  ;;  %v20165_v21 = vld [vmem:[#allocation167_spill] sm:$0xff] }
 0x4dc   :  { %v10130_v52 = vadd.f32 %v18527_v62, %v9980_v51  ;;  %v9984_v20 = vadd.f32 %v18613_v17, %v9522_v59  ;;  %v9524_v25 = vadd.f32 %v20158_v23, %v9331_v56  ;;  %v9333_v10 = vadd.f32 %v9332_v5, %v20159_v16  ;;  %v20162_v51 = vld [vmem:[#allocation10_spill] sm:$0xff] }
 0x4dd   :  { %v10131_v12 = vadd.f32 %v18537_v34, %v9981_v39  ;;  %10893 = vmatmul.mubr.bf16.gmra.mxu1 %v10366_v43  ;;  %v10221_v31 = vadd.f32 %v20142_v14, %v10071_v44  ;;  %v10225_v28 = vadd.f32 %v20142_v14, %v10075_v15  ;;  %v10254_v6 = vmax.f32 %v10126_v27, 0.0  ;;  %v9334_v55 = vpop.f32.mrf.mxu0  ;;  %v20164_v39 = vld [vmem:[#allocation179_spill] sm:$0xff] }
 0x4de   :  { %v10258_v53 = vmax.f32 %v10130_v52, 0.0  ;;  %v9985_v29 = vadd.f32 %v18619_v45, %v9524_v25  ;;  %v9526_v37 = vadd.f32 %v20160_v48, %v9333_v10  ;;  %v9335_v17 = vadd.f32 %v9334_v55, %v20161_v35  ;;  %v20163_v45 = vld [vmem:[#allocation26_spill] sm:$0xff]  ;;  %v20167_v25 = vld [vmem:[#allocation100_spill] sm:$0xff] }
 0x4df   :  { %v10413_v46 = vpack.c.bf16 %v10345_v61, %v10341_v54  ;;  %v10255_v18 = vmax.f32 %v10127_v36, 0.0  ;;  %v10134_v43 = vadd.f32 %v18527_v62, %v9984_v20  ;;  %v9338_v47 = vpop.f32.mrf.mxu0  ;;  %10820 = vmatmul.mubr.bf16.gmra.mxu0 %v20162_v51  ;;  %v10259_v44 = vmax.f32 %v10131_v12, 0.0  ;;  %v20166_v12 = vld [vmem:[#allocation172_spill] sm:$0xff]  ;;  %v20171_v51 = vld [vmem:[#allocation137_spill] sm:$0xff] }
 0x4e0   :  { %v10370_v33 = vpack.c.bf16 %v10258_v53, %v10254_v6  ;;  %v10340_v14 = vmax.f32 %v18745_v32, 0.0  ;;  %v10344_v15 = vmax.f32 %v18758_v40, 0.0  ;;  %v9988_v27 = vadd.f32 %v18623_v49, %v9526_v37  ;;  %v20168_v10 = vld [vmem:[#allocation68_spill] sm:$0xff]  ;;  %v18807_v6 = vpop.f32.mrf.mxu1  ;;  %v20169_v37 = vld [vmem:[#allocation165_spill] sm:$0xff] }
 0x4e1   :  { %v9528_v13 = vadd.f32 %v20163_v45, %v9335_v17  ;;  %10827 = vmatprep.mubr.bf16.mxu0 %v10413_v46  ;;  %v10074_v54 = vadd.f32 %v18710_v4, %v9057_v0  ;;  %v9339_v7 = vadd.f32 %v9338_v47, %v20164_v39  ;;  %v9340_v59 = vpop.f32.mrf.mxu0  ;;  %v10371_v60 = vpack.c.bf16 %v10259_v44, %v10255_v18  ;;  %v20172_v44 = vld [vmem:[#allocation30_spill] sm:$0xff] }
 0x4e2   :  { %v10353_v56 = vmax.f32 %v10225_v28, 0.0  ;;  %v10135_v61 = vadd.f32 %v18537_v34, %v9985_v29  ;;  %v10138_v32 = vadd.f32 %v18527_v62, %v9988_v27  ;;  %v9341_v49 = vadd.f32 %v9340_v59, %v20165_v21 }
 0x4e3   :  { %v9989_v40 = vadd.f32 %v18644_v50, %v9528_v13  ;;  %v10070_v36 = vadd.f32 %v18686_v2, %v9053_v1  ;;  %v10349_v52 = vmax.f32 %v10221_v31, 0.0  ;;  %v10262_v5 = vmax.f32 %v10134_v43, 0.0  ;;  %10900 = vmatprep.mubr.bf16.mxu1 %v10371_v60  ;;  %v9342_v4 = vpop.f32.mrf.mxu0  ;;  %v18820_v13 = vpop.f32.mrf.mxu1 }
 0x4e4   :  { %v9532_v20 = vadd.f32 %v20166_v12, %v9339_v7  ;;  %v10266_v0 = vmax.f32 %v10138_v32, 0.0  ;;  %v9534_v16 = vadd.f32 %v20167_v25, %v9341_v49  ;;  %v9343_v28 = vadd.f32 %v9342_v4, %v20168_v10  ;;  %v20175_v7 = vld [vmem:[#allocation107_spill] sm:$0xff]  ;;  %v20177_v32 = vld [vmem:[#allocation82_spill] sm:$0xff]  ;;  %v20178_v4 = vld [vmem:[#allocation12_spill] sm:$0xff] }
 0x4e5   :  { %v10139_v23 = vadd.f32 %v18537_v34, %v9989_v40  ;;  %10901 = vmatmul.mubr.bf16.gmra.mxu1 %v10370_v33  ;;  %v10412_v50 = vpack.c.bf16 %v10344_v15, %v10340_v14  ;;  %v10224_v53 = vadd.f32 %v20147_v38, %v10074_v54  ;;  %v9344_v1 = vpop.f32.mrf.mxu0  ;;  %v10417_v31 = vpack.c.bf16 %v10353_v56, %v10349_v52  ;;  %v20170_v33 = vld [vmem:[#allocation74_spill] sm:$0xff]  ;;  %v20173_v15 = vld [vmem:[#allocation44_spill] sm:$0xff]  ;;  %v20174_v54 = vld [vmem:[#allocation119_spill] sm:$0xff] }
 0x4e6   :  { %v9992_v2 = vadd.f32 %v18655_v41, %v9532_v20  ;;  %v10263_v55 = vmax.f32 %v10135_v61, 0.0  ;;  %v10374_v29 = vpack.c.bf16 %v10266_v0, %v10262_v5  ;;  %v9536_v35 = vadd.f32 %v20169_v37, %v9343_v28  ;;  %v20176_v61 = vld [vmem:[#allocation11_spill] sm:$0xff]  ;;  %v20180_v10 = vld [vmem:[#allocation80_spill] sm:$0xff]  ;;  %v20181_v28 = vld [vmem:[#allocation138_spill] sm:$0xff] }
 0x4e7   :  { %v10267_v48 = vmax.f32 %v10139_v23, 0.0  ;;  %v10220_v17 = vadd.f32 %v20147_v38, %v10070_v36  ;;  %v9993_v18 = vadd.f32 %v18661_v24, %v9534_v16  ;;  %v9345_v43 = vadd.f32 %v9344_v1, %v20170_v33  ;;  %v9348_v47 = vpop.f32.mrf.mxu0  ;;  %10828 = vmatmul.mubr.bf16.gmra.mxu0 %v10412_v50  ;;  %v20179_v23 = vld [vmem:[#allocation85_spill] sm:$0xff]  ;;  %v18835_v16 = vpop.f32.mrf.mxu1 }
 0x4e8   :  { %v10142_v46 = vadd.f32 %v18527_v62, %v9992_v2  ;;  %v7465_v41 = vmul.f32 %v20172_v44, %v20171_v51  ;;  %v9996_v14 = vadd.f32 %v18672_v63, %v9536_v35  ;;  %v9349_v27 = vadd.f32 %v9348_v47, %v20173_v15  ;;  %10835 = vmatprep.mubr.bf16.mxu0 %v10417_v31  ;;  %v20183_v2 = vld [vmem:[#allocation28_spill] sm:$0xff]  ;;  %v20186_v51 = vld [vmem:[#allocation162_spill] sm:$0xff] }
 0x4e9   :  { %v10375_v45 = vpack.c.bf16 %v10267_v48, %v10263_v55  ;;  %v10352_v38 = vmax.f32 %v10224_v53, 0.0  ;;  %v9538_v39 = vadd.f32 %v20174_v54, %v9345_v43  ;;  %v9869_v24 = vmul.f32 %v18080_v19, %v20126_v22  ;;  %v9350_v60 = vpop.f32.mrf.mxu0  ;;  %v20182_v53 = vld [vmem:[#allocation139_spill] sm:$0xff] }
 0x4ea   :  { %v9872_v59 = vmul.f32 %v18074_v58, %v20175_v7  ;;  %v10146_v56 = vadd.f32 %v18527_v62, %v9996_v14  ;;  %v9542_v63 = vadd.f32 %v20176_v61, %v9349_v27  ;;  %v9351_v40 = vadd.f32 %v9350_v60, %v20177_v32  ;;  %v20190_v61 = vld [vmem:[#allocation116_spill] sm:$0xff] }
 0x4eb   :  { %v9873_v21 = vmul.f32 %v18080_v19, %v20175_v7  ;;  %10908 = vmatprep.mubr.bf16.mxu1 %v10375_v45  ;;  %v10348_v49 = vmax.f32 %v10220_v17, 0.0  ;;  %v10270_v36 = vmax.f32 %v10142_v46, 0.0  ;;  %v10143_v52 = vadd.f32 %v18537_v34, %v9993_v18  ;;  %v9352_v22 = vpop.f32.mrf.mxu0  ;;  %v20184_v17 = vld [vmem:[#allocation69_spill] sm:$0xff]  ;;  %v20185_v18 = vld [vmem:[#allocation111_spill] sm:$0xff]  ;;  %v18858_v7 = vpop.f32.mrf.mxu1 }
 0x4ec   :  { %v9997_v5 = vadd.f32 %v9869_v24, %v9538_v39  ;;  %v10274_v12 = vmax.f32 %v10146_v56, 0.0  ;;  %v10000_v20 = vadd.f32 %v9872_v59, %v9542_v63  ;;  %v9544_v0 = vadd.f32 %v20178_v4, %v9351_v40  ;;  %v20187_v45 = vld [vmem:[#allocation147_spill] sm:$0xff]  ;;  %v20189_v59 = vld [vmem:[#allocation14_spill] sm:$0xff] }
 0x4ed   :  { %v9353_v25 = vadd.f32 %v9352_v22, %v20179_v23  ;;  %10909 = vmatmul.mubr.bf16.gmra.mxu1 %v10374_v29  ;;  %v18839_v50 = vadd.f32 %v20181_v28, %v20180_v10  ;;  %v7468_v1 = vmul.f32 %v20183_v2, %v20182_v53  ;;  %v9354_v55 = vpop.f32.mrf.mxu0  ;;  %v10416_v48 = vpack.c.bf16 %v10352_v38, %v10348_v49  ;;  %v20188_v39 = vld [vmem:[#allocation71_spill] sm:$0xff] }
 0x4ee   :  { %v10147_v31 = vadd.f32 %v18537_v34, %v9997_v5  ;;  %v10378_v37 = vpack.c.bf16 %v10274_v12, %v10270_v36  ;;  %v10001_v35 = vadd.f32 %v9873_v21, %v9544_v0  ;;  %v9876_v29 = vmul.f32 %v18074_v58, %v20185_v18  ;;  %v20191_v36 = vld [vmem:[#allocation18_spill] sm:$0xff]  ;;  %v20192_v5 = vld [vmem:[#allocation13_spill] sm:$0xff] }
 0x4ef   :  { %v9546_v46 = vadd.f32 %v20184_v17, %v9353_v25  ;;  %v10271_v33 = vmax.f32 %v10143_v52, 0.0  ;;  %v10150_v47 = vadd.f32 %v18527_v62, %v10000_v20  ;;  %v9355_v14 = vadd.f32 %v9354_v55, %v20186_v51  ;;  %v9358_v15 = vpop.f32.mrf.mxu0  ;;  %10836 = vmatmul.mubr.bf16.gmra.mxu0 %v10416_v48  ;;  %v20193_v12 = vld [vmem:[#allocation25_spill] sm:$0xff]  ;;  %v20195_v55 = vld [vmem:[#allocation72_spill] sm:$0xff]  ;;  %v20196_v17 = vld [vmem:[#allocation151_spill] sm:$0xff] }
 0x4f0   :  { %v10275_v43 = vmax.f32 %v10147_v31, 0.0  ;;  %v18851_v27 = vmul.f32 %v20172_v44, %v20182_v53  ;;  %v18855_v38 = vmul.f32 %v20183_v2, %v20187_v45  ;;  %v9359_v24 = vadd.f32 %v9358_v15, %v20188_v39  ;;  %v20194_v53 = vld [vmem:[#allocation181_spill] sm:$0xff]  ;;  %v20197_v51 = vld [vmem:[#allocation92_spill] sm:$0xff] }
 0x4f1   :  { %v10004_v54 = vadd.f32 %v9876_v29, %v9546_v46  ;;  %v9548_v60 = vadd.f32 %v20189_v59, %v9355_v14  ;;  %v9877_v56 = vmul.f32 %v18080_v19, %v20185_v18  ;;  %v9880_v63 = vmul.f32 %v18074_v58, %v20190_v61  ;;  %v9360_v32 = vpop.f32.mrf.mxu0  ;;  %v20198_v14 = vld [vmem:[#allocation127_spill] sm:$0xff] }
 0x4f2   :  { %v10379_v40 = vpack.c.bf16 %v10275_v43, %v10271_v33  ;;  %v10151_v21 = vadd.f32 %v18537_v34, %v10001_v35  ;;  %v9552_v52 = vadd.f32 %v20191_v36, %v9359_v24  ;;  %v9361_v22 = vadd.f32 %v9360_v32, %v20192_v5  ;;  %v18878_v35 = vpop.f32.mrf.mxu1  ;;  %v20199_v24 = vld [vmem:[#allocation154_spill] sm:$0xff]  ;;  %v20201_v32 = vld [vmem:[#allocation159_spill] sm:$0xff] }
 0x4f3   :  { %v10154_v49 = vadd.f32 %v18527_v62, %v10004_v54  ;;  %v18870_v20 = vadd.f32 %v20193_v12, %v7465_v41  ;;  %v18874_v4 = vmul.f32 %v20172_v44, %v20187_v45  ;;  %v10278_v0 = vmax.f32 %v10150_v47, 0.0  ;;  %v9362_v25 = vpop.f32.mrf.mxu0  ;;  %v20203_v5 = vld [vmem:[#allocation95_spill] sm:$0xff] }
 0x4f4   :  { %v10005_v23 = vadd.f32 %v9877_v56, %v9548_v60  ;;  %10916 = vmatprep.mubr.bf16.mxu1 %v10379_v40  ;;  %v10008_v28 = vadd.f32 %v9880_v63, %v9552_v52  ;;  %v9554_v31 = vadd.f32 %v20194_v53, %v9361_v22  ;;  %v9363_v48 = vadd.f32 %v9362_v25, %v20195_v55  ;;  %v20200_v56 = vld [vmem:[#allocation78_spill] sm:$0xff]  ;;  %v18902_v36 = vpop.f32.mrf.mxu1 }
 0x4f5   :  { %v10282_v10 = vmax.f32 %v10154_v49, 0.0  ;;  %10917 = vmatmul.mubr.bf16.gmra.mxu1 %v10378_v37  ;;  %v18882_v41 = vmul.f32 %v20183_v2, %v20196_v17  ;;  %v18886_v46 = vmul.f32 %v20172_v44, %v20196_v17  ;;  %v9881_v29 = vmul.f32 %v18080_v19, %v20190_v61  ;;  %v9364_v33 = vpop.f32.mrf.mxu0  ;;  %v20204_v25 = vld [vmem:[#allocation102_spill] sm:$0xff] }
 0x4f6   :  { %v10155_v18 = vadd.f32 %v18537_v34, %v10005_v23  ;;  %v10279_v43 = vmax.f32 %v10151_v21, 0.0  ;;  %v9556_v37 = vadd.f32 %v20197_v51, %v9363_v48  ;;  %v9884_v15 = vmul.f32 %v18074_v58, %v20198_v14  ;;  %v20202_v21 = vld [vmem:[#allocation16_spill] sm:$0xff] }
 0x4f7   :  { %v10382_v47 = vpack.c.bf16 %v10282_v10, %v10278_v0  ;;  %v10158_v54 = vadd.f32 %v18527_v62, %v10008_v28  ;;  %v10009_v39 = vadd.f32 %v9881_v29, %v9554_v31  ;;  %v9365_v59 = vadd.f32 %v9364_v33, %v20199_v24  ;;  %v9368_v60 = vpop.f32.mrf.mxu0  ;;  %v20205_v28 = vld [vmem:[#allocation130_spill] sm:$0xff]  ;;  %v20208_v24 = vld [vmem:[#allocation27_spill] sm:$0xff] }
 0x4f8   :  { %v10283_v45 = vmax.f32 %v10155_v18, 0.0  ;;  %v9186_v63 = vadd.f32 %v20200_v56, %v7468_v1  ;;  %v18899_v61 = vmul.f32 %v20183_v2, %v20201_v32  ;;  %v10012_v40 = vadd.f32 %v9884_v15, %v9556_v37  ;;  %v20206_v31 = vld [vmem:[#allocation158_spill] sm:$0xff] }
 0x4f9   :  { %v9369_v49 = vadd.f32 %v9368_v60, %v20202_v21  ;;  %v18906_v52 = vmul.f32 %v20172_v44, %v20201_v32  ;;  %v9558_v22 = vadd.f32 %v20203_v5, %v9365_v59  ;;  %v9885_v12 = vmul.f32 %v18080_v19, %v20198_v14  ;;  %v9370_v0 = vpop.f32.mrf.mxu0  ;;  %v20207_v37 = vld [vmem:[#allocation106_spill] sm:$0xff]  ;;  %v20209_v59 = vld [vmem:[#allocation160_spill] sm:$0xff] }
 0x4fa   :  { %v10383_v1 = vpack.c.bf16 %v10283_v45, %v10279_v43  ;;  %v10162_v23 = vadd.f32 %v18527_v62, %v10012_v40  ;;  %v9888_v53 = vmul.f32 %v18074_v58, %v20205_v28  ;;  %v9371_v55 = vadd.f32 %v9370_v0, %v20206_v31  ;;  %v18921_v45 = vpop.f32.mrf.mxu1 }
 0x4fb   :  { %v9562_v10 = vadd.f32 %v20204_v25, %v9369_v49  ;;  %v10286_v48 = vmax.f32 %v10158_v54, 0.0  ;;  %v10159_v17 = vadd.f32 %v18537_v34, %v10009_v39  ;;  %v10013_v18 = vadd.f32 %v9885_v12, %v9558_v22  ;;  %v9372_v33 = vpop.f32.mrf.mxu0 }
 0x4fc   :  { %v9889_v29 = vmul.f32 %v18080_v19, %v20205_v28  ;;  %10924 = vmatprep.mubr.bf16.mxu1 %v10383_v1  ;;  %v10290_v51 = vmax.f32 %v10162_v23, 0.0  ;;  %v9564_v14 = vadd.f32 %v20207_v37, %v9371_v55  ;;  %v9373_v15 = vadd.f32 %v9372_v33, %v18839_v50  ;;  %v20211_v1 = vld [vmem:[#allocation108_spill] sm:$0xff]  ;;  %v18947_v28 = vpop.f32.mrf.mxu1  ;;  %v20213_v33 = vld [vmem:[#allocation145_spill] sm:$0xff] }
 0x4fd   :  { %v10016_v43 = vadd.f32 %v9888_v53, %v9562_v10  ;;  %10925 = vmatmul.mubr.bf16.gmra.mxu1 %v10382_v47  ;;  %v9188_v54 = vadd.f32 %v20208_v24, %v18851_v27  ;;  %v18927_v39 = vmul.f32 %v20183_v2, %v20209_v59  ;;  %v18931_v60 = vmul.f32 %v20172_v44, %v20209_v59  ;;  %v9374_v32 = vpop.f32.mrf.mxu0  ;;  %v20210_v47 = vld [vmem:[#allocation141_spill] sm:$0xff] }
 0x4fe   :  { %v10163_v56 = vadd.f32 %v18537_v34, %v10013_v18  ;;  %v10386_v40 = vpack.c.bf16 %v10290_v51, %v10286_v48  ;;  %v10017_v21 = vadd.f32 %v9889_v29, %v9564_v14  ;;  %v9566_v50 = vadd.f32 %v18649_v8, %v9373_v15  ;;  %v20212_v53 = vld [vmem:[#allocation113_spill] sm:$0xff] }
 0x4ff   :  { %v9892_v49 = vmul.f32 %v18074_v58, %v20210_v47  ;;  %v10287_v5 = vmax.f32 %v10159_v17, 0.0  ;;  %v10166_v22 = vadd.f32 %v18527_v62, %v10016_v43  ;;  %v9375_v12 = vadd.f32 %v9374_v32, %v18870_v20  ;;  %v9378_v0 = vpop.f32.mrf.mxu0  ;;  %v20214_v32 = vld [vmem:[#allocation117_spill] sm:$0xff] }
 0x500   :  { %v10291_v27 = vmax.f32 %v10163_v56, 0.0  ;;  %v18941_v23 = vmul.f32 %v20183_v2, %v20211_v1  ;;  %v18945_v25 = vmul.f32 %v20172_v44, %v20211_v1  ;;  %v9379_v8 = vadd.f32 %v9378_v0, %v9186_v63 }
 0x501   :  { %v10020_v10 = vadd.f32 %v9892_v49, %v9566_v50  ;;  %v9190_v31 = vadd.f32 %v20212_v53, %v18855_v38  ;;  %v9568_v55 = vadd.f32 %v18674_v3, %v9375_v12  ;;  %v9893_v20 = vmul.f32 %v18080_v19, %v20210_v47  ;;  %v9380_v48 = vpop.f32.mrf.mxu0  ;;  %v20215_v50 = vld [vmem:[#allocation24_spill] sm:$0xff]  ;;  %v20216_v47 = vld [vmem:[#allocation110_spill] sm:$0xff] }
 0x502   :  { %v10387_v17 = vpack.c.bf16 %v10291_v27, %v10287_v5  ;;  %v9572_v29 = vadd.f32 %v18700_v26, %v9379_v8  ;;  %v9896_v51 = vmul.f32 %v18074_v58, %v20213_v33  ;;  %v9381_v63 = vadd.f32 %v9380_v48, %v9188_v54  ;;  %v18962_v26 = vpop.f32.mrf.mxu1  ;;  %v20218_v53 = vld [vmem:[#allocation104_spill] sm:$0xff] }
 0x503   :  { %v10170_v18 = vadd.f32 %v18527_v62, %v10020_v10  ;;  %v10294_v43 = vmax.f32 %v10166_v22, 0.0  ;;  %v10167_v37 = vadd.f32 %v18537_v34, %v10017_v21  ;;  %v10021_v14 = vadd.f32 %v9893_v20, %v9568_v55  ;;  %v9382_v38 = vpop.f32.mrf.mxu0 }
 0x504   :  { %v9897_v3 = vmul.f32 %v18080_v19, %v20213_v33  ;;  %10932 = vmatprep.mubr.bf16.mxu1 %v10387_v17  ;;  %v10024_v24 = vadd.f32 %v9896_v51, %v9572_v29  ;;  %v9574_v59 = vadd.f32 %v18723_v30, %v9381_v63  ;;  %v9383_v56 = vadd.f32 %v9382_v38, %v9190_v31  ;;  %v18983_v17 = vpop.f32.mrf.mxu1 }
 0x505   :  { %v10298_v15 = vmax.f32 %v10170_v18, 0.0  ;;  %10933 = vmatmul.mubr.bf16.gmra.mxu1 %v10386_v40  ;;  %v9192_v54 = vadd.f32 %v20214_v32, %v18874_v4  ;;  %v9196_v21 = vadd.f32 %v20215_v50, %v18882_v41  ;;  %v18970_v49 = vmul.f32 %v20183_v2, %v20216_v47  ;;  %v9384_v27 = vpop.f32.mrf.mxu0  ;;  %v20217_v40 = vld [vmem:[#allocation157_spill] sm:$0xff]  ;;  %v20221_v50 = vld [vmem:[#allocation122_spill] sm:$0xff] }
 0x506   :  { %v10171_v5 = vadd.f32 %v18537_v34, %v10021_v14  ;;  %v10025_v12 = vadd.f32 %v9897_v3, %v9574_v59  ;;  %v9576_v30 = vadd.f32 %v18742_v57, %v9383_v56  ;;  %v9900_v0 = vmul.f32 %v18074_v58, %v20217_v40  ;;  %v20219_v57 = vld [vmem:[#allocation114_spill] sm:$0xff] }
 0x507   :  { %v10390_v22 = vpack.c.bf16 %v10298_v15, %v10294_v43  ;;  %v10295_v1 = vmax.f32 %v10167_v37, 0.0  ;;  %v10174_v4 = vadd.f32 %v18527_v62, %v10024_v24  ;;  %v9385_v8 = vadd.f32 %v9384_v27, %v9192_v54  ;;  %v9388_v41 = vpop.f32.mrf.mxu0  ;;  %v20220_v37 = vld [vmem:[#allocation79_spill] sm:$0xff]  ;;  %v20223_v27 = vld [vmem:[#allocation149_spill] sm:$0xff] }
 0x508   :  { %v10299_v10 = vmax.f32 %v10171_v5, 0.0  ;;  %v9198_v31 = vadd.f32 %v20218_v53, %v18886_v46  ;;  %v18981_v55 = vmul.f32 %v20172_v44, %v20216_v47  ;;  %v10028_v20 = vadd.f32 %v9900_v0, %v9576_v30  ;;  %v20222_v47 = vld [vmem:[#allocation97_spill] sm:$0xff] }
 0x509   :  { %v9389_v48 = vadd.f32 %v9388_v41, %v9196_v21  ;;  %v9200_v18 = vadd.f32 %v20219_v57, %v18899_v61  ;;  %v9578_v29 = vadd.f32 %v18764_v9, %v9385_v8  ;;  %v9901_v33 = vmul.f32 %v18080_v19, %v20217_v40  ;;  %v9390_v51 = vpop.f32.mrf.mxu0 }
 0x50a   :  { %v10391_v63 = vpack.c.bf16 %v10299_v10, %v10295_v1  ;;  %v10178_v46 = vadd.f32 %v18527_v62, %v10028_v20  ;;  %v9904_v14 = vmul.f32 %v18074_v58, %v20220_v37  ;;  %v9391_v3 = vadd.f32 %v9390_v51, %v9198_v31  ;;  %v20224_v10 = vld [vmem:[#allocation98_spill] sm:$0xff] }
 0x50b   :  { %v9582_v43 = vadd.f32 %v18781_v11, %v9389_v48  ;;  %v10302_v38 = vmax.f32 %v10174_v4, 0.0  ;;  %v10175_v15 = vadd.f32 %v18537_v34, %v10025_v12  ;;  %v10029_v24 = vadd.f32 %v9901_v33, %v9578_v29  ;;  %v9392_v61 = vpop.f32.mrf.mxu0  ;;  %v18998_v11 = vpop.f32.mrf.mxu1 }
 0x50c   :  { %v9905_v9 = vmul.f32 %v18080_v19, %v20220_v37  ;;  %10940 = vmatprep.mubr.bf16.mxu1 %v10391_v63  ;;  %v10306_v59 = vmax.f32 %v10178_v46, 0.0  ;;  %v9584_v32 = vadd.f32 %v18794_v42, %v9391_v3  ;;  %v9393_v54 = vadd.f32 %v9392_v61, %v9200_v18  ;;  %v20227_v37 = vld [vmem:[#allocation166_spill] sm:$0xff] }
 0x50d   :  { %v10032_v56 = vadd.f32 %v9904_v14, %v9582_v43  ;;  %10941 = vmatmul.mubr.bf16.gmra.mxu1 %v10390_v22  ;;  %v9202_v21 = vadd.f32 %v20221_v50, %v18906_v52  ;;  %v9206_v5 = vadd.f32 %v20222_v47, %v18927_v39  ;;  %v7496_v12 = vmul.f32 %v20183_v2, %v20223_v27  ;;  %v9394_v40 = vpop.f32.mrf.mxu0  ;;  %v20225_v39 = vld [vmem:[#allocation29_spill] sm:$0xff]  ;;  %v19017_v18 = vpop.f32.mrf.mxu1  ;;  %v20229_v50 = vld [vmem:[#allocation123_spill] sm:$0xff]  ;;  %v20230_v47 = vld [vmem:[#allocation170_spill] sm:$0xff] }
 0x50e   :  { %v10179_v30 = vadd.f32 %v18537_v34, %v10029_v24  ;;  %v10394_v0 = vpack.c.bf16 %v10306_v59, %v10302_v38  ;;  %v10033_v1 = vadd.f32 %v9905_v9, %v9584_v32  ;;  %v9586_v42 = vadd.f32 %v18807_v6, %v9393_v54  ;;  %v20226_v6 = vld [vmem:[#allocation31_spill] sm:$0xff]  ;;  %v20228_v32 = vld [vmem:[#allocation105_spill] sm:$0xff] }
 0x50f   :  { %v9908_v22 = vmul.f32 %v18074_v58, %v20224_v10  ;;  %v10303_v4 = vmax.f32 %v10175_v15, 0.0  ;;  %v10182_v52 = vadd.f32 %v18527_v62, %v10032_v56  ;;  %v9395_v41 = vadd.f32 %v9394_v40, %v9202_v21  ;;  %v9398_v53 = vpop.f32.mrf.mxu0 }
 0x510   :  { %v10307_v8 = vmax.f32 %v10179_v30, 0.0  ;;  %v9208_v31 = vadd.f32 %v20225_v39, %v18931_v60  ;;  %v19015_v20 = vmul.f32 %v20172_v44, %v20223_v27  ;;  %v9399_v57 = vadd.f32 %v9398_v53, %v9206_v5 }
 0x511   :  { %v10036_v48 = vadd.f32 %v9908_v22, %v9586_v42  ;;  %v9210_v29 = vadd.f32 %v20226_v6, %v18941_v23  ;;  %v9588_v33 = vadd.f32 %v18820_v13, %v9395_v41  ;;  %v9909_v51 = vmul.f32 %v18080_v19, %v20224_v10  ;;  %v9400_v63 = vpop.f32.mrf.mxu0  ;;  %v20231_v42 = vld [vmem:[#allocation120_spill] sm:$0xff] }
 0x512   :  { %v10395_v46 = vpack.c.bf16 %v10307_v8, %v10303_v4  ;;  %v9592_v43 = vadd.f32 %v18835_v16, %v9399_v57  ;;  %v9912_v14 = vmul.f32 %v18074_v58, %v20227_v37  ;;  %v9401_v3 = vadd.f32 %v9400_v63, %v9208_v31  ;;  %v19032_v16 = vpop.f32.mrf.mxu1  ;;  %v20234_v63 = vld [vmem:[#allocation124_spill] sm:$0xff] }
 0x513   :  { %v10186_v60 = vadd.f32 %v18527_v62, %v10036_v48  ;;  %v10310_v38 = vmax.f32 %v10182_v52, 0.0  ;;  %v10183_v15 = vadd.f32 %v18537_v34, %v10033_v1  ;;  %v10037_v24 = vadd.f32 %v9909_v51, %v9588_v33  ;;  %v9402_v23 = vpop.f32.mrf.mxu0 }
 0x514   :  { %v9913_v13 = vmul.f32 %v18080_v19, %v20227_v37  ;;  %10948 = vmatprep.mubr.bf16.mxu1 %v10395_v46  ;;  %v10040_v61 = vadd.f32 %v9912_v14, %v9592_v43  ;;  %v9594_v59 = vadd.f32 %v18858_v7, %v9401_v3  ;;  %v9403_v56 = vadd.f32 %v9402_v23, %v9210_v29  ;;  %v19049_v31 = vpop.f32.mrf.mxu1 }
 0x515   :  { %v10314_v9 = vmax.f32 %v10186_v60, 0.0  ;;  %10949 = vmatmul.mubr.bf16.gmra.mxu1 %v10394_v0  ;;  %v9212_v54 = vadd.f32 %v20228_v32, %v18945_v25  ;;  %v9216_v21 = vadd.f32 %v20229_v50, %v18970_v49  ;;  %v7500_v5 = vmul.f32 %v20183_v2, %v20230_v47  ;;  %v9404_v30 = vpop.f32.mrf.mxu0  ;;  %v20232_v49 = vld [vmem:[#allocation115_spill] sm:$0xff] }
 0x516   :  { %v10187_v27 = vadd.f32 %v18537_v34, %v10037_v24  ;;  %v10041_v1 = vadd.f32 %v9913_v13, %v9594_v59  ;;  %v9596_v7 = vadd.f32 %v18878_v35, %v9403_v56  ;;  %v9916_v0 = vmul.f32 %v18074_v58, %v20231_v42  ;;  %v20233_v35 = vld [vmem:[#allocation33_spill] sm:$0xff]  ;;  %v20235_v13 = vld [vmem:[#allocation35_spill] sm:$0xff]  ;;  %v20237_v59 = vld [vmem:[#allocation42_spill] sm:$0xff] }
 0x517   :  { %v10398_v40 = vpack.c.bf16 %v10314_v9, %v10310_v38  ;;  %v10311_v10 = vmax.f32 %v10183_v15, 0.0  ;;  %v10190_v25 = vadd.f32 %v18527_v62, %v10040_v61  ;;  %v9405_v4 = vadd.f32 %v9404_v30, %v9212_v54  ;;  %v9408_v8 = vpop.f32.mrf.mxu0  ;;  %v20236_v9 = vld [vmem:[#allocation38_spill] sm:$0xff] }
 0x518   :  { %v10315_v22 = vmax.f32 %v10187_v27, 0.0  ;;  %v9218_v52 = vadd.f32 %v20232_v49, %v18981_v55  ;;  %v7501_v41 = vmul.f32 %v20172_v44, %v20230_v47  ;;  %v10044_v53 = vadd.f32 %v9916_v0, %v9596_v7  ;;  %v20238_v27 = vld [vmem:[#allocation156_spill] sm:$0xff] }
 0x519   :  { %v9409_v39 = vadd.f32 %v9408_v8, %v9216_v21  ;;  %v9220_v48 = vadd.f32 %v20233_v35, %v7496_v12  ;;  %v9598_v57 = vadd.f32 %v18902_v36, %v9405_v4  ;;  %v9917_v6 = vmul.f32 %v18080_v19, %v20231_v42  ;;  %v9410_v29 = vpop.f32.mrf.mxu0 }
 0x51a   :  { %v10399_v33 = vpack.c.bf16 %v10315_v22, %v10311_v10  ;;  %v10194_v51 = vadd.f32 %v18527_v62, %v10044_v53  ;;  %v9920_v46 = vmul.f32 %v18074_v58, %v20234_v63  ;;  %v9411_v60 = vadd.f32 %v9410_v29, %v9218_v52 }
 0x51b   :  { %v9602_v55 = vadd.f32 %v18921_v45, %v9409_v39  ;;  %v10318_v43 = vmax.f32 %v10190_v25, 0.0  ;;  %v10191_v37 = vadd.f32 %v18537_v34, %v10041_v1  ;;  %v10045_v14 = vadd.f32 %v9917_v6, %v9598_v57  ;;  %v9412_v12 = vpop.f32.mrf.mxu0  ;;  %v9621_v45 = vpop.f32.mrf.mxu1  ;;  %v20240_v25 = vld [vmem:[#allocation39_spill] sm:$0xff] }
 0x51c   :  { %v9921_v36 = vmul.f32 %v18080_v19, %v20234_v63  ;;  %10956 = vmatprep.mubr.bf16.mxu1 %v10399_v33  ;;  %v10322_v3 = vmax.f32 %v10194_v51, 0.0  ;;  %v9604_v15 = vadd.f32 %v18947_v28, %v9411_v60  ;;  %v9413_v24 = vadd.f32 %v9412_v12, %v9220_v48  ;;  %v20242_v60 = vld [vmem:[#allocation54_spill] sm:$0xff] }
 0x51d   :  { %v10048_v38 = vadd.f32 %v9920_v46, %v9602_v55  ;;  %10957 = vmatmul.mubr.bf16.gmra.mxu1 %v10398_v40  ;;  %v9222_v23 = vadd.f32 %v20235_v13, %v19015_v20  ;;  %v9226_v61 = vadd.f32 %v20236_v9, %v7500_v5  ;;  %v7504_v56 = vmul.f32 %v20183_v2, %v20237_v59  ;;  %v9414_v54 = vpop.f32.mrf.mxu0  ;;  %v20239_v5 = vld [vmem:[#allocation36_spill] sm:$0xff]  ;;  %v9623_v22 = vpop.f32.mrf.mxu1 }
 0x51e   :  { %v10195_v32 = vadd.f32 %v18537_v34, %v10045_v14  ;;  %v10402_v50 = vpack.c.bf16 %v10322_v3, %v10318_v43  ;;  %v10049_v21 = vadd.f32 %v9921_v36, %v9604_v15  ;;  %v9606_v47 = vadd.f32 %v18962_v26, %v9413_v24 }
 0x51f   :  { %v9924_v28 = vmul.f32 %v18074_v58, %v20238_v27  ;;  %v10319_v30 = vmax.f32 %v10191_v37, 0.0  ;;  %v10198_v1 = vadd.f32 %v18527_v62, %v10048_v38  ;;  %v9415_v20 = vadd.f32 %v9414_v54, %v9222_v23  ;;  %v9418_v7 = vpop.f32.mrf.mxu0  ;;  %v20243_v38 = vld [vmem:[#allocation37_spill] sm:$0xff]  ;;  %v20245_v54 = vld [vmem:[#allocation48_spill] sm:$0xff] }
 0x520   :  { %v10323_v40 = vmax.f32 %v10195_v32, 0.0  ;;  %v9228_v42 = vadd.f32 %v20239_v5, %v7501_v41  ;;  %v7505_v2 = vmul.f32 %v20172_v44, %v20237_v59  ;;  %v9419_v10 = vadd.f32 %v9418_v7, %v9226_v61  ;;  %v20241_v41 = vld [vmem:[#allocation17_spill] sm:$0xff]  ;;  %v20244_v59 = vld [vmem:[#allocation40_spill] sm:$0xff] }
 0x521   :  { %v10052_v0 = vadd.f32 %v9924_v28, %v9606_v47  ;;  %v9230_v4 = vadd.f32 %v20240_v25, %v7504_v56  ;;  %v9608_v26 = vadd.f32 %v18983_v17, %v9415_v20  ;;  %v9925_v8 = vmul.f32 %v18080_v19, %v20238_v27  ;;  %v9420_v49 = vpop.f32.mrf.mxu0 }
 0x522   :  { %v10403_v52 = vpack.c.bf16 %v10323_v40, %v10319_v30  ;;  %v9612_v39 = vadd.f32 %v18998_v11, %v9419_v10  ;;  %v9928_v35 = vmul.f32 %v18074_v58, %v20241_v41  ;;  %v9421_v48 = vadd.f32 %v9420_v49, %v9228_v42  ;;  %v9625_v11 = vpop.f32.mrf.mxu1  ;;  %v20246_v30 = vld [vmem:[#allocation32_spill] sm:$0xff]  ;;  %v20248_v10 = vld [vmem:[#allocation58_spill] sm:$0xff] }
 0x523   :  { %v10202_v53 = vadd.f32 %v18527_v62, %v10052_v0  ;;  %v10326_v57 = vmax.f32 %v10198_v1, 0.0  ;;  %v10199_v6 = vadd.f32 %v18537_v34, %v10049_v21  ;;  %v10053_v29 = vadd.f32 %v9925_v8, %v9608_v26  ;;  %v9422_v33 = vpop.f32.mrf.mxu0 }
 0x524   :  { %v9929_v17 = vmul.f32 %v18080_v19, %v20241_v41  ;;  %10964 = vmatprep.mubr.bf16.mxu1 %v10403_v52  ;;  %v10056_v55 = vadd.f32 %v9928_v35, %v9612_v39  ;;  %v9614_v63 = vadd.f32 %v19017_v18, %v9421_v48  ;;  %v9423_v46 = vadd.f32 %v9422_v33, %v9230_v4  ;;  %v9627_v32 = vpop.f32.mrf.mxu1  ;;  %v20249_v4 = vld [vmem:[#allocation49_spill] sm:$0xff] }
 0x525   :  { %v10330_v51 = vmax.f32 %v10202_v53, 0.0  ;;  %10965 = vmatmul.mubr.bf16.gmra.mxu1 %v10402_v50  ;;  %v9232_v43 = vadd.f32 %v20242_v60, %v7505_v2  ;;  %v10203_v37 = vadd.f32 %v18537_v34, %v10053_v29  ;;  %v9424_v14 = vpop.f32.mrf.mxu0  ;;  %v9932_v15 = vmul.f32 %v18074_v58, %v20243_v38  ;;  %v20247_v2 = vld [vmem:[#allocation136_spill] sm:$0xff]  ;;  %v20250_v52 = vld [vmem:[#allocation57_spill] sm:$0xff] }
 0x526   :  { %v10057_v12 = vadd.f32 %v9929_v17, %v9614_v63  ;;  %v9616_v3 = vadd.f32 %v19032_v16, %v9423_v46  ;;  %v10327_v24 = vmax.f32 %v10199_v6, 0.0  ;;  %v10206_v23 = vadd.f32 %v18527_v62, %v10056_v55  ;;  %v20252_v17 = vld [vmem:[#allocation55_spill] sm:$0xff]  ;;  %v20253_v55 = vld [vmem:[#allocation50_spill] sm:$0xff] }
 0x527   :  { %v10406_v36 = vpack.c.bf16 %v10330_v51, %v10326_v57  ;;  %v10331_v13 = vmax.f32 %v10203_v37, 0.0  ;;  %v9425_v18 = vadd.f32 %v9424_v14, %v9232_v43  ;;  %v9428_v9 = vpop.f32.mrf.mxu0  ;;  %v7513_v50 = vmul.f32 %v20172_v44, %v20245_v54  ;;  %v20254_v14 = vld [vmem:[#allocation53_spill] sm:$0xff] }
 0x528   :  { %v10060_v61 = vadd.f32 %v9932_v15, %v9616_v3  ;;  %v9429_v56 = vadd.f32 %v9428_v9, %v20244_v59  ;;  %v9933_v16 = vmul.f32 %v18080_v19, %v20243_v38  ;;  %v10334_v1 = vmax.f32 %v10206_v23, 0.0  ;;  %v9631_v19 = vpop.f32.mrf.mxu1  ;;  %v20255_v38 = vld [vmem:[#allocation135_spill] sm:$0xff] }
 0x529   :  { %v9618_v21 = vadd.f32 %v19049_v31, %v9425_v18  ;;  %v9430_v47 = vpop.f32.mrf.mxu0  ;;  %v10407_v58 = vpack.c.bf16 %v10331_v13, %v10327_v24  ;;  %v10207_v20 = vadd.f32 %v18537_v34, %v10057_v12  ;;  %v9242_v26 = vadd.f32 %v20249_v4, %v7513_v50  ;;  %v20256_v23 = vld [vmem:[#allocation51_spill] sm:$0xff] }
 0x52a   :  { %v10210_v27 = vadd.f32 %v18527_v62, %v10060_v61  ;;  %v9622_v28 = vadd.f32 %v9621_v45, %v9429_v56  ;;  %v9431_v40 = vadd.f32 %v9430_v47, %v20246_v30  ;;  %v9633_v51 = vpop.f32.mrf.mxu1  ;;  %v7521_v63 = vmul.f32 %v20172_v44, %v20253_v55  ;;  %v20257_v44 = vld [vmem:[#allocation66_spill] sm:$0xff]  ;;  %v20258_v56 = vld [vmem:[#allocation56_spill] sm:$0xff] }
 0x52b   :  { %v10061_v7 = vadd.f32 %v9933_v16, %v9618_v21  ;;  %10972 = vmatprep.mubr.bf16.mxu1 %v10407_v58  ;;  %v9432_v5 = vpop.f32.mrf.mxu0  ;;  %v10335_v41 = vmax.f32 %v10207_v20, 0.0  ;;  %v20259_v16 = vld [vmem:[#allocation43_spill] sm:$0xff]  ;;  %v20260_v20 = vld [vmem:[#allocation62_spill] sm:$0xff] }
 0x52c   :  { %v10338_v42 = vmax.f32 %v10210_v27, 0.0  ;;  %v10064_v0 = vadd.f32 %v20247_v2, %v9622_v28  ;;  %v9624_v31 = vadd.f32 %v9623_v22, %v9431_v40  ;;  %v9433_v25 = vadd.f32 %v9432_v5, %v20248_v10  ;;  %v20251_v22 = vld [vmem:[#allocation76_spill] sm:$0xff]  ;;  %v9635_v59 = vpop.f32.mrf.mxu1 }
 0x52d   :  { %10973 = vmatmul.mubr.bf16.gmra.mxu1 %v10406_v36  ;;  %v10211_v45 = vadd.f32 %v18537_v34, %v10061_v7  ;;  %v9434_v8 = vpop.f32.mrf.mxu0 }
 0x52e   :  { %v10410_v49 = vpack.c.bf16 %v10338_v42, %v10334_v1  ;;  %v10065_v53 = vadd.f32 %v20250_v52, %v9624_v31  ;;  %v9626_v39 = vadd.f32 %v9625_v11, %v9433_v25  ;;  %v10214_v48 = vadd.f32 %v18527_v62, %v10064_v0  ;;  %v9637_v5 = vpop.f32.mrf.mxu1  ;;  %v20261_v25 = vld [vmem:[#allocation67_spill] sm:$0xff] }
 0x52f   :  { %v10339_v35 = vmax.f32 %v10211_v45, 0.0  ;;  %v9435_v57 = vadd.f32 %v9434_v8, %v9242_v26  ;;  %v9438_v6 = vpop.f32.mrf.mxu0 }
 0x530   :  { %v10068_v29 = vadd.f32 %v20251_v22, %v9626_v39  ;;  %v9439_v33 = vadd.f32 %v9438_v6, %v20252_v17  ;;  %v10342_v12 = vmax.f32 %v10214_v48, 0.0  ;;  %v10215_v3 = vadd.f32 %v18537_v34, %v10065_v53 }
 0x531   :  { %v9628_v46 = vadd.f32 %v9627_v32, %v9435_v57  ;;  %v9440_v60 = vpop.f32.mrf.mxu0  ;;  %v10411_v43 = vpack.c.bf16 %v10339_v35, %v10335_v41  ;;  %v9252_v32 = vadd.f32 %v20258_v56, %v7521_v63 }
 0x532   :  { %v10218_v37 = vadd.f32 %v18527_v62, %v10068_v29  ;;  %v9632_v11 = vadd.f32 %v9631_v19, %v9439_v33  ;;  %v9441_v36 = vadd.f32 %v9440_v60, %v20254_v14  ;;  %v10343_v27 = vmax.f32 %v10215_v3, 0.0 }
 0x533   :  { %v10069_v15 = vadd.f32 %v20255_v38, %v9628_v46  ;;  %10980 = vmatprep.mubr.bf16.mxu1 %v10411_v43  ;;  %v9442_v24 = vpop.f32.mrf.mxu0 }
 0x534   :  { %v10346_v13 = vmax.f32 %v10218_v37, 0.0  ;;  %v10072_v18 = vadd.f32 %v20256_v23, %v9632_v11  ;;  %v9634_v9 = vadd.f32 %v9633_v51, %v9441_v36  ;;  %v9443_v61 = vadd.f32 %v9442_v24, %v20257_v44 }
 0x535   :  { %10981 = vmatmul.mubr.bf16.gmra.mxu1 %v10410_v49  ;;  %v10219_v54 = vadd.f32 %v18537_v34, %v10069_v15  ;;  %v9444_v50 = vpop.f32.mrf.mxu0 }
 0x536   :  { %v10414_v21 = vpack.c.bf16 %v10346_v13, %v10342_v12  ;;  %v10073_v47 = vadd.f32 %v20259_v16, %v9634_v9  ;;  %v9636_v58 = vadd.f32 %v9635_v59, %v9443_v61  ;;  %v9445_v30 = vadd.f32 %v9444_v50, %v9252_v32  ;;  %v11528_v61 = vld [vmem:[%s19141_s7] ss:$0 sm:$0xff] }
 0x537   :  { %v10347_v28 = vmax.f32 %v10219_v54, 0.0  ;;  %v11577_v40 = vpop.f32.mrf.mxu0  ;;  %v10222_v1 = vadd.f32 %v18527_v62, %v10072_v18 }
 0x538   :  { %v10076_v7 = vadd.f32 %v20260_v20, %v9636_v58  ;;  %v9638_v42 = vadd.f32 %v9637_v5, %v9445_v30  ;;  %v10223_v10 = vadd.f32 %v18537_v34, %v10073_v47 }
 0x539   :  { %v11578_v2 = vpop.f32.mrf.mxu0  ;;  %v10415_v0 = vpack.c.bf16 %v10347_v28, %v10343_v27  ;;  %v10350_v26 = vmax.f32 %v10222_v1, 0.0 }
 0x53a   :  { %v10226_v31 = vadd.f32 %v18527_v62, %v10076_v7  ;;  %v10077_v19 = vadd.f32 %v20261_v25, %v9638_v42  ;;  %v10351_v53 = vmax.f32 %v10223_v10, 0.0  ;;  %v11579_v44 = vadd.f32 %v11578_v2, %v11577_v40 }
 0x53b   :  { %10988 = vmatprep.mubr.bf16.mxu1 %v10415_v0  ;;  %v11580_v4 = vpop.f32.mrf.mxu0 }
 0x53c   :  { %v10354_v45 = vmax.f32 %v10226_v31, 0.0  ;;  %v10227_v8 = vadd.f32 %v18537_v34, %v10077_v19  ;;  %v10718_v54 = vadd.f32 %v11579_v44, %v11528_v61 }
 0x53d   :  { %10989 = vmatmul.mubr.bf16.gmra.mxu1 %v10414_v21  ;;  %v11581_v49 = vpop.f32.mrf.mxu0 }
 0x53e   :  { %v10418_v52 = vpack.c.bf16 %v10354_v45, %v10350_v26  ;;  %v10355_v39 = vmax.f32 %v10227_v8, 0.0 }
 0x53f   :  { %v11583_v41 = vpop.f32.mrf.mxu0 }
 0x540   :  { %v10419_v48 = vpack.c.bf16 %v10355_v39, %v10351_v53 }
 0x541   :  { %v11584_v35 = vpop.f32.mrf.mxu0 }
 0x542   :  { %10996 = vmatprep.mubr.bf16.mxu1 %v10419_v48 }
 0x543   :  { %v11586_v62 = vpop.f32.mrf.mxu0 }
 0x545   :  { %10997 = vmatmul.mubr.bf16.gmra.mxu1 %v10418_v52  ;;  %v11587_v57 = vpop.f32.mrf.mxu0 }
 0x547   :  { %v11589_v6 = vpop.f32.mrf.mxu0 }
 0x549   :  { %v11590_v22 = vpop.f32.mrf.mxu0 }
 0x54b   :  { %v11592_v29 = vpop.f32.mrf.mxu0 }
 0x54d   :  { %v11593_v17 = vpop.f32.mrf.mxu0 }
 0x54f   :  { %v11595_v33 = vpop.f32.mrf.mxu0 }
 0x551   :  { %v11596_v51 = vpop.f32.mrf.mxu0 }
 0x553   :  { %v11598_v55 = vpop.f32.mrf.mxu0 }
 0x555   :  { %v11599_v63 = vpop.f32.mrf.mxu0 }
 0x557   :  { %v11601_v34 = vpop.f32.mrf.mxu0 }
 0x559   :  { %v11602_v46 = vpop.f32.mrf.mxu0 }
 0x55b   :  { %v11604_v60 = vpop.f32.mrf.mxu0 }
 0x55d   :  { %v11605_v43 = vpop.f32.mrf.mxu0 }
 0x55f   :  { %v11607_v37 = vpop.f32.mrf.mxu0 }
 0x561   :  { %v11608_v11 = vpop.f32.mrf.mxu0 }
 0x563   :  { %v11610_v14 = vpop.f32.mrf.mxu0 }
 0x565   :  { %v11611_v36 = vpop.f32.mrf.mxu0 }
 0x567   :  { %v11613_v12 = vpop.f32.mrf.mxu0 }
 0x569   :  { %v11614_v3 = vpop.f32.mrf.mxu0 }
 0x56b   :  { %v11616_v38 = vpop.f32.mrf.mxu0 }
 0x56d   :  { %v11617_v15 = vpop.f32.mrf.mxu0 }
 0x56f   :  { %v11619_v24 = vpop.f32.mrf.mxu0 }
 0x571   :  { %v11620_v13 = vpop.f32.mrf.mxu0 }
 0x573   :  { %v11622_v23 = vpop.f32.mrf.mxu0 }
 0x575   :  { %v11623_v18 = vpop.f32.mrf.mxu0 }
 0x577   :  { %v11625_v9 = vpop.f32.mrf.mxu0 }
 0x579   :  { %v11626_v59 = vpop.f32.mrf.mxu0 }
 0x57b   :  { %v11628_v21 = vpop.f32.mrf.mxu0 }
 0x57d   :  { %v11629_v27 = vpop.f32.mrf.mxu0 }
 0x57f   :  { %v11631_v1 = vpop.f32.mrf.mxu0 }
 0x581   :  { %v11632_v5 = vpop.f32.mrf.mxu0 }
 0x583   :  { %v11634_v0 = vpop.f32.mrf.mxu0 }
 0x585   :  { %v11635_v25 = vpop.f32.mrf.mxu0 }
 0x587   :  { %v11637_v26 = vpop.f32.mrf.mxu0 }
 0x589   :  { %v11638_v49 = vpop.f32.mrf.mxu0 }
 0x58b   :  { %v11640_v39 = vpop.f32.mrf.mxu0 }
 0x58d   :  { %v11689_v56 = vpop.f32.mrf.mxu1  ;;  %v11641_v48 = vpop.f32.mrf.mxu0 }
 0x58f   :  { %v11690_v32 = vpop.f32.mrf.mxu1  ;;  %v11643_v6 = vpop.f32.mrf.mxu0 }
 0x590   :  { %v11691_v50 = vadd.f32 %v11690_v32, %v11689_v56 }
 0x591   :  { %v11692_v16 = vpop.f32.mrf.mxu1  ;;  %v11644_v17 = vpop.f32.mrf.mxu0 }
 0x592   :  { %v10879_v47 = vadd.f32 %v11691_v50, %v10718_v54 }
 0x593   :  { %v11693_v58 = vpop.f32.mrf.mxu1  ;;  %v11646_v55 = vpop.f32.mrf.mxu0 }
 0x594   :  { %11006 = vst.msk [vmem:[#allocation4] sm:$0xff] %vm11005_vm4, %v10879_v47 }
 0x595   :  { %v11695_v28 = vpop.f32.mrf.mxu1  ;;  %v11647_v46 = vpop.f32.mrf.mxu0 }
 0x597   :  { %v11696_v30 = vpop.f32.mrf.mxu1  ;;  %v11649_v37 = vpop.f32.mrf.mxu0 }
 0x599   :  { %v11698_v40 = vpop.f32.mrf.mxu1  ;;  %v11650_v36 = vpop.f32.mrf.mxu0 }
 0x59b   :  { %v11068_v20 = vld [vmem:[#allocation4] sm:$0xff]  ;;  %v11699_v7 = vpop.f32.mrf.mxu1  ;;  %v11652_v38 = vpop.f32.mrf.mxu0 }
 0x59c   :  { %11069 = vst [vmem:[%s19142_s8] sm:$0xff] %v11068_v20 }
 0x59d   :  { %v11701_v42 = vpop.f32.mrf.mxu1  ;;  %v11653_v13 = vpop.f32.mrf.mxu0 }
 0x59f   :  { %v11702_v2 = vpop.f32.mrf.mxu1  ;;  %v11655_v9 = vpop.f32.mrf.mxu0 }
 0x5a1   :  { %v11704_v31 = vpop.f32.mrf.mxu1  ;;  %v11656_v59 = vpop.f32.mrf.mxu0 }
 0x5a3   :  { %v11705_v10 = vpop.f32.mrf.mxu1  ;;  %v11658_v54 = vpop.f32.mrf.mxu0 }
 0x5a5   :  { %v11707_v19 = vpop.f32.mrf.mxu1  ;;  %v11659_v16 = vpop.f32.mrf.mxu0 }
 0x5a7   :  { %v11708_v4 = vpop.f32.mrf.mxu1  ;;  %v11661_v27 = vpop.f32.mrf.mxu0 }
 0x5a9   :  { %v11710_v45 = vpop.f32.mrf.mxu1  ;;  %v11662_v1 = vpop.f32.mrf.mxu0 }
 0x5ab   :  { %v11711_v8 = vpop.f32.mrf.mxu1  ;;  %v11664_v7 = vpop.f32.mrf.mxu0 }
 0x5ad   :  { %v11713_v52 = vpop.f32.mrf.mxu1  ;;  %v11665_v2 = vpop.f32.mrf.mxu0 }
 0x5af   :  { %v11714_v53 = vpop.f32.mrf.mxu1  ;;  %v11667_v10 = vpop.f32.mrf.mxu0 }
 0x5b1   :  { %v11716_v41 = vpop.f32.mrf.mxu1  ;;  %v11668_v4 = vpop.f32.mrf.mxu0 }
 0x5b3   :  { %v11717_v35 = vpop.f32.mrf.mxu1  ;;  %v11670_v8 = vpop.f32.mrf.mxu0 }
 0x5b5   :  { %v11719_v62 = vpop.f32.mrf.mxu1  ;;  %v11671_v53 = vpop.f32.mrf.mxu0 }
 0x5b7   :  { %v11720_v57 = vpop.f32.mrf.mxu1 }
 0x5b9   :  { %v11722_v22 = vpop.f32.mrf.mxu1 }
 0x5bb   :  { %v11723_v29 = vpop.f32.mrf.mxu1 }
 0x5bd   :  { %v11725_v33 = vpop.f32.mrf.mxu1 }
 0x5bf   :  { %v11726_v51 = vpop.f32.mrf.mxu1 }
 0x5c1   :  { %v11728_v63 = vpop.f32.mrf.mxu1 }
 0x5c3   :  { %v11729_v34 = vpop.f32.mrf.mxu1 }
 0x5c5   :  { %v11731_v60 = vpop.f32.mrf.mxu1 }
 0x5c7   :  { %v11732_v43 = vpop.f32.mrf.mxu1 }
 0x5c9   :  { %v11734_v11 = vpop.f32.mrf.mxu1 }
 0x5cb   :  { %v11735_v14 = vpop.f32.mrf.mxu1 }
 0x5cd   :  { %v11737_v12 = vpop.f32.mrf.mxu1 }
 0x5cf   :  { %v11738_v3 = vpop.f32.mrf.mxu1 }
 0x5d1   :  { %v11740_v15 = vpop.f32.mrf.mxu1 }
 0x5d3   :  { %v11741_v24 = vpop.f32.mrf.mxu1 }
 0x5d5   :  { %v11743_v23 = vpop.f32.mrf.mxu1 }
 0x5d7   :  { %v11744_v18 = vpop.f32.mrf.mxu1 }
 0x5d9   :  { %v11746_v44 = vpop.f32.mrf.mxu1 }
 0x5db   :  { %v11747_v61 = vpop.f32.mrf.mxu1 }
 0x5dd   :  { %v11749_v56 = vpop.f32.mrf.mxu1 }
 0x5df   :  { %v11750_v32 = vpop.f32.mrf.mxu1 }
 0x5e1   :  { %v11752_v50 = vpop.f32.mrf.mxu1 }
 0x5e3   :  { %v11753_v21 = vpop.f32.mrf.mxu1 }
 0x5e5   :  { %v11755_v47 = vpop.f32.mrf.mxu1 }
 0x5e7   :  { %v11756_v58 = vpop.f32.mrf.mxu1 }
 0x5e9   :  { %v11758_v28 = vpop.f32.mrf.mxu1 }
 0x5eb   :  { %v11759_v30 = vpop.f32.mrf.mxu1 }
 0x5ed   :  { %v11761_v40 = vpop.f32.mrf.mxu1 }
 0x5ef   :  { %v11762_v20 = vpop.f32.mrf.mxu1 }
 0x5f1   :  { %v11764_v5 = vpop.f32.mrf.mxu1 }
 0x5f3   :  { %v11765_v42 = vpop.f32.mrf.mxu1 }
 0x5f5   :  { %v11767_v0 = vpop.f32.mrf.mxu1 }
 0x5f7   :  { %v11768_v31 = vpop.f32.mrf.mxu1 }
 0x5f9   :  { %v11770_v25 = vpop.f32.mrf.mxu1 }
 0x5fb   :  { %v11771_v19 = vpop.f32.mrf.mxu1 }
 0x5fd   :  { %v11773_v26 = vpop.f32.mrf.mxu1 }
 0x5ff   :  { %v11774_v45 = vpop.f32.mrf.mxu1 }
 0x601   :  { %v11776_v49 = vpop.f32.mrf.mxu1 }
 0x603   :  { %v11777_v52 = vpop.f32.mrf.mxu1 }
 0x605   :  { %v11779_v39 = vpop.f32.mrf.mxu1 }
 0x607   :  { %v11780_v41 = vpop.f32.mrf.mxu1 }
 0x609   :  { %v11782_v35 = vpop.f32.mrf.mxu1 }
 0x60b   :  { %v11783_v48 = vpop.f32.mrf.mxu1 }
 0x60c   :  { %11075 = vsyncpa [#allocation3], 1 }

</bundles_post_ra>
